<compile_context>
chip_gen: v5e
topology: v5e:2x2
jax: 0.10.0
libtpu: 0.0.40
codegen_flags: <defaults>
</compile_context>

<pallas_src>
import jax
import jax.numpy as jnp
from jax.experimental import pallas as pl
from jax.experimental.pallas import tpu as pltpu

# ----------------------------- configuration -------------------------------
V = 16      # vocab size (len(dictionary))
PAD = 1     # dictionary['<pad>']
E = 32      # enc_emb_dim == dec_emb_dim
H = 32      # enc_hid_dim == dec_hid_dim == dec_out_emb_dim (no additional_fc)
B = 2       # batch
S = 8       # source sequence length
T = 8       # target (prev_output_tokens) sequence length
RP = 8      # batch rows padded to one sublane group (rows B..7 are dummies)
NEG_INF = -1e30


# --------------------------- fused forward kernel --------------------------
def _lstm_model_kernel(src_tok_ref, tgt_tok_ref, len_mask_ref, attn_bias_ref,
                       enc_tab_ref, enc_whh_ref,
                       dec_tab_ref, dec_whh_ref, dec_wfeed_ref,
                       w_attn_ref, wa_ctx_ref, fc_w_ref, fc_b_ref,
                       logits_ref, attn_ref,
                       xsrc_ref, xtgt_ref, enc_ref):
    f32 = jnp.float32

    # ---- hoisted per-timestep input projections (one MXU pass per RNN) -----
    # The (V, 4H) tables already contain  emb @ W_ih^T + (b_ih + b_hh)
    # (parameter packing), so one-hot @ table == embedding lookup + input
    # projection + bias.  Results go to VMEM scratch; the recurrences read
    # aligned (8, 4H) slices per step.
    src_tok = src_tok_ref[...]                                   # (S*RP, 1) i32
    onehot_src = (src_tok ==
                  jax.lax.broadcasted_iota(jnp.int32, (S * RP, V), 1)
                  ).astype(f32)                                  # (S*RP, V)
    xsrc_ref[...] = jnp.dot(onehot_src, enc_tab_ref[...],
                            preferred_element_type=f32)          # (S*RP, 4H)

    tgt_tok = tgt_tok_ref[...]                                   # (T*RP, 1) i32
    onehot_tgt = (tgt_tok ==
                  jax.lax.broadcasted_iota(jnp.int32, (T * RP, V), 1)
                  ).astype(f32)                                  # (T*RP, V)
    xtgt_ref[...] = jnp.dot(onehot_tgt, dec_tab_ref[...],
                            preferred_element_type=f32)          # (T*RP, 4H)

    # ------------------------------ encoder ---------------------------------
    enc_whh = enc_whh_ref[...]                                   # (H, 4H)

    def enc_step(t, carry):
        h, c = carry
        r0 = pl.multiple_of(t * RP, RP)
        gates = (xsrc_ref[pl.ds(r0, RP), :]
                 + jnp.dot(h, enc_whh, preferred_element_type=f32))  # (RP, 4H)
        sg = jax.nn.sigmoid(gates)
        th = jnp.tanh(gates)
        c_new = sg[:, H:2 * H] * c + sg[:, 0:H] * th[:, 2 * H:3 * H]
        h_new = sg[:, 3 * H:4 * H] * jnp.tanh(c_new)
        # pack_padded_sequence: state frozen past src_lengths[b];
        # pad_packed_sequence fills outputs with padding_idx * 1.0.
        m = len_mask_ref[t]                                      # (RP, 1)
        h = m * h_new + (1.0 - m) * h
        c = m * c_new + (1.0 - m) * c
        enc_ref[t] = m * h_new + (1.0 - m) * float(PAD)          # (RP, H) slab
        return h, c

    h0 = jnp.zeros((RP, H), f32)
    c0 = jnp.zeros((RP, H), f32)
    h, c = jax.lax.fori_loop(0, S, enc_step, (h0, c0), unroll=True)

    # ------------------------------ decoder ---------------------------------
    # prev_hiddens / prev_cells start from the encoder final state (enc_hid ==
    # dec_hid -> no encoder_hidden_proj); input_feed starts at zeros.
    dec_whh = dec_whh_ref[...]                                   # (H, 4H)
    dec_wfeed = dec_wfeed_ref[...]                               # (H, 4H)
    w_attn = w_attn_ref[...]                                     # (H, 2H)=[W_in|W_out_h]
    wa_ctx = wa_ctx_ref[...]                                     # (H, H)
    fc_w = fc_w_ref[...]                                         # (H, V)
    fc_b = fc_b_ref[...]                                         # (1, V)

    feed = jnp.zeros((RP, H), f32)
    logits_slab = jnp.zeros((RP, T * V), f32)                    # lane-dense slabs,
    attn_slab = jnp.zeros((RP, T * S), f32)                      # stored once at end

    # loop-invariant iotas for the lane placement of per-step outputs
    pv_row = jax.lax.broadcasted_iota(jnp.int32, (V, T * V), 0)
    pv_lane = jax.lax.broadcasted_iota(jnp.int32, (V, T * V), 1)
    lane_ts = jax.lax.broadcasted_iota(jnp.int32, (1, T * S), 1)

    for j in range(T):
        # LSTMCell on [emb ; input_feed]; the concat is replaced by two dots.
        gates = (xtgt_ref[pl.ds(j * RP, RP), :]
                 + jnp.dot(h, dec_whh, preferred_element_type=f32)
                 + jnp.dot(feed, dec_wfeed, preferred_element_type=f32))
        sg = jax.nn.sigmoid(gates)
        th = jnp.tanh(gates)
        c = sg[:, H:2 * H] * c + sg[:, 0:H] * th[:, 2 * H:3 * H]
        h = sg[:, 3 * H:4 * H] * jnp.tanh(c)

        # ---- attention (eval mode, dropout = identity) ----------------------
        # one dot gives input_proj(h) and the h-half of output_proj
        hp = jnp.dot(h, w_attn, preferred_element_type=f32)      # (RP, 2H)
        xp = hp[:, :H]
        h_op = hp[:, H:]
        enc_v = enc_ref[...]                                     # (S, RP, H) from VMEM
        scores = (jnp.sum(enc_v * xp[None, :, :], axis=2, keepdims=True)
                  + attn_bias_ref[...])                          # (S, RP, 1)
        m_s = jnp.max(scores, axis=0, keepdims=True)             # cross-vreg max
        e_s = jnp.exp(scores - m_s)
        denom = jnp.sum(e_s, axis=0, keepdims=True)              # (1, RP, 1)
        attn_g = e_s * pl.reciprocal(denom, approx=True)         # (S, RP, 1)
        ctx = jnp.sum(attn_g * enc_v, axis=0)                    # (RP, H)
        out = jnp.tanh(jnp.dot(ctx, wa_ctx, preferred_element_type=f32) + h_op)
        feed = out                                               # input feed

        # ---- accumulate this step's outputs into the lane-dense slabs -------
        # (off the recurrence's critical chain; single store after the loop)
        logits_j = jnp.dot(out, fc_w, preferred_element_type=f32) + fc_b  # (RP, V)
        place_j = (pv_lane == pv_row + j * V).astype(f32)                 # (V, T*V)
        logits_slab = logits_slab + jnp.dot(logits_j, place_j,
                                            preferred_element_type=f32)
        contrib = attn_g[0] * (lane_ts == j * S).astype(f32)              # (RP, T*S)
        for s in range(1, S):
            contrib = contrib + attn_g[s] * (lane_ts == j * S + s).astype(f32)
        attn_slab = attn_slab + contrib

    logits_ref[...] = logits_slab        # (8, 128): single unmasked vreg store
    attn_ref[...] = attn_slab            # (8, 64):  single store


# ------------------------------ parameters ----------------------------------
def init_params(key):
    """Raw parameters with the same init scheme as the PyTorch module."""
    def uni(k, shape):
        return jax.random.uniform(k, shape, jnp.float32, -0.1, 0.1)

    ks = jax.random.split(key, 12)
    p = {}
    # embeddings (padding row zeroed, as nn.Embedding(padding_idx=...))
    p["enc_emb"] = uni(ks[0], (V, E)).at[PAD].set(0.0)
    p["dec_emb"] = uni(ks[1], (V, E)).at[PAD].set(0.0)
    # encoder LSTM (single layer, unidirectional), gate order i,f,g,o
    p["enc_wih_t"] = uni(ks[2], (4 * H, E)).T                   # (E, 4H)
    p["enc_whh_t"] = uni(ks[3], (4 * H, H)).T                   # (H, 4H)
    p["enc_b"] = (uni(ks[4], (4 * H,)) + uni(ks[5], (4 * H,))).reshape(1, 4 * H)
    # decoder LSTMCell, input = [emb ; input_feed]; split W_ih to avoid concat
    dec_wih_t = uni(ks[6], (4 * H, E + H)).T                    # (E+H, 4H)
    p["dec_wx_t"] = dec_wih_t[:E]                               # (E, 4H)
    p["dec_wfeed_t"] = dec_wih_t[E:]                            # (H, 4H)
    p["dec_whh_t"] = uni(ks[7], (4 * H, H)).T                   # (H, 4H)
    p["dec_b"] = (uni(ks[8], (4 * H,)) + uni(ks[9], (4 * H,))).reshape(1, 4 * H)
    # attention projections (bias=False); split output proj -> [ctx ; h]
    p["attn_in_t"] = uni(ks[10], (H, H)).T
    attn_out_t = uni(ks[11], (H, 2 * H)).T                      # (2H, H)
    p["wa_ctx_t"] = attn_out_t[:H]
    p["wa_h_t"] = attn_out_t[H:]
    # fc_out
    k_fc_w, k_fc_b = jax.random.split(jax.random.fold_in(key, 99))
    p["fc_w_t"] = uni(k_fc_w, (V, H)).T                         # (H, V)
    p["fc_b"] = uni(k_fc_b, (V,)).reshape(1, V)
    return p


def pack_params(p):
    """Parameter-only precompute (hoisted out of the kernel, per review)."""
    return {
        # one-hot @ table == embedding lookup + W_ih projection + both biases
        "enc_tab": jnp.dot(p["enc_emb"], p["enc_wih_t"]) + p["enc_b"],   # (V, 4H)
        "enc_whh": p["enc_whh_t"],                                       # (H, 4H)
        "dec_tab": jnp.dot(p["dec_emb"], p["dec_wx_t"]) + p["dec_b"],    # (V, 4H)
        "dec_whh": p["dec_whh_t"],                                       # (H, 4H)
        "dec_wfeed": p["dec_wfeed_t"],                                   # (H, 4H)
        # attention input_proj and output_proj's h-half share the fresh hidden
        # as LHS -> lane-pack them into a single MXU RHS.
        "w_attn": jnp.concatenate([p["attn_in_t"], p["wa_h_t"]], axis=1),  # (H, 2H)
        "wa_ctx": p["wa_ctx_t"],                                         # (H, H)
        "fc_w": p["fc_w_t"],                                             # (H, V)
        "fc_b": p["fc_b"],                                               # (1, V)
    }


# ------------------------------ full forward --------------------------------
def _rows_padded(tokens):
    """(B, L) tokens -> (L*RP, 1) int32, batch rows at sublane offsets 0..B-1."""
    L = tokens.shape[1]
    slab = jnp.zeros((L, RP), jnp.int32).at[:, :B].set(tokens.T.astype(jnp.int32))
    return slab.reshape(L * RP, 1)


@jax.jit
def lstm_model_forward(packed_params, src_tokens, src_lengths, prev_output_tokens):
    p = packed_params
    # tiny XLA-side layout prep (no gathers): padded time-major token columns,
    # encoder length mask and the attention pad bias (hoisted out of the kernel)
    src_col = _rows_padded(src_tokens)                              # (S*RP, 1)
    tgt_col = _rows_padded(prev_output_tokens)                      # (T*RP, 1)

    t_idx = jnp.arange(S)[:, None]
    r_idx = jnp.arange(RP)[None, :]
    lens = jnp.zeros((RP,), jnp.int32).at[:B].set(src_lengths.astype(jnp.int32))
    len_mask = ((t_idx < lens[None, :]) & (r_idx < B)
                ).astype(jnp.float32)[:, :, None]                   # (S, RP, 1)
    pad_sb = jnp.zeros((S, RP), jnp.bool_).at[:, :B].set((src_tokens == PAD).T)
    attn_bias = jnp.where(pad_sb, NEG_INF, 0.0
                          ).astype(jnp.float32)[:, :, None]         # (S, RP, 1)

    logits_slab, attn_slab = pl.pallas_call(
        _lstm_model_kernel,
        out_shape=(jax.ShapeDtypeStruct((RP, T * V), jnp.float32),   # (8, 128)
                   jax.ShapeDtypeStruct((RP, T * S), jnp.float32)),  # (8, 64)
        scratch_shapes=[
            pltpu.VMEM((S * RP, 4 * H), jnp.float32),   # encoder input proj
            pltpu.VMEM((T * RP, 4 * H), jnp.float32),   # decoder input proj
            pltpu.VMEM((S, RP, H), jnp.float32),        # encoder outputs
        ],
    )(src_col, tgt_col, len_mask, attn_bias,
      p["enc_tab"], p["enc_whh"],
      p["dec_tab"], p["dec_whh"], p["dec_wfeed"],
      p["w_attn"], p["wa_ctx"], p["fc_w"], p["fc_b"])

    # lane-dense slabs already have the (batch, tgt, ...) ordering per lane:
    logits = logits_slab[:B].reshape(B, T, V)
    attn_scores = attn_slab[:B].reshape(B, T, S)   # eval-mode transpose(0, 2) layout
    return logits, attn_scores


# TODO(synk): incremental_state (cached single-step decoding) path is not
# implemented; only the full-sequence, eval-mode forward is reproduced.

if __name__ == "__main__":
    key = jax.random.PRNGKey(0)
    raw = init_params(key)
    params = pack_params(raw)

    k_src, k_tgt = jax.random.split(jax.random.fold_in(key, 7))
    # src lengths sorted descending (pack_padded_sequence, enforce_sorted=True)
    src_lengths = jnp.array([S, S - 2], dtype=jnp.int32)
    src_tokens = jax.random.randint(k_src, (B, S), 2, V).astype(jnp.int32)
    valid = jnp.arange(S)[None, :] < src_lengths[:, None]
    src_tokens = jnp.where(valid, src_tokens, PAD)
    prev_output_tokens = jax.random.randint(k_tgt, (B, T), 2, V).astype(jnp.int32)

    logits, attn = lstm_model_forward(params, src_tokens, src_lengths,
                                      prev_output_tokens)
    jax.block_until_ready((logits, attn))
    assert logits.shape == (B, T, V)
    assert attn.shape == (B, T, S)
    assert bool(jnp.all(jnp.isfinite(logits)))
    assert bool(jnp.all(jnp.isfinite(attn)))
    print("KERNEL_OK")
</pallas_src>

<mosaic_0001>
module attributes {stable_mosaic.version = 11 : i64} {
  func.func @_lstm_model_kernel(%arg0: memref<64x1xi32, #tpu.memory_space<vmem>>, %arg1: memref<64x1xi32, #tpu.memory_space<vmem>>, %arg2: memref<8x8x1xf32, #tpu.memory_space<vmem>>, %arg3: memref<8x8x1xf32, #tpu.memory_space<vmem>>, %arg4: memref<16x128xf32, #tpu.memory_space<vmem>>, %arg5: memref<32x128xf32, #tpu.memory_space<vmem>>, %arg6: memref<16x128xf32, #tpu.memory_space<vmem>>, %arg7: memref<32x128xf32, #tpu.memory_space<vmem>>, %arg8: memref<32x128xf32, #tpu.memory_space<vmem>>, %arg9: memref<32x64xf32, #tpu.memory_space<vmem>>, %arg10: memref<32x32xf32, #tpu.memory_space<vmem>>, %arg11: memref<32x16xf32, #tpu.memory_space<vmem>>, %arg12: memref<1x16xf32, #tpu.memory_space<vmem>>, %arg13: memref<8x128xf32, #tpu.memory_space<vmem>>, %arg14: memref<8x64xf32, #tpu.memory_space<vmem>>, %arg15: memref<64x128xf32, #tpu.memory_space<vmem>>, %arg16: memref<64x128xf32, #tpu.memory_space<vmem>>, %arg17: memref<8x8x32xf32, #tpu.memory_space<vmem>>) attributes {dimension_semantics = [], scalar_prefetch = 0 : i64, scratch_operands = 3 : i64, tpu.core_type = #tpu.core_type<tc>} {
    %c0 = arith.constant 0 : index
    %c0_0 = arith.constant 0 : index
    %0 = vector.load %arg0[%c0, %c0_0] : memref<64x1xi32, #tpu.memory_space<vmem>>, vector<64x1xi32>
    %1 = tpu.iota {dimensions = array<i32: 1>} : vector<64x16xi32>
    %2 = vector.broadcast %0 : vector<64x1xi32> to vector<64x16xi32>
    %3 = arith.cmpi eq, %2, %1 : vector<64x16xi32>
    %4 = arith.extui %3 : vector<64x16xi1> to vector<64x16xi32>
    %5 = arith.sitofp %4 : vector<64x16xi32> to vector<64x16xf32>
    %c0_1 = arith.constant 0 : index
    %c0_2 = arith.constant 0 : index
    %6 = vector.load %arg4[%c0_1, %c0_2] : memref<16x128xf32, #tpu.memory_space<vmem>>, vector<16x128xf32>
    %cst = arith.constant dense<0.000000e+00> : vector<64x128xf32>
    %7 = tpu.matmul %5, %6, %cst {dimension_numbers = #tpu.dot_dimension_numbers<[1], [0], [0], [1], [0, 0, 1, 1], [], []>} : vector<64x16xf32>, vector<16x128xf32>, vector<64x128xf32> -> vector<64x128xf32>
    %c0_3 = arith.constant 0 : index
    %c0_4 = arith.constant 0 : index
    %8 = vector.load %arg15[%c0_3, %c0_4] : memref<64x128xf32, #tpu.memory_space<vmem>>, vector<64x128xf32>
    tpu.vector_store %arg15[%c0_3, %c0_4], %7 {strides = array<i32>} : memref<64x128xf32, #tpu.memory_space<vmem>>, vector<64x128xf32>,
    %c0_5 = arith.constant 0 : index
    %c0_6 = arith.constant 0 : index
    %9 = vector.load %arg1[%c0_5, %c0_6] : memref<64x1xi32, #tpu.memory_space<vmem>>, vector<64x1xi32>
    %10 = tpu.iota {dimensions = array<i32: 1>} : vector<64x16xi32>
    %11 = vector.broadcast %9 : vector<64x1xi32> to vector<64x16xi32>
    %12 = arith.cmpi eq, %11, %10 : vector<64x16xi32>
    %13 = arith.extui %12 : vector<64x16xi1> to vector<64x16xi32>
    %14 = arith.sitofp %13 : vector<64x16xi32> to vector<64x16xf32>
    %c0_7 = arith.constant 0 : index
    %c0_8 = arith.constant 0 : index
    %15 = vector.load %arg6[%c0_7, %c0_8] : memref<16x128xf32, #tpu.memory_space<vmem>>, vector<16x128xf32>
    %cst_9 = arith.constant dense<0.000000e+00> : vector<64x128xf32>
    %16 = tpu.matmul %14, %15, %cst_9 {dimension_numbers = #tpu.dot_dimension_numbers<[1], [0], [0], [1], [0, 0, 1, 1], [], []>} : vector<64x16xf32>, vector<16x128xf32>, vector<64x128xf32> -> vector<64x128xf32>
    %c0_10 = arith.constant 0 : index
    %c0_11 = arith.constant 0 : index
    %17 = vector.load %arg16[%c0_10, %c0_11] : memref<64x128xf32, #tpu.memory_space<vmem>>, vector<64x128xf32>
    tpu.vector_store %arg16[%c0_10, %c0_11], %16 {strides = array<i32>} : memref<64x128xf32, #tpu.memory_space<vmem>>, vector<64x128xf32>,
    %c0_12 = arith.constant 0 : index
    %c0_13 = arith.constant 0 : index
    %18 = vector.load %arg5[%c0_12, %c0_13] : memref<32x128xf32, #tpu.memory_space<vmem>>, vector<32x128xf32>
    %cst_14 = arith.constant 0.000000e+00 : f32
    %19 = vector.broadcast %cst_14 : f32 to vector<8x32xf32>
    %cst_15 = arith.constant 0.000000e+00 : f32
    %20 = vector.broadcast %cst_15 : f32 to vector<8x32xf32>
    %c0_i32 = arith.constant 0 : i32
    %c8_i32 = arith.constant 8 : i32
    %21 = arith.muli %c0_i32, %c8_i32 : i32
    %22 = tpu.assume_multiple %21, 8 : i32
    %23 = arith.index_cast %22 : i32 to index
    %c0_16 = arith.constant 0 : index
    %24 = vector.load %arg15[%23, %c0_16] : memref<64x128xf32, #tpu.memory_space<vmem>>, vector<8x128xf32>
    %cst_17 = arith.constant dense<0.000000e+00> : vector<8x128xf32>
    %25 = tpu.matmul %19, %18, %cst_17 {dimension_numbers = #tpu.dot_dimension_numbers<[1], [0], [0], [1], [0, 0, 1, 1], [], []>} : vector<8x32xf32>, vector<32x128xf32>, vector<8x128xf32> -> vector<8x128xf32>
    %26 = arith.addf %24, %25 : vector<8x128xf32>
    %27 = arith.negf %26 : vector<8x128xf32>
    %28 = math.exp %27 : vector<8x128xf32>
    %cst_18 = arith.constant 1.000000e+00 : f32
    %29 = vector.broadcast %cst_18 : f32 to vector<8x128xf32>
    %30 = arith.addf %29, %28 : vector<8x128xf32>
    %31 = arith.divf %29, %30 : vector<8x128xf32>
    %32 = math.tanh %26 : vector<8x128xf32>
    %33 = vector.extract_strided_slice %31 {offsets = [0, 32], sizes = [8, 32], strides = [1, 1]} : vector<8x128xf32> to vector<8x32xf32>
    %34 = arith.mulf %33, %20 : vector<8x32xf32>
    %35 = vector.extract_strided_slice %31 {offsets = [0, 0], sizes = [8, 32], strides = [1, 1]} : vector<8x128xf32> to vector<8x32xf32>
    %36 = vector.extract_strided_slice %32 {offsets = [0, 64], sizes = [8, 32], strides = [1, 1]} : vector<8x128xf32> to vector<8x32xf32>
    %37 = arith.mulf %35, %36 : vector<8x32xf32>
    %38 = arith.addf %34, %37 : vector<8x32xf32>
    %39 = vector.extract_strided_slice %31 {offsets = [0, 96], sizes = [8, 32], strides = [1, 1]} : vector<8x128xf32> to vector<8x32xf32>
    %40 = math.tanh %38 : vector<8x32xf32>
    %41 = arith.mulf %39, %40 : vector<8x32xf32>
    %42 = arith.index_cast %c0_i32 : i32 to index
    %c0_19 = arith.constant 0 : index
    %c0_20 = arith.constant 0 : index
    %43 = vector.load %arg2[%42, %c0_19, %c0_20] : memref<8x8x1xf32, #tpu.memory_space<vmem>>, vector<1x8x1xf32>
    %44 = vector.shape_cast %43 : vector<1x8x1xf32> to vector<8x1xf32>
    %45 = vector.broadcast %44 : vector<8x1xf32> to vector<8x32xf32>
    %46 = arith.mulf %45, %41 : vector<8x32xf32>
    %cst_21 = arith.constant 1.000000e+00 : f32
    %47 = vector.broadcast %cst_21 : f32 to vector<8x1xf32>
    %48 = arith.subf %47, %44 : vector<8x1xf32>
    %49 = vector.broadcast %48 : vector<8x1xf32> to vector<8x32xf32>
    %50 = arith.mulf %49, %19 : vector<8x32xf32>
    %51 = arith.addf %46, %50 : vector<8x32xf32>
    %52 = vector.broadcast %44 : vector<8x1xf32> to vector<8x32xf32>
    %53 = arith.mulf %52, %38 : vector<8x32xf32>
    %cst_22 = arith.constant 1.000000e+00 : f32
    %54 = vector.broadcast %cst_22 : f32 to vector<8x1xf32>
    %55 = arith.subf %54, %44 : vector<8x1xf32>
    %56 = vector.broadcast %55 : vector<8x1xf32> to vector<8x32xf32>
    %57 = arith.mulf %56, %20 : vector<8x32xf32>
    %58 = arith.addf %53, %57 : vector<8x32xf32>
    %59 = vector.broadcast %44 : vector<8x1xf32> to vector<8x32xf32>
    %60 = arith.mulf %59, %41 : vector<8x32xf32>
    %cst_23 = arith.constant 1.000000e+00 : f32
    %61 = vector.broadcast %cst_23 : f32 to vector<8x1xf32>
    %62 = arith.subf %61, %44 : vector<8x1xf32>
    %cst_24 = arith.constant 1.000000e+00 : f32
    %63 = vector.broadcast %cst_24 : f32 to vector<8x1xf32>
    %64 = arith.mulf %62, %63 : vector<8x1xf32>
    %65 = vector.broadcast %64 : vector<8x1xf32> to vector<8x32xf32>
    %66 = arith.addf %60, %65 : vector<8x32xf32>
    %67 = arith.index_cast %c0_i32 : i32 to index
    %c0_25 = arith.constant 0 : index
    %c0_26 = arith.constant 0 : index
    %68 = vector.load %arg17[%67, %c0_25, %c0_26] : memref<8x8x32xf32, #tpu.memory_space<vmem>>, vector<1x8x32xf32>
    %69 = vector.shape_cast %68 : vector<1x8x32xf32> to vector<8x32xf32>
    %70 = vector.shape_cast %66 : vector<8x32xf32> to vector<1x8x32xf32>
    tpu.vector_store %arg17[%67, %c0_25, %c0_26], %70 {strides = array<i32>} : memref<8x8x32xf32, #tpu.memory_space<vmem>>, vector<1x8x32xf32>,
    %c1_i32 = arith.constant 1 : i32
    %c8_i32_27 = arith.constant 8 : i32
    %71 = arith.muli %c1_i32, %c8_i32_27 : i32
    %72 = tpu.assume_multiple %71, 8 : i32
    %73 = arith.index_cast %72 : i32 to index
    %c0_28 = arith.constant 0 : index
    %74 = vector.load %arg15[%73, %c0_28] : memref<64x128xf32, #tpu.memory_space<vmem>>, vector<8x128xf32>
    %cst_29 = arith.constant dense<0.000000e+00> : vector<8x128xf32>
    %75 = tpu.matmul %51, %18, %cst_29 {dimension_numbers = #tpu.dot_dimension_numbers<[1], [0], [0], [1], [0, 0, 1, 1], [], []>} : vector<8x32xf32>, vector<32x128xf32>, vector<8x128xf32> -> vector<8x128xf32>
    %76 = arith.addf %74, %75 : vector<8x128xf32>
    %77 = arith.negf %76 : vector<8x128xf32>
    %78 = math.exp %77 : vector<8x128xf32>
    %cst_30 = arith.constant 1.000000e+00 : f32
    %79 = vector.broadcast %cst_30 : f32 to vector<8x128xf32>
    %80 = arith.addf %79, %78 : vector<8x128xf32>
    %81 = arith.divf %79, %80 : vector<8x128xf32>
    %82 = math.tanh %76 : vector<8x128xf32>
    %83 = vector.extract_strided_slice %81 {offsets = [0, 32], sizes = [8, 32], strides = [1, 1]} : vector<8x128xf32> to vector<8x32xf32>
    %84 = arith.mulf %83, %58 : vector<8x32xf32>
    %85 = vector.extract_strided_slice %81 {offsets = [0, 0], sizes = [8, 32], strides = [1, 1]} : vector<8x128xf32> to vector<8x32xf32>
    %86 = vector.extract_strided_slice %82 {offsets = [0, 64], sizes = [8, 32], strides = [1, 1]} : vector<8x128xf32> to vector<8x32xf32>
    %87 = arith.mulf %85, %86 : vector<8x32xf32>
    %88 = arith.addf %84, %87 : vector<8x32xf32>
    %89 = vector.extract_strided_slice %81 {offsets = [0, 96], sizes = [8, 32], strides = [1, 1]} : vector<8x128xf32> to vector<8x32xf32>
    %90 = math.tanh %88 : vector<8x32xf32>
    %91 = arith.mulf %89, %90 : vector<8x32xf32>
    %92 = arith.index_cast %c1_i32 : i32 to index
    %c0_31 = arith.constant 0 : index
    %c0_32 = arith.constant 0 : index
    %93 = vector.load %arg2[%92, %c0_31, %c0_32] : memref<8x8x1xf32, #tpu.memory_space<vmem>>, vector<1x8x1xf32>
    %94 = vector.shape_cast %93 : vector<1x8x1xf32> to vector<8x1xf32>
    %95 = vector.broadcast %94 : vector<8x1xf32> to vector<8x32xf32>
    %96 = arith.mulf %95, %91 : vector<8x32xf32>
    %cst_33 = arith.constant 1.000000e+00 : f32
    %97 = vector.broadcast %cst_33 : f32 to vector<8x1xf32>
    %98 = arith.subf %97, %94 : vector<8x1xf32>
    %99 = vector.broadcast %98 : vector<8x1xf32> to vector<8x32xf32>
    %100 = arith.mulf %99, %51 : vector<8x32xf32>
    %101 = arith.addf %96, %100 : vector<8x32xf32>
    %102 = vector.broadcast %94 : vector<8x1xf32> to vector<8x32xf32>
    %103 = arith.mulf %102, %88 : vector<8x32xf32>
    %cst_34 = arith.constant 1.000000e+00 : f32
    %104 = vector.broadcast %cst_34 : f32 to vector<8x1xf32>
    %105 = arith.subf %104, %94 : vector<8x1xf32>
    %106 = vector.broadcast %105 : vector<8x1xf32> to vector<8x32xf32>
    %107 = arith.mulf %106, %58 : vector<8x32xf32>
    %108 = arith.addf %103, %107 : vector<8x32xf32>
    %109 = vector.broadcast %94 : vector<8x1xf32> to vector<8x32xf32>
    %110 = arith.mulf %109, %91 : vector<8x32xf32>
    %cst_35 = arith.constant 1.000000e+00 : f32
    %111 = vector.broadcast %cst_35 : f32 to vector<8x1xf32>
    %112 = arith.subf %111, %94 : vector<8x1xf32>
    %cst_36 = arith.constant 1.000000e+00 : f32
    %113 = vector.broadcast %cst_36 : f32 to vector<8x1xf32>
    %114 = arith.mulf %112, %113 : vector<8x1xf32>
    %115 = vector.broadcast %114 : vector<8x1xf32> to vector<8x32xf32>
    %116 = arith.addf %110, %115 : vector<8x32xf32>
    %117 = arith.index_cast %c1_i32 : i32 to index
    %c0_37 = arith.constant 0 : index
    %c0_38 = arith.constant 0 : index
    %118 = vector.load %arg17[%117, %c0_37, %c0_38] : memref<8x8x32xf32, #tpu.memory_space<vmem>>, vector<1x8x32xf32>
    %119 = vector.shape_cast %118 : vector<1x8x32xf32> to vector<8x32xf32>
    %120 = vector.shape_cast %116 : vector<8x32xf32> to vector<1x8x32xf32>
    tpu.vector_store %arg17[%117, %c0_37, %c0_38], %120 {strides = array<i32>} : memref<8x8x32xf32, #tpu.memory_space<vmem>>, vector<1x8x32xf32>,
    %c2_i32 = arith.constant 2 : i32
    %c8_i32_39 = arith.constant 8 : i32
    %121 = arith.muli %c2_i32, %c8_i32_39 : i32
    %122 = tpu.assume_multiple %121, 8 : i32
    %123 = arith.index_cast %122 : i32 to index
    %c0_40 = arith.constant 0 : index
    %124 = vector.load %arg15[%123, %c0_40] : memref<64x128xf32, #tpu.memory_space<vmem>>, vector<8x128xf32>
    %cst_41 = arith.constant dense<0.000000e+00> : vector<8x128xf32>
    %125 = tpu.matmul %101, %18, %cst_41 {dimension_numbers = #tpu.dot_dimension_numbers<[1], [0], [0], [1], [0, 0, 1, 1], [], []>} : vector<8x32xf32>, vector<32x128xf32>, vector<8x128xf32> -> vector<8x128xf32>
    %126 = arith.addf %124, %125 : vector<8x128xf32>
    %127 = arith.negf %126 : vector<8x128xf32>
    %128 = math.exp %127 : vector<8x128xf32>
    %cst_42 = arith.constant 1.000000e+00 : f32
    %129 = vector.broadcast %cst_42 : f32 to vector<8x128xf32>
    %130 = arith.addf %129, %128 : vector<8x128xf32>
    %131 = arith.divf %129, %130 : vector<8x128xf32>
    %132 = math.tanh %126 : vector<8x128xf32>
    %133 = vector.extract_strided_slice %131 {offsets = [0, 32], sizes = [8, 32], strides = [1, 1]} : vector<8x128xf32> to vector<8x32xf32>
    %134 = arith.mulf %133, %108 : vector<8x32xf32>
    %135 = vector.extract_strided_slice %131 {offsets = [0, 0], sizes = [8, 32], strides = [1, 1]} : vector<8x128xf32> to vector<8x32xf32>
    %136 = vector.extract_strided_slice %132 {offsets = [0, 64], sizes = [8, 32], strides = [1, 1]} : vector<8x128xf32> to vector<8x32xf32>
    %137 = arith.mulf %135, %136 : vector<8x32xf32>
    %138 = arith.addf %134, %137 : vector<8x32xf32>
    %139 = vector.extract_strided_slice %131 {offsets = [0, 96], sizes = [8, 32], strides = [1, 1]} : vector<8x128xf32> to vector<8x32xf32>
    %140 = math.tanh %138 : vector<8x32xf32>
    %141 = arith.mulf %139, %140 : vector<8x32xf32>
    %142 = arith.index_cast %c2_i32 : i32 to index
    %c0_43 = arith.constant 0 : index
    %c0_44 = arith.constant 0 : index
    %143 = vector.load %arg2[%142, %c0_43, %c0_44] : memref<8x8x1xf32, #tpu.memory_space<vmem>>, vector<1x8x1xf32>
    %144 = vector.shape_cast %143 : vector<1x8x1xf32> to vector<8x1xf32>
    %145 = vector.broadcast %144 : vector<8x1xf32> to vector<8x32xf32>
    %146 = arith.mulf %145, %141 : vector<8x32xf32>
    %cst_45 = arith.constant 1.000000e+00 : f32
    %147 = vector.broadcast %cst_45 : f32 to vector<8x1xf32>
    %148 = arith.subf %147, %144 : vector<8x1xf32>
    %149 = vector.broadcast %148 : vector<8x1xf32> to vector<8x32xf32>
    %150 = arith.mulf %149, %101 : vector<8x32xf32>
    %151 = arith.addf %146, %150 : vector<8x32xf32>
    %152 = vector.broadcast %144 : vector<8x1xf32> to vector<8x32xf32>
    %153 = arith.mulf %152, %138 : vector<8x32xf32>
    %cst_46 = arith.constant 1.000000e+00 : f32
    %154 = vector.broadcast %cst_46 : f32 to vector<8x1xf32>
    %155 = arith.subf %154, %144 : vector<8x1xf32>
    %156 = vector.broadcast %155 : vector<8x1xf32> to vector<8x32xf32>
    %157 = arith.mulf %156, %108 : vector<8x32xf32>
    %158 = arith.addf %153, %157 : vector<8x32xf32>
    %159 = vector.broadcast %144 : vector<8x1xf32> to vector<8x32xf32>
    %160 = arith.mulf %159, %141 : vector<8x32xf32>
    %cst_47 = arith.constant 1.000000e+00 : f32
    %161 = vector.broadcast %cst_47 : f32 to vector<8x1xf32>
    %162 = arith.subf %161, %144 : vector<8x1xf32>
    %cst_48 = arith.constant 1.000000e+00 : f32
    %163 = vector.broadcast %cst_48 : f32 to vector<8x1xf32>
    %164 = arith.mulf %162, %163 : vector<8x1xf32>
    %165 = vector.broadcast %164 : vector<8x1xf32> to vector<8x32xf32>
    %166 = arith.addf %160, %165 : vector<8x32xf32>
    %167 = arith.index_cast %c2_i32 : i32 to index
    %c0_49 = arith.constant 0 : index
    %c0_50 = arith.constant 0 : index
    %168 = vector.load %arg17[%167, %c0_49, %c0_50] : memref<8x8x32xf32, #tpu.memory_space<vmem>>, vector<1x8x32xf32>
    %169 = vector.shape_cast %168 : vector<1x8x32xf32> to vector<8x32xf32>
    %170 = vector.shape_cast %166 : vector<8x32xf32> to vector<1x8x32xf32>
    tpu.vector_store %arg17[%167, %c0_49, %c0_50], %170 {strides = array<i32>} : memref<8x8x32xf32, #tpu.memory_space<vmem>>, vector<1x8x32xf32>,
    %c3_i32 = arith.constant 3 : i32
    %c8_i32_51 = arith.constant 8 : i32
    %171 = arith.muli %c3_i32, %c8_i32_51 : i32
    %172 = tpu.assume_multiple %171, 8 : i32
    %173 = arith.index_cast %172 : i32 to index
    %c0_52 = arith.constant 0 : index
    %174 = vector.load %arg15[%173, %c0_52] : memref<64x128xf32, #tpu.memory_space<vmem>>, vector<8x128xf32>
    %cst_53 = arith.constant dense<0.000000e+00> : vector<8x128xf32>
    %175 = tpu.matmul %151, %18, %cst_53 {dimension_numbers = #tpu.dot_dimension_numbers<[1], [0], [0], [1], [0, 0, 1, 1], [], []>} : vector<8x32xf32>, vector<32x128xf32>, vector<8x128xf32> -> vector<8x128xf32>
    %176 = arith.addf %174, %175 : vector<8x128xf32>
    %177 = arith.negf %176 : vector<8x128xf32>
    %178 = math.exp %177 : vector<8x128xf32>
    %cst_54 = arith.constant 1.000000e+00 : f32
    %179 = vector.broadcast %cst_54 : f32 to vector<8x128xf32>
    %180 = arith.addf %179, %178 : vector<8x128xf32>
    %181 = arith.divf %179, %180 : vector<8x128xf32>
    %182 = math.tanh %176 : vector<8x128xf32>
    %183 = vector.extract_strided_slice %181 {offsets = [0, 32], sizes = [8, 32], strides = [1, 1]} : vector<8x128xf32> to vector<8x32xf32>
    %184 = arith.mulf %183, %158 : vector<8x32xf32>
    %185 = vector.extract_strided_slice %181 {offsets = [0, 0], sizes = [8, 32], strides = [1, 1]} : vector<8x128xf32> to vector<8x32xf32>
    %186 = vector.extract_strided_slice %182 {offsets = [0, 64], sizes = [8, 32], strides = [1, 1]} : vector<8x128xf32> to vector<8x32xf32>
    %187 = arith.mulf %185, %186 : vector<8x32xf32>
    %188 = arith.addf %184, %187 : vector<8x32xf32>
    %189 = vector.extract_strided_slice %181 {offsets = [0, 96], sizes = [8, 32], strides = [1, 1]} : vector<8x128xf32> to vector<8x32xf32>
    %190 = math.tanh %188 : vector<8x32xf32>
    %191 = arith.mulf %189, %190 : vector<8x32xf32>
    %192 = arith.index_cast %c3_i32 : i32 to index
    %c0_55 = arith.constant 0 : index
    %c0_56 = arith.constant 0 : index
    %193 = vector.load %arg2[%192, %c0_55, %c0_56] : memref<8x8x1xf32, #tpu.memory_space<vmem>>, vector<1x8x1xf32>
    %194 = vector.shape_cast %193 : vector<1x8x1xf32> to vector<8x1xf32>
    %195 = vector.broadcast %194 : vector<8x1xf32> to vector<8x32xf32>
    %196 = arith.mulf %195, %191 : vector<8x32xf32>
    %cst_57 = arith.constant 1.000000e+00 : f32
    %197 = vector.broadcast %cst_57 : f32 to vector<8x1xf32>
    %198 = arith.subf %197, %194 : vector<8x1xf32>
    %199 = vector.broadcast %198 : vector<8x1xf32> to vector<8x32xf32>
    %200 = arith.mulf %199, %151 : vector<8x32xf32>
    %201 = arith.addf %196, %200 : vector<8x32xf32>
    %202 = vector.broadcast %194 : vector<8x1xf32> to vector<8x32xf32>
    %203 = arith.mulf %202, %188 : vector<8x32xf32>
    %cst_58 = arith.constant 1.000000e+00 : f32
    %204 = vector.broadcast %cst_58 : f32 to vector<8x1xf32>
    %205 = arith.subf %204, %194 : vector<8x1xf32>
    %206 = vector.broadcast %205 : vector<8x1xf32> to vector<8x32xf32>
    %207 = arith.mulf %206, %158 : vector<8x32xf32>
    %208 = arith.addf %203, %207 : vector<8x32xf32>
    %209 = vector.broadcast %194 : vector<8x1xf32> to vector<8x32xf32>
    %210 = arith.mulf %209, %191 : vector<8x32xf32>
    %cst_59 = arith.constant 1.000000e+00 : f32
    %211 = vector.broadcast %cst_59 : f32 to vector<8x1xf32>
    %212 = arith.subf %211, %194 : vector<8x1xf32>
    %cst_60 = arith.constant 1.000000e+00 : f32
    %213 = vector.broadcast %cst_60 : f32 to vector<8x1xf32>
    %214 = arith.mulf %212, %213 : vector<8x1xf32>
    %215 = vector.broadcast %214 : vector<8x1xf32> to vector<8x32xf32>
    %216 = arith.addf %210, %215 : vector<8x32xf32>
    %217 = arith.index_cast %c3_i32 : i32 to index
    %c0_61 = arith.constant 0 : index
    %c0_62 = arith.constant 0 : index
    %218 = vector.load %arg17[%217, %c0_61, %c0_62] : memref<8x8x32xf32, #tpu.memory_space<vmem>>, vector<1x8x32xf32>
    %219 = vector.shape_cast %218 : vector<1x8x32xf32> to vector<8x32xf32>
    %220 = vector.shape_cast %216 : vector<8x32xf32> to vector<1x8x32xf32>
    tpu.vector_store %arg17[%217, %c0_61, %c0_62], %220 {strides = array<i32>} : memref<8x8x32xf32, #tpu.memory_space<vmem>>, vector<1x8x32xf32>,
    %c4_i32 = arith.constant 4 : i32
    %c8_i32_63 = arith.constant 8 : i32
    %221 = arith.muli %c4_i32, %c8_i32_63 : i32
    %222 = tpu.assume_multiple %221, 8 : i32
    %223 = arith.index_cast %222 : i32 to index
    %c0_64 = arith.constant 0 : index
    %224 = vector.load %arg15[%223, %c0_64] : memref<64x128xf32, #tpu.memory_space<vmem>>, vector<8x128xf32>
    %cst_65 = arith.constant dense<0.000000e+00> : vector<8x128xf32>
    %225 = tpu.matmul %201, %18, %cst_65 {dimension_numbers = #tpu.dot_dimension_numbers<[1], [0], [0], [1], [0, 0, 1, 1], [], []>} : vector<8x32xf32>, vector<32x128xf32>, vector<8x128xf32> -> vector<8x128xf32>
    %226 = arith.addf %224, %225 : vector<8x128xf32>
    %227 = arith.negf %226 : vector<8x128xf32>
    %228 = math.exp %227 : vector<8x128xf32>
    %cst_66 = arith.constant 1.000000e+00 : f32
    %229 = vector.broadcast %cst_66 : f32 to vector<8x128xf32>
    %230 = arith.addf %229, %228 : vector<8x128xf32>
    %231 = arith.divf %229, %230 : vector<8x128xf32>
    %232 = math.tanh %226 : vector<8x128xf32>
    %233 = vector.extract_strided_slice %231 {offsets = [0, 32], sizes = [8, 32], strides = [1, 1]} : vector<8x128xf32> to vector<8x32xf32>
    %234 = arith.mulf %233, %208 : vector<8x32xf32>
    %235 = vector.extract_strided_slice %231 {offsets = [0, 0], sizes = [8, 32], strides = [1, 1]} : vector<8x128xf32> to vector<8x32xf32>
    %236 = vector.extract_strided_slice %232 {offsets = [0, 64], sizes = [8, 32], strides = [1, 1]} : vector<8x128xf32> to vector<8x32xf32>
    %237 = arith.mulf %235, %236 : vector<8x32xf32>
    %238 = arith.addf %234, %237 : vector<8x32xf32>
    %239 = vector.extract_strided_slice %231 {offsets = [0, 96], sizes = [8, 32], strides = [1, 1]} : vector<8x128xf32> to vector<8x32xf32>
    %240 = math.tanh %238 : vector<8x32xf32>
    %241 = arith.mulf %239, %240 : vector<8x32xf32>
    %242 = arith.index_cast %c4_i32 : i32 to index
    %c0_67 = arith.constant 0 : index
    %c0_68 = arith.constant 0 : index
    %243 = vector.load %arg2[%242, %c0_67, %c0_68] : memref<8x8x1xf32, #tpu.memory_space<vmem>>, vector<1x8x1xf32>
    %244 = vector.shape_cast %243 : vector<1x8x1xf32> to vector<8x1xf32>
    %245 = vector.broadcast %244 : vector<8x1xf32> to vector<8x32xf32>
    %246 = arith.mulf %245, %241 : vector<8x32xf32>
    %cst_69 = arith.constant 1.000000e+00 : f32
    %247 = vector.broadcast %cst_69 : f32 to vector<8x1xf32>
    %248 = arith.subf %247, %244 : vector<8x1xf32>
    %249 = vector.broadcast %248 : vector<8x1xf32> to vector<8x32xf32>
    %250 = arith.mulf %249, %201 : vector<8x32xf32>
    %251 = arith.addf %246, %250 : vector<8x32xf32>
    %252 = vector.broadcast %244 : vector<8x1xf32> to vector<8x32xf32>
    %253 = arith.mulf %252, %238 : vector<8x32xf32>
    %cst_70 = arith.constant 1.000000e+00 : f32
    %254 = vector.broadcast %cst_70 : f32 to vector<8x1xf32>
    %255 = arith.subf %254, %244 : vector<8x1xf32>
    %256 = vector.broadcast %255 : vector<8x1xf32> to vector<8x32xf32>
    %257 = arith.mulf %256, %208 : vector<8x32xf32>
    %258 = arith.addf %253, %257 : vector<8x32xf32>
    %259 = vector.broadcast %244 : vector<8x1xf32> to vector<8x32xf32>
    %260 = arith.mulf %259, %241 : vector<8x32xf32>
    %cst_71 = arith.constant 1.000000e+00 : f32
    %261 = vector.broadcast %cst_71 : f32 to vector<8x1xf32>
    %262 = arith.subf %261, %244 : vector<8x1xf32>
    %cst_72 = arith.constant 1.000000e+00 : f32
    %263 = vector.broadcast %cst_72 : f32 to vector<8x1xf32>
    %264 = arith.mulf %262, %263 : vector<8x1xf32>
    %265 = vector.broadcast %264 : vector<8x1xf32> to vector<8x32xf32>
    %266 = arith.addf %260, %265 : vector<8x32xf32>
    %267 = arith.index_cast %c4_i32 : i32 to index
    %c0_73 = arith.constant 0 : index
    %c0_74 = arith.constant 0 : index
    %268 = vector.load %arg17[%267, %c0_73, %c0_74] : memref<8x8x32xf32, #tpu.memory_space<vmem>>, vector<1x8x32xf32>
    %269 = vector.shape_cast %268 : vector<1x8x32xf32> to vector<8x32xf32>
    %270 = vector.shape_cast %266 : vector<8x32xf32> to vector<1x8x32xf32>
    tpu.vector_store %arg17[%267, %c0_73, %c0_74], %270 {strides = array<i32>} : memref<8x8x32xf32, #tpu.memory_space<vmem>>, vector<1x8x32xf32>,
    %c5_i32 = arith.constant 5 : i32
    %c8_i32_75 = arith.constant 8 : i32
    %271 = arith.muli %c5_i32, %c8_i32_75 : i32
    %272 = tpu.assume_multiple %271, 8 : i32
    %273 = arith.index_cast %272 : i32 to index
    %c0_76 = arith.constant 0 : index
    %274 = vector.load %arg15[%273, %c0_76] : memref<64x128xf32, #tpu.memory_space<vmem>>, vector<8x128xf32>
    %cst_77 = arith.constant dense<0.000000e+00> : vector<8x128xf32>
    %275 = tpu.matmul %251, %18, %cst_77 {dimension_numbers = #tpu.dot_dimension_numbers<[1], [0], [0], [1], [0, 0, 1, 1], [], []>} : vector<8x32xf32>, vector<32x128xf32>, vector<8x128xf32> -> vector<8x128xf32>
    %276 = arith.addf %274, %275 : vector<8x128xf32>
    %277 = arith.negf %276 : vector<8x128xf32>
    %278 = math.exp %277 : vector<8x128xf32>
    %cst_78 = arith.constant 1.000000e+00 : f32
    %279 = vector.broadcast %cst_78 : f32 to vector<8x128xf32>
    %280 = arith.addf %279, %278 : vector<8x128xf32>
    %281 = arith.divf %279, %280 : vector<8x128xf32>
    %282 = math.tanh %276 : vector<8x128xf32>
    %283 = vector.extract_strided_slice %281 {offsets = [0, 32], sizes = [8, 32], strides = [1, 1]} : vector<8x128xf32> to vector<8x32xf32>
    %284 = arith.mulf %283, %258 : vector<8x32xf32>
    %285 = vector.extract_strided_slice %281 {offsets = [0, 0], sizes = [8, 32], strides = [1, 1]} : vector<8x128xf32> to vector<8x32xf32>
    %286 = vector.extract_strided_slice %282 {offsets = [0, 64], sizes = [8, 32], strides = [1, 1]} : vector<8x128xf32> to vector<8x32xf32>
    %287 = arith.mulf %285, %286 : vector<8x32xf32>
    %288 = arith.addf %284, %287 : vector<8x32xf32>
    %289 = vector.extract_strided_slice %281 {offsets = [0, 96], sizes = [8, 32], strides = [1, 1]} : vector<8x128xf32> to vector<8x32xf32>
    %290 = math.tanh %288 : vector<8x32xf32>
    %291 = arith.mulf %289, %290 : vector<8x32xf32>
    %292 = arith.index_cast %c5_i32 : i32 to index
    %c0_79 = arith.constant 0 : index
    %c0_80 = arith.constant 0 : index
    %293 = vector.load %arg2[%292, %c0_79, %c0_80] : memref<8x8x1xf32, #tpu.memory_space<vmem>>, vector<1x8x1xf32>
    %294 = vector.shape_cast %293 : vector<1x8x1xf32> to vector<8x1xf32>
    %295 = vector.broadcast %294 : vector<8x1xf32> to vector<8x32xf32>
    %296 = arith.mulf %295, %291 : vector<8x32xf32>
    %cst_81 = arith.constant 1.000000e+00 : f32
    %297 = vector.broadcast %cst_81 : f32 to vector<8x1xf32>
    %298 = arith.subf %297, %294 : vector<8x1xf32>
    %299 = vector.broadcast %298 : vector<8x1xf32> to vector<8x32xf32>
    %300 = arith.mulf %299, %251 : vector<8x32xf32>
    %301 = arith.addf %296, %300 : vector<8x32xf32>
    %302 = vector.broadcast %294 : vector<8x1xf32> to vector<8x32xf32>
    %303 = arith.mulf %302, %288 : vector<8x32xf32>
    %cst_82 = arith.constant 1.000000e+00 : f32
    %304 = vector.broadcast %cst_82 : f32 to vector<8x1xf32>
    %305 = arith.subf %304, %294 : vector<8x1xf32>
    %306 = vector.broadcast %305 : vector<8x1xf32> to vector<8x32xf32>
    %307 = arith.mulf %306, %258 : vector<8x32xf32>
    %308 = arith.addf %303, %307 : vector<8x32xf32>
    %309 = vector.broadcast %294 : vector<8x1xf32> to vector<8x32xf32>
    %310 = arith.mulf %309, %291 : vector<8x32xf32>
    %cst_83 = arith.constant 1.000000e+00 : f32
    %311 = vector.broadcast %cst_83 : f32 to vector<8x1xf32>
    %312 = arith.subf %311, %294 : vector<8x1xf32>
    %cst_84 = arith.constant 1.000000e+00 : f32
    %313 = vector.broadcast %cst_84 : f32 to vector<8x1xf32>
    %314 = arith.mulf %312, %313 : vector<8x1xf32>
    %315 = vector.broadcast %314 : vector<8x1xf32> to vector<8x32xf32>
    %316 = arith.addf %310, %315 : vector<8x32xf32>
    %317 = arith.index_cast %c5_i32 : i32 to index
    %c0_85 = arith.constant 0 : index
    %c0_86 = arith.constant 0 : index
    %318 = vector.load %arg17[%317, %c0_85, %c0_86] : memref<8x8x32xf32, #tpu.memory_space<vmem>>, vector<1x8x32xf32>
    %319 = vector.shape_cast %318 : vector<1x8x32xf32> to vector<8x32xf32>
    %320 = vector.shape_cast %316 : vector<8x32xf32> to vector<1x8x32xf32>
    tpu.vector_store %arg17[%317, %c0_85, %c0_86], %320 {strides = array<i32>} : memref<8x8x32xf32, #tpu.memory_space<vmem>>, vector<1x8x32xf32>,
    %c6_i32 = arith.constant 6 : i32
    %c8_i32_87 = arith.constant 8 : i32
    %321 = arith.muli %c6_i32, %c8_i32_87 : i32
    %322 = tpu.assume_multiple %321, 8 : i32
    %323 = arith.index_cast %322 : i32 to index
    %c0_88 = arith.constant 0 : index
    %324 = vector.load %arg15[%323, %c0_88] : memref<64x128xf32, #tpu.memory_space<vmem>>, vector<8x128xf32>
    %cst_89 = arith.constant dense<0.000000e+00> : vector<8x128xf32>
    %325 = tpu.matmul %301, %18, %cst_89 {dimension_numbers = #tpu.dot_dimension_numbers<[1], [0], [0], [1], [0, 0, 1, 1], [], []>} : vector<8x32xf32>, vector<32x128xf32>, vector<8x128xf32> -> vector<8x128xf32>
    %326 = arith.addf %324, %325 : vector<8x128xf32>
    %327 = arith.negf %326 : vector<8x128xf32>
    %328 = math.exp %327 : vector<8x128xf32>
    %cst_90 = arith.constant 1.000000e+00 : f32
    %329 = vector.broadcast %cst_90 : f32 to vector<8x128xf32>
    %330 = arith.addf %329, %328 : vector<8x128xf32>
    %331 = arith.divf %329, %330 : vector<8x128xf32>
    %332 = math.tanh %326 : vector<8x128xf32>
    %333 = vector.extract_strided_slice %331 {offsets = [0, 32], sizes = [8, 32], strides = [1, 1]} : vector<8x128xf32> to vector<8x32xf32>
    %334 = arith.mulf %333, %308 : vector<8x32xf32>
    %335 = vector.extract_strided_slice %331 {offsets = [0, 0], sizes = [8, 32], strides = [1, 1]} : vector<8x128xf32> to vector<8x32xf32>
    %336 = vector.extract_strided_slice %332 {offsets = [0, 64], sizes = [8, 32], strides = [1, 1]} : vector<8x128xf32> to vector<8x32xf32>
    %337 = arith.mulf %335, %336 : vector<8x32xf32>
    %338 = arith.addf %334, %337 : vector<8x32xf32>
    %339 = vector.extract_strided_slice %331 {offsets = [0, 96], sizes = [8, 32], strides = [1, 1]} : vector<8x128xf32> to vector<8x32xf32>
    %340 = math.tanh %338 : vector<8x32xf32>
    %341 = arith.mulf %339, %340 : vector<8x32xf32>
    %342 = arith.index_cast %c6_i32 : i32 to index
    %c0_91 = arith.constant 0 : index
    %c0_92 = arith.constant 0 : index
    %343 = vector.load %arg2[%342, %c0_91, %c0_92] : memref<8x8x1xf32, #tpu.memory_space<vmem>>, vector<1x8x1xf32>
    %344 = vector.shape_cast %343 : vector<1x8x1xf32> to vector<8x1xf32>
    %345 = vector.broadcast %344 : vector<8x1xf32> to vector<8x32xf32>
    %346 = arith.mulf %345, %341 : vector<8x32xf32>
    %cst_93 = arith.constant 1.000000e+00 : f32
    %347 = vector.broadcast %cst_93 : f32 to vector<8x1xf32>
    %348 = arith.subf %347, %344 : vector<8x1xf32>
    %349 = vector.broadcast %348 : vector<8x1xf32> to vector<8x32xf32>
    %350 = arith.mulf %349, %301 : vector<8x32xf32>
    %351 = arith.addf %346, %350 : vector<8x32xf32>
    %352 = vector.broadcast %344 : vector<8x1xf32> to vector<8x32xf32>
    %353 = arith.mulf %352, %338 : vector<8x32xf32>
    %cst_94 = arith.constant 1.000000e+00 : f32
    %354 = vector.broadcast %cst_94 : f32 to vector<8x1xf32>
    %355 = arith.subf %354, %344 : vector<8x1xf32>
    %356 = vector.broadcast %355 : vector<8x1xf32> to vector<8x32xf32>
    %357 = arith.mulf %356, %308 : vector<8x32xf32>
    %358 = arith.addf %353, %357 : vector<8x32xf32>
    %359 = vector.broadcast %344 : vector<8x1xf32> to vector<8x32xf32>
    %360 = arith.mulf %359, %341 : vector<8x32xf32>
    %cst_95 = arith.constant 1.000000e+00 : f32
    %361 = vector.broadcast %cst_95 : f32 to vector<8x1xf32>
    %362 = arith.subf %361, %344 : vector<8x1xf32>
    %cst_96 = arith.constant 1.000000e+00 : f32
    %363 = vector.broadcast %cst_96 : f32 to vector<8x1xf32>
    %364 = arith.mulf %362, %363 : vector<8x1xf32>
    %365 = vector.broadcast %364 : vector<8x1xf32> to vector<8x32xf32>
    %366 = arith.addf %360, %365 : vector<8x32xf32>
    %367 = arith.index_cast %c6_i32 : i32 to index
    %c0_97 = arith.constant 0 : index
    %c0_98 = arith.constant 0 : index
    %368 = vector.load %arg17[%367, %c0_97, %c0_98] : memref<8x8x32xf32, #tpu.memory_space<vmem>>, vector<1x8x32xf32>
    %369 = vector.shape_cast %368 : vector<1x8x32xf32> to vector<8x32xf32>
    %370 = vector.shape_cast %366 : vector<8x32xf32> to vector<1x8x32xf32>
    tpu.vector_store %arg17[%367, %c0_97, %c0_98], %370 {strides = array<i32>} : memref<8x8x32xf32, #tpu.memory_space<vmem>>, vector<1x8x32xf32>,
    %c7_i32 = arith.constant 7 : i32
    %c8_i32_99 = arith.constant 8 : i32
    %371 = arith.muli %c7_i32, %c8_i32_99 : i32
    %372 = tpu.assume_multiple %371, 8 : i32
    %373 = arith.index_cast %372 : i32 to index
    %c0_100 = arith.constant 0 : index
    %374 = vector.load %arg15[%373, %c0_100] : memref<64x128xf32, #tpu.memory_space<vmem>>, vector<8x128xf32>
    %cst_101 = arith.constant dense<0.000000e+00> : vector<8x128xf32>
    %375 = tpu.matmul %351, %18, %cst_101 {dimension_numbers = #tpu.dot_dimension_numbers<[1], [0], [0], [1], [0, 0, 1, 1], [], []>} : vector<8x32xf32>, vector<32x128xf32>, vector<8x128xf32> -> vector<8x128xf32>
    %376 = arith.addf %374, %375 : vector<8x128xf32>
    %377 = arith.negf %376 : vector<8x128xf32>
    %378 = math.exp %377 : vector<8x128xf32>
    %cst_102 = arith.constant 1.000000e+00 : f32
    %379 = vector.broadcast %cst_102 : f32 to vector<8x128xf32>
    %380 = arith.addf %379, %378 : vector<8x128xf32>
    %381 = arith.divf %379, %380 : vector<8x128xf32>
    %382 = math.tanh %376 : vector<8x128xf32>
    %383 = vector.extract_strided_slice %381 {offsets = [0, 32], sizes = [8, 32], strides = [1, 1]} : vector<8x128xf32> to vector<8x32xf32>
    %384 = arith.mulf %383, %358 : vector<8x32xf32>
    %385 = vector.extract_strided_slice %381 {offsets = [0, 0], sizes = [8, 32], strides = [1, 1]} : vector<8x128xf32> to vector<8x32xf32>
    %386 = vector.extract_strided_slice %382 {offsets = [0, 64], sizes = [8, 32], strides = [1, 1]} : vector<8x128xf32> to vector<8x32xf32>
    %387 = arith.mulf %385, %386 : vector<8x32xf32>
    %388 = arith.addf %384, %387 : vector<8x32xf32>
    %389 = vector.extract_strided_slice %381 {offsets = [0, 96], sizes = [8, 32], strides = [1, 1]} : vector<8x128xf32> to vector<8x32xf32>
    %390 = math.tanh %388 : vector<8x32xf32>
    %391 = arith.mulf %389, %390 : vector<8x32xf32>
    %392 = arith.index_cast %c7_i32 : i32 to index
    %c0_103 = arith.constant 0 : index
    %c0_104 = arith.constant 0 : index
    %393 = vector.load %arg2[%392, %c0_103, %c0_104] : memref<8x8x1xf32, #tpu.memory_space<vmem>>, vector<1x8x1xf32>
    %394 = vector.shape_cast %393 : vector<1x8x1xf32> to vector<8x1xf32>
    %395 = vector.broadcast %394 : vector<8x1xf32> to vector<8x32xf32>
    %396 = arith.mulf %395, %391 : vector<8x32xf32>
    %cst_105 = arith.constant 1.000000e+00 : f32
    %397 = vector.broadcast %cst_105 : f32 to vector<8x1xf32>
    %398 = arith.subf %397, %394 : vector<8x1xf32>
    %399 = vector.broadcast %398 : vector<8x1xf32> to vector<8x32xf32>
    %400 = arith.mulf %399, %351 : vector<8x32xf32>
    %401 = arith.addf %396, %400 : vector<8x32xf32>
    %402 = vector.broadcast %394 : vector<8x1xf32> to vector<8x32xf32>
    %403 = arith.mulf %402, %388 : vector<8x32xf32>
    %cst_106 = arith.constant 1.000000e+00 : f32
    %404 = vector.broadcast %cst_106 : f32 to vector<8x1xf32>
    %405 = arith.subf %404, %394 : vector<8x1xf32>
    %406 = vector.broadcast %405 : vector<8x1xf32> to vector<8x32xf32>
    %407 = arith.mulf %406, %358 : vector<8x32xf32>
    %408 = arith.addf %403, %407 : vector<8x32xf32>
    %409 = vector.broadcast %394 : vector<8x1xf32> to vector<8x32xf32>
    %410 = arith.mulf %409, %391 : vector<8x32xf32>
    %cst_107 = arith.constant 1.000000e+00 : f32
    %411 = vector.broadcast %cst_107 : f32 to vector<8x1xf32>
    %412 = arith.subf %411, %394 : vector<8x1xf32>
    %cst_108 = arith.constant 1.000000e+00 : f32
    %413 = vector.broadcast %cst_108 : f32 to vector<8x1xf32>
    %414 = arith.mulf %412, %413 : vector<8x1xf32>
    %415 = vector.broadcast %414 : vector<8x1xf32> to vector<8x32xf32>
    %416 = arith.addf %410, %415 : vector<8x32xf32>
    %417 = arith.index_cast %c7_i32 : i32 to index
    %c0_109 = arith.constant 0 : index
    %c0_110 = arith.constant 0 : index
    %418 = vector.load %arg17[%417, %c0_109, %c0_110] : memref<8x8x32xf32, #tpu.memory_space<vmem>>, vector<1x8x32xf32>
    %419 = vector.shape_cast %418 : vector<1x8x32xf32> to vector<8x32xf32>
    %420 = vector.shape_cast %416 : vector<8x32xf32> to vector<1x8x32xf32>
    tpu.vector_store %arg17[%417, %c0_109, %c0_110], %420 {strides = array<i32>} : memref<8x8x32xf32, #tpu.memory_space<vmem>>, vector<1x8x32xf32>,
    %c8_i32_111 = arith.constant 8 : i32
    %c0_112 = arith.constant 0 : index
    %c0_113 = arith.constant 0 : index
    %421 = vector.load %arg7[%c0_112, %c0_113] : memref<32x128xf32, #tpu.memory_space<vmem>>, vector<32x128xf32>
    %c0_114 = arith.constant 0 : index
    %c0_115 = arith.constant 0 : index
    %422 = vector.load %arg8[%c0_114, %c0_115] : memref<32x128xf32, #tpu.memory_space<vmem>>, vector<32x128xf32>
    %c0_116 = arith.constant 0 : index
    %c0_117 = arith.constant 0 : index
    %423 = vector.load %arg9[%c0_116, %c0_117] : memref<32x64xf32, #tpu.memory_space<vmem>>, vector<32x64xf32>
    %c0_118 = arith.constant 0 : index
    %c0_119 = arith.constant 0 : index
    %424 = vector.load %arg10[%c0_118, %c0_119] : memref<32x32xf32, #tpu.memory_space<vmem>>, vector<32x32xf32>
    %c0_120 = arith.constant 0 : index
    %c0_121 = arith.constant 0 : index
    %425 = vector.load %arg11[%c0_120, %c0_121] : memref<32x16xf32, #tpu.memory_space<vmem>>, vector<32x16xf32>
    %c0_122 = arith.constant 0 : index
    %c0_123 = arith.constant 0 : index
    %426 = vector.load %arg12[%c0_122, %c0_123] : memref<1x16xf32, #tpu.memory_space<vmem>>, vector<1x16xf32>
    %cst_124 = arith.constant 0.000000e+00 : f32
    %427 = vector.broadcast %cst_124 : f32 to vector<8x32xf32>
    %cst_125 = arith.constant 0.000000e+00 : f32
    %428 = vector.broadcast %cst_125 : f32 to vector<8x128xf32>
    %cst_126 = arith.constant 0.000000e+00 : f32
    %429 = vector.broadcast %cst_126 : f32 to vector<8x64xf32>
    %430 = tpu.iota {dimensions = array<i32: 0>} : vector<16x128xi32>
    %431 = tpu.iota {dimensions = array<i32: 1>} : vector<16x128xi32>
    %432 = tpu.iota {dimensions = array<i32: 1>} : vector<1x64xi32>
    %c0_127 = arith.constant 0 : index
    %c0_128 = arith.constant 0 : index
    %433 = vector.load %arg16[%c0_127, %c0_128] : memref<64x128xf32, #tpu.memory_space<vmem>>, vector<8x128xf32>
    %cst_129 = arith.constant dense<0.000000e+00> : vector<8x128xf32>
    %434 = tpu.matmul %401, %421, %cst_129 {dimension_numbers = #tpu.dot_dimension_numbers<[1], [0], [0], [1], [0, 0, 1, 1], [], []>} : vector<8x32xf32>, vector<32x128xf32>, vector<8x128xf32> -> vector<8x128xf32>
    %435 = arith.addf %433, %434 : vector<8x128xf32>
    %cst_130 = arith.constant dense<0.000000e+00> : vector<8x128xf32>
    %436 = tpu.matmul %427, %422, %cst_130 {dimension_numbers = #tpu.dot_dimension_numbers<[1], [0], [0], [1], [0, 0, 1, 1], [], []>} : vector<8x32xf32>, vector<32x128xf32>, vector<8x128xf32> -> vector<8x128xf32>
    %437 = arith.addf %435, %436 : vector<8x128xf32>
    %438 = arith.negf %437 : vector<8x128xf32>
    %439 = math.exp %438 : vector<8x128xf32>
    %cst_131 = arith.constant 1.000000e+00 : f32
    %440 = vector.broadcast %cst_131 : f32 to vector<8x128xf32>
    %441 = arith.addf %440, %439 : vector<8x128xf32>
    %442 = arith.divf %440, %441 : vector<8x128xf32>
    %443 = math.tanh %437 : vector<8x128xf32>
    %444 = vector.extract_strided_slice %442 {offsets = [0, 32], sizes = [8, 32], strides = [1, 1]} : vector<8x128xf32> to vector<8x32xf32>
    %445 = arith.mulf %444, %408 : vector<8x32xf32>
    %446 = vector.extract_strided_slice %442 {offsets = [0, 0], sizes = [8, 32], strides = [1, 1]} : vector<8x128xf32> to vector<8x32xf32>
    %447 = vector.extract_strided_slice %443 {offsets = [0, 64], sizes = [8, 32], strides = [1, 1]} : vector<8x128xf32> to vector<8x32xf32>
    %448 = arith.mulf %446, %447 : vector<8x32xf32>
    %449 = arith.addf %445, %448 : vector<8x32xf32>
    %450 = vector.extract_strided_slice %442 {offsets = [0, 96], sizes = [8, 32], strides = [1, 1]} : vector<8x128xf32> to vector<8x32xf32>
    %451 = math.tanh %449 : vector<8x32xf32>
    %452 = arith.mulf %450, %451 : vector<8x32xf32>
    %cst_132 = arith.constant dense<0.000000e+00> : vector<8x64xf32>
    %453 = tpu.matmul %452, %423, %cst_132 {dimension_numbers = #tpu.dot_dimension_numbers<[1], [0], [0], [1], [0, 0, 1, 1], [], []>} : vector<8x32xf32>, vector<32x64xf32>, vector<8x64xf32> -> vector<8x64xf32>
    %454 = vector.extract_strided_slice %453 {offsets = [0, 0], sizes = [8, 32], strides = [1, 1]} : vector<8x64xf32> to vector<8x32xf32>
    %455 = vector.extract_strided_slice %453 {offsets = [0, 32], sizes = [8, 32], strides = [1, 1]} : vector<8x64xf32> to vector<8x32xf32>
    %c0_133 = arith.constant 0 : index
    %c0_134 = arith.constant 0 : index
    %c0_135 = arith.constant 0 : index
    %456 = vector.load %arg17[%c0_133, %c0_134, %c0_135] : memref<8x8x32xf32, #tpu.memory_space<vmem>>, vector<8x8x32xf32>
    %457 = vector.shape_cast %454 : vector<8x32xf32> to vector<1x8x32xf32>
    %458 = vector.broadcast %457 : vector<1x8x32xf32> to vector<8x8x32xf32>
    %459 = arith.mulf %456, %458 : vector<8x8x32xf32>
    %cst_136 = arith.constant dense<0.000000e+00> : vector<8x8xf32>
    %460 = vector.multi_reduction <add>, %459, %cst_136 [2] : vector<8x8x32xf32> to vector<8x8xf32>
    %461 = vector.shape_cast %460 : vector<8x8xf32> to vector<8x8x1xf32>
    %c0_137 = arith.constant 0 : index
    %c0_138 = arith.constant 0 : index
    %c0_139 = arith.constant 0 : index
    %462 = vector.load %arg3[%c0_137, %c0_138, %c0_139] : memref<8x8x1xf32, #tpu.memory_space<vmem>>, vector<8x8x1xf32>
    %463 = arith.addf %461, %462 : vector<8x8x1xf32>
    %cst_140 = arith.constant dense<0xFF800000> : vector<8x1xf32>
    %464 = vector.multi_reduction <maximumf>, %463, %cst_140 [0] : vector<8x8x1xf32> to vector<8x1xf32>
    %465 = vector.shape_cast %464 : vector<8x1xf32> to vector<1x8x1xf32>
    %466 = vector.broadcast %465 : vector<1x8x1xf32> to vector<8x8x1xf32>
    %467 = arith.subf %463, %466 : vector<8x8x1xf32>
    %468 = math.exp %467 : vector<8x8x1xf32>
    %cst_141 = arith.constant dense<0.000000e+00> : vector<8x1xf32>
    %469 = vector.multi_reduction <add>, %468, %cst_141 [0] : vector<8x8x1xf32> to vector<8x1xf32>
    %470 = vector.shape_cast %469 : vector<8x1xf32> to vector<1x8x1xf32>
    %471 = tpu.reciprocal %470 {approx = true} : vector<1x8x1xf32> -> vector<1x8x1xf32>
    %472 = vector.broadcast %471 : vector<1x8x1xf32> to vector<8x8x1xf32>
    %473 = arith.mulf %468, %472 : vector<8x8x1xf32>
    %474 = vector.broadcast %473 : vector<8x8x1xf32> to vector<8x8x32xf32>
    %475 = arith.mulf %474, %456 : vector<8x8x32xf32>
    %cst_142 = arith.constant dense<0.000000e+00> : vector<8x32xf32>
    %476 = vector.multi_reduction <add>, %475, %cst_142 [0] : vector<8x8x32xf32> to vector<8x32xf32>
    %cst_143 = arith.constant dense<0.000000e+00> : vector<8x32xf32>
    %477 = tpu.matmul %476, %424, %cst_143 {dimension_numbers = #tpu.dot_dimension_numbers<[1], [0], [0], [1], [0, 0, 1, 1], [], []>} : vector<8x32xf32>, vector<32x32xf32>, vector<8x32xf32> -> vector<8x32xf32>
    %478 = arith.addf %477, %455 : vector<8x32xf32>
    %479 = math.tanh %478 : vector<8x32xf32>
    %cst_144 = arith.constant dense<0.000000e+00> : vector<8x16xf32>
    %480 = tpu.matmul %479, %425, %cst_144 {dimension_numbers = #tpu.dot_dimension_numbers<[1], [0], [0], [1], [0, 0, 1, 1], [], []>} : vector<8x32xf32>, vector<32x16xf32>, vector<8x16xf32> -> vector<8x16xf32>
    %481 = vector.broadcast %426 : vector<1x16xf32> to vector<8x16xf32>
    %482 = arith.addf %480, %481 : vector<8x16xf32>
    %c0_i32_145 = arith.constant 0 : i32
    %483 = vector.broadcast %c0_i32_145 : i32 to vector<16x128xi32>
    %484 = arith.addi %430, %483 : vector<16x128xi32>
    %485 = arith.cmpi eq, %431, %484 : vector<16x128xi32>
    %486 = arith.extui %485 : vector<16x128xi1> to vector<16x128xi32>
    %487 = arith.sitofp %486 : vector<16x128xi32> to vector<16x128xf32>
    %cst_146 = arith.constant dense<0.000000e+00> : vector<8x128xf32>
    %488 = tpu.matmul %482, %487, %cst_146 {dimension_numbers = #tpu.dot_dimension_numbers<[1], [0], [0], [1], [0, 0, 1, 1], [], []>} : vector<8x16xf32>, vector<16x128xf32>, vector<8x128xf32> -> vector<8x128xf32>
    %489 = arith.addf %428, %488 : vector<8x128xf32>
    %490 = vector.extract_strided_slice %473 {offsets = [0, 0, 0], sizes = [1, 8, 1], strides = [1, 1, 1]} : vector<8x8x1xf32> to vector<1x8x1xf32>
    %491 = vector.shape_cast %490 : vector<1x8x1xf32> to vector<8x1xf32>
    %c0_i32_147 = arith.constant 0 : i32
    %492 = vector.broadcast %c0_i32_147 : i32 to vector<1x64xi32>
    %493 = arith.cmpi eq, %432, %492 : vector<1x64xi32>
    %494 = arith.extui %493 : vector<1x64xi1> to vector<1x64xi32>
    %495 = arith.sitofp %494 : vector<1x64xi32> to vector<1x64xf32>
    %496 = vector.broadcast %491 : vector<8x1xf32> to vector<8x64xf32>
    %497 = vector.broadcast %495 : vector<1x64xf32> to vector<8x64xf32>
    %498 = arith.mulf %496, %497 : vector<8x64xf32>
    %499 = vector.extract_strided_slice %473 {offsets = [1, 0, 0], sizes = [1, 8, 1], strides = [1, 1, 1]} : vector<8x8x1xf32> to vector<1x8x1xf32>
    %500 = vector.shape_cast %499 : vector<1x8x1xf32> to vector<8x1xf32>
    %c1_i32_148 = arith.constant 1 : i32
    %501 = vector.broadcast %c1_i32_148 : i32 to vector<1x64xi32>
    %502 = arith.cmpi eq, %432, %501 : vector<1x64xi32>
    %503 = arith.extui %502 : vector<1x64xi1> to vector<1x64xi32>
    %504 = arith.sitofp %503 : vector<1x64xi32> to vector<1x64xf32>
    %505 = vector.broadcast %500 : vector<8x1xf32> to vector<8x64xf32>
    %506 = vector.broadcast %504 : vector<1x64xf32> to vector<8x64xf32>
    %507 = arith.mulf %505, %506 : vector<8x64xf32>
    %508 = arith.addf %498, %507 : vector<8x64xf32>
    %509 = vector.extract_strided_slice %473 {offsets = [2, 0, 0], sizes = [1, 8, 1], strides = [1, 1, 1]} : vector<8x8x1xf32> to vector<1x8x1xf32>
    %510 = vector.shape_cast %509 : vector<1x8x1xf32> to vector<8x1xf32>
    %c2_i32_149 = arith.constant 2 : i32
    %511 = vector.broadcast %c2_i32_149 : i32 to vector<1x64xi32>
    %512 = arith.cmpi eq, %432, %511 : vector<1x64xi32>
    %513 = arith.extui %512 : vector<1x64xi1> to vector<1x64xi32>
    %514 = arith.sitofp %513 : vector<1x64xi32> to vector<1x64xf32>
    %515 = vector.broadcast %510 : vector<8x1xf32> to vector<8x64xf32>
    %516 = vector.broadcast %514 : vector<1x64xf32> to vector<8x64xf32>
    %517 = arith.mulf %515, %516 : vector<8x64xf32>
    %518 = arith.addf %508, %517 : vector<8x64xf32>
    %519 = vector.extract_strided_slice %473 {offsets = [3, 0, 0], sizes = [1, 8, 1], strides = [1, 1, 1]} : vector<8x8x1xf32> to vector<1x8x1xf32>
    %520 = vector.shape_cast %519 : vector<1x8x1xf32> to vector<8x1xf32>
    %c3_i32_150 = arith.constant 3 : i32
    %521 = vector.broadcast %c3_i32_150 : i32 to vector<1x64xi32>
    %522 = arith.cmpi eq, %432, %521 : vector<1x64xi32>
    %523 = arith.extui %522 : vector<1x64xi1> to vector<1x64xi32>
    %524 = arith.sitofp %523 : vector<1x64xi32> to vector<1x64xf32>
    %525 = vector.broadcast %520 : vector<8x1xf32> to vector<8x64xf32>
    %526 = vector.broadcast %524 : vector<1x64xf32> to vector<8x64xf32>
    %527 = arith.mulf %525, %526 : vector<8x64xf32>
    %528 = arith.addf %518, %527 : vector<8x64xf32>
    %529 = vector.extract_strided_slice %473 {offsets = [4, 0, 0], sizes = [1, 8, 1], strides = [1, 1, 1]} : vector<8x8x1xf32> to vector<1x8x1xf32>
    %530 = vector.shape_cast %529 : vector<1x8x1xf32> to vector<8x1xf32>
    %c4_i32_151 = arith.constant 4 : i32
    %531 = vector.broadcast %c4_i32_151 : i32 to vector<1x64xi32>
    %532 = arith.cmpi eq, %432, %531 : vector<1x64xi32>
    %533 = arith.extui %532 : vector<1x64xi1> to vector<1x64xi32>
    %534 = arith.sitofp %533 : vector<1x64xi32> to vector<1x64xf32>
    %535 = vector.broadcast %530 : vector<8x1xf32> to vector<8x64xf32>
    %536 = vector.broadcast %534 : vector<1x64xf32> to vector<8x64xf32>
    %537 = arith.mulf %535, %536 : vector<8x64xf32>
    %538 = arith.addf %528, %537 : vector<8x64xf32>
    %539 = vector.extract_strided_slice %473 {offsets = [5, 0, 0], sizes = [1, 8, 1], strides = [1, 1, 1]} : vector<8x8x1xf32> to vector<1x8x1xf32>
    %540 = vector.shape_cast %539 : vector<1x8x1xf32> to vector<8x1xf32>
    %c5_i32_152 = arith.constant 5 : i32
    %541 = vector.broadcast %c5_i32_152 : i32 to vector<1x64xi32>
    %542 = arith.cmpi eq, %432, %541 : vector<1x64xi32>
    %543 = arith.extui %542 : vector<1x64xi1> to vector<1x64xi32>
    %544 = arith.sitofp %543 : vector<1x64xi32> to vector<1x64xf32>
    %545 = vector.broadcast %540 : vector<8x1xf32> to vector<8x64xf32>
    %546 = vector.broadcast %544 : vector<1x64xf32> to vector<8x64xf32>
    %547 = arith.mulf %545, %546 : vector<8x64xf32>
    %548 = arith.addf %538, %547 : vector<8x64xf32>
    %549 = vector.extract_strided_slice %473 {offsets = [6, 0, 0], sizes = [1, 8, 1], strides = [1, 1, 1]} : vector<8x8x1xf32> to vector<1x8x1xf32>
    %550 = vector.shape_cast %549 : vector<1x8x1xf32> to vector<8x1xf32>
    %c6_i32_153 = arith.constant 6 : i32
    %551 = vector.broadcast %c6_i32_153 : i32 to vector<1x64xi32>
    %552 = arith.cmpi eq, %432, %551 : vector<1x64xi32>
    %553 = arith.extui %552 : vector<1x64xi1> to vector<1x64xi32>
    %554 = arith.sitofp %553 : vector<1x64xi32> to vector<1x64xf32>
    %555 = vector.broadcast %550 : vector<8x1xf32> to vector<8x64xf32>
    %556 = vector.broadcast %554 : vector<1x64xf32> to vector<8x64xf32>
    %557 = arith.mulf %555, %556 : vector<8x64xf32>
    %558 = arith.addf %548, %557 : vector<8x64xf32>
    %559 = vector.extract_strided_slice %473 {offsets = [7, 0, 0], sizes = [1, 8, 1], strides = [1, 1, 1]} : vector<8x8x1xf32> to vector<1x8x1xf32>
    %560 = vector.shape_cast %559 : vector<1x8x1xf32> to vector<8x1xf32>
    %c7_i32_154 = arith.constant 7 : i32
    %561 = vector.broadcast %c7_i32_154 : i32 to vector<1x64xi32>
    %562 = arith.cmpi eq, %432, %561 : vector<1x64xi32>
    %563 = arith.extui %562 : vector<1x64xi1> to vector<1x64xi32>
    %564 = arith.sitofp %563 : vector<1x64xi32> to vector<1x64xf32>
    %565 = vector.broadcast %560 : vector<8x1xf32> to vector<8x64xf32>
    %566 = vector.broadcast %564 : vector<1x64xf32> to vector<8x64xf32>
    %567 = arith.mulf %565, %566 : vector<8x64xf32>
    %568 = arith.addf %558, %567 : vector<8x64xf32>
    %569 = arith.addf %429, %568 : vector<8x64xf32>
    %c8 = arith.constant 8 : index
    %c0_155 = arith.constant 0 : index
    %570 = vector.load %arg16[%c8, %c0_155] : memref<64x128xf32, #tpu.memory_space<vmem>>, vector<8x128xf32>
    %cst_156 = arith.constant dense<0.000000e+00> : vector<8x128xf32>
    %571 = tpu.matmul %452, %421, %cst_156 {dimension_numbers = #tpu.dot_dimension_numbers<[1], [0], [0], [1], [0, 0, 1, 1], [], []>} : vector<8x32xf32>, vector<32x128xf32>, vector<8x128xf32> -> vector<8x128xf32>
    %572 = arith.addf %570, %571 : vector<8x128xf32>
    %cst_157 = arith.constant dense<0.000000e+00> : vector<8x128xf32>
    %573 = tpu.matmul %479, %422, %cst_157 {dimension_numbers = #tpu.dot_dimension_numbers<[1], [0], [0], [1], [0, 0, 1, 1], [], []>} : vector<8x32xf32>, vector<32x128xf32>, vector<8x128xf32> -> vector<8x128xf32>
    %574 = arith.addf %572, %573 : vector<8x128xf32>
    %575 = arith.negf %574 : vector<8x128xf32>
    %576 = math.exp %575 : vector<8x128xf32>
    %cst_158 = arith.constant 1.000000e+00 : f32
    %577 = vector.broadcast %cst_158 : f32 to vector<8x128xf32>
    %578 = arith.addf %577, %576 : vector<8x128xf32>
    %579 = arith.divf %577, %578 : vector<8x128xf32>
    %580 = math.tanh %574 : vector<8x128xf32>
    %581 = vector.extract_strided_slice %579 {offsets = [0, 32], sizes = [8, 32], strides = [1, 1]} : vector<8x128xf32> to vector<8x32xf32>
    %582 = arith.mulf %581, %449 : vector<8x32xf32>
    %583 = vector.extract_strided_slice %579 {offsets = [0, 0], sizes = [8, 32], strides = [1, 1]} : vector<8x128xf32> to vector<8x32xf32>
    %584 = vector.extract_strided_slice %580 {offsets = [0, 64], sizes = [8, 32], strides = [1, 1]} : vector<8x128xf32> to vector<8x32xf32>
    %585 = arith.mulf %583, %584 : vector<8x32xf32>
    %586 = arith.addf %582, %585 : vector<8x32xf32>
    %587 = vector.extract_strided_slice %579 {offsets = [0, 96], sizes = [8, 32], strides = [1, 1]} : vector<8x128xf32> to vector<8x32xf32>
    %588 = math.tanh %586 : vector<8x32xf32>
    %589 = arith.mulf %587, %588 : vector<8x32xf32>
    %cst_159 = arith.constant dense<0.000000e+00> : vector<8x64xf32>
    %590 = tpu.matmul %589, %423, %cst_159 {dimension_numbers = #tpu.dot_dimension_numbers<[1], [0], [0], [1], [0, 0, 1, 1], [], []>} : vector<8x32xf32>, vector<32x64xf32>, vector<8x64xf32> -> vector<8x64xf32>
    %591 = vector.extract_strided_slice %590 {offsets = [0, 0], sizes = [8, 32], strides = [1, 1]} : vector<8x64xf32> to vector<8x32xf32>
    %592 = vector.extract_strided_slice %590 {offsets = [0, 32], sizes = [8, 32], strides = [1, 1]} : vector<8x64xf32> to vector<8x32xf32>
    %c0_160 = arith.constant 0 : index
    %c0_161 = arith.constant 0 : index
    %c0_162 = arith.constant 0 : index
    %593 = vector.load %arg17[%c0_160, %c0_161, %c0_162] : memref<8x8x32xf32, #tpu.memory_space<vmem>>, vector<8x8x32xf32>
    %594 = vector.shape_cast %591 : vector<8x32xf32> to vector<1x8x32xf32>
    %595 = vector.broadcast %594 : vector<1x8x32xf32> to vector<8x8x32xf32>
    %596 = arith.mulf %593, %595 : vector<8x8x32xf32>
    %cst_163 = arith.constant dense<0.000000e+00> : vector<8x8xf32>
    %597 = vector.multi_reduction <add>, %596, %cst_163 [2] : vector<8x8x32xf32> to vector<8x8xf32>
    %598 = vector.shape_cast %597 : vector<8x8xf32> to vector<8x8x1xf32>
    %c0_164 = arith.constant 0 : index
    %c0_165 = arith.constant 0 : index
    %c0_166 = arith.constant 0 : index
    %599 = vector.load %arg3[%c0_164, %c0_165, %c0_166] : memref<8x8x1xf32, #tpu.memory_space<vmem>>, vector<8x8x1xf32>
    %600 = arith.addf %598, %599 : vector<8x8x1xf32>
    %cst_167 = arith.constant dense<0xFF800000> : vector<8x1xf32>
    %601 = vector.multi_reduction <maximumf>, %600, %cst_167 [0] : vector<8x8x1xf32> to vector<8x1xf32>
    %602 = vector.shape_cast %601 : vector<8x1xf32> to vector<1x8x1xf32>
    %603 = vector.broadcast %602 : vector<1x8x1xf32> to vector<8x8x1xf32>
    %604 = arith.subf %600, %603 : vector<8x8x1xf32>
    %605 = math.exp %604 : vector<8x8x1xf32>
    %cst_168 = arith.constant dense<0.000000e+00> : vector<8x1xf32>
    %606 = vector.multi_reduction <add>, %605, %cst_168 [0] : vector<8x8x1xf32> to vector<8x1xf32>
    %607 = vector.shape_cast %606 : vector<8x1xf32> to vector<1x8x1xf32>
    %608 = tpu.reciprocal %607 {approx = true} : vector<1x8x1xf32> -> vector<1x8x1xf32>
    %609 = vector.broadcast %608 : vector<1x8x1xf32> to vector<8x8x1xf32>
    %610 = arith.mulf %605, %609 : vector<8x8x1xf32>
    %611 = vector.broadcast %610 : vector<8x8x1xf32> to vector<8x8x32xf32>
    %612 = arith.mulf %611, %593 : vector<8x8x32xf32>
    %cst_169 = arith.constant dense<0.000000e+00> : vector<8x32xf32>
    %613 = vector.multi_reduction <add>, %612, %cst_169 [0] : vector<8x8x32xf32> to vector<8x32xf32>
    %cst_170 = arith.constant dense<0.000000e+00> : vector<8x32xf32>
    %614 = tpu.matmul %613, %424, %cst_170 {dimension_numbers = #tpu.dot_dimension_numbers<[1], [0], [0], [1], [0, 0, 1, 1], [], []>} : vector<8x32xf32>, vector<32x32xf32>, vector<8x32xf32> -> vector<8x32xf32>
    %615 = arith.addf %614, %592 : vector<8x32xf32>
    %616 = math.tanh %615 : vector<8x32xf32>
    %cst_171 = arith.constant dense<0.000000e+00> : vector<8x16xf32>
    %617 = tpu.matmul %616, %425, %cst_171 {dimension_numbers = #tpu.dot_dimension_numbers<[1], [0], [0], [1], [0, 0, 1, 1], [], []>} : vector<8x32xf32>, vector<32x16xf32>, vector<8x16xf32> -> vector<8x16xf32>
    %618 = vector.broadcast %426 : vector<1x16xf32> to vector<8x16xf32>
    %619 = arith.addf %617, %618 : vector<8x16xf32>
    %c16_i32 = arith.constant 16 : i32
    %620 = vector.broadcast %c16_i32 : i32 to vector<16x128xi32>
    %621 = arith.addi %430, %620 : vector<16x128xi32>
    %622 = arith.cmpi eq, %431, %621 : vector<16x128xi32>
    %623 = arith.extui %622 : vector<16x128xi1> to vector<16x128xi32>
    %624 = arith.sitofp %623 : vector<16x128xi32> to vector<16x128xf32>
    %cst_172 = arith.constant dense<0.000000e+00> : vector<8x128xf32>
    %625 = tpu.matmul %619, %624, %cst_172 {dimension_numbers = #tpu.dot_dimension_numbers<[1], [0], [0], [1], [0, 0, 1, 1], [], []>} : vector<8x16xf32>, vector<16x128xf32>, vector<8x128xf32> -> vector<8x128xf32>
    %626 = arith.addf %489, %625 : vector<8x128xf32>
    %627 = vector.extract_strided_slice %610 {offsets = [0, 0, 0], sizes = [1, 8, 1], strides = [1, 1, 1]} : vector<8x8x1xf32> to vector<1x8x1xf32>
    %628 = vector.shape_cast %627 : vector<1x8x1xf32> to vector<8x1xf32>
    %c8_i32_173 = arith.constant 8 : i32
    %629 = vector.broadcast %c8_i32_173 : i32 to vector<1x64xi32>
    %630 = arith.cmpi eq, %432, %629 : vector<1x64xi32>
    %631 = arith.extui %630 : vector<1x64xi1> to vector<1x64xi32>
    %632 = arith.sitofp %631 : vector<1x64xi32> to vector<1x64xf32>
    %633 = vector.broadcast %628 : vector<8x1xf32> to vector<8x64xf32>
    %634 = vector.broadcast %632 : vector<1x64xf32> to vector<8x64xf32>
    %635 = arith.mulf %633, %634 : vector<8x64xf32>
    %636 = vector.extract_strided_slice %610 {offsets = [1, 0, 0], sizes = [1, 8, 1], strides = [1, 1, 1]} : vector<8x8x1xf32> to vector<1x8x1xf32>
    %637 = vector.shape_cast %636 : vector<1x8x1xf32> to vector<8x1xf32>
    %c9_i32 = arith.constant 9 : i32
    %638 = vector.broadcast %c9_i32 : i32 to vector<1x64xi32>
    %639 = arith.cmpi eq, %432, %638 : vector<1x64xi32>
    %640 = arith.extui %639 : vector<1x64xi1> to vector<1x64xi32>
    %641 = arith.sitofp %640 : vector<1x64xi32> to vector<1x64xf32>
    %642 = vector.broadcast %637 : vector<8x1xf32> to vector<8x64xf32>
    %643 = vector.broadcast %641 : vector<1x64xf32> to vector<8x64xf32>
    %644 = arith.mulf %642, %643 : vector<8x64xf32>
    %645 = arith.addf %635, %644 : vector<8x64xf32>
    %646 = vector.extract_strided_slice %610 {offsets = [2, 0, 0], sizes = [1, 8, 1], strides = [1, 1, 1]} : vector<8x8x1xf32> to vector<1x8x1xf32>
    %647 = vector.shape_cast %646 : vector<1x8x1xf32> to vector<8x1xf32>
    %c10_i32 = arith.constant 10 : i32
    %648 = vector.broadcast %c10_i32 : i32 to vector<1x64xi32>
    %649 = arith.cmpi eq, %432, %648 : vector<1x64xi32>
    %650 = arith.extui %649 : vector<1x64xi1> to vector<1x64xi32>
    %651 = arith.sitofp %650 : vector<1x64xi32> to vector<1x64xf32>
    %652 = vector.broadcast %647 : vector<8x1xf32> to vector<8x64xf32>
    %653 = vector.broadcast %651 : vector<1x64xf32> to vector<8x64xf32>
    %654 = arith.mulf %652, %653 : vector<8x64xf32>
    %655 = arith.addf %645, %654 : vector<8x64xf32>
    %656 = vector.extract_strided_slice %610 {offsets = [3, 0, 0], sizes = [1, 8, 1], strides = [1, 1, 1]} : vector<8x8x1xf32> to vector<1x8x1xf32>
    %657 = vector.shape_cast %656 : vector<1x8x1xf32> to vector<8x1xf32>
    %c11_i32 = arith.constant 11 : i32
    %658 = vector.broadcast %c11_i32 : i32 to vector<1x64xi32>
    %659 = arith.cmpi eq, %432, %658 : vector<1x64xi32>
    %660 = arith.extui %659 : vector<1x64xi1> to vector<1x64xi32>
    %661 = arith.sitofp %660 : vector<1x64xi32> to vector<1x64xf32>
    %662 = vector.broadcast %657 : vector<8x1xf32> to vector<8x64xf32>
    %663 = vector.broadcast %661 : vector<1x64xf32> to vector<8x64xf32>
    %664 = arith.mulf %662, %663 : vector<8x64xf32>
    %665 = arith.addf %655, %664 : vector<8x64xf32>
    %666 = vector.extract_strided_slice %610 {offsets = [4, 0, 0], sizes = [1, 8, 1], strides = [1, 1, 1]} : vector<8x8x1xf32> to vector<1x8x1xf32>
    %667 = vector.shape_cast %666 : vector<1x8x1xf32> to vector<8x1xf32>
    %c12_i32 = arith.constant 12 : i32
    %668 = vector.broadcast %c12_i32 : i32 to vector<1x64xi32>
    %669 = arith.cmpi eq, %432, %668 : vector<1x64xi32>
    %670 = arith.extui %669 : vector<1x64xi1> to vector<1x64xi32>
    %671 = arith.sitofp %670 : vector<1x64xi32> to vector<1x64xf32>
    %672 = vector.broadcast %667 : vector<8x1xf32> to vector<8x64xf32>
    %673 = vector.broadcast %671 : vector<1x64xf32> to vector<8x64xf32>
    %674 = arith.mulf %672, %673 : vector<8x64xf32>
    %675 = arith.addf %665, %674 : vector<8x64xf32>
    %676 = vector.extract_strided_slice %610 {offsets = [5, 0, 0], sizes = [1, 8, 1], strides = [1, 1, 1]} : vector<8x8x1xf32> to vector<1x8x1xf32>
    %677 = vector.shape_cast %676 : vector<1x8x1xf32> to vector<8x1xf32>
    %c13_i32 = arith.constant 13 : i32
    %678 = vector.broadcast %c13_i32 : i32 to vector<1x64xi32>
    %679 = arith.cmpi eq, %432, %678 : vector<1x64xi32>
    %680 = arith.extui %679 : vector<1x64xi1> to vector<1x64xi32>
    %681 = arith.sitofp %680 : vector<1x64xi32> to vector<1x64xf32>
    %682 = vector.broadcast %677 : vector<8x1xf32> to vector<8x64xf32>
    %683 = vector.broadcast %681 : vector<1x64xf32> to vector<8x64xf32>
    %684 = arith.mulf %682, %683 : vector<8x64xf32>
    %685 = arith.addf %675, %684 : vector<8x64xf32>
    %686 = vector.extract_strided_slice %610 {offsets = [6, 0, 0], sizes = [1, 8, 1], strides = [1, 1, 1]} : vector<8x8x1xf32> to vector<1x8x1xf32>
    %687 = vector.shape_cast %686 : vector<1x8x1xf32> to vector<8x1xf32>
    %c14_i32 = arith.constant 14 : i32
    %688 = vector.broadcast %c14_i32 : i32 to vector<1x64xi32>
    %689 = arith.cmpi eq, %432, %688 : vector<1x64xi32>
    %690 = arith.extui %689 : vector<1x64xi1> to vector<1x64xi32>
    %691 = arith.sitofp %690 : vector<1x64xi32> to vector<1x64xf32>
    %692 = vector.broadcast %687 : vector<8x1xf32> to vector<8x64xf32>
    %693 = vector.broadcast %691 : vector<1x64xf32> to vector<8x64xf32>
    %694 = arith.mulf %692, %693 : vector<8x64xf32>
    %695 = arith.addf %685, %694 : vector<8x64xf32>
    %696 = vector.extract_strided_slice %610 {offsets = [7, 0, 0], sizes = [1, 8, 1], strides = [1, 1, 1]} : vector<8x8x1xf32> to vector<1x8x1xf32>
    %697 = vector.shape_cast %696 : vector<1x8x1xf32> to vector<8x1xf32>
    %c15_i32 = arith.constant 15 : i32
    %698 = vector.broadcast %c15_i32 : i32 to vector<1x64xi32>
    %699 = arith.cmpi eq, %432, %698 : vector<1x64xi32>
    %700 = arith.extui %699 : vector<1x64xi1> to vector<1x64xi32>
    %701 = arith.sitofp %700 : vector<1x64xi32> to vector<1x64xf32>
    %702 = vector.broadcast %697 : vector<8x1xf32> to vector<8x64xf32>
    %703 = vector.broadcast %701 : vector<1x64xf32> to vector<8x64xf32>
    %704 = arith.mulf %702, %703 : vector<8x64xf32>
    %705 = arith.addf %695, %704 : vector<8x64xf32>
    %706 = arith.addf %569, %705 : vector<8x64xf32>
    %c16 = arith.constant 16 : index
    %c0_174 = arith.constant 0 : index
    %707 = vector.load %arg16[%c16, %c0_174] : memref<64x128xf32, #tpu.memory_space<vmem>>, vector<8x128xf32>
    %cst_175 = arith.constant dense<0.000000e+00> : vector<8x128xf32>
    %708 = tpu.matmul %589, %421, %cst_175 {dimension_numbers = #tpu.dot_dimension_numbers<[1], [0], [0], [1], [0, 0, 1, 1], [], []>} : vector<8x32xf32>, vector<32x128xf32>, vector<8x128xf32> -> vector<8x128xf32>
    %709 = arith.addf %707, %708 : vector<8x128xf32>
    %cst_176 = arith.constant dense<0.000000e+00> : vector<8x128xf32>
    %710 = tpu.matmul %616, %422, %cst_176 {dimension_numbers = #tpu.dot_dimension_numbers<[1], [0], [0], [1], [0, 0, 1, 1], [], []>} : vector<8x32xf32>, vector<32x128xf32>, vector<8x128xf32> -> vector<8x128xf32>
    %711 = arith.addf %709, %710 : vector<8x128xf32>
    %712 = arith.negf %711 : vector<8x128xf32>
    %713 = math.exp %712 : vector<8x128xf32>
    %cst_177 = arith.constant 1.000000e+00 : f32
    %714 = vector.broadcast %cst_177 : f32 to vector<8x128xf32>
    %715 = arith.addf %714, %713 : vector<8x128xf32>
    %716 = arith.divf %714, %715 : vector<8x128xf32>
    %717 = math.tanh %711 : vector<8x128xf32>
    %718 = vector.extract_strided_slice %716 {offsets = [0, 32], sizes = [8, 32], strides = [1, 1]} : vector<8x128xf32> to vector<8x32xf32>
    %719 = arith.mulf %718, %586 : vector<8x32xf32>
    %720 = vector.extract_strided_slice %716 {offsets = [0, 0], sizes = [8, 32], strides = [1, 1]} : vector<8x128xf32> to vector<8x32xf32>
    %721 = vector.extract_strided_slice %717 {offsets = [0, 64], sizes = [8, 32], strides = [1, 1]} : vector<8x128xf32> to vector<8x32xf32>
    %722 = arith.mulf %720, %721 : vector<8x32xf32>
    %723 = arith.addf %719, %722 : vector<8x32xf32>
    %724 = vector.extract_strided_slice %716 {offsets = [0, 96], sizes = [8, 32], strides = [1, 1]} : vector<8x128xf32> to vector<8x32xf32>
    %725 = math.tanh %723 : vector<8x32xf32>
    %726 = arith.mulf %724, %725 : vector<8x32xf32>
    %cst_178 = arith.constant dense<0.000000e+00> : vector<8x64xf32>
    %727 = tpu.matmul %726, %423, %cst_178 {dimension_numbers = #tpu.dot_dimension_numbers<[1], [0], [0], [1], [0, 0, 1, 1], [], []>} : vector<8x32xf32>, vector<32x64xf32>, vector<8x64xf32> -> vector<8x64xf32>
    %728 = vector.extract_strided_slice %727 {offsets = [0, 0], sizes = [8, 32], strides = [1, 1]} : vector<8x64xf32> to vector<8x32xf32>
    %729 = vector.extract_strided_slice %727 {offsets = [0, 32], sizes = [8, 32], strides = [1, 1]} : vector<8x64xf32> to vector<8x32xf32>
    %c0_179 = arith.constant 0 : index
    %c0_180 = arith.constant 0 : index
    %c0_181 = arith.constant 0 : index
    %730 = vector.load %arg17[%c0_179, %c0_180, %c0_181] : memref<8x8x32xf32, #tpu.memory_space<vmem>>, vector<8x8x32xf32>
    %731 = vector.shape_cast %728 : vector<8x32xf32> to vector<1x8x32xf32>
    %732 = vector.broadcast %731 : vector<1x8x32xf32> to vector<8x8x32xf32>
    %733 = arith.mulf %730, %732 : vector<8x8x32xf32>
    %cst_182 = arith.constant dense<0.000000e+00> : vector<8x8xf32>
    %734 = vector.multi_reduction <add>, %733, %cst_182 [2] : vector<8x8x32xf32> to vector<8x8xf32>
    %735 = vector.shape_cast %734 : vector<8x8xf32> to vector<8x8x1xf32>
    %c0_183 = arith.constant 0 : index
    %c0_184 = arith.constant 0 : index
    %c0_185 = arith.constant 0 : index
    %736 = vector.load %arg3[%c0_183, %c0_184, %c0_185] : memref<8x8x1xf32, #tpu.memory_space<vmem>>, vector<8x8x1xf32>
    %737 = arith.addf %735, %736 : vector<8x8x1xf32>
    %cst_186 = arith.constant dense<0xFF800000> : vector<8x1xf32>
    %738 = vector.multi_reduction <maximumf>, %737, %cst_186 [0] : vector<8x8x1xf32> to vector<8x1xf32>
    %739 = vector.shape_cast %738 : vector<8x1xf32> to vector<1x8x1xf32>
    %740 = vector.broadcast %739 : vector<1x8x1xf32> to vector<8x8x1xf32>
    %741 = arith.subf %737, %740 : vector<8x8x1xf32>
    %742 = math.exp %741 : vector<8x8x1xf32>
    %cst_187 = arith.constant dense<0.000000e+00> : vector<8x1xf32>
    %743 = vector.multi_reduction <add>, %742, %cst_187 [0] : vector<8x8x1xf32> to vector<8x1xf32>
    %744 = vector.shape_cast %743 : vector<8x1xf32> to vector<1x8x1xf32>
    %745 = tpu.reciprocal %744 {approx = true} : vector<1x8x1xf32> -> vector<1x8x1xf32>
    %746 = vector.broadcast %745 : vector<1x8x1xf32> to vector<8x8x1xf32>
    %747 = arith.mulf %742, %746 : vector<8x8x1xf32>
    %748 = vector.broadcast %747 : vector<8x8x1xf32> to vector<8x8x32xf32>
    %749 = arith.mulf %748, %730 : vector<8x8x32xf32>
    %cst_188 = arith.constant dense<0.000000e+00> : vector<8x32xf32>
    %750 = vector.multi_reduction <add>, %749, %cst_188 [0] : vector<8x8x32xf32> to vector<8x32xf32>
    %cst_189 = arith.constant dense<0.000000e+00> : vector<8x32xf32>
    %751 = tpu.matmul %750, %424, %cst_189 {dimension_numbers = #tpu.dot_dimension_numbers<[1], [0], [0], [1], [0, 0, 1, 1], [], []>} : vector<8x32xf32>, vector<32x32xf32>, vector<8x32xf32> -> vector<8x32xf32>
    %752 = arith.addf %751, %729 : vector<8x32xf32>
    %753 = math.tanh %752 : vector<8x32xf32>
    %cst_190 = arith.constant dense<0.000000e+00> : vector<8x16xf32>
    %754 = tpu.matmul %753, %425, %cst_190 {dimension_numbers = #tpu.dot_dimension_numbers<[1], [0], [0], [1], [0, 0, 1, 1], [], []>} : vector<8x32xf32>, vector<32x16xf32>, vector<8x16xf32> -> vector<8x16xf32>
    %755 = vector.broadcast %426 : vector<1x16xf32> to vector<8x16xf32>
    %756 = arith.addf %754, %755 : vector<8x16xf32>
    %c32_i32 = arith.constant 32 : i32
    %757 = vector.broadcast %c32_i32 : i32 to vector<16x128xi32>
    %758 = arith.addi %430, %757 : vector<16x128xi32>
    %759 = arith.cmpi eq, %431, %758 : vector<16x128xi32>
    %760 = arith.extui %759 : vector<16x128xi1> to vector<16x128xi32>
    %761 = arith.sitofp %760 : vector<16x128xi32> to vector<16x128xf32>
    %cst_191 = arith.constant dense<0.000000e+00> : vector<8x128xf32>
    %762 = tpu.matmul %756, %761, %cst_191 {dimension_numbers = #tpu.dot_dimension_numbers<[1], [0], [0], [1], [0, 0, 1, 1], [], []>} : vector<8x16xf32>, vector<16x128xf32>, vector<8x128xf32> -> vector<8x128xf32>
    %763 = arith.addf %626, %762 : vector<8x128xf32>
    %764 = vector.extract_strided_slice %747 {offsets = [0, 0, 0], sizes = [1, 8, 1], strides = [1, 1, 1]} : vector<8x8x1xf32> to vector<1x8x1xf32>
    %765 = vector.shape_cast %764 : vector<1x8x1xf32> to vector<8x1xf32>
    %c16_i32_192 = arith.constant 16 : i32
    %766 = vector.broadcast %c16_i32_192 : i32 to vector<1x64xi32>
    %767 = arith.cmpi eq, %432, %766 : vector<1x64xi32>
    %768 = arith.extui %767 : vector<1x64xi1> to vector<1x64xi32>
    %769 = arith.sitofp %768 : vector<1x64xi32> to vector<1x64xf32>
    %770 = vector.broadcast %765 : vector<8x1xf32> to vector<8x64xf32>
    %771 = vector.broadcast %769 : vector<1x64xf32> to vector<8x64xf32>
    %772 = arith.mulf %770, %771 : vector<8x64xf32>
    %773 = vector.extract_strided_slice %747 {offsets = [1, 0, 0], sizes = [1, 8, 1], strides = [1, 1, 1]} : vector<8x8x1xf32> to vector<1x8x1xf32>
    %774 = vector.shape_cast %773 : vector<1x8x1xf32> to vector<8x1xf32>
    %c17_i32 = arith.constant 17 : i32
    %775 = vector.broadcast %c17_i32 : i32 to vector<1x64xi32>
    %776 = arith.cmpi eq, %432, %775 : vector<1x64xi32>
    %777 = arith.extui %776 : vector<1x64xi1> to vector<1x64xi32>
    %778 = arith.sitofp %777 : vector<1x64xi32> to vector<1x64xf32>
    %779 = vector.broadcast %774 : vector<8x1xf32> to vector<8x64xf32>
    %780 = vector.broadcast %778 : vector<1x64xf32> to vector<8x64xf32>
    %781 = arith.mulf %779, %780 : vector<8x64xf32>
    %782 = arith.addf %772, %781 : vector<8x64xf32>
    %783 = vector.extract_strided_slice %747 {offsets = [2, 0, 0], sizes = [1, 8, 1], strides = [1, 1, 1]} : vector<8x8x1xf32> to vector<1x8x1xf32>
    %784 = vector.shape_cast %783 : vector<1x8x1xf32> to vector<8x1xf32>
    %c18_i32 = arith.constant 18 : i32
    %785 = vector.broadcast %c18_i32 : i32 to vector<1x64xi32>
    %786 = arith.cmpi eq, %432, %785 : vector<1x64xi32>
    %787 = arith.extui %786 : vector<1x64xi1> to vector<1x64xi32>
    %788 = arith.sitofp %787 : vector<1x64xi32> to vector<1x64xf32>
    %789 = vector.broadcast %784 : vector<8x1xf32> to vector<8x64xf32>
    %790 = vector.broadcast %788 : vector<1x64xf32> to vector<8x64xf32>
    %791 = arith.mulf %789, %790 : vector<8x64xf32>
    %792 = arith.addf %782, %791 : vector<8x64xf32>
    %793 = vector.extract_strided_slice %747 {offsets = [3, 0, 0], sizes = [1, 8, 1], strides = [1, 1, 1]} : vector<8x8x1xf32> to vector<1x8x1xf32>
    %794 = vector.shape_cast %793 : vector<1x8x1xf32> to vector<8x1xf32>
    %c19_i32 = arith.constant 19 : i32
    %795 = vector.broadcast %c19_i32 : i32 to vector<1x64xi32>
    %796 = arith.cmpi eq, %432, %795 : vector<1x64xi32>
    %797 = arith.extui %796 : vector<1x64xi1> to vector<1x64xi32>
    %798 = arith.sitofp %797 : vector<1x64xi32> to vector<1x64xf32>
    %799 = vector.broadcast %794 : vector<8x1xf32> to vector<8x64xf32>
    %800 = vector.broadcast %798 : vector<1x64xf32> to vector<8x64xf32>
    %801 = arith.mulf %799, %800 : vector<8x64xf32>
    %802 = arith.addf %792, %801 : vector<8x64xf32>
    %803 = vector.extract_strided_slice %747 {offsets = [4, 0, 0], sizes = [1, 8, 1], strides = [1, 1, 1]} : vector<8x8x1xf32> to vector<1x8x1xf32>
    %804 = vector.shape_cast %803 : vector<1x8x1xf32> to vector<8x1xf32>
    %c20_i32 = arith.constant 20 : i32
    %805 = vector.broadcast %c20_i32 : i32 to vector<1x64xi32>
    %806 = arith.cmpi eq, %432, %805 : vector<1x64xi32>
    %807 = arith.extui %806 : vector<1x64xi1> to vector<1x64xi32>
    %808 = arith.sitofp %807 : vector<1x64xi32> to vector<1x64xf32>
    %809 = vector.broadcast %804 : vector<8x1xf32> to vector<8x64xf32>
    %810 = vector.broadcast %808 : vector<1x64xf32> to vector<8x64xf32>
    %811 = arith.mulf %809, %810 : vector<8x64xf32>
    %812 = arith.addf %802, %811 : vector<8x64xf32>
    %813 = vector.extract_strided_slice %747 {offsets = [5, 0, 0], sizes = [1, 8, 1], strides = [1, 1, 1]} : vector<8x8x1xf32> to vector<1x8x1xf32>
    %814 = vector.shape_cast %813 : vector<1x8x1xf32> to vector<8x1xf32>
    %c21_i32 = arith.constant 21 : i32
    %815 = vector.broadcast %c21_i32 : i32 to vector<1x64xi32>
    %816 = arith.cmpi eq, %432, %815 : vector<1x64xi32>
    %817 = arith.extui %816 : vector<1x64xi1> to vector<1x64xi32>
    %818 = arith.sitofp %817 : vector<1x64xi32> to vector<1x64xf32>
    %819 = vector.broadcast %814 : vector<8x1xf32> to vector<8x64xf32>
    %820 = vector.broadcast %818 : vector<1x64xf32> to vector<8x64xf32>
    %821 = arith.mulf %819, %820 : vector<8x64xf32>
    %822 = arith.addf %812, %821 : vector<8x64xf32>
    %823 = vector.extract_strided_slice %747 {offsets = [6, 0, 0], sizes = [1, 8, 1], strides = [1, 1, 1]} : vector<8x8x1xf32> to vector<1x8x1xf32>
    %824 = vector.shape_cast %823 : vector<1x8x1xf32> to vector<8x1xf32>
    %c22_i32 = arith.constant 22 : i32
    %825 = vector.broadcast %c22_i32 : i32 to vector<1x64xi32>
    %826 = arith.cmpi eq, %432, %825 : vector<1x64xi32>
    %827 = arith.extui %826 : vector<1x64xi1> to vector<1x64xi32>
    %828 = arith.sitofp %827 : vector<1x64xi32> to vector<1x64xf32>
    %829 = vector.broadcast %824 : vector<8x1xf32> to vector<8x64xf32>
    %830 = vector.broadcast %828 : vector<1x64xf32> to vector<8x64xf32>
    %831 = arith.mulf %829, %830 : vector<8x64xf32>
    %832 = arith.addf %822, %831 : vector<8x64xf32>
    %833 = vector.extract_strided_slice %747 {offsets = [7, 0, 0], sizes = [1, 8, 1], strides = [1, 1, 1]} : vector<8x8x1xf32> to vector<1x8x1xf32>
    %834 = vector.shape_cast %833 : vector<1x8x1xf32> to vector<8x1xf32>
    %c23_i32 = arith.constant 23 : i32
    %835 = vector.broadcast %c23_i32 : i32 to vector<1x64xi32>
    %836 = arith.cmpi eq, %432, %835 : vector<1x64xi32>
    %837 = arith.extui %836 : vector<1x64xi1> to vector<1x64xi32>
    %838 = arith.sitofp %837 : vector<1x64xi32> to vector<1x64xf32>
    %839 = vector.broadcast %834 : vector<8x1xf32> to vector<8x64xf32>
    %840 = vector.broadcast %838 : vector<1x64xf32> to vector<8x64xf32>
    %841 = arith.mulf %839, %840 : vector<8x64xf32>
    %842 = arith.addf %832, %841 : vector<8x64xf32>
    %843 = arith.addf %706, %842 : vector<8x64xf32>
    %c24 = arith.constant 24 : index
    %c0_193 = arith.constant 0 : index
    %844 = vector.load %arg16[%c24, %c0_193] : memref<64x128xf32, #tpu.memory_space<vmem>>, vector<8x128xf32>
    %cst_194 = arith.constant dense<0.000000e+00> : vector<8x128xf32>
    %845 = tpu.matmul %726, %421, %cst_194 {dimension_numbers = #tpu.dot_dimension_numbers<[1], [0], [0], [1], [0, 0, 1, 1], [], []>} : vector<8x32xf32>, vector<32x128xf32>, vector<8x128xf32> -> vector<8x128xf32>
    %846 = arith.addf %844, %845 : vector<8x128xf32>
    %cst_195 = arith.constant dense<0.000000e+00> : vector<8x128xf32>
    %847 = tpu.matmul %753, %422, %cst_195 {dimension_numbers = #tpu.dot_dimension_numbers<[1], [0], [0], [1], [0, 0, 1, 1], [], []>} : vector<8x32xf32>, vector<32x128xf32>, vector<8x128xf32> -> vector<8x128xf32>
    %848 = arith.addf %846, %847 : vector<8x128xf32>
    %849 = arith.negf %848 : vector<8x128xf32>
    %850 = math.exp %849 : vector<8x128xf32>
    %cst_196 = arith.constant 1.000000e+00 : f32
    %851 = vector.broadcast %cst_196 : f32 to vector<8x128xf32>
    %852 = arith.addf %851, %850 : vector<8x128xf32>
    %853 = arith.divf %851, %852 : vector<8x128xf32>
    %854 = math.tanh %848 : vector<8x128xf32>
    %855 = vector.extract_strided_slice %853 {offsets = [0, 32], sizes = [8, 32], strides = [1, 1]} : vector<8x128xf32> to vector<8x32xf32>
    %856 = arith.mulf %855, %723 : vector<8x32xf32>
    %857 = vector.extract_strided_slice %853 {offsets = [0, 0], sizes = [8, 32], strides = [1, 1]} : vector<8x128xf32> to vector<8x32xf32>
    %858 = vector.extract_strided_slice %854 {offsets = [0, 64], sizes = [8, 32], strides = [1, 1]} : vector<8x128xf32> to vector<8x32xf32>
    %859 = arith.mulf %857, %858 : vector<8x32xf32>
    %860 = arith.addf %856, %859 : vector<8x32xf32>
    %861 = vector.extract_strided_slice %853 {offsets = [0, 96], sizes = [8, 32], strides = [1, 1]} : vector<8x128xf32> to vector<8x32xf32>
    %862 = math.tanh %860 : vector<8x32xf32>
    %863 = arith.mulf %861, %862 : vector<8x32xf32>
    %cst_197 = arith.constant dense<0.000000e+00> : vector<8x64xf32>
    %864 = tpu.matmul %863, %423, %cst_197 {dimension_numbers = #tpu.dot_dimension_numbers<[1], [0], [0], [1], [0, 0, 1, 1], [], []>} : vector<8x32xf32>, vector<32x64xf32>, vector<8x64xf32> -> vector<8x64xf32>
    %865 = vector.extract_strided_slice %864 {offsets = [0, 0], sizes = [8, 32], strides = [1, 1]} : vector<8x64xf32> to vector<8x32xf32>
    %866 = vector.extract_strided_slice %864 {offsets = [0, 32], sizes = [8, 32], strides = [1, 1]} : vector<8x64xf32> to vector<8x32xf32>
    %c0_198 = arith.constant 0 : index
    %c0_199 = arith.constant 0 : index
    %c0_200 = arith.constant 0 : index
    %867 = vector.load %arg17[%c0_198, %c0_199, %c0_200] : memref<8x8x32xf32, #tpu.memory_space<vmem>>, vector<8x8x32xf32>
    %868 = vector.shape_cast %865 : vector<8x32xf32> to vector<1x8x32xf32>
    %869 = vector.broadcast %868 : vector<1x8x32xf32> to vector<8x8x32xf32>
    %870 = arith.mulf %867, %869 : vector<8x8x32xf32>
    %cst_201 = arith.constant dense<0.000000e+00> : vector<8x8xf32>
    %871 = vector.multi_reduction <add>, %870, %cst_201 [2] : vector<8x8x32xf32> to vector<8x8xf32>
    %872 = vector.shape_cast %871 : vector<8x8xf32> to vector<8x8x1xf32>
    %c0_202 = arith.constant 0 : index
    %c0_203 = arith.constant 0 : index
    %c0_204 = arith.constant 0 : index
    %873 = vector.load %arg3[%c0_202, %c0_203, %c0_204] : memref<8x8x1xf32, #tpu.memory_space<vmem>>, vector<8x8x1xf32>
    %874 = arith.addf %872, %873 : vector<8x8x1xf32>
    %cst_205 = arith.constant dense<0xFF800000> : vector<8x1xf32>
    %875 = vector.multi_reduction <maximumf>, %874, %cst_205 [0] : vector<8x8x1xf32> to vector<8x1xf32>
    %876 = vector.shape_cast %875 : vector<8x1xf32> to vector<1x8x1xf32>
    %877 = vector.broadcast %876 : vector<1x8x1xf32> to vector<8x8x1xf32>
    %878 = arith.subf %874, %877 : vector<8x8x1xf32>
    %879 = math.exp %878 : vector<8x8x1xf32>
    %cst_206 = arith.constant dense<0.000000e+00> : vector<8x1xf32>
    %880 = vector.multi_reduction <add>, %879, %cst_206 [0] : vector<8x8x1xf32> to vector<8x1xf32>
    %881 = vector.shape_cast %880 : vector<8x1xf32> to vector<1x8x1xf32>
    %882 = tpu.reciprocal %881 {approx = true} : vector<1x8x1xf32> -> vector<1x8x1xf32>
    %883 = vector.broadcast %882 : vector<1x8x1xf32> to vector<8x8x1xf32>
    %884 = arith.mulf %879, %883 : vector<8x8x1xf32>
    %885 = vector.broadcast %884 : vector<8x8x1xf32> to vector<8x8x32xf32>
    %886 = arith.mulf %885, %867 : vector<8x8x32xf32>
    %cst_207 = arith.constant dense<0.000000e+00> : vector<8x32xf32>
    %887 = vector.multi_reduction <add>, %886, %cst_207 [0] : vector<8x8x32xf32> to vector<8x32xf32>
    %cst_208 = arith.constant dense<0.000000e+00> : vector<8x32xf32>
    %888 = tpu.matmul %887, %424, %cst_208 {dimension_numbers = #tpu.dot_dimension_numbers<[1], [0], [0], [1], [0, 0, 1, 1], [], []>} : vector<8x32xf32>, vector<32x32xf32>, vector<8x32xf32> -> vector<8x32xf32>
    %889 = arith.addf %888, %866 : vector<8x32xf32>
    %890 = math.tanh %889 : vector<8x32xf32>
    %cst_209 = arith.constant dense<0.000000e+00> : vector<8x16xf32>
    %891 = tpu.matmul %890, %425, %cst_209 {dimension_numbers = #tpu.dot_dimension_numbers<[1], [0], [0], [1], [0, 0, 1, 1], [], []>} : vector<8x32xf32>, vector<32x16xf32>, vector<8x16xf32> -> vector<8x16xf32>
    %892 = vector.broadcast %426 : vector<1x16xf32> to vector<8x16xf32>
    %893 = arith.addf %891, %892 : vector<8x16xf32>
    %c48_i32 = arith.constant 48 : i32
    %894 = vector.broadcast %c48_i32 : i32 to vector<16x128xi32>
    %895 = arith.addi %430, %894 : vector<16x128xi32>
    %896 = arith.cmpi eq, %431, %895 : vector<16x128xi32>
    %897 = arith.extui %896 : vector<16x128xi1> to vector<16x128xi32>
    %898 = arith.sitofp %897 : vector<16x128xi32> to vector<16x128xf32>
    %cst_210 = arith.constant dense<0.000000e+00> : vector<8x128xf32>
    %899 = tpu.matmul %893, %898, %cst_210 {dimension_numbers = #tpu.dot_dimension_numbers<[1], [0], [0], [1], [0, 0, 1, 1], [], []>} : vector<8x16xf32>, vector<16x128xf32>, vector<8x128xf32> -> vector<8x128xf32>
    %900 = arith.addf %763, %899 : vector<8x128xf32>
    %901 = vector.extract_strided_slice %884 {offsets = [0, 0, 0], sizes = [1, 8, 1], strides = [1, 1, 1]} : vector<8x8x1xf32> to vector<1x8x1xf32>
    %902 = vector.shape_cast %901 : vector<1x8x1xf32> to vector<8x1xf32>
    %c24_i32 = arith.constant 24 : i32
    %903 = vector.broadcast %c24_i32 : i32 to vector<1x64xi32>
    %904 = arith.cmpi eq, %432, %903 : vector<1x64xi32>
    %905 = arith.extui %904 : vector<1x64xi1> to vector<1x64xi32>
    %906 = arith.sitofp %905 : vector<1x64xi32> to vector<1x64xf32>
    %907 = vector.broadcast %902 : vector<8x1xf32> to vector<8x64xf32>
    %908 = vector.broadcast %906 : vector<1x64xf32> to vector<8x64xf32>
    %909 = arith.mulf %907, %908 : vector<8x64xf32>
    %910 = vector.extract_strided_slice %884 {offsets = [1, 0, 0], sizes = [1, 8, 1], strides = [1, 1, 1]} : vector<8x8x1xf32> to vector<1x8x1xf32>
    %911 = vector.shape_cast %910 : vector<1x8x1xf32> to vector<8x1xf32>
    %c25_i32 = arith.constant 25 : i32
    %912 = vector.broadcast %c25_i32 : i32 to vector<1x64xi32>
    %913 = arith.cmpi eq, %432, %912 : vector<1x64xi32>
    %914 = arith.extui %913 : vector<1x64xi1> to vector<1x64xi32>
    %915 = arith.sitofp %914 : vector<1x64xi32> to vector<1x64xf32>
    %916 = vector.broadcast %911 : vector<8x1xf32> to vector<8x64xf32>
    %917 = vector.broadcast %915 : vector<1x64xf32> to vector<8x64xf32>
    %918 = arith.mulf %916, %917 : vector<8x64xf32>
    %919 = arith.addf %909, %918 : vector<8x64xf32>
    %920 = vector.extract_strided_slice %884 {offsets = [2, 0, 0], sizes = [1, 8, 1], strides = [1, 1, 1]} : vector<8x8x1xf32> to vector<1x8x1xf32>
    %921 = vector.shape_cast %920 : vector<1x8x1xf32> to vector<8x1xf32>
    %c26_i32 = arith.constant 26 : i32
    %922 = vector.broadcast %c26_i32 : i32 to vector<1x64xi32>
    %923 = arith.cmpi eq, %432, %922 : vector<1x64xi32>
    %924 = arith.extui %923 : vector<1x64xi1> to vector<1x64xi32>
    %925 = arith.sitofp %924 : vector<1x64xi32> to vector<1x64xf32>
    %926 = vector.broadcast %921 : vector<8x1xf32> to vector<8x64xf32>
    %927 = vector.broadcast %925 : vector<1x64xf32> to vector<8x64xf32>
    %928 = arith.mulf %926, %927 : vector<8x64xf32>
    %929 = arith.addf %919, %928 : vector<8x64xf32>
    %930 = vector.extract_strided_slice %884 {offsets = [3, 0, 0], sizes = [1, 8, 1], strides = [1, 1, 1]} : vector<8x8x1xf32> to vector<1x8x1xf32>
    %931 = vector.shape_cast %930 : vector<1x8x1xf32> to vector<8x1xf32>
    %c27_i32 = arith.constant 27 : i32
    %932 = vector.broadcast %c27_i32 : i32 to vector<1x64xi32>
    %933 = arith.cmpi eq, %432, %932 : vector<1x64xi32>
    %934 = arith.extui %933 : vector<1x64xi1> to vector<1x64xi32>
    %935 = arith.sitofp %934 : vector<1x64xi32> to vector<1x64xf32>
    %936 = vector.broadcast %931 : vector<8x1xf32> to vector<8x64xf32>
    %937 = vector.broadcast %935 : vector<1x64xf32> to vector<8x64xf32>
    %938 = arith.mulf %936, %937 : vector<8x64xf32>
    %939 = arith.addf %929, %938 : vector<8x64xf32>
    %940 = vector.extract_strided_slice %884 {offsets = [4, 0, 0], sizes = [1, 8, 1], strides = [1, 1, 1]} : vector<8x8x1xf32> to vector<1x8x1xf32>
    %941 = vector.shape_cast %940 : vector<1x8x1xf32> to vector<8x1xf32>
    %c28_i32 = arith.constant 28 : i32
    %942 = vector.broadcast %c28_i32 : i32 to vector<1x64xi32>
    %943 = arith.cmpi eq, %432, %942 : vector<1x64xi32>
    %944 = arith.extui %943 : vector<1x64xi1> to vector<1x64xi32>
    %945 = arith.sitofp %944 : vector<1x64xi32> to vector<1x64xf32>
    %946 = vector.broadcast %941 : vector<8x1xf32> to vector<8x64xf32>
    %947 = vector.broadcast %945 : vector<1x64xf32> to vector<8x64xf32>
    %948 = arith.mulf %946, %947 : vector<8x64xf32>
    %949 = arith.addf %939, %948 : vector<8x64xf32>
    %950 = vector.extract_strided_slice %884 {offsets = [5, 0, 0], sizes = [1, 8, 1], strides = [1, 1, 1]} : vector<8x8x1xf32> to vector<1x8x1xf32>
    %951 = vector.shape_cast %950 : vector<1x8x1xf32> to vector<8x1xf32>
    %c29_i32 = arith.constant 29 : i32
    %952 = vector.broadcast %c29_i32 : i32 to vector<1x64xi32>
    %953 = arith.cmpi eq, %432, %952 : vector<1x64xi32>
    %954 = arith.extui %953 : vector<1x64xi1> to vector<1x64xi32>
    %955 = arith.sitofp %954 : vector<1x64xi32> to vector<1x64xf32>
    %956 = vector.broadcast %951 : vector<8x1xf32> to vector<8x64xf32>
    %957 = vector.broadcast %955 : vector<1x64xf32> to vector<8x64xf32>
    %958 = arith.mulf %956, %957 : vector<8x64xf32>
    %959 = arith.addf %949, %958 : vector<8x64xf32>
    %960 = vector.extract_strided_slice %884 {offsets = [6, 0, 0], sizes = [1, 8, 1], strides = [1, 1, 1]} : vector<8x8x1xf32> to vector<1x8x1xf32>
    %961 = vector.shape_cast %960 : vector<1x8x1xf32> to vector<8x1xf32>
    %c30_i32 = arith.constant 30 : i32
    %962 = vector.broadcast %c30_i32 : i32 to vector<1x64xi32>
    %963 = arith.cmpi eq, %432, %962 : vector<1x64xi32>
    %964 = arith.extui %963 : vector<1x64xi1> to vector<1x64xi32>
    %965 = arith.sitofp %964 : vector<1x64xi32> to vector<1x64xf32>
    %966 = vector.broadcast %961 : vector<8x1xf32> to vector<8x64xf32>
    %967 = vector.broadcast %965 : vector<1x64xf32> to vector<8x64xf32>
    %968 = arith.mulf %966, %967 : vector<8x64xf32>
    %969 = arith.addf %959, %968 : vector<8x64xf32>
    %970 = vector.extract_strided_slice %884 {offsets = [7, 0, 0], sizes = [1, 8, 1], strides = [1, 1, 1]} : vector<8x8x1xf32> to vector<1x8x1xf32>
    %971 = vector.shape_cast %970 : vector<1x8x1xf32> to vector<8x1xf32>
    %c31_i32 = arith.constant 31 : i32
    %972 = vector.broadcast %c31_i32 : i32 to vector<1x64xi32>
    %973 = arith.cmpi eq, %432, %972 : vector<1x64xi32>
    %974 = arith.extui %973 : vector<1x64xi1> to vector<1x64xi32>
    %975 = arith.sitofp %974 : vector<1x64xi32> to vector<1x64xf32>
    %976 = vector.broadcast %971 : vector<8x1xf32> to vector<8x64xf32>
    %977 = vector.broadcast %975 : vector<1x64xf32> to vector<8x64xf32>
    %978 = arith.mulf %976, %977 : vector<8x64xf32>
    %979 = arith.addf %969, %978 : vector<8x64xf32>
    %980 = arith.addf %843, %979 : vector<8x64xf32>
    %c32 = arith.constant 32 : index
    %c0_211 = arith.constant 0 : index
    %981 = vector.load %arg16[%c32, %c0_211] : memref<64x128xf32, #tpu.memory_space<vmem>>, vector<8x128xf32>
    %cst_212 = arith.constant dense<0.000000e+00> : vector<8x128xf32>
    %982 = tpu.matmul %863, %421, %cst_212 {dimension_numbers = #tpu.dot_dimension_numbers<[1], [0], [0], [1], [0, 0, 1, 1], [], []>} : vector<8x32xf32>, vector<32x128xf32>, vector<8x128xf32> -> vector<8x128xf32>
    %983 = arith.addf %981, %982 : vector<8x128xf32>
    %cst_213 = arith.constant dense<0.000000e+00> : vector<8x128xf32>
    %984 = tpu.matmul %890, %422, %cst_213 {dimension_numbers = #tpu.dot_dimension_numbers<[1], [0], [0], [1], [0, 0, 1, 1], [], []>} : vector<8x32xf32>, vector<32x128xf32>, vector<8x128xf32> -> vector<8x128xf32>
    %985 = arith.addf %983, %984 : vector<8x128xf32>
    %986 = arith.negf %985 : vector<8x128xf32>
    %987 = math.exp %986 : vector<8x128xf32>
    %cst_214 = arith.constant 1.000000e+00 : f32
    %988 = vector.broadcast %cst_214 : f32 to vector<8x128xf32>
    %989 = arith.addf %988, %987 : vector<8x128xf32>
    %990 = arith.divf %988, %989 : vector<8x128xf32>
    %991 = math.tanh %985 : vector<8x128xf32>
    %992 = vector.extract_strided_slice %990 {offsets = [0, 32], sizes = [8, 32], strides = [1, 1]} : vector<8x128xf32> to vector<8x32xf32>
    %993 = arith.mulf %992, %860 : vector<8x32xf32>
    %994 = vector.extract_strided_slice %990 {offsets = [0, 0], sizes = [8, 32], strides = [1, 1]} : vector<8x128xf32> to vector<8x32xf32>
    %995 = vector.extract_strided_slice %991 {offsets = [0, 64], sizes = [8, 32], strides = [1, 1]} : vector<8x128xf32> to vector<8x32xf32>
    %996 = arith.mulf %994, %995 : vector<8x32xf32>
    %997 = arith.addf %993, %996 : vector<8x32xf32>
    %998 = vector.extract_strided_slice %990 {offsets = [0, 96], sizes = [8, 32], strides = [1, 1]} : vector<8x128xf32> to vector<8x32xf32>
    %999 = math.tanh %997 : vector<8x32xf32>
    %1000 = arith.mulf %998, %999 : vector<8x32xf32>
    %cst_215 = arith.constant dense<0.000000e+00> : vector<8x64xf32>
    %1001 = tpu.matmul %1000, %423, %cst_215 {dimension_numbers = #tpu.dot_dimension_numbers<[1], [0], [0], [1], [0, 0, 1, 1], [], []>} : vector<8x32xf32>, vector<32x64xf32>, vector<8x64xf32> -> vector<8x64xf32>
    %1002 = vector.extract_strided_slice %1001 {offsets = [0, 0], sizes = [8, 32], strides = [1, 1]} : vector<8x64xf32> to vector<8x32xf32>
    %1003 = vector.extract_strided_slice %1001 {offsets = [0, 32], sizes = [8, 32], strides = [1, 1]} : vector<8x64xf32> to vector<8x32xf32>
    %c0_216 = arith.constant 0 : index
    %c0_217 = arith.constant 0 : index
    %c0_218 = arith.constant 0 : index
    %1004 = vector.load %arg17[%c0_216, %c0_217, %c0_218] : memref<8x8x32xf32, #tpu.memory_space<vmem>>, vector<8x8x32xf32>
    %1005 = vector.shape_cast %1002 : vector<8x32xf32> to vector<1x8x32xf32>
    %1006 = vector.broadcast %1005 : vector<1x8x32xf32> to vector<8x8x32xf32>
    %1007 = arith.mulf %1004, %1006 : vector<8x8x32xf32>
    %cst_219 = arith.constant dense<0.000000e+00> : vector<8x8xf32>
    %1008 = vector.multi_reduction <add>, %1007, %cst_219 [2] : vector<8x8x32xf32> to vector<8x8xf32>
    %1009 = vector.shape_cast %1008 : vector<8x8xf32> to vector<8x8x1xf32>
    %c0_220 = arith.constant 0 : index
    %c0_221 = arith.constant 0 : index
    %c0_222 = arith.constant 0 : index
    %1010 = vector.load %arg3[%c0_220, %c0_221, %c0_222] : memref<8x8x1xf32, #tpu.memory_space<vmem>>, vector<8x8x1xf32>
    %1011 = arith.addf %1009, %1010 : vector<8x8x1xf32>
    %cst_223 = arith.constant dense<0xFF800000> : vector<8x1xf32>
    %1012 = vector.multi_reduction <maximumf>, %1011, %cst_223 [0] : vector<8x8x1xf32> to vector<8x1xf32>
    %1013 = vector.shape_cast %1012 : vector<8x1xf32> to vector<1x8x1xf32>
    %1014 = vector.broadcast %1013 : vector<1x8x1xf32> to vector<8x8x1xf32>
    %1015 = arith.subf %1011, %1014 : vector<8x8x1xf32>
    %1016 = math.exp %1015 : vector<8x8x1xf32>
    %cst_224 = arith.constant dense<0.000000e+00> : vector<8x1xf32>
    %1017 = vector.multi_reduction <add>, %1016, %cst_224 [0] : vector<8x8x1xf32> to vector<8x1xf32>
    %1018 = vector.shape_cast %1017 : vector<8x1xf32> to vector<1x8x1xf32>
    %1019 = tpu.reciprocal %1018 {approx = true} : vector<1x8x1xf32> -> vector<1x8x1xf32>
    %1020 = vector.broadcast %1019 : vector<1x8x1xf32> to vector<8x8x1xf32>
    %1021 = arith.mulf %1016, %1020 : vector<8x8x1xf32>
    %1022 = vector.broadcast %1021 : vector<8x8x1xf32> to vector<8x8x32xf32>
    %1023 = arith.mulf %1022, %1004 : vector<8x8x32xf32>
    %cst_225 = arith.constant dense<0.000000e+00> : vector<8x32xf32>
    %1024 = vector.multi_reduction <add>, %1023, %cst_225 [0] : vector<8x8x32xf32> to vector<8x32xf32>
    %cst_226 = arith.constant dense<0.000000e+00> : vector<8x32xf32>
    %1025 = tpu.matmul %1024, %424, %cst_226 {dimension_numbers = #tpu.dot_dimension_numbers<[1], [0], [0], [1], [0, 0, 1, 1], [], []>} : vector<8x32xf32>, vector<32x32xf32>, vector<8x32xf32> -> vector<8x32xf32>
    %1026 = arith.addf %1025, %1003 : vector<8x32xf32>
    %1027 = math.tanh %1026 : vector<8x32xf32>
    %cst_227 = arith.constant dense<0.000000e+00> : vector<8x16xf32>
    %1028 = tpu.matmul %1027, %425, %cst_227 {dimension_numbers = #tpu.dot_dimension_numbers<[1], [0], [0], [1], [0, 0, 1, 1], [], []>} : vector<8x32xf32>, vector<32x16xf32>, vector<8x16xf32> -> vector<8x16xf32>
    %1029 = vector.broadcast %426 : vector<1x16xf32> to vector<8x16xf32>
    %1030 = arith.addf %1028, %1029 : vector<8x16xf32>
    %c64_i32 = arith.constant 64 : i32
    %1031 = vector.broadcast %c64_i32 : i32 to vector<16x128xi32>
    %1032 = arith.addi %430, %1031 : vector<16x128xi32>
    %1033 = arith.cmpi eq, %431, %1032 : vector<16x128xi32>
    %1034 = arith.extui %1033 : vector<16x128xi1> to vector<16x128xi32>
    %1035 = arith.sitofp %1034 : vector<16x128xi32> to vector<16x128xf32>
    %cst_228 = arith.constant dense<0.000000e+00> : vector<8x128xf32>
    %1036 = tpu.matmul %1030, %1035, %cst_228 {dimension_numbers = #tpu.dot_dimension_numbers<[1], [0], [0], [1], [0, 0, 1, 1], [], []>} : vector<8x16xf32>, vector<16x128xf32>, vector<8x128xf32> -> vector<8x128xf32>
    %1037 = arith.addf %900, %1036 : vector<8x128xf32>
    %1038 = vector.extract_strided_slice %1021 {offsets = [0, 0, 0], sizes = [1, 8, 1], strides = [1, 1, 1]} : vector<8x8x1xf32> to vector<1x8x1xf32>
    %1039 = vector.shape_cast %1038 : vector<1x8x1xf32> to vector<8x1xf32>
    %c32_i32_229 = arith.constant 32 : i32
    %1040 = vector.broadcast %c32_i32_229 : i32 to vector<1x64xi32>
    %1041 = arith.cmpi eq, %432, %1040 : vector<1x64xi32>
    %1042 = arith.extui %1041 : vector<1x64xi1> to vector<1x64xi32>
    %1043 = arith.sitofp %1042 : vector<1x64xi32> to vector<1x64xf32>
    %1044 = vector.broadcast %1039 : vector<8x1xf32> to vector<8x64xf32>
    %1045 = vector.broadcast %1043 : vector<1x64xf32> to vector<8x64xf32>
    %1046 = arith.mulf %1044, %1045 : vector<8x64xf32>
    %1047 = vector.extract_strided_slice %1021 {offsets = [1, 0, 0], sizes = [1, 8, 1], strides = [1, 1, 1]} : vector<8x8x1xf32> to vector<1x8x1xf32>
    %1048 = vector.shape_cast %1047 : vector<1x8x1xf32> to vector<8x1xf32>
    %c33_i32 = arith.constant 33 : i32
    %1049 = vector.broadcast %c33_i32 : i32 to vector<1x64xi32>
    %1050 = arith.cmpi eq, %432, %1049 : vector<1x64xi32>
    %1051 = arith.extui %1050 : vector<1x64xi1> to vector<1x64xi32>
    %1052 = arith.sitofp %1051 : vector<1x64xi32> to vector<1x64xf32>
    %1053 = vector.broadcast %1048 : vector<8x1xf32> to vector<8x64xf32>
    %1054 = vector.broadcast %1052 : vector<1x64xf32> to vector<8x64xf32>
    %1055 = arith.mulf %1053, %1054 : vector<8x64xf32>
    %1056 = arith.addf %1046, %1055 : vector<8x64xf32>
    %1057 = vector.extract_strided_slice %1021 {offsets = [2, 0, 0], sizes = [1, 8, 1], strides = [1, 1, 1]} : vector<8x8x1xf32> to vector<1x8x1xf32>
    %1058 = vector.shape_cast %1057 : vector<1x8x1xf32> to vector<8x1xf32>
    %c34_i32 = arith.constant 34 : i32
    %1059 = vector.broadcast %c34_i32 : i32 to vector<1x64xi32>
    %1060 = arith.cmpi eq, %432, %1059 : vector<1x64xi32>
    %1061 = arith.extui %1060 : vector<1x64xi1> to vector<1x64xi32>
    %1062 = arith.sitofp %1061 : vector<1x64xi32> to vector<1x64xf32>
    %1063 = vector.broadcast %1058 : vector<8x1xf32> to vector<8x64xf32>
    %1064 = vector.broadcast %1062 : vector<1x64xf32> to vector<8x64xf32>
    %1065 = arith.mulf %1063, %1064 : vector<8x64xf32>
    %1066 = arith.addf %1056, %1065 : vector<8x64xf32>
    %1067 = vector.extract_strided_slice %1021 {offsets = [3, 0, 0], sizes = [1, 8, 1], strides = [1, 1, 1]} : vector<8x8x1xf32> to vector<1x8x1xf32>
    %1068 = vector.shape_cast %1067 : vector<1x8x1xf32> to vector<8x1xf32>
    %c35_i32 = arith.constant 35 : i32
    %1069 = vector.broadcast %c35_i32 : i32 to vector<1x64xi32>
    %1070 = arith.cmpi eq, %432, %1069 : vector<1x64xi32>
    %1071 = arith.extui %1070 : vector<1x64xi1> to vector<1x64xi32>
    %1072 = arith.sitofp %1071 : vector<1x64xi32> to vector<1x64xf32>
    %1073 = vector.broadcast %1068 : vector<8x1xf32> to vector<8x64xf32>
    %1074 = vector.broadcast %1072 : vector<1x64xf32> to vector<8x64xf32>
    %1075 = arith.mulf %1073, %1074 : vector<8x64xf32>
    %1076 = arith.addf %1066, %1075 : vector<8x64xf32>
    %1077 = vector.extract_strided_slice %1021 {offsets = [4, 0, 0], sizes = [1, 8, 1], strides = [1, 1, 1]} : vector<8x8x1xf32> to vector<1x8x1xf32>
    %1078 = vector.shape_cast %1077 : vector<1x8x1xf32> to vector<8x1xf32>
    %c36_i32 = arith.constant 36 : i32
    %1079 = vector.broadcast %c36_i32 : i32 to vector<1x64xi32>
    %1080 = arith.cmpi eq, %432, %1079 : vector<1x64xi32>
    %1081 = arith.extui %1080 : vector<1x64xi1> to vector<1x64xi32>
    %1082 = arith.sitofp %1081 : vector<1x64xi32> to vector<1x64xf32>
    %1083 = vector.broadcast %1078 : vector<8x1xf32> to vector<8x64xf32>
    %1084 = vector.broadcast %1082 : vector<1x64xf32> to vector<8x64xf32>
    %1085 = arith.mulf %1083, %1084 : vector<8x64xf32>
    %1086 = arith.addf %1076, %1085 : vector<8x64xf32>
    %1087 = vector.extract_strided_slice %1021 {offsets = [5, 0, 0], sizes = [1, 8, 1], strides = [1, 1, 1]} : vector<8x8x1xf32> to vector<1x8x1xf32>
    %1088 = vector.shape_cast %1087 : vector<1x8x1xf32> to vector<8x1xf32>
    %c37_i32 = arith.constant 37 : i32
    %1089 = vector.broadcast %c37_i32 : i32 to vector<1x64xi32>
    %1090 = arith.cmpi eq, %432, %1089 : vector<1x64xi32>
    %1091 = arith.extui %1090 : vector<1x64xi1> to vector<1x64xi32>
    %1092 = arith.sitofp %1091 : vector<1x64xi32> to vector<1x64xf32>
    %1093 = vector.broadcast %1088 : vector<8x1xf32> to vector<8x64xf32>
    %1094 = vector.broadcast %1092 : vector<1x64xf32> to vector<8x64xf32>
    %1095 = arith.mulf %1093, %1094 : vector<8x64xf32>
    %1096 = arith.addf %1086, %1095 : vector<8x64xf32>
    %1097 = vector.extract_strided_slice %1021 {offsets = [6, 0, 0], sizes = [1, 8, 1], strides = [1, 1, 1]} : vector<8x8x1xf32> to vector<1x8x1xf32>
    %1098 = vector.shape_cast %1097 : vector<1x8x1xf32> to vector<8x1xf32>
    %c38_i32 = arith.constant 38 : i32
    %1099 = vector.broadcast %c38_i32 : i32 to vector<1x64xi32>
    %1100 = arith.cmpi eq, %432, %1099 : vector<1x64xi32>
    %1101 = arith.extui %1100 : vector<1x64xi1> to vector<1x64xi32>
    %1102 = arith.sitofp %1101 : vector<1x64xi32> to vector<1x64xf32>
    %1103 = vector.broadcast %1098 : vector<8x1xf32> to vector<8x64xf32>
    %1104 = vector.broadcast %1102 : vector<1x64xf32> to vector<8x64xf32>
    %1105 = arith.mulf %1103, %1104 : vector<8x64xf32>
    %1106 = arith.addf %1096, %1105 : vector<8x64xf32>
    %1107 = vector.extract_strided_slice %1021 {offsets = [7, 0, 0], sizes = [1, 8, 1], strides = [1, 1, 1]} : vector<8x8x1xf32> to vector<1x8x1xf32>
    %1108 = vector.shape_cast %1107 : vector<1x8x1xf32> to vector<8x1xf32>
    %c39_i32 = arith.constant 39 : i32
    %1109 = vector.broadcast %c39_i32 : i32 to vector<1x64xi32>
    %1110 = arith.cmpi eq, %432, %1109 : vector<1x64xi32>
    %1111 = arith.extui %1110 : vector<1x64xi1> to vector<1x64xi32>
    %1112 = arith.sitofp %1111 : vector<1x64xi32> to vector<1x64xf32>
    %1113 = vector.broadcast %1108 : vector<8x1xf32> to vector<8x64xf32>
    %1114 = vector.broadcast %1112 : vector<1x64xf32> to vector<8x64xf32>
    %1115 = arith.mulf %1113, %1114 : vector<8x64xf32>
    %1116 = arith.addf %1106, %1115 : vector<8x64xf32>
    %1117 = arith.addf %980, %1116 : vector<8x64xf32>
    %c40 = arith.constant 40 : index
    %c0_230 = arith.constant 0 : index
    %1118 = vector.load %arg16[%c40, %c0_230] : memref<64x128xf32, #tpu.memory_space<vmem>>, vector<8x128xf32>
    %cst_231 = arith.constant dense<0.000000e+00> : vector<8x128xf32>
    %1119 = tpu.matmul %1000, %421, %cst_231 {dimension_numbers = #tpu.dot_dimension_numbers<[1], [0], [0], [1], [0, 0, 1, 1], [], []>} : vector<8x32xf32>, vector<32x128xf32>, vector<8x128xf32> -> vector<8x128xf32>
    %1120 = arith.addf %1118, %1119 : vector<8x128xf32>
    %cst_232 = arith.constant dense<0.000000e+00> : vector<8x128xf32>
    %1121 = tpu.matmul %1027, %422, %cst_232 {dimension_numbers = #tpu.dot_dimension_numbers<[1], [0], [0], [1], [0, 0, 1, 1], [], []>} : vector<8x32xf32>, vector<32x128xf32>, vector<8x128xf32> -> vector<8x128xf32>
    %1122 = arith.addf %1120, %1121 : vector<8x128xf32>
    %1123 = arith.negf %1122 : vector<8x128xf32>
    %1124 = math.exp %1123 : vector<8x128xf32>
    %cst_233 = arith.constant 1.000000e+00 : f32
    %1125 = vector.broadcast %cst_233 : f32 to vector<8x128xf32>
    %1126 = arith.addf %1125, %1124 : vector<8x128xf32>
    %1127 = arith.divf %1125, %1126 : vector<8x128xf32>
    %1128 = math.tanh %1122 : vector<8x128xf32>
    %1129 = vector.extract_strided_slice %1127 {offsets = [0, 32], sizes = [8, 32], strides = [1, 1]} : vector<8x128xf32> to vector<8x32xf32>
    %1130 = arith.mulf %1129, %997 : vector<8x32xf32>
    %1131 = vector.extract_strided_slice %1127 {offsets = [0, 0], sizes = [8, 32], strides = [1, 1]} : vector<8x128xf32> to vector<8x32xf32>
    %1132 = vector.extract_strided_slice %1128 {offsets = [0, 64], sizes = [8, 32], strides = [1, 1]} : vector<8x128xf32> to vector<8x32xf32>
    %1133 = arith.mulf %1131, %1132 : vector<8x32xf32>
    %1134 = arith.addf %1130, %1133 : vector<8x32xf32>
    %1135 = vector.extract_strided_slice %1127 {offsets = [0, 96], sizes = [8, 32], strides = [1, 1]} : vector<8x128xf32> to vector<8x32xf32>
    %1136 = math.tanh %1134 : vector<8x32xf32>
    %1137 = arith.mulf %1135, %1136 : vector<8x32xf32>
    %cst_234 = arith.constant dense<0.000000e+00> : vector<8x64xf32>
    %1138 = tpu.matmul %1137, %423, %cst_234 {dimension_numbers = #tpu.dot_dimension_numbers<[1], [0], [0], [1], [0, 0, 1, 1], [], []>} : vector<8x32xf32>, vector<32x64xf32>, vector<8x64xf32> -> vector<8x64xf32>
    %1139 = vector.extract_strided_slice %1138 {offsets = [0, 0], sizes = [8, 32], strides = [1, 1]} : vector<8x64xf32> to vector<8x32xf32>
    %1140 = vector.extract_strided_slice %1138 {offsets = [0, 32], sizes = [8, 32], strides = [1, 1]} : vector<8x64xf32> to vector<8x32xf32>
    %c0_235 = arith.constant 0 : index
    %c0_236 = arith.constant 0 : index
    %c0_237 = arith.constant 0 : index
    %1141 = vector.load %arg17[%c0_235, %c0_236, %c0_237] : memref<8x8x32xf32, #tpu.memory_space<vmem>>, vector<8x8x32xf32>
    %1142 = vector.shape_cast %1139 : vector<8x32xf32> to vector<1x8x32xf32>
    %1143 = vector.broadcast %1142 : vector<1x8x32xf32> to vector<8x8x32xf32>
    %1144 = arith.mulf %1141, %1143 : vector<8x8x32xf32>
    %cst_238 = arith.constant dense<0.000000e+00> : vector<8x8xf32>
    %1145 = vector.multi_reduction <add>, %1144, %cst_238 [2] : vector<8x8x32xf32> to vector<8x8xf32>
    %1146 = vector.shape_cast %1145 : vector<8x8xf32> to vector<8x8x1xf32>
    %c0_239 = arith.constant 0 : index
    %c0_240 = arith.constant 0 : index
    %c0_241 = arith.constant 0 : index
    %1147 = vector.load %arg3[%c0_239, %c0_240, %c0_241] : memref<8x8x1xf32, #tpu.memory_space<vmem>>, vector<8x8x1xf32>
    %1148 = arith.addf %1146, %1147 : vector<8x8x1xf32>
    %cst_242 = arith.constant dense<0xFF800000> : vector<8x1xf32>
    %1149 = vector.multi_reduction <maximumf>, %1148, %cst_242 [0] : vector<8x8x1xf32> to vector<8x1xf32>
    %1150 = vector.shape_cast %1149 : vector<8x1xf32> to vector<1x8x1xf32>
    %1151 = vector.broadcast %1150 : vector<1x8x1xf32> to vector<8x8x1xf32>
    %1152 = arith.subf %1148, %1151 : vector<8x8x1xf32>
    %1153 = math.exp %1152 : vector<8x8x1xf32>
    %cst_243 = arith.constant dense<0.000000e+00> : vector<8x1xf32>
    %1154 = vector.multi_reduction <add>, %1153, %cst_243 [0] : vector<8x8x1xf32> to vector<8x1xf32>
    %1155 = vector.shape_cast %1154 : vector<8x1xf32> to vector<1x8x1xf32>
    %1156 = tpu.reciprocal %1155 {approx = true} : vector<1x8x1xf32> -> vector<1x8x1xf32>
    %1157 = vector.broadcast %1156 : vector<1x8x1xf32> to vector<8x8x1xf32>
    %1158 = arith.mulf %1153, %1157 : vector<8x8x1xf32>
    %1159 = vector.broadcast %1158 : vector<8x8x1xf32> to vector<8x8x32xf32>
    %1160 = arith.mulf %1159, %1141 : vector<8x8x32xf32>
    %cst_244 = arith.constant dense<0.000000e+00> : vector<8x32xf32>
    %1161 = vector.multi_reduction <add>, %1160, %cst_244 [0] : vector<8x8x32xf32> to vector<8x32xf32>
    %cst_245 = arith.constant dense<0.000000e+00> : vector<8x32xf32>
    %1162 = tpu.matmul %1161, %424, %cst_245 {dimension_numbers = #tpu.dot_dimension_numbers<[1], [0], [0], [1], [0, 0, 1, 1], [], []>} : vector<8x32xf32>, vector<32x32xf32>, vector<8x32xf32> -> vector<8x32xf32>
    %1163 = arith.addf %1162, %1140 : vector<8x32xf32>
    %1164 = math.tanh %1163 : vector<8x32xf32>
    %cst_246 = arith.constant dense<0.000000e+00> : vector<8x16xf32>
    %1165 = tpu.matmul %1164, %425, %cst_246 {dimension_numbers = #tpu.dot_dimension_numbers<[1], [0], [0], [1], [0, 0, 1, 1], [], []>} : vector<8x32xf32>, vector<32x16xf32>, vector<8x16xf32> -> vector<8x16xf32>
    %1166 = vector.broadcast %426 : vector<1x16xf32> to vector<8x16xf32>
    %1167 = arith.addf %1165, %1166 : vector<8x16xf32>
    %c80_i32 = arith.constant 80 : i32
    %1168 = vector.broadcast %c80_i32 : i32 to vector<16x128xi32>
    %1169 = arith.addi %430, %1168 : vector<16x128xi32>
    %1170 = arith.cmpi eq, %431, %1169 : vector<16x128xi32>
    %1171 = arith.extui %1170 : vector<16x128xi1> to vector<16x128xi32>
    %1172 = arith.sitofp %1171 : vector<16x128xi32> to vector<16x128xf32>
    %cst_247 = arith.constant dense<0.000000e+00> : vector<8x128xf32>
    %1173 = tpu.matmul %1167, %1172, %cst_247 {dimension_numbers = #tpu.dot_dimension_numbers<[1], [0], [0], [1], [0, 0, 1, 1], [], []>} : vector<8x16xf32>, vector<16x128xf32>, vector<8x128xf32> -> vector<8x128xf32>
    %1174 = arith.addf %1037, %1173 : vector<8x128xf32>
    %1175 = vector.extract_strided_slice %1158 {offsets = [0, 0, 0], sizes = [1, 8, 1], strides = [1, 1, 1]} : vector<8x8x1xf32> to vector<1x8x1xf32>
    %1176 = vector.shape_cast %1175 : vector<1x8x1xf32> to vector<8x1xf32>
    %c40_i32 = arith.constant 40 : i32
    %1177 = vector.broadcast %c40_i32 : i32 to vector<1x64xi32>
    %1178 = arith.cmpi eq, %432, %1177 : vector<1x64xi32>
    %1179 = arith.extui %1178 : vector<1x64xi1> to vector<1x64xi32>
    %1180 = arith.sitofp %1179 : vector<1x64xi32> to vector<1x64xf32>
    %1181 = vector.broadcast %1176 : vector<8x1xf32> to vector<8x64xf32>
    %1182 = vector.broadcast %1180 : vector<1x64xf32> to vector<8x64xf32>
    %1183 = arith.mulf %1181, %1182 : vector<8x64xf32>
    %1184 = vector.extract_strided_slice %1158 {offsets = [1, 0, 0], sizes = [1, 8, 1], strides = [1, 1, 1]} : vector<8x8x1xf32> to vector<1x8x1xf32>
    %1185 = vector.shape_cast %1184 : vector<1x8x1xf32> to vector<8x1xf32>
    %c41_i32 = arith.constant 41 : i32
    %1186 = vector.broadcast %c41_i32 : i32 to vector<1x64xi32>
    %1187 = arith.cmpi eq, %432, %1186 : vector<1x64xi32>
    %1188 = arith.extui %1187 : vector<1x64xi1> to vector<1x64xi32>
    %1189 = arith.sitofp %1188 : vector<1x64xi32> to vector<1x64xf32>
    %1190 = vector.broadcast %1185 : vector<8x1xf32> to vector<8x64xf32>
    %1191 = vector.broadcast %1189 : vector<1x64xf32> to vector<8x64xf32>
    %1192 = arith.mulf %1190, %1191 : vector<8x64xf32>
    %1193 = arith.addf %1183, %1192 : vector<8x64xf32>
    %1194 = vector.extract_strided_slice %1158 {offsets = [2, 0, 0], sizes = [1, 8, 1], strides = [1, 1, 1]} : vector<8x8x1xf32> to vector<1x8x1xf32>
    %1195 = vector.shape_cast %1194 : vector<1x8x1xf32> to vector<8x1xf32>
    %c42_i32 = arith.constant 42 : i32
    %1196 = vector.broadcast %c42_i32 : i32 to vector<1x64xi32>
    %1197 = arith.cmpi eq, %432, %1196 : vector<1x64xi32>
    %1198 = arith.extui %1197 : vector<1x64xi1> to vector<1x64xi32>
    %1199 = arith.sitofp %1198 : vector<1x64xi32> to vector<1x64xf32>
    %1200 = vector.broadcast %1195 : vector<8x1xf32> to vector<8x64xf32>
    %1201 = vector.broadcast %1199 : vector<1x64xf32> to vector<8x64xf32>
    %1202 = arith.mulf %1200, %1201 : vector<8x64xf32>
    %1203 = arith.addf %1193, %1202 : vector<8x64xf32>
    %1204 = vector.extract_strided_slice %1158 {offsets = [3, 0, 0], sizes = [1, 8, 1], strides = [1, 1, 1]} : vector<8x8x1xf32> to vector<1x8x1xf32>
    %1205 = vector.shape_cast %1204 : vector<1x8x1xf32> to vector<8x1xf32>
    %c43_i32 = arith.constant 43 : i32
    %1206 = vector.broadcast %c43_i32 : i32 to vector<1x64xi32>
    %1207 = arith.cmpi eq, %432, %1206 : vector<1x64xi32>
    %1208 = arith.extui %1207 : vector<1x64xi1> to vector<1x64xi32>
    %1209 = arith.sitofp %1208 : vector<1x64xi32> to vector<1x64xf32>
    %1210 = vector.broadcast %1205 : vector<8x1xf32> to vector<8x64xf32>
    %1211 = vector.broadcast %1209 : vector<1x64xf32> to vector<8x64xf32>
    %1212 = arith.mulf %1210, %1211 : vector<8x64xf32>
    %1213 = arith.addf %1203, %1212 : vector<8x64xf32>
    %1214 = vector.extract_strided_slice %1158 {offsets = [4, 0, 0], sizes = [1, 8, 1], strides = [1, 1, 1]} : vector<8x8x1xf32> to vector<1x8x1xf32>
    %1215 = vector.shape_cast %1214 : vector<1x8x1xf32> to vector<8x1xf32>
    %c44_i32 = arith.constant 44 : i32
    %1216 = vector.broadcast %c44_i32 : i32 to vector<1x64xi32>
    %1217 = arith.cmpi eq, %432, %1216 : vector<1x64xi32>
    %1218 = arith.extui %1217 : vector<1x64xi1> to vector<1x64xi32>
    %1219 = arith.sitofp %1218 : vector<1x64xi32> to vector<1x64xf32>
    %1220 = vector.broadcast %1215 : vector<8x1xf32> to vector<8x64xf32>
    %1221 = vector.broadcast %1219 : vector<1x64xf32> to vector<8x64xf32>
    %1222 = arith.mulf %1220, %1221 : vector<8x64xf32>
    %1223 = arith.addf %1213, %1222 : vector<8x64xf32>
    %1224 = vector.extract_strided_slice %1158 {offsets = [5, 0, 0], sizes = [1, 8, 1], strides = [1, 1, 1]} : vector<8x8x1xf32> to vector<1x8x1xf32>
    %1225 = vector.shape_cast %1224 : vector<1x8x1xf32> to vector<8x1xf32>
    %c45_i32 = arith.constant 45 : i32
    %1226 = vector.broadcast %c45_i32 : i32 to vector<1x64xi32>
    %1227 = arith.cmpi eq, %432, %1226 : vector<1x64xi32>
    %1228 = arith.extui %1227 : vector<1x64xi1> to vector<1x64xi32>
    %1229 = arith.sitofp %1228 : vector<1x64xi32> to vector<1x64xf32>
    %1230 = vector.broadcast %1225 : vector<8x1xf32> to vector<8x64xf32>
    %1231 = vector.broadcast %1229 : vector<1x64xf32> to vector<8x64xf32>
    %1232 = arith.mulf %1230, %1231 : vector<8x64xf32>
    %1233 = arith.addf %1223, %1232 : vector<8x64xf32>
    %1234 = vector.extract_strided_slice %1158 {offsets = [6, 0, 0], sizes = [1, 8, 1], strides = [1, 1, 1]} : vector<8x8x1xf32> to vector<1x8x1xf32>
    %1235 = vector.shape_cast %1234 : vector<1x8x1xf32> to vector<8x1xf32>
    %c46_i32 = arith.constant 46 : i32
    %1236 = vector.broadcast %c46_i32 : i32 to vector<1x64xi32>
    %1237 = arith.cmpi eq, %432, %1236 : vector<1x64xi32>
    %1238 = arith.extui %1237 : vector<1x64xi1> to vector<1x64xi32>
    %1239 = arith.sitofp %1238 : vector<1x64xi32> to vector<1x64xf32>
    %1240 = vector.broadcast %1235 : vector<8x1xf32> to vector<8x64xf32>
    %1241 = vector.broadcast %1239 : vector<1x64xf32> to vector<8x64xf32>
    %1242 = arith.mulf %1240, %1241 : vector<8x64xf32>
    %1243 = arith.addf %1233, %1242 : vector<8x64xf32>
    %1244 = vector.extract_strided_slice %1158 {offsets = [7, 0, 0], sizes = [1, 8, 1], strides = [1, 1, 1]} : vector<8x8x1xf32> to vector<1x8x1xf32>
    %1245 = vector.shape_cast %1244 : vector<1x8x1xf32> to vector<8x1xf32>
    %c47_i32 = arith.constant 47 : i32
    %1246 = vector.broadcast %c47_i32 : i32 to vector<1x64xi32>
    %1247 = arith.cmpi eq, %432, %1246 : vector<1x64xi32>
    %1248 = arith.extui %1247 : vector<1x64xi1> to vector<1x64xi32>
    %1249 = arith.sitofp %1248 : vector<1x64xi32> to vector<1x64xf32>
    %1250 = vector.broadcast %1245 : vector<8x1xf32> to vector<8x64xf32>
    %1251 = vector.broadcast %1249 : vector<1x64xf32> to vector<8x64xf32>
    %1252 = arith.mulf %1250, %1251 : vector<8x64xf32>
    %1253 = arith.addf %1243, %1252 : vector<8x64xf32>
    %1254 = arith.addf %1117, %1253 : vector<8x64xf32>
    %c48 = arith.constant 48 : index
    %c0_248 = arith.constant 0 : index
    %1255 = vector.load %arg16[%c48, %c0_248] : memref<64x128xf32, #tpu.memory_space<vmem>>, vector<8x128xf32>
    %cst_249 = arith.constant dense<0.000000e+00> : vector<8x128xf32>
    %1256 = tpu.matmul %1137, %421, %cst_249 {dimension_numbers = #tpu.dot_dimension_numbers<[1], [0], [0], [1], [0, 0, 1, 1], [], []>} : vector<8x32xf32>, vector<32x128xf32>, vector<8x128xf32> -> vector<8x128xf32>
    %1257 = arith.addf %1255, %1256 : vector<8x128xf32>
    %cst_250 = arith.constant dense<0.000000e+00> : vector<8x128xf32>
    %1258 = tpu.matmul %1164, %422, %cst_250 {dimension_numbers = #tpu.dot_dimension_numbers<[1], [0], [0], [1], [0, 0, 1, 1], [], []>} : vector<8x32xf32>, vector<32x128xf32>, vector<8x128xf32> -> vector<8x128xf32>
    %1259 = arith.addf %1257, %1258 : vector<8x128xf32>
    %1260 = arith.negf %1259 : vector<8x128xf32>
    %1261 = math.exp %1260 : vector<8x128xf32>
    %cst_251 = arith.constant 1.000000e+00 : f32
    %1262 = vector.broadcast %cst_251 : f32 to vector<8x128xf32>
    %1263 = arith.addf %1262, %1261 : vector<8x128xf32>
    %1264 = arith.divf %1262, %1263 : vector<8x128xf32>
    %1265 = math.tanh %1259 : vector<8x128xf32>
    %1266 = vector.extract_strided_slice %1264 {offsets = [0, 32], sizes = [8, 32], strides = [1, 1]} : vector<8x128xf32> to vector<8x32xf32>
    %1267 = arith.mulf %1266, %1134 : vector<8x32xf32>
    %1268 = vector.extract_strided_slice %1264 {offsets = [0, 0], sizes = [8, 32], strides = [1, 1]} : vector<8x128xf32> to vector<8x32xf32>
    %1269 = vector.extract_strided_slice %1265 {offsets = [0, 64], sizes = [8, 32], strides = [1, 1]} : vector<8x128xf32> to vector<8x32xf32>
    %1270 = arith.mulf %1268, %1269 : vector<8x32xf32>
    %1271 = arith.addf %1267, %1270 : vector<8x32xf32>
    %1272 = vector.extract_strided_slice %1264 {offsets = [0, 96], sizes = [8, 32], strides = [1, 1]} : vector<8x128xf32> to vector<8x32xf32>
    %1273 = math.tanh %1271 : vector<8x32xf32>
    %1274 = arith.mulf %1272, %1273 : vector<8x32xf32>
    %cst_252 = arith.constant dense<0.000000e+00> : vector<8x64xf32>
    %1275 = tpu.matmul %1274, %423, %cst_252 {dimension_numbers = #tpu.dot_dimension_numbers<[1], [0], [0], [1], [0, 0, 1, 1], [], []>} : vector<8x32xf32>, vector<32x64xf32>, vector<8x64xf32> -> vector<8x64xf32>
    %1276 = vector.extract_strided_slice %1275 {offsets = [0, 0], sizes = [8, 32], strides = [1, 1]} : vector<8x64xf32> to vector<8x32xf32>
    %1277 = vector.extract_strided_slice %1275 {offsets = [0, 32], sizes = [8, 32], strides = [1, 1]} : vector<8x64xf32> to vector<8x32xf32>
    %c0_253 = arith.constant 0 : index
    %c0_254 = arith.constant 0 : index
    %c0_255 = arith.constant 0 : index
    %1278 = vector.load %arg17[%c0_253, %c0_254, %c0_255] : memref<8x8x32xf32, #tpu.memory_space<vmem>>, vector<8x8x32xf32>
    %1279 = vector.shape_cast %1276 : vector<8x32xf32> to vector<1x8x32xf32>
    %1280 = vector.broadcast %1279 : vector<1x8x32xf32> to vector<8x8x32xf32>
    %1281 = arith.mulf %1278, %1280 : vector<8x8x32xf32>
    %cst_256 = arith.constant dense<0.000000e+00> : vector<8x8xf32>
    %1282 = vector.multi_reduction <add>, %1281, %cst_256 [2] : vector<8x8x32xf32> to vector<8x8xf32>
    %1283 = vector.shape_cast %1282 : vector<8x8xf32> to vector<8x8x1xf32>
    %c0_257 = arith.constant 0 : index
    %c0_258 = arith.constant 0 : index
    %c0_259 = arith.constant 0 : index
    %1284 = vector.load %arg3[%c0_257, %c0_258, %c0_259] : memref<8x8x1xf32, #tpu.memory_space<vmem>>, vector<8x8x1xf32>
    %1285 = arith.addf %1283, %1284 : vector<8x8x1xf32>
    %cst_260 = arith.constant dense<0xFF800000> : vector<8x1xf32>
    %1286 = vector.multi_reduction <maximumf>, %1285, %cst_260 [0] : vector<8x8x1xf32> to vector<8x1xf32>
    %1287 = vector.shape_cast %1286 : vector<8x1xf32> to vector<1x8x1xf32>
    %1288 = vector.broadcast %1287 : vector<1x8x1xf32> to vector<8x8x1xf32>
    %1289 = arith.subf %1285, %1288 : vector<8x8x1xf32>
    %1290 = math.exp %1289 : vector<8x8x1xf32>
    %cst_261 = arith.constant dense<0.000000e+00> : vector<8x1xf32>
    %1291 = vector.multi_reduction <add>, %1290, %cst_261 [0] : vector<8x8x1xf32> to vector<8x1xf32>
    %1292 = vector.shape_cast %1291 : vector<8x1xf32> to vector<1x8x1xf32>
    %1293 = tpu.reciprocal %1292 {approx = true} : vector<1x8x1xf32> -> vector<1x8x1xf32>
    %1294 = vector.broadcast %1293 : vector<1x8x1xf32> to vector<8x8x1xf32>
    %1295 = arith.mulf %1290, %1294 : vector<8x8x1xf32>
    %1296 = vector.broadcast %1295 : vector<8x8x1xf32> to vector<8x8x32xf32>
    %1297 = arith.mulf %1296, %1278 : vector<8x8x32xf32>
    %cst_262 = arith.constant dense<0.000000e+00> : vector<8x32xf32>
    %1298 = vector.multi_reduction <add>, %1297, %cst_262 [0] : vector<8x8x32xf32> to vector<8x32xf32>
    %cst_263 = arith.constant dense<0.000000e+00> : vector<8x32xf32>
    %1299 = tpu.matmul %1298, %424, %cst_263 {dimension_numbers = #tpu.dot_dimension_numbers<[1], [0], [0], [1], [0, 0, 1, 1], [], []>} : vector<8x32xf32>, vector<32x32xf32>, vector<8x32xf32> -> vector<8x32xf32>
    %1300 = arith.addf %1299, %1277 : vector<8x32xf32>
    %1301 = math.tanh %1300 : vector<8x32xf32>
    %cst_264 = arith.constant dense<0.000000e+00> : vector<8x16xf32>
    %1302 = tpu.matmul %1301, %425, %cst_264 {dimension_numbers = #tpu.dot_dimension_numbers<[1], [0], [0], [1], [0, 0, 1, 1], [], []>} : vector<8x32xf32>, vector<32x16xf32>, vector<8x16xf32> -> vector<8x16xf32>
    %1303 = vector.broadcast %426 : vector<1x16xf32> to vector<8x16xf32>
    %1304 = arith.addf %1302, %1303 : vector<8x16xf32>
    %c96_i32 = arith.constant 96 : i32
    %1305 = vector.broadcast %c96_i32 : i32 to vector<16x128xi32>
    %1306 = arith.addi %430, %1305 : vector<16x128xi32>
    %1307 = arith.cmpi eq, %431, %1306 : vector<16x128xi32>
    %1308 = arith.extui %1307 : vector<16x128xi1> to vector<16x128xi32>
    %1309 = arith.sitofp %1308 : vector<16x128xi32> to vector<16x128xf32>
    %cst_265 = arith.constant dense<0.000000e+00> : vector<8x128xf32>
    %1310 = tpu.matmul %1304, %1309, %cst_265 {dimension_numbers = #tpu.dot_dimension_numbers<[1], [0], [0], [1], [0, 0, 1, 1], [], []>} : vector<8x16xf32>, vector<16x128xf32>, vector<8x128xf32> -> vector<8x128xf32>
    %1311 = arith.addf %1174, %1310 : vector<8x128xf32>
    %1312 = vector.extract_strided_slice %1295 {offsets = [0, 0, 0], sizes = [1, 8, 1], strides = [1, 1, 1]} : vector<8x8x1xf32> to vector<1x8x1xf32>
    %1313 = vector.shape_cast %1312 : vector<1x8x1xf32> to vector<8x1xf32>
    %c48_i32_266 = arith.constant 48 : i32
    %1314 = vector.broadcast %c48_i32_266 : i32 to vector<1x64xi32>
    %1315 = arith.cmpi eq, %432, %1314 : vector<1x64xi32>
    %1316 = arith.extui %1315 : vector<1x64xi1> to vector<1x64xi32>
    %1317 = arith.sitofp %1316 : vector<1x64xi32> to vector<1x64xf32>
    %1318 = vector.broadcast %1313 : vector<8x1xf32> to vector<8x64xf32>
    %1319 = vector.broadcast %1317 : vector<1x64xf32> to vector<8x64xf32>
    %1320 = arith.mulf %1318, %1319 : vector<8x64xf32>
    %1321 = vector.extract_strided_slice %1295 {offsets = [1, 0, 0], sizes = [1, 8, 1], strides = [1, 1, 1]} : vector<8x8x1xf32> to vector<1x8x1xf32>
    %1322 = vector.shape_cast %1321 : vector<1x8x1xf32> to vector<8x1xf32>
    %c49_i32 = arith.constant 49 : i32
    %1323 = vector.broadcast %c49_i32 : i32 to vector<1x64xi32>
    %1324 = arith.cmpi eq, %432, %1323 : vector<1x64xi32>
    %1325 = arith.extui %1324 : vector<1x64xi1> to vector<1x64xi32>
    %1326 = arith.sitofp %1325 : vector<1x64xi32> to vector<1x64xf32>
    %1327 = vector.broadcast %1322 : vector<8x1xf32> to vector<8x64xf32>
    %1328 = vector.broadcast %1326 : vector<1x64xf32> to vector<8x64xf32>
    %1329 = arith.mulf %1327, %1328 : vector<8x64xf32>
    %1330 = arith.addf %1320, %1329 : vector<8x64xf32>
    %1331 = vector.extract_strided_slice %1295 {offsets = [2, 0, 0], sizes = [1, 8, 1], strides = [1, 1, 1]} : vector<8x8x1xf32> to vector<1x8x1xf32>
    %1332 = vector.shape_cast %1331 : vector<1x8x1xf32> to vector<8x1xf32>
    %c50_i32 = arith.constant 50 : i32
    %1333 = vector.broadcast %c50_i32 : i32 to vector<1x64xi32>
    %1334 = arith.cmpi eq, %432, %1333 : vector<1x64xi32>
    %1335 = arith.extui %1334 : vector<1x64xi1> to vector<1x64xi32>
    %1336 = arith.sitofp %1335 : vector<1x64xi32> to vector<1x64xf32>
    %1337 = vector.broadcast %1332 : vector<8x1xf32> to vector<8x64xf32>
    %1338 = vector.broadcast %1336 : vector<1x64xf32> to vector<8x64xf32>
    %1339 = arith.mulf %1337, %1338 : vector<8x64xf32>
    %1340 = arith.addf %1330, %1339 : vector<8x64xf32>
    %1341 = vector.extract_strided_slice %1295 {offsets = [3, 0, 0], sizes = [1, 8, 1], strides = [1, 1, 1]} : vector<8x8x1xf32> to vector<1x8x1xf32>
    %1342 = vector.shape_cast %1341 : vector<1x8x1xf32> to vector<8x1xf32>
    %c51_i32 = arith.constant 51 : i32
    %1343 = vector.broadcast %c51_i32 : i32 to vector<1x64xi32>
    %1344 = arith.cmpi eq, %432, %1343 : vector<1x64xi32>
    %1345 = arith.extui %1344 : vector<1x64xi1> to vector<1x64xi32>
    %1346 = arith.sitofp %1345 : vector<1x64xi32> to vector<1x64xf32>
    %1347 = vector.broadcast %1342 : vector<8x1xf32> to vector<8x64xf32>
    %1348 = vector.broadcast %1346 : vector<1x64xf32> to vector<8x64xf32>
    %1349 = arith.mulf %1347, %1348 : vector<8x64xf32>
    %1350 = arith.addf %1340, %1349 : vector<8x64xf32>
    %1351 = vector.extract_strided_slice %1295 {offsets = [4, 0, 0], sizes = [1, 8, 1], strides = [1, 1, 1]} : vector<8x8x1xf32> to vector<1x8x1xf32>
    %1352 = vector.shape_cast %1351 : vector<1x8x1xf32> to vector<8x1xf32>
    %c52_i32 = arith.constant 52 : i32
    %1353 = vector.broadcast %c52_i32 : i32 to vector<1x64xi32>
    %1354 = arith.cmpi eq, %432, %1353 : vector<1x64xi32>
    %1355 = arith.extui %1354 : vector<1x64xi1> to vector<1x64xi32>
    %1356 = arith.sitofp %1355 : vector<1x64xi32> to vector<1x64xf32>
    %1357 = vector.broadcast %1352 : vector<8x1xf32> to vector<8x64xf32>
    %1358 = vector.broadcast %1356 : vector<1x64xf32> to vector<8x64xf32>
    %1359 = arith.mulf %1357, %1358 : vector<8x64xf32>
    %1360 = arith.addf %1350, %1359 : vector<8x64xf32>
    %1361 = vector.extract_strided_slice %1295 {offsets = [5, 0, 0], sizes = [1, 8, 1], strides = [1, 1, 1]} : vector<8x8x1xf32> to vector<1x8x1xf32>
    %1362 = vector.shape_cast %1361 : vector<1x8x1xf32> to vector<8x1xf32>
    %c53_i32 = arith.constant 53 : i32
    %1363 = vector.broadcast %c53_i32 : i32 to vector<1x64xi32>
    %1364 = arith.cmpi eq, %432, %1363 : vector<1x64xi32>
    %1365 = arith.extui %1364 : vector<1x64xi1> to vector<1x64xi32>
    %1366 = arith.sitofp %1365 : vector<1x64xi32> to vector<1x64xf32>
    %1367 = vector.broadcast %1362 : vector<8x1xf32> to vector<8x64xf32>
    %1368 = vector.broadcast %1366 : vector<1x64xf32> to vector<8x64xf32>
    %1369 = arith.mulf %1367, %1368 : vector<8x64xf32>
    %1370 = arith.addf %1360, %1369 : vector<8x64xf32>
    %1371 = vector.extract_strided_slice %1295 {offsets = [6, 0, 0], sizes = [1, 8, 1], strides = [1, 1, 1]} : vector<8x8x1xf32> to vector<1x8x1xf32>
    %1372 = vector.shape_cast %1371 : vector<1x8x1xf32> to vector<8x1xf32>
    %c54_i32 = arith.constant 54 : i32
    %1373 = vector.broadcast %c54_i32 : i32 to vector<1x64xi32>
    %1374 = arith.cmpi eq, %432, %1373 : vector<1x64xi32>
    %1375 = arith.extui %1374 : vector<1x64xi1> to vector<1x64xi32>
    %1376 = arith.sitofp %1375 : vector<1x64xi32> to vector<1x64xf32>
    %1377 = vector.broadcast %1372 : vector<8x1xf32> to vector<8x64xf32>
    %1378 = vector.broadcast %1376 : vector<1x64xf32> to vector<8x64xf32>
    %1379 = arith.mulf %1377, %1378 : vector<8x64xf32>
    %1380 = arith.addf %1370, %1379 : vector<8x64xf32>
    %1381 = vector.extract_strided_slice %1295 {offsets = [7, 0, 0], sizes = [1, 8, 1], strides = [1, 1, 1]} : vector<8x8x1xf32> to vector<1x8x1xf32>
    %1382 = vector.shape_cast %1381 : vector<1x8x1xf32> to vector<8x1xf32>
    %c55_i32 = arith.constant 55 : i32
    %1383 = vector.broadcast %c55_i32 : i32 to vector<1x64xi32>
    %1384 = arith.cmpi eq, %432, %1383 : vector<1x64xi32>
    %1385 = arith.extui %1384 : vector<1x64xi1> to vector<1x64xi32>
    %1386 = arith.sitofp %1385 : vector<1x64xi32> to vector<1x64xf32>
    %1387 = vector.broadcast %1382 : vector<8x1xf32> to vector<8x64xf32>
    %1388 = vector.broadcast %1386 : vector<1x64xf32> to vector<8x64xf32>
    %1389 = arith.mulf %1387, %1388 : vector<8x64xf32>
    %1390 = arith.addf %1380, %1389 : vector<8x64xf32>
    %1391 = arith.addf %1254, %1390 : vector<8x64xf32>
    %c56 = arith.constant 56 : index
    %c0_267 = arith.constant 0 : index
    %1392 = vector.load %arg16[%c56, %c0_267] : memref<64x128xf32, #tpu.memory_space<vmem>>, vector<8x128xf32>
    %cst_268 = arith.constant dense<0.000000e+00> : vector<8x128xf32>
    %1393 = tpu.matmul %1274, %421, %cst_268 {dimension_numbers = #tpu.dot_dimension_numbers<[1], [0], [0], [1], [0, 0, 1, 1], [], []>} : vector<8x32xf32>, vector<32x128xf32>, vector<8x128xf32> -> vector<8x128xf32>
    %1394 = arith.addf %1392, %1393 : vector<8x128xf32>
    %cst_269 = arith.constant dense<0.000000e+00> : vector<8x128xf32>
    %1395 = tpu.matmul %1301, %422, %cst_269 {dimension_numbers = #tpu.dot_dimension_numbers<[1], [0], [0], [1], [0, 0, 1, 1], [], []>} : vector<8x32xf32>, vector<32x128xf32>, vector<8x128xf32> -> vector<8x128xf32>
    %1396 = arith.addf %1394, %1395 : vector<8x128xf32>
    %1397 = arith.negf %1396 : vector<8x128xf32>
    %1398 = math.exp %1397 : vector<8x128xf32>
    %cst_270 = arith.constant 1.000000e+00 : f32
    %1399 = vector.broadcast %cst_270 : f32 to vector<8x128xf32>
    %1400 = arith.addf %1399, %1398 : vector<8x128xf32>
    %1401 = arith.divf %1399, %1400 : vector<8x128xf32>
    %1402 = math.tanh %1396 : vector<8x128xf32>
    %1403 = vector.extract_strided_slice %1401 {offsets = [0, 32], sizes = [8, 32], strides = [1, 1]} : vector<8x128xf32> to vector<8x32xf32>
    %1404 = arith.mulf %1403, %1271 : vector<8x32xf32>
    %1405 = vector.extract_strided_slice %1401 {offsets = [0, 0], sizes = [8, 32], strides = [1, 1]} : vector<8x128xf32> to vector<8x32xf32>
    %1406 = vector.extract_strided_slice %1402 {offsets = [0, 64], sizes = [8, 32], strides = [1, 1]} : vector<8x128xf32> to vector<8x32xf32>
    %1407 = arith.mulf %1405, %1406 : vector<8x32xf32>
    %1408 = arith.addf %1404, %1407 : vector<8x32xf32>
    %1409 = vector.extract_strided_slice %1401 {offsets = [0, 96], sizes = [8, 32], strides = [1, 1]} : vector<8x128xf32> to vector<8x32xf32>
    %1410 = math.tanh %1408 : vector<8x32xf32>
    %1411 = arith.mulf %1409, %1410 : vector<8x32xf32>
    %cst_271 = arith.constant dense<0.000000e+00> : vector<8x64xf32>
    %1412 = tpu.matmul %1411, %423, %cst_271 {dimension_numbers = #tpu.dot_dimension_numbers<[1], [0], [0], [1], [0, 0, 1, 1], [], []>} : vector<8x32xf32>, vector<32x64xf32>, vector<8x64xf32> -> vector<8x64xf32>
    %1413 = vector.extract_strided_slice %1412 {offsets = [0, 0], sizes = [8, 32], strides = [1, 1]} : vector<8x64xf32> to vector<8x32xf32>
    %1414 = vector.extract_strided_slice %1412 {offsets = [0, 32], sizes = [8, 32], strides = [1, 1]} : vector<8x64xf32> to vector<8x32xf32>
    %c0_272 = arith.constant 0 : index
    %c0_273 = arith.constant 0 : index
    %c0_274 = arith.constant 0 : index
    %1415 = vector.load %arg17[%c0_272, %c0_273, %c0_274] : memref<8x8x32xf32, #tpu.memory_space<vmem>>, vector<8x8x32xf32>
    %1416 = vector.shape_cast %1413 : vector<8x32xf32> to vector<1x8x32xf32>
    %1417 = vector.broadcast %1416 : vector<1x8x32xf32> to vector<8x8x32xf32>
    %1418 = arith.mulf %1415, %1417 : vector<8x8x32xf32>
    %cst_275 = arith.constant dense<0.000000e+00> : vector<8x8xf32>
    %1419 = vector.multi_reduction <add>, %1418, %cst_275 [2] : vector<8x8x32xf32> to vector<8x8xf32>
    %1420 = vector.shape_cast %1419 : vector<8x8xf32> to vector<8x8x1xf32>
    %c0_276 = arith.constant 0 : index
    %c0_277 = arith.constant 0 : index
    %c0_278 = arith.constant 0 : index
    %1421 = vector.load %arg3[%c0_276, %c0_277, %c0_278] : memref<8x8x1xf32, #tpu.memory_space<vmem>>, vector<8x8x1xf32>
    %1422 = arith.addf %1420, %1421 : vector<8x8x1xf32>
    %cst_279 = arith.constant dense<0xFF800000> : vector<8x1xf32>
    %1423 = vector.multi_reduction <maximumf>, %1422, %cst_279 [0] : vector<8x8x1xf32> to vector<8x1xf32>
    %1424 = vector.shape_cast %1423 : vector<8x1xf32> to vector<1x8x1xf32>
    %1425 = vector.broadcast %1424 : vector<1x8x1xf32> to vector<8x8x1xf32>
    %1426 = arith.subf %1422, %1425 : vector<8x8x1xf32>
    %1427 = math.exp %1426 : vector<8x8x1xf32>
    %cst_280 = arith.constant dense<0.000000e+00> : vector<8x1xf32>
    %1428 = vector.multi_reduction <add>, %1427, %cst_280 [0] : vector<8x8x1xf32> to vector<8x1xf32>
    %1429 = vector.shape_cast %1428 : vector<8x1xf32> to vector<1x8x1xf32>
    %1430 = tpu.reciprocal %1429 {approx = true} : vector<1x8x1xf32> -> vector<1x8x1xf32>
    %1431 = vector.broadcast %1430 : vector<1x8x1xf32> to vector<8x8x1xf32>
    %1432 = arith.mulf %1427, %1431 : vector<8x8x1xf32>
    %1433 = vector.broadcast %1432 : vector<8x8x1xf32> to vector<8x8x32xf32>
    %1434 = arith.mulf %1433, %1415 : vector<8x8x32xf32>
    %cst_281 = arith.constant dense<0.000000e+00> : vector<8x32xf32>
    %1435 = vector.multi_reduction <add>, %1434, %cst_281 [0] : vector<8x8x32xf32> to vector<8x32xf32>
    %cst_282 = arith.constant dense<0.000000e+00> : vector<8x32xf32>
    %1436 = tpu.matmul %1435, %424, %cst_282 {dimension_numbers = #tpu.dot_dimension_numbers<[1], [0], [0], [1], [0, 0, 1, 1], [], []>} : vector<8x32xf32>, vector<32x32xf32>, vector<8x32xf32> -> vector<8x32xf32>
    %1437 = arith.addf %1436, %1414 : vector<8x32xf32>
    %1438 = math.tanh %1437 : vector<8x32xf32>
    %cst_283 = arith.constant dense<0.000000e+00> : vector<8x16xf32>
    %1439 = tpu.matmul %1438, %425, %cst_283 {dimension_numbers = #tpu.dot_dimension_numbers<[1], [0], [0], [1], [0, 0, 1, 1], [], []>} : vector<8x32xf32>, vector<32x16xf32>, vector<8x16xf32> -> vector<8x16xf32>
    %1440 = vector.broadcast %426 : vector<1x16xf32> to vector<8x16xf32>
    %1441 = arith.addf %1439, %1440 : vector<8x16xf32>
    %c112_i32 = arith.constant 112 : i32
    %1442 = vector.broadcast %c112_i32 : i32 to vector<16x128xi32>
    %1443 = arith.addi %430, %1442 : vector<16x128xi32>
    %1444 = arith.cmpi eq, %431, %1443 : vector<16x128xi32>
    %1445 = arith.extui %1444 : vector<16x128xi1> to vector<16x128xi32>
    %1446 = arith.sitofp %1445 : vector<16x128xi32> to vector<16x128xf32>
    %cst_284 = arith.constant dense<0.000000e+00> : vector<8x128xf32>
    %1447 = tpu.matmul %1441, %1446, %cst_284 {dimension_numbers = #tpu.dot_dimension_numbers<[1], [0], [0], [1], [0, 0, 1, 1], [], []>} : vector<8x16xf32>, vector<16x128xf32>, vector<8x128xf32> -> vector<8x128xf32>
    %1448 = arith.addf %1311, %1447 : vector<8x128xf32>
    %1449 = vector.extract_strided_slice %1432 {offsets = [0, 0, 0], sizes = [1, 8, 1], strides = [1, 1, 1]} : vector<8x8x1xf32> to vector<1x8x1xf32>
    %1450 = vector.shape_cast %1449 : vector<1x8x1xf32> to vector<8x1xf32>
    %c56_i32 = arith.constant 56 : i32
    %1451 = vector.broadcast %c56_i32 : i32 to vector<1x64xi32>
    %1452 = arith.cmpi eq, %432, %1451 : vector<1x64xi32>
    %1453 = arith.extui %1452 : vector<1x64xi1> to vector<1x64xi32>
    %1454 = arith.sitofp %1453 : vector<1x64xi32> to vector<1x64xf32>
    %1455 = vector.broadcast %1450 : vector<8x1xf32> to vector<8x64xf32>
    %1456 = vector.broadcast %1454 : vector<1x64xf32> to vector<8x64xf32>
    %1457 = arith.mulf %1455, %1456 : vector<8x64xf32>
    %1458 = vector.extract_strided_slice %1432 {offsets = [1, 0, 0], sizes = [1, 8, 1], strides = [1, 1, 1]} : vector<8x8x1xf32> to vector<1x8x1xf32>
    %1459 = vector.shape_cast %1458 : vector<1x8x1xf32> to vector<8x1xf32>
    %c57_i32 = arith.constant 57 : i32
    %1460 = vector.broadcast %c57_i32 : i32 to vector<1x64xi32>
    %1461 = arith.cmpi eq, %432, %1460 : vector<1x64xi32>
    %1462 = arith.extui %1461 : vector<1x64xi1> to vector<1x64xi32>
    %1463 = arith.sitofp %1462 : vector<1x64xi32> to vector<1x64xf32>
    %1464 = vector.broadcast %1459 : vector<8x1xf32> to vector<8x64xf32>
    %1465 = vector.broadcast %1463 : vector<1x64xf32> to vector<8x64xf32>
    %1466 = arith.mulf %1464, %1465 : vector<8x64xf32>
    %1467 = arith.addf %1457, %1466 : vector<8x64xf32>
    %1468 = vector.extract_strided_slice %1432 {offsets = [2, 0, 0], sizes = [1, 8, 1], strides = [1, 1, 1]} : vector<8x8x1xf32> to vector<1x8x1xf32>
    %1469 = vector.shape_cast %1468 : vector<1x8x1xf32> to vector<8x1xf32>
    %c58_i32 = arith.constant 58 : i32
    %1470 = vector.broadcast %c58_i32 : i32 to vector<1x64xi32>
    %1471 = arith.cmpi eq, %432, %1470 : vector<1x64xi32>
    %1472 = arith.extui %1471 : vector<1x64xi1> to vector<1x64xi32>
    %1473 = arith.sitofp %1472 : vector<1x64xi32> to vector<1x64xf32>
    %1474 = vector.broadcast %1469 : vector<8x1xf32> to vector<8x64xf32>
    %1475 = vector.broadcast %1473 : vector<1x64xf32> to vector<8x64xf32>
    %1476 = arith.mulf %1474, %1475 : vector<8x64xf32>
    %1477 = arith.addf %1467, %1476 : vector<8x64xf32>
    %1478 = vector.extract_strided_slice %1432 {offsets = [3, 0, 0], sizes = [1, 8, 1], strides = [1, 1, 1]} : vector<8x8x1xf32> to vector<1x8x1xf32>
    %1479 = vector.shape_cast %1478 : vector<1x8x1xf32> to vector<8x1xf32>
    %c59_i32 = arith.constant 59 : i32
    %1480 = vector.broadcast %c59_i32 : i32 to vector<1x64xi32>
    %1481 = arith.cmpi eq, %432, %1480 : vector<1x64xi32>
    %1482 = arith.extui %1481 : vector<1x64xi1> to vector<1x64xi32>
    %1483 = arith.sitofp %1482 : vector<1x64xi32> to vector<1x64xf32>
    %1484 = vector.broadcast %1479 : vector<8x1xf32> to vector<8x64xf32>
    %1485 = vector.broadcast %1483 : vector<1x64xf32> to vector<8x64xf32>
    %1486 = arith.mulf %1484, %1485 : vector<8x64xf32>
    %1487 = arith.addf %1477, %1486 : vector<8x64xf32>
    %1488 = vector.extract_strided_slice %1432 {offsets = [4, 0, 0], sizes = [1, 8, 1], strides = [1, 1, 1]} : vector<8x8x1xf32> to vector<1x8x1xf32>
    %1489 = vector.shape_cast %1488 : vector<1x8x1xf32> to vector<8x1xf32>
    %c60_i32 = arith.constant 60 : i32
    %1490 = vector.broadcast %c60_i32 : i32 to vector<1x64xi32>
    %1491 = arith.cmpi eq, %432, %1490 : vector<1x64xi32>
    %1492 = arith.extui %1491 : vector<1x64xi1> to vector<1x64xi32>
    %1493 = arith.sitofp %1492 : vector<1x64xi32> to vector<1x64xf32>
    %1494 = vector.broadcast %1489 : vector<8x1xf32> to vector<8x64xf32>
    %1495 = vector.broadcast %1493 : vector<1x64xf32> to vector<8x64xf32>
    %1496 = arith.mulf %1494, %1495 : vector<8x64xf32>
    %1497 = arith.addf %1487, %1496 : vector<8x64xf32>
    %1498 = vector.extract_strided_slice %1432 {offsets = [5, 0, 0], sizes = [1, 8, 1], strides = [1, 1, 1]} : vector<8x8x1xf32> to vector<1x8x1xf32>
    %1499 = vector.shape_cast %1498 : vector<1x8x1xf32> to vector<8x1xf32>
    %c61_i32 = arith.constant 61 : i32
    %1500 = vector.broadcast %c61_i32 : i32 to vector<1x64xi32>
    %1501 = arith.cmpi eq, %432, %1500 : vector<1x64xi32>
    %1502 = arith.extui %1501 : vector<1x64xi1> to vector<1x64xi32>
    %1503 = arith.sitofp %1502 : vector<1x64xi32> to vector<1x64xf32>
    %1504 = vector.broadcast %1499 : vector<8x1xf32> to vector<8x64xf32>
    %1505 = vector.broadcast %1503 : vector<1x64xf32> to vector<8x64xf32>
    %1506 = arith.mulf %1504, %1505 : vector<8x64xf32>
    %1507 = arith.addf %1497, %1506 : vector<8x64xf32>
    %1508 = vector.extract_strided_slice %1432 {offsets = [6, 0, 0], sizes = [1, 8, 1], strides = [1, 1, 1]} : vector<8x8x1xf32> to vector<1x8x1xf32>
    %1509 = vector.shape_cast %1508 : vector<1x8x1xf32> to vector<8x1xf32>
    %c62_i32 = arith.constant 62 : i32
    %1510 = vector.broadcast %c62_i32 : i32 to vector<1x64xi32>
    %1511 = arith.cmpi eq, %432, %1510 : vector<1x64xi32>
    %1512 = arith.extui %1511 : vector<1x64xi1> to vector<1x64xi32>
    %1513 = arith.sitofp %1512 : vector<1x64xi32> to vector<1x64xf32>
    %1514 = vector.broadcast %1509 : vector<8x1xf32> to vector<8x64xf32>
    %1515 = vector.broadcast %1513 : vector<1x64xf32> to vector<8x64xf32>
    %1516 = arith.mulf %1514, %1515 : vector<8x64xf32>
    %1517 = arith.addf %1507, %1516 : vector<8x64xf32>
    %1518 = vector.extract_strided_slice %1432 {offsets = [7, 0, 0], sizes = [1, 8, 1], strides = [1, 1, 1]} : vector<8x8x1xf32> to vector<1x8x1xf32>
    %1519 = vector.shape_cast %1518 : vector<1x8x1xf32> to vector<8x1xf32>
    %c63_i32 = arith.constant 63 : i32
    %1520 = vector.broadcast %c63_i32 : i32 to vector<1x64xi32>
    %1521 = arith.cmpi eq, %432, %1520 : vector<1x64xi32>
    %1522 = arith.extui %1521 : vector<1x64xi1> to vector<1x64xi32>
    %1523 = arith.sitofp %1522 : vector<1x64xi32> to vector<1x64xf32>
    %1524 = vector.broadcast %1519 : vector<8x1xf32> to vector<8x64xf32>
    %1525 = vector.broadcast %1523 : vector<1x64xf32> to vector<8x64xf32>
    %1526 = arith.mulf %1524, %1525 : vector<8x64xf32>
    %1527 = arith.addf %1517, %1526 : vector<8x64xf32>
    %1528 = arith.addf %1391, %1527 : vector<8x64xf32>
    %c0_285 = arith.constant 0 : index
    %c0_286 = arith.constant 0 : index
    %1529 = vector.load %arg13[%c0_285, %c0_286] : memref<8x128xf32, #tpu.memory_space<vmem>>, vector<8x128xf32>
    tpu.vector_store %arg13[%c0_285, %c0_286], %1448 {strides = array<i32>} : memref<8x128xf32, #tpu.memory_space<vmem>>, vector<8x128xf32>,
    %c0_287 = arith.constant 0 : index
    %c0_288 = arith.constant 0 : index
    %1530 = vector.load %arg14[%c0_287, %c0_288] : memref<8x64xf32, #tpu.memory_space<vmem>>, vector<8x64xf32>
    tpu.vector_store %arg14[%c0_287, %c0_288], %1528 {strides = array<i32>} : memref<8x64xf32, #tpu.memory_space<vmem>>, vector<8x64xf32>,
    return
  }
}

</mosaic_0001>

<bundles_post_ra>
// kernel: lstm_model_forward.1
= control target key start
LH: loop header
LB: loop body
LE: loop exit
PB: predicated region body
PF: predicated region fallthrough
CT: control target
= control target key end

     0   :  { %v4848_v0 = vmov 0   ;;  %v6970_v7 = vmov 0.0   ;;  %v6967_v9 = vlaneseq  ;;  %vm106_vm0 = vcmask 130048   ;;  %s4850_s26 = smov 64   ;;  %s4851_s28 = smov 32   ;;  %s6952_s0 = inlined_call_operand.vmem [shape: s32[64,1], index: 0, kind: input, shape index: {}]   ;;  %s6953_s5 = inlined_call_operand.vmem [shape: f32[32,128], index: 5, kind: input, shape index: {}]   ;;  %s6954_s4 = inlined_call_operand.vmem [shape: f32[16,128], index: 4, kind: input, shape index: {}]   ;;  %s6955_s2 = inlined_call_operand.vmem [shape: f32[8,8,1], index: 2, kind: input, shape index: {}]   ;;  %s6956_s1 = inlined_call_operand.vmem [shape: s32[64,1], index: 1, kind: input, shape index: {}]   ;;  %s6957_s6 = inlined_call_operand.vmem [shape: f32[16,128], index: 6, kind: input, shape index: {}]   ;;  %s6958_s7 = inlined_call_operand.vmem [shape: f32[32,128], index: 7, kind: input, shape index: {}]   ;;  %s6959_s8 = inlined_call_operand.vmem [shape: f32[32,128], index: 8, kind: input, shape index: {}]   ;;  %s6960_s9 = inlined_call_operand.vmem [shape: f32[32,64], index: 9, kind: input, shape index: {}]   ;;  %s6961_s3 = inlined_call_operand.vmem [shape: f32[8,8,1], index: 3, kind: input, shape index: {}]   ;;  %s6962_s10 = inlined_call_operand.vmem [shape: f32[32,32], index: 10, kind: input, shape index: {}]   ;;  %s6963_s12 = inlined_call_operand.vmem [shape: f32[1,16], index: 12, kind: input, shape index: {}]   ;;  %s6964_s11 = inlined_call_operand.vmem [shape: f32[32,16], index: 11, kind: input, shape index: {}]   ;;  %s6965_s14 = inlined_call_operand.vmem [shape: f32[8,64], index: 14, kind: output, shape index: {1}]   ;;  %s6966_s13 = inlined_call_operand.vmem [shape: f32[8,128], index: 13, kind: output, shape index: {0}]  }
   0x1   :  { %4457 = vset.pattern.permute.xlu0 %v4848_v0  ;;  %v46_v1 = vld [vmem:[%s6952_s0] sm:$0xff]  ;;  %v4935_v2 = vld [vmem:[%s6953_s5 + $0x18] sm:$0xff]  ;;  %v4940_v3 = vld [vmem:[%s6953_s5 + $0x10] sm:$0xff]  ;;  %4458 = vset.pattern.permute.xlu2 %v4848_v0  ;;  %vm316_vm7 = vcmask 261120   ;;  %s4852_s30 = smov 96  }
   0x2   :  { %57 = vperm.xlu0 %4457, %v46_v1   ;;  %332 = vmatpush.msra.mxu2 %v4935_v2  ;;  %v105_v4 = vld [vmem:[%s6954_s4 + $0x8] sm:$0xff]  ;;  %v4956_v6 = vld [vmem:[%s6953_s5] sm:$0xff]  ;;  %v4980_v10 = vand.u32 127, %v6967_v9  ;;  %v48_v54 = vld [vmem:[%s6952_s0 + $0x10] sm:$0xff] }
   0x3   :  { %v4949_v5 = vld [vmem:[%s6953_s5 + $0x8] sm:$0xff]  ;;  %145 = vmatpush.msra.mxu0 %v105_v4  ;;  %4459 = vset.pattern.permute.xlu1 %v4848_v0  ;;  %v104_v8 = vld [vmem:[%s6954_s4] sm:$0xff] }
   0x4   :  { %333 = vmatpush.msra.mxu2 %v4940_v3  ;;  %420 = vmatpush.msra.mxu3 %v4935_v2  ;;  %v378_v20 = vld [vmem:[%s6955_s2] sm:$0xff]  ;;  %v47_v38 = vld [vmem:[%s6952_s0 + $0x8] sm:$0xff] }
   0x5   :  { %146 = vmatpush.msra.mxu0 %v104_v8  ;;  %381 = vperm.xlu2 %4458, %v378_v20   ;;  %v385_v21 = vsub.f32 1.0, %v378_v20  ;;  %v4281_v53 = vld [vmem:[%s6955_s2 + $0x8] sm:$0xff] }
   0x6   :  { %334 = vmatpush.msra.mxu2 %v4949_v5  ;;  %421 = vmatpush.msra.mxu3 %v4940_v3 }
   0x8   :  { %335 = vmatpush.msra.mxu2 %v4956_v6  ;;  %422 = vmatpush.msra.mxu3 %v4949_v5 }
   0x9   :  { %336 = vmatmul.f32.vlgmr.msra.gmra.mxu2 %v6970_v7 }
   0xa   :  { %423 = vmatpush.msra.mxu3 %v4956_v6  ;;  %511 = vmatpush.msrb.mxu2 %v4935_v2 }
   0xc   :  { %602 = vmatpush.msrb.mxu3 %v4935_v2  ;;  %512 = vmatpush.msrb.mxu2 %v4940_v3 }
   0xd   :  { %388 = vperm.xlu2 %4458, %v385_v21  }
   0xe   :  { %603 = vmatpush.msrb.mxu3 %v4940_v3  ;;  %513 = vmatpush.msrb.mxu2 %v4949_v5 }
  0x10   :  { %604 = vmatpush.msrb.mxu3 %v4949_v5  ;;  %514 = vmatpush.msrb.mxu2 %v4956_v6 }
  0x12   :  { %605 = vmatpush.msrb.mxu3 %v4956_v6  ;;  %693 = vmatpush.msra.mxu2 %v4935_v2 }
  0x14   :  { %694 = vmatpush.msra.mxu2 %v4940_v3 }
  0x16   :  { %695 = vmatpush.msra.mxu2 %v4949_v5 }
  0x18   :  { %696 = vmatpush.msra.mxu2 %v4956_v6 }
  0x5f   :  { %v382_v39 = vpop.permute.xlu2 %381 }
  0x67   :  { %v4997_v40 = vpop.permute.xlu2 %388 }
  0x68   :  { %v391_v43 = vmul.f32 0.0, %v4997_v40 }
  0x74   :  { %v58_v11 = vpop.permute.xlu0 %57 }
  0x75   :  { %vm80_vm1 = vcmp.eq.s32.totalorder %v58_v11, %v4980_v10 }
  0x76   :  { %v4246_v12 = vsel %vm80_vm1, 1.0, %v6970_v7 }
  0x77   :  { %4254 = vmatmul.msk.f32.vlgmr.msra.gmra.mxu0 %vm106_vm0, %v4246_v12 }
  0x8c   :  { %v337_v13 = vpop.f32.mrf.mxu2 }
  0xf4   :  { %v148_v14 = vpop.f32.mrf.mxu0 }
  0xf5   :  { %v340_v15 = vadd.f32 %v337_v13, %v148_v14  ;;  %v474_v13 = vsub.f32 1.0, %v4281_v53 }
  0xf7   :  { %4461 = vtanh.f32 %v340_v15  ;;  %v4278_v17 = vmul.f32 -1.442695, %v340_v15 }
  0xf9   :  { %4463 = vpow2.f32 %v4278_v17 }
  0xfd   :  { %v4462_v16 = vpop.eup %4461 }
  0xfe   :  { %363 = vrot.lane.b32.xlu0 %v4462_v16, %s4850_s26 }
  0xff   :  { %v4464_v18 = vpop.eup %4463 }
 0x100   :  { %v344_v19 = vadd.f32 1.0, %v4464_v18 }
 0x102   :  { %4465 = vrcp.f32 %v344_v19  ;;  %v356_v27 = vand.u32 2147483648, %v344_v19  ;;  %vm350_vm3 = vweird.f32 %v344_v19  ;;  %v354_v28 = vand.u32 2147483647, %v344_v19 }
 0x104   :  { %v357_v30 = vor.u32 1.1754944e-38, %v356_v27  ;;  %vm355_vm5 = vcmp.eq.f32.partialorder %v354_v28, 8.507059e+37 }
 0x108   :  { %v4466_v22 = vpop.eup %4465 }
 0x109   :  { %v346_v23 = vmul.f32 %v4466_v22, %v344_v19  ;;  %vm351_vm2 = vweird.f32 %v4466_v22 }
 0x10a   :  { %vm352_vm4 = vmor %vm350_vm3, %vm351_vm2 }
 0x10b   :  { %v347_v24 = vsub.f32 1.0, %v346_v23 }
 0x10d   :  { %v348_v25 = vmul.f32 %v4466_v22, %v347_v24 }
 0x10f   :  { %v349_v26 = vadd.f32 %v4466_v22, %v348_v25 }
 0x111   :  { %v353_v29 = vsel %vm352_vm4, %v4466_v22, %v349_v26 }
 0x112   :  { %v358_v32 = vsel %vm355_vm5, %v357_v30, %v353_v29 }
 0x113   :  { %v361_v34 = vmul.f32 0.0, %v358_v32 }
 0x170   :  { %v364_v31 = vpop.permute.xlu0 %363 }
 0x171   :  { %v366_v33 = vmul.f32 %v364_v31, %v358_v32 }
 0x173   :  { %368 = vrot.lane.b32.xlu1 %v366_v33, %s4851_s28 }
 0x1e5   :  { %v369_v35 = vpop.permute.xlu1 %368 }
 0x1e6   :  { %v4990_v36 = vadd.f32 %v369_v35, %v361_v34  ;;  %v4284_v34 = vld [vmem:[%s6955_s2 + $0x10] sm:$0xff]  ;;  %v49_v35 = vld [vmem:[%s6952_s0 + $0x18] sm:$0xff] }
 0x1e8   :  { %4467 = vtanh.f32 %v4990_v36  ;;  %v393_v17 = vmul.f32 %v382_v39, %v4990_v36 }
 0x1ea   :  { %v394_v18 = vadd.f32 %v393_v17, %v391_v43 }
 0x1ee   :  { %v4468_v37 = vpop.eup %4467 }
 0x1ef   :  { %374 = vrot.lane.b32.xlu1 %v4468_v37, %s4850_s26 }
 0x1f7   :  { %60 = vperm.xlu1 %4459, %v47_v38  }
 0x261   :  { %v375_v41 = vpop.permute.xlu1 %374 }
 0x262   :  { %v377_v42 = vmul.f32 %v375_v41, %v358_v32 }
 0x264   :  { %v5000_v44 = vmul.f32 %v382_v39, %v377_v42 }
 0x266   :  { %v5003_v45 = vadd.f32 %v391_v43, %v5000_v44 }
 0x268   :  { %404 = vrot.lane.b32.xlu0 %v5003_v45, %s4851_s28 }
 0x269   :  { %v61_v46 = vpop.permute.xlu1 %60 }
 0x26a   :  { %vm81_vm6 = vcmp.eq.s32.totalorder %v61_v46, %v4980_v10 }
 0x26b   :  { %v4247_v47 = vsel %vm81_vm6, 1.0, %v6970_v7 }
 0x26c   :  { %4255 = vmatmul.msk.f32.gmra.mxu0 %vm106_vm0, %v4247_v47 }
 0x2da   :  { %v405_v48 = vpop.permute.xlu0 %404 }
 0x2db   :  { %4279 = vmatmul.msk.f32.vlgmr.msra.gmra.mxu3 %vm316_vm7, %v405_v48 }
 0x2dc   :  { %784 = vmatpush.msra.mxu3 %v4935_v2 }
 0x2de   :  { %785 = vmatpush.msra.mxu3 %v4940_v3 }
 0x2e0   :  { %786 = vmatpush.msra.mxu3 %v4949_v5 }
 0x2e2   :  { %787 = vmatpush.msra.mxu3 %v4956_v6 }
 0x2e9   :  { %v151_v49 = vpop.f32.mrf.mxu0 }
 0x35e   :  { %v425_v50 = vpop.f32.mrf.mxu3 }
 0x35f   :  { %v428_v51 = vadd.f32 %v425_v50, %v151_v49 }
 0x361   :  { %4469 = vtanh.f32 %v428_v51  ;;  %v4280_v55 = vmul.f32 -1.442695, %v428_v51 }
 0x363   :  { %4471 = vpow2.f32 %v4280_v55 }
 0x367   :  { %v4470_v52 = vpop.eup %4469 }
 0x368   :  { %451 = vrot.lane.b32.xlu2 %v4470_v52, %s4850_s26 }
 0x369   :  { %v4472_v56 = vpop.eup %4471 }
 0x36a   :  { %v432_v57 = vadd.f32 1.0, %v4472_v56 }
 0x36c   :  { %4473 = vrcp.f32 %v432_v57  ;;  %v444_v63 = vand.u32 2147483648, %v432_v57  ;;  %vm438_vm9 = vweird.f32 %v432_v57  ;;  %v442_v0 = vand.u32 2147483647, %v432_v57 }
 0x36e   :  { %v445_v4 = vor.u32 1.1754944e-38, %v444_v63  ;;  %vm443_vm11 = vcmp.eq.f32.partialorder %v442_v0, 8.507059e+37 }
 0x370   :  { %470 = vperm.xlu2 %4458, %v4281_v53   ;;  %v565_v53 = vsub.f32 1.0, %v4284_v34 }
 0x372   :  { %v4474_v58 = vpop.eup %4473 }
 0x373   :  { %v434_v59 = vmul.f32 %v4474_v58, %v432_v57  ;;  %vm439_vm8 = vweird.f32 %v4474_v58 }
 0x374   :  { %vm440_vm10 = vmor %vm438_vm9, %vm439_vm8 }
 0x375   :  { %v435_v60 = vsub.f32 1.0, %v434_v59 }
 0x377   :  { %v436_v61 = vmul.f32 %v4474_v58, %v435_v60 }
 0x378   :  { %63 = vperm.xlu2 %4458, %v48_v54  }
 0x379   :  { %v437_v62 = vadd.f32 %v4474_v58, %v436_v61 }
 0x37b   :  { %v441_v1 = vsel %vm440_vm10, %v4474_v58, %v437_v62 }
 0x37c   :  { %v446_v11 = vsel %vm443_vm11, %v445_v4, %v441_v1 }
 0x37d   :  { %v449_v19 = vmul.f32 %v446_v11, %v394_v18 }
 0x3c2   :  { %v452_v8 = vpop.permute.xlu2 %451 }
 0x3c3   :  { %v454_v12 = vmul.f32 %v452_v8, %v446_v11 }
 0x3c5   :  { %456 = vrot.lane.b32.xlu0 %v454_v12, %s4851_s28 }
 0x3ca   :  { %v5023_v14 = vpop.permute.xlu2 %470 }
 0x3cd   :  { %477 = vperm.xlu0 %4457, %v474_v13  }
 0x3d2   :  { %v64_v15 = vpop.permute.xlu2 %63 }
 0x3d3   :  { %vm82_vm12 = vcmp.eq.s32.totalorder %v64_v15, %v4980_v10 }
 0x3d4   :  { %v4248_v16 = vsel %vm82_vm12, 1.0, %v6970_v7 }
 0x3d5   :  { %4256 = vmatmul.msk.f32.gmra.mxu0 %vm106_vm0, %v4248_v16 }
 0x437   :  { %v457_v20 = vpop.permute.xlu0 %456 }
 0x438   :  { %v459_v21 = vadd.f32 %v457_v20, %v449_v19 }
 0x43a   :  { %4475 = vtanh.f32 %v459_v21  ;;  %v482_v58 = vmul.f32 %v5023_v14, %v459_v21 }
 0x43f   :  { %v5030_v23 = vpop.permute.xlu0 %477 }
 0x440   :  { %v4476_v22 = vpop.eup %4475  ;;  %v480_v26 = vmul.f32 %v5030_v23, %v5003_v45  ;;  %v483_v57 = vmul.f32 %v5030_v23, %v394_v18  ;;  %v4287_v18 = vld [vmem:[%s6955_s2 + $0x18] sm:$0xff] }
 0x441   :  { %462 = vrot.lane.b32.xlu1 %v4476_v22, %s4850_s26 }
 0x442   :  { %v484_v59 = vadd.f32 %v483_v57, %v482_v58  ;;  %v4290_v57 = vld [vmem:[%s6955_s2 + $0x20] sm:$0xff]  ;;  %v51_v58 = vld [vmem:[%s6952_s0 + $0x28] sm:$0xff] }
 0x452   :  { %v154_v30 = vpop.f32.mrf.mxu0 }
 0x4b3   :  { %v463_v24 = vpop.permute.xlu1 %462 }
 0x4b4   :  { %v465_v25 = vmul.f32 %v463_v24, %v446_v11 }
 0x4b6   :  { %v5035_v27 = vmul.f32 %v5023_v14, %v465_v25 }
 0x4b8   :  { %v481_v28 = vadd.f32 %v480_v26, %v5035_v27 }
 0x4ba   :  { %495 = vrot.lane.b32.xlu1 %v481_v28, %s4851_s28 }
 0x52c   :  { %v496_v29 = vpop.permute.xlu1 %495 }
 0x52d   :  { %4282 = vmatmul.msk.f32.vlgmr.msrb.gmra.mxu2 %vm316_vm7, %v496_v29 }
 0x52e   :  { %875 = vmatpush.msrb.mxu2 %v4935_v2 }
 0x530   :  { %876 = vmatpush.msrb.mxu2 %v4940_v3 }
 0x532   :  { %877 = vmatpush.msrb.mxu2 %v4949_v5 }
 0x534   :  { %878 = vmatpush.msrb.mxu2 %v4956_v6 }
 0x5b0   :  { %v516_v31 = vpop.f32.mrf.mxu2 }
 0x5b1   :  { %v519_v32 = vadd.f32 %v516_v31, %v154_v30 }
 0x5b3   :  { %4477 = vtanh.f32 %v519_v32  ;;  %v4283_v36 = vmul.f32 -1.442695, %v519_v32 }
 0x5b5   :  { %4479 = vpow2.f32 %v4283_v36 }
 0x5b9   :  { %v4478_v33 = vpop.eup %4477 }
 0x5ba   :  { %542 = vrot.lane.b32.xlu0 %v4478_v33, %s4850_s26  ;;  %v656_v33 = vsub.f32 1.0, %v4287_v18 }
 0x5bb   :  { %v4480_v37 = vpop.eup %4479 }
 0x5bc   :  { %v523_v38 = vadd.f32 1.0, %v4480_v37 }
 0x5be   :  { %4481 = vrcp.f32 %v523_v38  ;;  %v535_v46 = vand.u32 2147483648, %v523_v38  ;;  %vm529_vm14 = vweird.f32 %v523_v38  ;;  %v533_v47 = vand.u32 2147483647, %v523_v38 }
 0x5c0   :  { %v536_v49 = vor.u32 1.1754944e-38, %v535_v46  ;;  %vm534_vm1 = vcmp.eq.f32.partialorder %v533_v47, 8.507059e+37 }
 0x5c2   :  { %561 = vperm.xlu0 %4457, %v4284_v34  }
 0x5c4   :  { %v4482_v39 = vpop.eup %4481 }
 0x5c5   :  { %v525_v41 = vmul.f32 %v4482_v39, %v523_v38  ;;  %vm530_vm13 = vweird.f32 %v4482_v39 }
 0x5c6   :  { %vm531_vm15 = vmor %vm529_vm14, %vm530_vm13 }
 0x5c7   :  { %v526_v42 = vsub.f32 1.0, %v525_v41 }
 0x5c9   :  { %v527_v43 = vmul.f32 %v4482_v39, %v526_v42 }
 0x5ca   :  { %66 = vperm.xlu0 %4457, %v49_v35  }
 0x5cb   :  { %v528_v45 = vadd.f32 %v4482_v39, %v527_v43 }
 0x5cd   :  { %v532_v48 = vsel %vm531_vm15, %v4482_v39, %v528_v45 }
 0x5ce   :  { %v537_v51 = vsel %vm534_vm1, %v536_v49, %v532_v48 }
 0x5cf   :  { %v540_v60 = vmul.f32 %v537_v51, %v484_v59 }
 0x62c   :  { %v543_v50 = vpop.permute.xlu0 %542 }
 0x62d   :  { %v545_v52 = vmul.f32 %v543_v50, %v537_v51 }
 0x62f   :  { %547 = vrot.lane.b32.xlu1 %v545_v52, %s4851_s28 }
 0x634   :  { %v5052_v54 = vpop.permute.xlu0 %561 }
 0x637   :  { %568 = vperm.xlu1 %4459, %v565_v53  }
 0x63c   :  { %v67_v55 = vpop.permute.xlu0 %66 }
 0x63d   :  { %vm83_vm2 = vcmp.eq.s32.totalorder %v67_v55, %v4980_v10 }
 0x63e   :  { %v4249_v56 = vsel %vm83_vm2, 1.0, %v6970_v7 }
 0x63f   :  { %4257 = vmatmul.msk.f32.gmra.mxu0 %vm106_vm0, %v4249_v56 }
 0x6a1   :  { %v548_v61 = vpop.permute.xlu1 %547 }
 0x6a2   :  { %v550_v62 = vadd.f32 %v548_v61, %v540_v60 }
 0x6a4   :  { %4483 = vtanh.f32 %v550_v62  ;;  %v573_v38 = vmul.f32 %v5052_v54, %v550_v62 }
 0x6a9   :  { %v5060_v0 = vpop.permute.xlu1 %568 }
 0x6aa   :  { %v4484_v63 = vpop.eup %4483  ;;  %v571_v8 = vmul.f32 %v5060_v0, %v481_v28  ;;  %v574_v37 = vmul.f32 %v5060_v0, %v484_v59 }
 0x6ab   :  { %553 = vrot.lane.b32.xlu2 %v4484_v63, %s4850_s26 }
 0x6ac   :  { %v575_v39 = vadd.f32 %v574_v37, %v573_v38 }
 0x6bc   :  { %v157_v14 = vpop.f32.mrf.mxu0 }
 0x705   :  { %v554_v1 = vpop.permute.xlu2 %553 }
 0x706   :  { %v556_v4 = vmul.f32 %v554_v1, %v537_v51 }
 0x708   :  { %v5064_v11 = vmul.f32 %v5052_v54, %v556_v4 }
 0x70a   :  { %v572_v12 = vadd.f32 %v571_v8, %v5064_v11 }
 0x70c   :  { %586 = vrot.lane.b32.xlu2 %v572_v12, %s4851_s28 }
 0x766   :  { %v587_v13 = vpop.permute.xlu2 %586 }
 0x767   :  { %4285 = vmatmul.msk.f32.vlgmr.msrb.gmra.mxu3 %vm316_vm7, %v587_v13 }
 0x768   :  { %966 = vmatpush.msrb.mxu3 %v4935_v2  ;;  %v50_v2 = vld [vmem:[%s6952_s0 + $0x20] sm:$0xff] }
 0x76a   :  { %967 = vmatpush.msrb.mxu3 %v4940_v3 }
 0x76c   :  { %968 = vmatpush.msrb.mxu3 %v4949_v5 }
 0x76e   :  { %969 = vmatpush.msrb.mxu3 %v4956_v6 }
 0x7ea   :  { %v607_v15 = vpop.f32.mrf.mxu3 }
 0x7eb   :  { %v610_v16 = vadd.f32 %v607_v15, %v157_v14 }
 0x7ed   :  { %4485 = vtanh.f32 %v610_v16  ;;  %v4286_v3 = vmul.f32 -1.442695, %v610_v16 }
 0x7ef   :  { %4487 = vpow2.f32 %v4286_v3 }
 0x7f3   :  { %v4486_v17 = vpop.eup %4485 }
 0x7f4   :  { %633 = vrot.lane.b32.xlu1 %v4486_v17, %s4850_s26 }
 0x7f5   :  { %v4488_v5 = vpop.eup %4487 }
 0x7f6   :  { %v614_v6 = vadd.f32 1.0, %v4488_v5 }
 0x7f8   :  { %4489 = vrcp.f32 %v614_v6  ;;  %v626_v25 = vand.u32 2147483648, %v614_v6  ;;  %vm620_vm4 = vweird.f32 %v614_v6  ;;  %v624_v26 = vand.u32 2147483647, %v614_v6 }
 0x7fa   :  { %v627_v29 = vor.u32 1.1754944e-38, %v626_v25  ;;  %vm625_vm6 = vcmp.eq.f32.partialorder %v624_v26, 8.507059e+37 }
 0x7fc   :  { %652 = vperm.xlu1 %4459, %v4287_v18  }
 0x7fe   :  { %v4490_v19 = vpop.eup %4489 }
 0x7ff   :  { %v616_v20 = vmul.f32 %v4490_v19, %v614_v6  ;;  %vm621_vm3 = vweird.f32 %v4490_v19 }
 0x800   :  { %vm622_vm5 = vmor %vm620_vm4, %vm621_vm3 }
 0x801   :  { %v617_v21 = vsub.f32 1.0, %v616_v20 }
 0x803   :  { %v618_v22 = vmul.f32 %v4490_v19, %v617_v21 }
 0x804   :  { %69 = vperm.xlu1 %4459, %v50_v2   ;;  %v747_v2 = vsub.f32 1.0, %v4290_v57 }
 0x805   :  { %v619_v24 = vadd.f32 %v4490_v19, %v618_v22 }
 0x807   :  { %v623_v28 = vsel %vm622_vm5, %v4490_v19, %v619_v24 }
 0x808   :  { %v628_v31 = vsel %vm625_vm6, %v627_v29, %v623_v28 }
 0x809   :  { %v631_v41 = vmul.f32 %v628_v31, %v575_v39 }
 0x866   :  { %v634_v30 = vpop.permute.xlu1 %633 }
 0x867   :  { %v636_v32 = vmul.f32 %v634_v30, %v628_v31 }
 0x869   :  { %638 = vrot.lane.b32.xlu2 %v636_v32, %s4851_s28 }
 0x86e   :  { %v5081_v34 = vpop.permute.xlu1 %652 }
 0x871   :  { %659 = vperm.xlu2 %4458, %v656_v33  }
 0x876   :  { %v70_v35 = vpop.permute.xlu1 %69 }
 0x877   :  { %vm84_vm8 = vcmp.eq.s32.totalorder %v70_v35, %v4980_v10 }
 0x878   :  { %v4250_v36 = vsel %vm84_vm8, 1.0, %v6970_v7 }
 0x879   :  { %4258 = vmatmul.msk.f32.gmra.mxu0 %vm106_vm0, %v4250_v36 }
 0x8c3   :  { %v639_v42 = vpop.permute.xlu2 %638 }
 0x8c4   :  { %v641_v43 = vadd.f32 %v639_v42, %v631_v41  ;;  %v52_v41 = vld [vmem:[%s6952_s0 + $0x30] sm:$0xff] }
 0x8c6   :  { %4491 = vtanh.f32 %v641_v43  ;;  %v664_v20 = vmul.f32 %v5081_v34, %v641_v43 }
 0x8cb   :  { %v5089_v46 = vpop.permute.xlu2 %659 }
 0x8cc   :  { %v4492_v45 = vpop.eup %4491  ;;  %v662_v49 = vmul.f32 %v5089_v46, %v572_v12  ;;  %v665_v19 = vmul.f32 %v5089_v46, %v575_v39  ;;  %v4293_v39 = vld [vmem:[%s6955_s2 + $0x28] sm:$0xff] }
 0x8cd   :  { %644 = vrot.lane.b32.xlu0 %v4492_v45, %s4850_s26 }
 0x8ce   :  { %v666_v21 = vadd.f32 %v665_v19, %v664_v20 }
 0x8f6   :  { %v160_v53 = vpop.f32.mrf.mxu0 }
 0x93f   :  { %v645_v47 = vpop.permute.xlu0 %644 }
 0x940   :  { %v647_v48 = vmul.f32 %v645_v47, %v628_v31 }
 0x942   :  { %v5093_v50 = vmul.f32 %v5081_v34, %v647_v48 }
 0x944   :  { %v663_v51 = vadd.f32 %v662_v49, %v5093_v50 }
 0x946   :  { %677 = vrot.lane.b32.xlu0 %v663_v51, %s4851_s28 }
 0x9b8   :  { %v678_v52 = vpop.permute.xlu0 %677 }
 0x9b9   :  { %4288 = vmatmul.msk.f32.vlgmr.msra.gmra.mxu2 %vm316_vm7, %v678_v52 }
 0xa3c   :  { %v698_v54 = vpop.f32.mrf.mxu2 }
 0xa3d   :  { %v701_v55 = vadd.f32 %v698_v54, %v160_v53 }
 0xa3f   :  { %4493 = vtanh.f32 %v701_v55  ;;  %v4289_v59 = vmul.f32 -1.442695, %v701_v55 }
 0xa41   :  { %4495 = vpow2.f32 %v4289_v59 }
 0xa45   :  { %v4494_v56 = vpop.eup %4493 }
 0xa46   :  { %724 = vrot.lane.b32.xlu2 %v4494_v56, %s4850_s26 }
 0xa47   :  { %v4496_v60 = vpop.eup %4495 }
 0xa48   :  { %v705_v61 = vadd.f32 1.0, %v4496_v60  ;;  %v838_v60 = vsub.f32 1.0, %v4293_v39 }
 0xa4a   :  { %4497 = vrcp.f32 %v705_v61  ;;  %v717_v12 = vand.u32 2147483648, %v705_v61  ;;  %vm711_vm10 = vweird.f32 %v705_v61  ;;  %v715_v13 = vand.u32 2147483647, %v705_v61 }
 0xa4c   :  { %v718_v15 = vor.u32 1.1754944e-38, %v717_v12  ;;  %vm716_vm12 = vcmp.eq.f32.partialorder %v715_v13, 8.507059e+37 }
 0xa4e   :  { %743 = vperm.xlu2 %4458, %v4290_v57  }
 0xa50   :  { %v4498_v62 = vpop.eup %4497 }
 0xa51   :  { %v707_v63 = vmul.f32 %v4498_v62, %v705_v61  ;;  %vm712_vm9 = vweird.f32 %v4498_v62 }
 0xa52   :  { %vm713_vm11 = vmor %vm711_vm10, %vm712_vm9 }
 0xa53   :  { %v708_v1 = vsub.f32 1.0, %v707_v63 }
 0xa55   :  { %v709_v4 = vmul.f32 %v4498_v62, %v708_v1 }
 0xa56   :  { %72 = vperm.xlu2 %4458, %v51_v58  }
 0xa57   :  { %v710_v8 = vadd.f32 %v4498_v62, %v709_v4 }
 0xa59   :  { %v714_v14 = vsel %vm713_vm11, %v4498_v62, %v710_v8 }
 0xa5a   :  { %v719_v17 = vsel %vm716_vm12, %v718_v15, %v714_v14 }
 0xa5b   :  { %v722_v22 = vmul.f32 %v719_v17, %v666_v21 }
 0xaa0   :  { %v725_v16 = vpop.permute.xlu2 %724 }
 0xaa1   :  { %v727_v18 = vmul.f32 %v725_v16, %v719_v17 }
 0xaa3   :  { %729 = vrot.lane.b32.xlu0 %v727_v18, %s4851_s28 }
 0xaa8   :  { %v5106_v3 = vpop.permute.xlu2 %743 }
 0xaab   :  { %750 = vperm.xlu0 %4457, %v747_v2  }
 0xab0   :  { %v73_v5 = vpop.permute.xlu2 %72 }
 0xab1   :  { %vm85_vm13 = vcmp.eq.s32.totalorder %v73_v5, %v4980_v10 }
 0xab2   :  { %v4251_v6 = vsel %vm85_vm13, 1.0, %v6970_v7 }
 0xab3   :  { %4259 = vmatmul.msk.f32.gmra.mxu0 %vm106_vm0, %v4251_v6 }
 0xb15   :  { %v730_v24 = vpop.permute.xlu0 %729 }
 0xb16   :  { %v732_v25 = vadd.f32 %v730_v24, %v722_v22  ;;  %v4296_v24 = vld [vmem:[%s6955_s2 + $0x30] sm:$0xff] }
 0xb18   :  { %4499 = vtanh.f32 %v732_v25  ;;  %v755_v4 = vmul.f32 %v5106_v3, %v732_v25  ;;  %v53_v25 = vld [vmem:[%s6952_s0 + $0x38] sm:$0xff] }
 0xb1d   :  { %v5114_v28 = vpop.permute.xlu0 %750 }
 0xb1e   :  { %v4500_v26 = vpop.eup %4499  ;;  %v753_v31 = vmul.f32 %v5114_v28, %v663_v51  ;;  %v756_v1 = vmul.f32 %v5114_v28, %v666_v21 }
 0xb1f   :  { %735 = vrot.lane.b32.xlu1 %v4500_v26, %s4850_s26 }
 0xb20   :  { %v757_v8 = vadd.f32 %v756_v1, %v755_v4 }
 0xb30   :  { %v163_v35 = vpop.f32.mrf.mxu0 }
 0xb91   :  { %v736_v29 = vpop.permute.xlu1 %735 }
 0xb92   :  { %v738_v30 = vmul.f32 %v736_v29, %v719_v17 }
 0xb94   :  { %v5118_v32 = vmul.f32 %v5106_v3, %v738_v30 }
 0xb96   :  { %v754_v33 = vadd.f32 %v753_v31, %v5118_v32 }
 0xb98   :  { %768 = vrot.lane.b32.xlu1 %v754_v33, %s4851_s28 }
 0xc0a   :  { %v769_v34 = vpop.permute.xlu1 %768 }
 0xc0b   :  { %4291 = vmatmul.msk.f32.vlgmr.msra.gmra.mxu3 %vm316_vm7, %v769_v34 }
 0xc8e   :  { %v789_v36 = vpop.f32.mrf.mxu3 }
 0xc8f   :  { %v792_v37 = vadd.f32 %v789_v36, %v163_v35 }
 0xc91   :  { %4501 = vtanh.f32 %v792_v37  ;;  %v4292_v42 = vmul.f32 -1.442695, %v792_v37 }
 0xc93   :  { %4503 = vpow2.f32 %v4292_v42 }
 0xc97   :  { %v4502_v38 = vpop.eup %4501 }
 0xc98   :  { %815 = vrot.lane.b32.xlu0 %v4502_v38, %s4850_s26 }
 0xc99   :  { %v4504_v43 = vpop.eup %4503 }
 0xc9a   :  { %v796_v45 = vadd.f32 1.0, %v4504_v43 }
 0xc9c   :  { %4505 = vrcp.f32 %v796_v45  ;;  %v808_v53 = vand.u32 2147483648, %v796_v45  ;;  %vm802_vm15 = vweird.f32 %v796_v45  ;;  %v806_v54 = vand.u32 2147483647, %v796_v45 }
 0xc9e   :  { %v809_v56 = vor.u32 1.1754944e-38, %v808_v53  ;;  %vm807_vm2 = vcmp.eq.f32.partialorder %v806_v54, 8.507059e+37 }
 0xca0   :  { %834 = vperm.xlu0 %4457, %v4293_v39  }
 0xca2   :  { %v4506_v47 = vpop.eup %4505 }
 0xca3   :  { %v798_v48 = vmul.f32 %v4506_v47, %v796_v45  ;;  %vm803_vm14 = vweird.f32 %v4506_v47 }
 0xca4   :  { %vm804_vm1 = vmor %vm802_vm15, %vm803_vm14 }
 0xca5   :  { %v799_v49 = vsub.f32 1.0, %v798_v48 }
 0xca7   :  { %v800_v51 = vmul.f32 %v4506_v47, %v799_v49 }
 0xca8   :  { %75 = vperm.xlu0 %4457, %v52_v41  }
 0xca9   :  { %v801_v52 = vadd.f32 %v4506_v47, %v800_v51 }
 0xcab   :  { %v805_v55 = vsel %vm804_vm1, %v4506_v47, %v801_v52  ;;  %v929_v47 = vsub.f32 1.0, %v4296_v24 }
 0xcac   :  { %v810_v58 = vsel %vm807_vm2, %v809_v56, %v805_v55 }
 0xcad   :  { %v813_v12 = vmul.f32 %v810_v58, %v757_v8 }
 0xd0a   :  { %v816_v57 = vpop.permute.xlu0 %815 }
 0xd0b   :  { %v818_v59 = vmul.f32 %v816_v57, %v810_v58 }
 0xd0d   :  { %820 = vrot.lane.b32.xlu1 %v818_v59, %s4851_s28 }
 0xd12   :  { %v5131_v61 = vpop.permute.xlu0 %834 }
 0xd15   :  { %841 = vperm.xlu1 %4459, %v838_v60  }
 0xd1a   :  { %v76_v62 = vpop.permute.xlu0 %75 }
 0xd1b   :  { %vm86_vm3 = vcmp.eq.s32.totalorder %v76_v62, %v4980_v10 }
 0xd1c   :  { %v4252_v63 = vsel %vm86_vm3, 1.0, %v6970_v7 }
 0xd1d   :  { %4260 = vmatmul.msk.f32.gmra.mxu0 %vm106_vm0, %v4252_v63 }
 0xd7f   :  { %v821_v13 = vpop.permute.xlu1 %820 }
 0xd80   :  { %v823_v14 = vadd.f32 %v821_v13, %v813_v12 }
 0xd82   :  { %4507 = vtanh.f32 %v823_v14  ;;  %v846_v53 = vmul.f32 %v5131_v61, %v823_v14 }
 0xd87   :  { %v5139_v16 = vpop.permute.xlu1 %841 }
 0xd88   :  { %v4508_v15 = vpop.eup %4507  ;;  %v844_v2 = vmul.f32 %v5139_v16, %v754_v33  ;;  %v847_v52 = vmul.f32 %v5139_v16, %v757_v8 }
 0xd89   :  { %826 = vrot.lane.b32.xlu2 %v4508_v15, %s4850_s26  ;;  %v4299_v15 = vld [vmem:[%s6955_s2 + $0x38] sm:$0xff] }
 0xd8a   :  { %v848_v54 = vadd.f32 %v847_v52, %v846_v53  ;;  %v5207_v52 = vld [vmem:[%s6958_s7 + $0x18] sm:$0xff] }
 0xd8b   :  { %v5217_v53 = vld [vmem:[%s6959_s8 + $0x18] sm:$0xff]  ;;  %1080 = vmatpush.msra.mxu2 %v5207_v52 }
 0xd8c   :  { %1101 = vmatpush.msra.mxu3 %v5217_v53 }
 0xd9a   :  { %v166_v19 = vpop.f32.mrf.mxu0 }
 0xde3   :  { %v827_v17 = vpop.permute.xlu2 %826 }
 0xde4   :  { %v829_v18 = vmul.f32 %v827_v17, %v810_v58  ;;  %v180_v17 = vld [vmem:[%s6956_s1] sm:$0xff] }
 0xde6   :  { %v5143_v5 = vmul.f32 %v5131_v61, %v829_v18 }
 0xde8   :  { %v845_v6 = vadd.f32 %v844_v2, %v5143_v5 }
 0xdea   :  { %859 = vrot.lane.b32.xlu2 %v845_v6, %s4851_s28 }
 0xe44   :  { %v860_v3 = vpop.permute.xlu2 %859 }
 0xe45   :  { %4294 = vmatmul.msk.f32.vlgmr.msrb.gmra.mxu2 %vm316_vm7, %v860_v3 }
 0xec8   :  { %v880_v20 = vpop.f32.mrf.mxu2 }
 0xec9   :  { %v883_v21 = vadd.f32 %v880_v20, %v166_v19  ;;  %v237_v19 = vld [vmem:[%s6957_s6 + $0x8] sm:$0xff] }
 0xeca   :  { %276 = vmatpush.msra.mxu1 %v237_v19 }
 0xecb   :  { %4509 = vtanh.f32 %v883_v21  ;;  %v4295_v26 = vmul.f32 -1.442695, %v883_v21 }
 0xecd   :  { %4511 = vpow2.f32 %v4295_v26 }
 0xed1   :  { %v4510_v22 = vpop.eup %4509 }
 0xed2   :  { %906 = vrot.lane.b32.xlu1 %v4510_v22, %s4850_s26  ;;  %v236_v22 = vld [vmem:[%s6957_s6] sm:$0xff] }
 0xed3   :  { %v4512_v29 = vpop.eup %4511  ;;  %277 = vmatpush.msra.mxu1 %v236_v22 }
 0xed4   :  { %v887_v30 = vadd.f32 1.0, %v4512_v29 }
 0xed6   :  { %4513 = vrcp.f32 %v887_v30  ;;  %v899_v37 = vand.u32 2147483648, %v887_v30  ;;  %vm893_vm5 = vweird.f32 %v887_v30  ;;  %v897_v38 = vand.u32 2147483647, %v887_v30 }
 0xed8   :  { %v900_v41 = vor.u32 1.1754944e-38, %v899_v37  ;;  %vm898_vm8 = vcmp.eq.f32.partialorder %v897_v38, 8.507059e+37 }
 0xeda   :  { %925 = vperm.xlu1 %4459, %v4296_v24  }
 0xedc   :  { %v4514_v31 = vpop.eup %4513 }
 0xedd   :  { %v889_v33 = vmul.f32 %v4514_v31, %v887_v30  ;;  %vm894_vm4 = vweird.f32 %v4514_v31 }
 0xede   :  { %vm895_vm6 = vmor %vm893_vm5, %vm894_vm4  ;;  %vm1228_vm4 = vcmask 7168  }
 0xedf   :  { %v890_v34 = vsub.f32 1.0, %v889_v33 }
 0xee1   :  { %v891_v35 = vmul.f32 %v4514_v31, %v890_v34 }
 0xee2   :  { %78 = vperm.xlu1 %4459, %v53_v25  }
 0xee3   :  { %v892_v36 = vadd.f32 %v4514_v31, %v891_v35 }
 0xee5   :  { %v896_v39 = vsel %vm895_vm6, %v4514_v31, %v892_v36  ;;  %v1020_v36 = vsub.f32 1.0, %v4299_v15 }
 0xee6   :  { %v901_v43 = vsel %vm898_vm8, %v900_v41, %v896_v39 }
 0xee7   :  { %v904_v55 = vmul.f32 %v901_v43, %v848_v54 }
 0xf44   :  { %v907_v42 = vpop.permute.xlu1 %906 }
 0xf45   :  { %v909_v45 = vmul.f32 %v907_v42, %v901_v43 }
 0xf47   :  { %911 = vrot.lane.b32.xlu2 %v909_v45, %s4851_s28 }
 0xf4c   :  { %v5156_v48 = vpop.permute.xlu1 %925 }
 0xf4f   :  { %932 = vperm.xlu2 %4458, %v929_v47  }
 0xf54   :  { %v79_v49 = vpop.permute.xlu1 %78 }
 0xf55   :  { %vm87_vm9 = vcmp.eq.s32.totalorder %v79_v49, %v4980_v10 }
 0xf56   :  { %v4253_v51 = vsel %vm87_vm9, 1.0, %v6970_v7 }
 0xf57   :  { %4261 = vmatmul.msk.f32.gmra.mxu0 %vm106_vm0, %v4253_v51 }
 0xfa1   :  { %v912_v56 = vpop.permute.xlu2 %911 }
 0xfa2   :  { %v914_v57 = vadd.f32 %v912_v56, %v904_v55  ;;  %v5229_v55 = vld [vmem:[%s6958_s7 + $0x8] sm:$0xff] }
 0xfa3   :  { %v5234_v56 = vld [vmem:[%s6959_s8 + $0x8] sm:$0xff] }
 0xfa4   :  { %4515 = vtanh.f32 %v914_v57  ;;  %v937_v42 = vmul.f32 %v5156_v48, %v914_v57  ;;  %v5241_v57 = vld [vmem:[%s6958_s7] sm:$0xff] }
 0xfa9   :  { %v5164_v59 = vpop.permute.xlu2 %932 }
 0xfaa   :  { %v4516_v58 = vpop.eup %4515  ;;  %v935_v63 = vmul.f32 %v5164_v59, %v845_v6  ;;  %v938_v41 = vmul.f32 %v5164_v59, %v848_v54  ;;  %v5224_v54 = vld [vmem:[%s6959_s8 + $0x10] sm:$0xff] }
 0xfab   :  { %917 = vrot.lane.b32.xlu0 %v4516_v58, %s4850_s26  ;;  %1102 = vmatpush.msra.mxu3 %v5224_v54 }
 0xfad   :  { %1103 = vmatpush.msra.mxu3 %v5234_v56 }
 0xfd4   :  { %v169_v8 = vpop.f32.mrf.mxu0 }
0x101d   :  { %v918_v60 = vpop.permute.xlu0 %917 }
0x101e   :  { %v920_v62 = vmul.f32 %v918_v60, %v901_v43  ;;  %v5197_v43 = vadd.f32 %v938_v41, %v937_v42 }
0x1020   :  { %v5168_v1 = vmul.f32 %v5156_v48, %v920_v62  ;;  %v5212_v48 = vld [vmem:[%s6958_s7 + $0x10] sm:$0xff] }
0x1021   :  { %1081 = vmatpush.msra.mxu2 %v5212_v48 }
0x1022   :  { %v5171_v4 = vadd.f32 %v935_v63, %v5168_v1 }
0x1023   :  { %1082 = vmatpush.msra.mxu2 %v5229_v55 }
0x1024   :  { %950 = vrot.lane.b32.xlu0 %v5171_v4, %s4851_s28 }
0x1025   :  { %1083 = vmatpush.msra.mxu2 %v5241_v57 }
0x1096   :  { %v951_v61 = vpop.permute.xlu0 %950 }
0x1097   :  { %4297 = vmatmul.msk.f32.vlgmr.msrb.gmra.mxu3 %vm316_vm7, %v951_v61 }
0x111a   :  { %v971_v12 = vpop.f32.mrf.mxu3 }
0x111b   :  { %v974_v13 = vadd.f32 %v971_v12, %v169_v8  ;;  %v5258_v12 = vld [vmem:[%s6959_s8] sm:$0xff] }
0x111c   :  { %1104 = vmatpush.msra.mxu3 %v5258_v12 }
0x111d   :  { %4517 = vtanh.f32 %v974_v13  ;;  %v4298_v18 = vmul.f32 -1.442695, %v974_v13  ;;  %1105 = vmatmul.f32.vlgmr.msra.gmra.mxu3 %v6970_v7 }
0x111f   :  { %4519 = vpow2.f32 %v4298_v18 }
0x1123   :  { %v4518_v14 = vpop.eup %4517 }
0x1124   :  { %997 = vrot.lane.b32.xlu2 %v4518_v14, %s4850_s26 }
0x1125   :  { %v4520_v2 = vpop.eup %4519 }
0x1126   :  { %v978_v6 = vadd.f32 1.0, %v4520_v2 }
0x1128   :  { %4521 = vrcp.f32 %v978_v6  ;;  %v990_v26 = vand.u32 2147483648, %v978_v6  ;;  %vm984_vm11 = vweird.f32 %v978_v6  ;;  %v988_v29 = vand.u32 2147483647, %v978_v6 }
0x112a   :  { %v991_v31 = vor.u32 1.1754944e-38, %v990_v26  ;;  %vm989_vm13 = vcmp.eq.f32.partialorder %v988_v29, 8.507059e+37 }
0x112c   :  { %1016 = vperm.xlu2 %4458, %v4299_v15  }
0x112e   :  { %v4522_v3 = vpop.eup %4521 }
0x112f   :  { %v980_v20 = vmul.f32 %v4522_v3, %v978_v6  ;;  %vm985_vm10 = vweird.f32 %v4522_v3 }
0x1130   :  { %vm986_vm12 = vmor %vm984_vm11, %vm985_vm10 }
0x1131   :  { %v981_v21 = vsub.f32 1.0, %v980_v20 }
0x1133   :  { %v982_v24 = vmul.f32 %v4522_v3, %v981_v21 }
0x1134   :  { %189 = vperm.xlu2 %4458, %v180_v17  }
0x1135   :  { %v983_v25 = vadd.f32 %v4522_v3, %v982_v24 }
0x1137   :  { %v987_v30 = vsel %vm986_vm12, %v4522_v3, %v983_v25 }
0x1138   :  { %v992_v34 = vsel %vm989_vm13, %v991_v31, %v987_v30  ;;  %vm1835_vm13 = vcmp.eq.s32.totalorder %v4980_v10, 9 }
0x1139   :  { %v995_v45 = vmul.f32 %v992_v34, %v5197_v43 }
0x117e   :  { %v998_v33 = vpop.permute.xlu2 %997 }
0x117f   :  { %v1000_v35 = vmul.f32 %v998_v33, %v992_v34 }
0x1181   :  { %1002 = vrot.lane.b32.xlu0 %v1000_v35, %s4851_s28 }
0x1186   :  { %v5190_v37 = vpop.permute.xlu2 %1016 }
0x1189   :  { %1023 = vperm.xlu0 %4457, %v1020_v36   ;;  %v395_v36 = vadd.f32 %v4997_v40, %v5000_v44 }
0x118e   :  { %v190_v38 = vpop.permute.xlu2 %189 }
0x118f   :  { %vm212_vm14 = vcmp.eq.s32.totalorder %v190_v38, %v4980_v10  ;;  %v667_v38 = vadd.f32 %v5089_v46, %v5093_v50 }
0x1190   :  { %v4262_v39 = vsel %vm212_vm14, 1.0, %v6970_v7  ;;  %vm1831_vm14 = vcmp.eq.s32.totalorder %v4980_v10, 8 }
0x1191   :  { %4270 = vmatmul.msk.f32.vlgmr.msra.gmra.mxu1 %vm106_vm0, %v4262_v39  ;;  %v940_v39 = vadd.f32 %v5164_v59, %v5168_v1  ;;  %v485_v1 = vadd.f32 %v5030_v23, %v5035_v27  ;;  %v5297_v23 = vld [vmem:[%s6960_s9 + $0x18] sm:$0xff]  ;;  %v5302_v27 = vld [vmem:[%s6960_s9 + $0x10] sm:$0xff] }
0x1192   :  { %1164 = vmatpush.msrb.mxu2 %v5297_v23 }
0x1194   :  { %1165 = vmatpush.msrb.mxu2 %v5302_v27 }
0x11a0   :  { %v1106_v15 = vpop.f32.mrf.mxu3 }
0x11f3   :  { %v1003_v47 = vpop.permute.xlu0 %1002 }
0x11f4   :  { %v5200_v49 = vadd.f32 %v1003_v47, %v995_v45 }
0x11f6   :  { %4523 = vtanh.f32 %v5200_v49  ;;  %v1028_v42 = vmul.f32 %v5190_v37, %v5200_v49 }
0x11fb   :  { %v5246_v58 = vpop.permute.xlu0 %1023 }
0x11fc   :  { %v4524_v51 = vpop.eup %4523  ;;  %v1026_v63 = vmul.f32 %v5246_v58, %v5171_v4  ;;  %v1029_v41 = vmul.f32 %v5246_v58, %v5197_v43  ;;  %v758_v43 = vadd.f32 %v5114_v28, %v5118_v32  ;;  %v5308_v32 = vld [vmem:[%s6960_s9 + $0x8] sm:$0xff] }
0x11fd   :  { %1008 = vrot.lane.b32.xlu1 %v4524_v51, %s4850_s26  ;;  %1166 = vmatpush.msrb.mxu2 %v5308_v32 }
0x11fe   :  { %v1030_v45 = vadd.f32 %v1029_v41, %v1028_v42 }
0x120e   :  { %v279_v4 = vpop.f32.mrf.mxu1 }
0x126f   :  { %v1009_v60 = vpop.permute.xlu1 %1008 }
0x1270   :  { %v1011_v62 = vmul.f32 %v1009_v60, %v992_v34 }
0x1272   :  { %v5251_v61 = vmul.f32 %v5190_v37, %v1011_v62  ;;  %v576_v62 = vadd.f32 %v5060_v0, %v5064_v11 }
0x1274   :  { %v1027_v8 = vadd.f32 %v1026_v63, %v5251_v61  ;;  %v1031_v49 = vadd.f32 %v5246_v58, %v5251_v61  ;;  %v5315_v58 = vld [vmem:[%s6960_s9] sm:$0xff]  ;;  %v849_v61 = vadd.f32 %v5139_v16, %v5143_v5 }
0x1275   :  { %1167 = vmatpush.msrb.mxu2 %v5315_v58 }
0x1276   :  { %1064 = vrot.lane.b32.xlu1 %v1027_v8, %s4851_s28 }
0x12e8   :  { %v1065_v13 = vpop.permute.xlu1 %1064 }
0x12e9   :  { %4300 = vmatmul.msk.f32.vlgmr.msra.gmra.mxu2 %vm316_vm7, %v1065_v13 }
0x136c   :  { %v1085_v14 = vpop.f32.mrf.mxu2 }
0x136d   :  { %v1088_v17 = vadd.f32 %v1085_v14, %v279_v4 }
0x136f   :  { %v1109_v18 = vadd.f32 %v1106_v15, %v1088_v17 }
0x1371   :  { %4525 = vtanh.f32 %v1109_v18  ;;  %v4301_v6 = vmul.f32 -1.442695, %v1109_v18 }
0x1373   :  { %4527 = vpow2.f32 %v4301_v6 }
0x1377   :  { %v4526_v2 = vpop.eup %4525 }
0x1378   :  { %1132 = vrot.lane.b32.xlu0 %v4526_v2, %s4850_s26 }
0x1379   :  { %v4528_v3 = vpop.eup %4527 }
0x137a   :  { %v1113_v19 = vadd.f32 1.0, %v4528_v3 }
0x137c   :  { %4529 = vrcp.f32 %v1113_v19  ;;  %v1125_v26 = vand.u32 2147483648, %v1113_v19  ;;  %vm1119_vm1 = vweird.f32 %v1113_v19  ;;  %v1123_v29 = vand.u32 2147483647, %v1113_v19 }
0x137e   :  { %v1126_v31 = vor.u32 1.1754944e-38, %v1125_v26  ;;  %vm1124_vm3 = vcmp.eq.f32.partialorder %v1123_v29, 8.507059e+37 }
0x1382   :  { %v4530_v20 = vpop.eup %4529 }
0x1383   :  { %v1115_v21 = vmul.f32 %v4530_v20, %v1113_v19  ;;  %vm1120_vm15 = vweird.f32 %v4530_v20 }
0x1384   :  { %vm1121_vm2 = vmor %vm1119_vm1, %vm1120_vm15  ;;  %vm1840_vm15 = vcmp.eq.s32.totalorder %v4980_v10, 10  ;;  %vm1845_vm1 = vcmp.eq.s32.totalorder %v4980_v10, 11 }
0x1385   :  { %v1116_v22 = vsub.f32 1.0, %v1115_v21 }
0x1387   :  { %v1117_v24 = vmul.f32 %v4530_v20, %v1116_v22 }
0x1389   :  { %v1118_v25 = vadd.f32 %v4530_v20, %v1117_v24 }
0x138b   :  { %v1122_v30 = vsel %vm1121_vm2, %v4530_v20, %v1118_v25  ;;  %vm1850_vm2 = vcmp.eq.s32.totalorder %v4980_v10, 12 }
0x138c   :  { %v1127_v34 = vsel %vm1124_vm3, %v1126_v31, %v1122_v30  ;;  %vm1855_vm3 = vcmp.eq.s32.totalorder %v4980_v10, 13 }
0x138d   :  { %v1130_v40 = vmul.f32 %v1127_v34, %v1030_v45  ;;  %v5379_v45 = vld [vmem:[%s6961_s3 + $0x28] sm:$0xff] }
0x13ea   :  { %v1133_v33 = vpop.permute.xlu0 %1132 }
0x13eb   :  { %v1135_v35 = vmul.f32 %v1133_v33, %v1127_v34 }
0x13ed   :  { %1137 = vrot.lane.b32.xlu1 %v1135_v35, %s4851_s28 }
0x13f5   :  { %397 = vrot.lane.b32.xlu1 %v395_v36, %s4851_s28 }
0x13fd   :  { %669 = vrot.lane.b32.xlu1 %v667_v38, %s4851_s28 }
0x1405   :  { %942 = vrot.lane.b32.xlu1 %v940_v39, %s4851_s28 }
0x145f   :  { %v1138_v44 = vpop.permute.xlu1 %1137 }
0x1460   :  { %v5278_v47 = vadd.f32 %v1138_v44, %v1130_v40  ;;  %v5384_v40 = vld [vmem:[%s6961_s3 + $0x20] sm:$0xff] }
0x1462   :  { %4531 = vtanh.f32 %v5278_v47 }
0x1467   :  { %v398_v46 = vpop.permute.xlu1 %397 }
0x1468   :  { %v4532_v50 = vpop.eup %4531  ;;  %400 = vst.msk [vmem:[#allocation4] sm:$0xff] %vm316_vm7, %v398_v46 }
0x1469   :  { %1143 = vrot.lane.b32.xlu2 %v4532_v50, %s4850_s26 }
0x146f   :  { %v670_v59 = vpop.permute.xlu1 %669  ;;  %v5334_v11 = vld [vmem:[#allocation4] sm:$0xff] }
0x1470   :  { %673 = vst.msk [vmem:[#allocation4 + $0x18] sm:$0xff] %vm316_vm7, %v670_v59  ;;  %v5389_v59 = vld [vmem:[%s6961_s3] sm:$0xff] }
0x1471   :  { %487 = vrot.lane.b32.xlu2 %v485_v1, %s4851_s28  ;;  %v5394_v1 = vld [vmem:[%s6961_s3 + $0x8] sm:$0xff] }
0x1477   :  { %v943_v37 = vpop.permute.xlu1 %942  ;;  %v5351_v19 = vld [vmem:[#allocation4 + $0x18] sm:$0xff] }
0x1478   :  { %946 = vst.msk [vmem:[#allocation4 + $0x30] sm:$0xff] %vm316_vm7, %v943_v37 }
0x1479   :  { %760 = vrot.lane.b32.xlu2 %v758_v43, %s4851_s28 }
0x147f   :  { %v5366_v31 = vld [vmem:[#allocation4 + $0x30] sm:$0xff] }
0x1481   :  { %1033 = vrot.lane.b32.xlu2 %v1031_v49, %s4851_s28  ;;  %v5401_v49 = vld [vmem:[%s6961_s3 + $0x10] sm:$0xff] }
0x14c3   :  { %v1144_v51 = vpop.permute.xlu2 %1143 }
0x14c4   :  { %v1146_v28 = vmul.f32 %v1144_v51, %v1127_v34  ;;  %v5406_v51 = vld [vmem:[%s6961_s3 + $0x18] sm:$0xff] }
0x14c6   :  { %1148 = vrot.lane.b32.xlu0 %v1146_v28, %s4851_s28 }
0x14cb   :  { %v488_v60 = vpop.permute.xlu2 %487 }
0x14cc   :  { %491 = vst.msk [vmem:[#allocation4 + $0x8] sm:$0xff] %vm316_vm7, %v488_v60 }
0x14ce   :  { %578 = vrot.lane.b32.xlu0 %v576_v62, %s4851_s28  ;;  %v5413_v62 = vld [vmem:[%s6961_s3 + $0x38] sm:$0xff] }
0x14d3   :  { %v761_v63 = vpop.permute.xlu2 %760  ;;  %v5336_v14 = vld [vmem:[#allocation4 + $0x8] sm:$0xff] }
0x14d4   :  { %764 = vst.msk [vmem:[#allocation4 + $0x20] sm:$0xff] %vm316_vm7, %v761_v63  ;;  %v5418_v63 = vld [vmem:[%s6961_s3 + $0x30] sm:$0xff] }
0x14d6   :  { %851 = vrot.lane.b32.xlu0 %v849_v61, %s4851_s28 }
0x14db   :  { %v1034_v8 = vpop.permute.xlu2 %1033  ;;  %v5353_v20 = vld [vmem:[#allocation4 + $0x20] sm:$0xff] }
0x14dc   :  { %1037 = vst.msk [vmem:[#allocation4 + $0x38] sm:$0xff] %vm316_vm7, %v1034_v8 }
0x14e3   :  { %v5368_v33 = vld [vmem:[#allocation4 + $0x38] sm:$0xff] }
0x1538   :  { %v5328_v13 = vpop.permute.xlu0 %1148 }
0x1539   :  { %4302 = vmatmul.msk.f32.vlgmr.msrb.gmra.mxu2 %vm316_vm7, %v5328_v13 }
0x1540   :  { %v579_v4 = vpop.permute.xlu0 %578 }
0x1541   :  { %582 = vst.msk [vmem:[#allocation4 + $0x10] sm:$0xff] %vm316_vm7, %v579_v4 }
0x1548   :  { %v852_v0 = vpop.permute.xlu0 %851  ;;  %v5338_v16 = vld [vmem:[#allocation4 + $0x10] sm:$0xff] }
0x1549   :  { %855 = vst.msk [vmem:[#allocation4 + $0x28] sm:$0xff] %vm316_vm7, %v852_v0 }
0x1550   :  { %v5355_v21 = vld [vmem:[#allocation4 + $0x28] sm:$0xff] }
0x15bc   :  { %v5340_v5 = vpop.f32.mrf.mxu2 }
0x15bd   :  { %v1180_v15 = vmul.f32 %v5334_v11, %v5340_v5  ;;  %v1182_v17 = vmul.f32 %v5338_v16, %v5340_v5  ;;  %v1181_v18 = vmul.f32 %v5336_v14, %v5340_v5  ;;  %v1183_v22 = vmul.f32 %v5351_v19, %v5340_v5 }
0x15be   :  { %v1184_v24 = vmul.f32 %v5353_v20, %v5340_v5  ;;  %v1185_v25 = vmul.f32 %v5355_v21, %v5340_v5  ;;  %v1186_v34 = vmul.f32 %v5366_v31, %v5340_v5  ;;  %v1187_v35 = vmul.f32 %v5368_v33, %v5340_v5 }
0x15bf   :  { %v1188_v2 = vsel %vm316_vm7, %v1180_v15, 0.0  ;;  %v1194_v6 = vsel %vm316_vm7, %v1182_v17, 0.0  ;;  %v1191_v3 = vsel %vm316_vm7, %v1181_v18, 0.0  ;;  %v1197_v26 = vsel %vm316_vm7, %v1183_v22, 0.0 }
0x15c0   :  { %1189 = vadd.xlane.f32.xlu0 %v1188_v2  ;;  %1195 = vadd.xlane.f32.xlu2 %v1194_v6  ;;  %v1200_v29 = vsel %vm316_vm7, %v1184_v24, 0.0  ;;  %v1203_v30 = vsel %vm316_vm7, %v1185_v25, 0.0  ;;  %v1206_v36 = vsel %vm316_vm7, %v1186_v34, 0.0  ;;  %v1209_v38 = vsel %vm316_vm7, %v1187_v35, 0.0 }
0x15c1   :  { %1192 = vadd.xlane.f32.xlu1 %v1191_v3 }
0x15c8   :  { %1198 = vadd.xlane.f32.xlu2 %v1197_v26  ;;  %1201 = vadd.xlane.f32.xlu0 %v1200_v29 }
0x15c9   :  { %1204 = vadd.xlane.f32.xlu1 %v1203_v30 }
0x15d0   :  { %1207 = vadd.xlane.f32.xlu2 %v1206_v36  ;;  %1210 = vadd.xlane.f32.xlu0 %v1209_v38 }
0x1633   :  { %v1190_v39 = vpop.xlane.xlu0 %1189  ;;  %v1196_v41 = vpop.xlane.xlu2 %1195 }
0x1634   :  { %v1193_v42 = vpop.xlane.xlu1 %1192  ;;  %v1220_v28 = vadd.f32 %v5389_v59, %v1190_v39  ;;  %v1222_v61 = vadd.f32 %v5401_v49, %v1196_v41 }
0x1635   :  { %v1221_v60 = vadd.f32 %v5394_v1, %v1193_v42 }
0x1636   :  { %v1229_v18 = vsel %vm1228_vm4, %v1220_v28, -inf  ;;  %v1231_v25 = vsel %vm1228_vm4, %v1222_v61, -inf }
0x1637   :  { %v1230_v2 = vsel %vm1228_vm4, %v1221_v60, -inf }
0x163b   :  { %v1202_v44 = vpop.xlane.xlu0 %1201  ;;  %v1199_v46 = vpop.xlane.xlu2 %1198 }
0x163c   :  { %v1205_v50 = vpop.xlane.xlu1 %1204  ;;  %v1224_v43 = vadd.f32 %v5384_v40, %v1202_v44  ;;  %v1223_v0 = vadd.f32 %v5406_v51, %v1199_v46 }
0x163d   :  { %v1225_v37 = vadd.f32 %v5379_v45, %v1205_v50 }
0x163e   :  { %v1233_v4 = vsel %vm1228_vm4, %v1224_v43, -inf  ;;  %v1232_v26 = vsel %vm1228_vm4, %v1223_v0, -inf }
0x163f   :  { %v1235_v8 = vsel %vm1228_vm4, %v1225_v37, -inf  ;;  %v1234_v24 = vmax.f32 %v1229_v18, %v1233_v4 }
0x1640   :  { %v1236_v22 = vmax.f32 %v1230_v2, %v1235_v8 }
0x1642   :  { %v1241_v36 = vmax.f32 %v1234_v24, %v1236_v22 }
0x1643   :  { %v1211_v15 = vpop.xlane.xlu0 %1210  ;;  %v1208_v17 = vpop.xlane.xlu2 %1207 }
0x1644   :  { %v1227_v6 = vadd.f32 %v5413_v62, %v1211_v15  ;;  %v1226_v3 = vadd.f32 %v5418_v63, %v1208_v17 }
0x1646   :  { %v1239_v29 = vsel %vm1228_vm4, %v1227_v6, -inf  ;;  %v1237_v30 = vsel %vm1228_vm4, %v1226_v3, -inf }
0x1647   :  { %v1240_v34 = vmax.f32 %v1232_v26, %v1239_v29  ;;  %v1238_v35 = vmax.f32 %v1231_v25, %v1237_v30 }
0x1649   :  { %v1242_v38 = vmax.f32 %v1238_v35, %v1240_v34 }
0x164b   :  { %v1243_v39 = vmax.f32 %v1241_v36, %v1242_v38 }
0x164d   :  { %v1244_v41 = vsub.f32 %v1220_v28, %v1243_v39  ;;  %v1245_v42 = vsub.f32 %v1221_v60, %v1243_v39  ;;  %v1246_v44 = vsub.f32 %v1222_v61, %v1243_v39  ;;  %v1247_v46 = vsub.f32 %v1223_v0, %v1243_v39 }
0x164e   :  { %v1248_v50 = vsub.f32 %v1224_v43, %v1243_v39  ;;  %v1249_v17 = vsub.f32 %v1225_v37, %v1243_v39  ;;  %v1250_v2 = vsub.f32 %v1226_v3, %v1243_v39  ;;  %v1251_v26 = vsub.f32 %v1227_v6, %v1243_v39 }
0x164f   :  { %v1252_v8 = vmul.f32 1.442695, %v1244_v41  ;;  %v1254_v4 = vmul.f32 1.442695, %v1245_v42  ;;  %v1256_v15 = vmul.f32 1.442695, %v1246_v44 }
0x1650   :  { %v1258_v18 = vmul.f32 1.442695, %v1247_v46  ;;  %v1260_v9 = vmul.f32 1.442695, %v1248_v50  ;;  %v1262_v22 = vmul.f32 1.442695, %v1249_v17 }
0x1651   :  { %4533 = vpow2.f32 %v1252_v8  ;;  %v1264_v24 = vmul.f32 1.442695, %v1250_v2  ;;  %v1266_v61 = vmul.f32 1.442695, %v1251_v26 }
0x1652   :  { %4535 = vpow2.f32 %v1254_v4 }
0x1653   :  { %4537 = vpow2.f32 %v1256_v15 }
0x1654   :  { %4539 = vpow2.f32 %v1258_v18 }
0x1655   :  { %4541 = vpow2.f32 %v1260_v9 }
0x1656   :  { %4543 = vpow2.f32 %v1262_v22 }
0x1657   :  { %v4534_v28 = vpop.eup %4533  ;;  %4545 = vpow2.f32 %v1264_v24 }
0x1658   :  { %v4536_v60 = vpop.eup %4535  ;;  %v1268_v43 = vsel %vm1228_vm4, %v4534_v28, 0.0  ;;  %4547 = vpow2.f32 %v1266_v61 }
0x1659   :  { %v4538_v0 = vpop.eup %4537  ;;  %v1269_v37 = vsel %vm1228_vm4, %v4536_v60, 0.0 }
0x165a   :  { %v4540_v25 = vpop.eup %4539  ;;  %v1270_v3 = vadd.f32 %v1269_v37, %v1268_v43  ;;  %v1271_v29 = vsel %vm1228_vm4, %v4538_v0, 0.0  ;;  %v5467_v37 = vld [vmem:[%s6962_s10] sm:$0xff] }
0x165b   :  { %v4542_v30 = vpop.eup %4541  ;;  %v1273_v34 = vsel %vm1228_vm4, %v4540_v25, 0.0 }
0x165c   :  { %v1272_v6 = vadd.f32 %v1271_v29, %v1270_v3  ;;  %v4544_v9 = vpop.eup %4543  ;;  %v1275_v36 = vsel %vm1228_vm4, %v4542_v30, 0.0 }
0x165d   :  { %v4546_v38 = vpop.eup %4545  ;;  %v1277_v41 = vsel %vm1228_vm4, %v4544_v9, 0.0 }
0x165e   :  { %v1274_v35 = vadd.f32 %v1273_v34, %v1272_v6  ;;  %v4548_v42 = vpop.eup %4547  ;;  %v1279_v46 = vsel %vm1228_vm4, %v4546_v38, 0.0 }
0x165f   :  { %v1281_v8 = vsel %vm1228_vm4, %v4548_v42, 0.0 }
0x1660   :  { %v1276_v39 = vadd.f32 %v1275_v36, %v1274_v35 }
0x1662   :  { %v1278_v44 = vadd.f32 %v1277_v41, %v1276_v39 }
0x1664   :  { %v1280_v50 = vadd.f32 %v1279_v46, %v1278_v44 }
0x1666   :  { %v1282_v4 = vadd.f32 %v1281_v8, %v1280_v50 }
0x1668   :  { %4549 = vrcp.f32 %v1282_v4 }
0x166e   :  { %v4550_v15 = vpop.eup %4549 }
0x166f   :  { %v1286_v17 = vmul.f32 %v4550_v15, %v4538_v0  ;;  %v1285_v18 = vmul.f32 %v4550_v15, %v4536_v60  ;;  %v1284_v2 = vmul.f32 %v4550_v15, %v4534_v28  ;;  %v1288_v26 = vmul.f32 %v4550_v15, %v4542_v30  ;;  %v181_v28 = vld [vmem:[%s6956_s1 + $0x8] sm:$0xff]  ;;  %v5448_v60 = vld [vmem:[%s6962_s10 + $0x18] sm:$0xff]  ;;  %v5455_v0 = vld [vmem:[%s6962_s10 + $0x10] sm:$0xff] }
0x1670   :  { %v1289_v22 = vmul.f32 %v4550_v15, %v4544_v9  ;;  %v1287_v24 = vmul.f32 %v4550_v15, %v4540_v25  ;;  %v1291_v61 = vmul.f32 %v4550_v15, %v4548_v42  ;;  %v1290_v43 = vmul.f32 %v4550_v15, %v4546_v38  ;;  %1374 = vmatpush.msrb.mxu3 %v5448_v60 }
0x1671   :  { %1304 = vperm.xlu0 %4457, %v1286_v17   ;;  %1299 = vperm.xlu2 %4458, %v1285_v18  }
0x1672   :  { %1294 = vperm.xlu1 %4459, %v1284_v2   ;;  %1745 = vmatpush.msrb.mxu0 %v5448_v60 }
0x1673   :  { %1375 = vmatpush.msrb.mxu3 %v5455_v0 }
0x1674   :  { %1746 = vmatpush.msrb.mxu0 %v5455_v0 }
0x1679   :  { %1314 = vperm.xlu0 %4457, %v1288_v26   ;;  %1319 = vperm.xlu2 %4458, %v1289_v22  }
0x167a   :  { %1309 = vperm.xlu1 %4459, %v1287_v24  }
0x1681   :  { %1329 = vperm.xlu0 %4457, %v1291_v61   ;;  %1356 = vrot.lane.b32.xlu2 %v5340_v5, %s4852_s30  ;;  %v5460_v5 = vld [vmem:[%s6962_s10 + $0x8] sm:$0xff] }
0x1682   :  { %1324 = vperm.xlu1 %4459, %v1290_v43   ;;  %1376 = vmatpush.msrb.mxu3 %v5460_v5 }
0x1683   :  { %1747 = vmatpush.msrb.mxu0 %v5460_v5 }
0x1684   :  { %1377 = vmatpush.msrb.mxu3 %v5467_v37 }
0x1685   :  { %1748 = vmatpush.msrb.mxu0 %v5467_v37 }
0x1686   :  { %1468 = vmatpush.msra.mxu3 %v5207_v52 }
0x1687   :  { %1884 = vmatpush.msra.mxu0 %v5207_v52 }
0x1688   :  { %1469 = vmatpush.msra.mxu3 %v5212_v48 }
0x1689   :  { %1885 = vmatpush.msra.mxu0 %v5212_v48 }
0x168a   :  { %192 = vperm.xlu1 %4459, %v181_v28   ;;  %1470 = vmatpush.msra.mxu3 %v5229_v55 }
0x168b   :  { %1886 = vmatpush.msra.mxu0 %v5229_v55 }
0x168c   :  { %1471 = vmatpush.msra.mxu3 %v5241_v57 }
0x168d   :  { %1887 = vmatpush.msra.mxu0 %v5241_v57 }
0x16cb   :  { %v5475_v25 = vpop.permute.xlu2 %1299 }
0x16cc   :  { %v1333_v30 = vmul.f32 %v5475_v25, %v5336_v14 }
0x16ce   :  { %v1341_v6 = vsel %vm316_vm7, %v1333_v30, 0.0 }
0x16d3   :  { %v5504_v39 = vpop.permute.xlu2 %1319 }
0x16d4   :  { %v1337_v46 = vmul.f32 %v5504_v39, %v5355_v21 }
0x16d6   :  { %v1349_v17 = vsel %vm316_vm7, %v1337_v46, 0.0 }
0x16e3   :  { %v5479_v3 = vpop.permute.xlu0 %1304 }
0x16e4   :  { %v5481_v29 = vpop.permute.xlu1 %1294  ;;  %v1334_v34 = vmul.f32 %v5479_v3, %v5338_v16 }
0x16e5   :  { %v1332_v52 = vmul.f32 %v5481_v29, %v5334_v11 }
0x16e6   :  { %v1343_v36 = vsel %vm316_vm7, %v1334_v34, 0.0 }
0x16e7   :  { %v1340_v48 = vsel %vm316_vm7, %v1332_v52, 0.0  ;;  %v5534_v52 = vld [vmem:[%s6964_s11 + $0x18] sm:$0xff] }
0x16e8   :  { %v1342_v9 = vadd.f32 %v1341_v6, %v1340_v48  ;;  %1401 = vmatpush.msra.mxu2 %v5534_v52  ;;  %1769 = vmatpush.msrb.mxu1 %v5534_v52 }
0x16ea   :  { %v1344_v41 = vadd.f32 %v1343_v36, %v1342_v9 }
0x16eb   :  { %v5495_v35 = vpop.permute.xlu0 %1314 }
0x16ec   :  { %v5497_v55 = vpop.permute.xlu1 %1309  ;;  %v1336_v38 = vmul.f32 %v5495_v35, %v5353_v20 }
0x16ed   :  { %v1335_v57 = vmul.f32 %v5497_v55, %v5351_v19 }
0x16ee   :  { %v1347_v50 = vsel %vm316_vm7, %v1336_v38, 0.0 }
0x16ef   :  { %v1345_v42 = vsel %vm316_vm7, %v1335_v57, 0.0 }
0x16f0   :  { %v1346_v44 = vadd.f32 %v1345_v42, %v1344_v41 }
0x16f2   :  { %v1348_v8 = vadd.f32 %v1347_v50, %v1346_v44 }
0x16f3   :  { %v5510_v4 = vpop.permute.xlu0 %1329 }
0x16f4   :  { %v5512_v15 = vpop.permute.xlu1 %1324  ;;  %v1339_v18 = vmul.f32 %v5510_v4, %v5368_v33  ;;  %v1350_v26 = vadd.f32 %v1349_v17, %v1348_v8 }
0x16f5   :  { %v1338_v2 = vmul.f32 %v5512_v15, %v5366_v31 }
0x16f6   :  { %v1353_v61 = vsel %vm316_vm7, %v1339_v18, 0.0 }
0x16f7   :  { %v1351_v22 = vsel %vm316_vm7, %v1338_v2, 0.0 }
0x16f8   :  { %v1352_v24 = vadd.f32 %v1351_v22, %v1350_v26 }
0x16fa   :  { %v1354_v43 = vadd.f32 %v1353_v61, %v1352_v24 }
0x16fc   :  { %4303 = vmatmul.msk.f32.vlgmr.msrb.gmra.mxu3 %vm316_vm7, %v1354_v43  ;;  %v193_v28 = vpop.permute.xlu1 %192 }
0x16fd   :  { %vm213_vm5 = vcmp.eq.s32.totalorder %v193_v28, %v4980_v10  ;;  %1552 = vmatpush.msrb.mxu3 %v5297_v23  ;;  %v5539_v23 = vld [vmem:[%s6964_s11 + $0x10] sm:$0xff] }
0x16fe   :  { %v4263_v30 = vsel %vm213_vm5, 1.0, %v6970_v7  ;;  %1402 = vmatpush.msra.mxu2 %v5539_v23  ;;  %1770 = vmatpush.msrb.mxu1 %v5539_v23  ;;  %vm1860_vm5 = vcmp.eq.s32.totalorder %v4980_v10, 14 }
0x16ff   :  { %4271 = vmatmul.msk.f32.gmra.mxu1 %vm106_vm0, %v4263_v30  ;;  %1553 = vmatpush.msrb.mxu3 %v5302_v27  ;;  %v5546_v27 = vld [vmem:[%s6964_s11 + $0x8] sm:$0xff] }
0x1700   :  { %1403 = vmatpush.msra.mxu2 %v5546_v27  ;;  %1771 = vmatpush.msrb.mxu1 %v5546_v27 }
0x1701   :  { %1554 = vmatpush.msrb.mxu3 %v5308_v32  ;;  %v5553_v32 = vld [vmem:[%s6964_s11] sm:$0xff] }
0x1702   :  { %1404 = vmatpush.msra.mxu2 %v5553_v32  ;;  %1772 = vmatpush.msrb.mxu1 %v5553_v32 }
0x1703   :  { %1555 = vmatpush.msrb.mxu3 %v5315_v58  ;;  %v1357_v58 = vpop.permute.xlu2 %1356 }
0x1704   :  { %4315 = vmatmul.msk.f32.vlgmr.msra.gmra.mxu3 %vm316_vm7, %v5328_v13  ;;  %1489 = vmatpush.msrb.mxu2 %v5217_v53 }
0x1705   :  { %1905 = vmatpush.msra.mxu1 %v5217_v53 }
0x1706   :  { %1490 = vmatpush.msrb.mxu2 %v5224_v54 }
0x1707   :  { %1906 = vmatpush.msra.mxu1 %v5224_v54 }
0x1708   :  { %1491 = vmatpush.msrb.mxu2 %v5234_v56 }
0x1709   :  { %1907 = vmatpush.msra.mxu1 %v5234_v56 }
0x170a   :  { %1492 = vmatpush.msrb.mxu2 %v5258_v12 }
0x170b   :  { %1908 = vmatpush.msra.mxu1 %v5258_v12 }
0x177c   :  { %v282_v36 = vpop.f32.mrf.mxu1 }
0x177f   :  { %v1379_v13 = vpop.f32.mrf.mxu3 }
0x1780   :  { %v1380_v48 = vadd.f32 %v1379_v13, %v1357_v58 }
0x1782   :  { %4551 = vtanh.f32 %v1380_v48 }
0x1787   :  { %v1473_v9 = vpop.f32.mrf.mxu3 }
0x1788   :  { %v4552_v6 = vpop.eup %4551  ;;  %v1476_v38 = vadd.f32 %v1473_v9, %v282_v36 }
0x1789   :  { %4304 = vmatmul.msk.f32.vlgmr.msra.gmra.mxu2 %vm316_vm7, %v4552_v6 }
0x1791   :  { %4316 = vmatmul.msk.f32.vlgmr.msrb.gmra.mxu2 %vm316_vm7, %v4552_v6 }
0x180c   :  { %v1406_v34 = vpop.f32.mrf.mxu2 }
0x1814   :  { %v1494_v57 = vpop.f32.mrf.mxu2 }
0x1815   :  { %v1497_v41 = vadd.f32 %v1494_v57, %v1476_v38  ;;  %v6977_v57 = vlaneseq }
0x1817   :  { %4553 = vtanh.f32 %v1497_v41  ;;  %v4317_v44 = vmul.f32 -1.442695, %v1497_v41  ;;  %v5578_v41 = vshrl.u32 %v6977_v57, 7 }
0x1819   :  { %4555 = vpow2.f32 %v4317_v44  ;;  %vm1409_vm12 = vcmp.eq.s32.totalorder %v4980_v10, %v5578_v41 }
0x181d   :  { %v4554_v42 = vpop.eup %4553 }
0x181e   :  { %1520 = vrot.lane.b32.xlu0 %v4554_v42, %s4850_s26  ;;  %v5581_v42 = vadd.s32 8, %v5578_v41 }
0x181f   :  { %v4556_v46 = vpop.eup %4555 }
0x1820   :  { %v1501_v50 = vadd.f32 1.0, %v4556_v46  ;;  %vm1410_vm11 = vcmp.eq.s32.totalorder %v4980_v10, %v5581_v42  ;;  %v5597_v46 = vld [vmem:[%s6963_s12] ss:$0 sm:$0xff] }
0x1822   :  { %4557 = vrcp.f32 %v1501_v50  ;;  %v1513_v22 = vand.u32 2147483648, %v1501_v50  ;;  %vm1507_vm8 = vweird.f32 %v1501_v50  ;;  %v1511_v24 = vand.u32 2147483647, %v1501_v50 }
0x1824   :  { %v1514_v43 = vor.u32 1.1754944e-38, %v1513_v22  ;;  %vm1512_vm10 = vcmp.eq.f32.partialorder %v1511_v24, 8.507059e+37 }
0x1828   :  { %v4558_v8 = vpop.eup %4557 }
0x1829   :  { %v1503_v17 = vmul.f32 %v4558_v8, %v1501_v50  ;;  %vm1508_vm6 = vweird.f32 %v4558_v8  ;;  %v1407_v50 = vadd.f32 %v5597_v46, %v1406_v34 }
0x182a   :  { %vm1509_vm9 = vmor %vm1507_vm8, %vm1508_vm6  ;;  %vm1865_vm6 = vcmp.eq.s32.totalorder %v4980_v10, 15 }
0x182b   :  { %v1504_v18 = vsub.f32 1.0, %v1503_v17 }
0x182d   :  { %v1505_v2 = vmul.f32 %v4558_v8, %v1504_v18 }
0x182f   :  { %v1506_v26 = vadd.f32 %v4558_v8, %v1505_v2 }
0x1831   :  { %v1510_v61 = vsel %vm1509_vm9, %v4558_v8, %v1506_v26 }
0x1832   :  { %v1515_v30 = vsel %vm1512_vm10, %v1514_v43, %v1510_v61 }
0x1833   :  { %v1518_v13 = vmul.f32 %v1515_v30, %v5278_v47  ;;  %v6968_v47 = vmov 1.0  }
0x1834   :  { %4326 = vmatpush.msk.msra.mxu3 %vm1410_vm11, %v6968_v47 }
0x1836   :  { %4327 = vmatpush.msk.msra.mxu3 %vm1409_vm12, %v6968_v47 }
0x1890   :  { %v1521_v28 = vpop.permute.xlu0 %1520 }
0x1891   :  { %v1523_v58 = vmul.f32 %v1521_v28, %v1515_v30 }
0x1893   :  { %1525 = vrot.lane.b32.xlu2 %v1523_v58, %s4851_s28 }
0x18ed   :  { %v1526_v48 = vpop.permute.xlu2 %1525 }
0x18ee   :  { %v5572_v6 = vadd.f32 %v1526_v48, %v1518_v13 }
0x18f0   :  { %4559 = vtanh.f32 %v5572_v6 }
0x18f6   :  { %v4560_v9 = vpop.eup %4559 }
0x18f7   :  { %1531 = vrot.lane.b32.xlu1 %v4560_v9, %s4850_s26 }
0x1969   :  { %v1532_v36 = vpop.permute.xlu1 %1531 }
0x196a   :  { %v1534_v38 = vmul.f32 %v1532_v36, %v1515_v30 }
0x196c   :  { %1536 = vrot.lane.b32.xlu0 %v1534_v38, %s4851_s28 }
0x19de   :  { %v5589_v44 = vpop.permute.xlu0 %1536 }
0x19df   :  { %4318 = vmatmul.msk.f32.vlgmr.msrb.gmra.mxu3 %vm316_vm7, %v5589_v44 }
0x19e0   :  { %2161 = vmatpush.msrb.mxu3 %v5448_v60 }
0x19e2   :  { %2162 = vmatpush.msrb.mxu3 %v5455_v0 }
0x19e4   :  { %2163 = vmatpush.msrb.mxu3 %v5460_v5 }
0x19e6   :  { %2164 = vmatpush.msrb.mxu3 %v5467_v37 }
0x19e7   :  { %4328 = vmatmul.msk.f32.vlgmr.msra.gmra.mxu3 %vm106_vm0, %v1407_v50 }
0x19e8   :  { %2299 = vmatpush.msra.mxu3 %v5217_v53 }
0x19ea   :  { %2300 = vmatpush.msra.mxu3 %v5224_v54 }
0x19ec   :  { %2301 = vmatpush.msra.mxu3 %v5234_v56 }
0x19ee   :  { %2302 = vmatpush.msra.mxu3 %v5258_v12 }
0x1a62   :  { %v5608_v60 = vpop.f32.mrf.mxu3 }
0x1a63   :  { %v1562_v0 = vmul.f32 %v5608_v60, %v5338_v16  ;;  %v1561_v5 = vmul.f32 %v5608_v60, %v5336_v14  ;;  %v1560_v37 = vmul.f32 %v5608_v60, %v5334_v11  ;;  %v1565_v56 = vmul.f32 %v5608_v60, %v5355_v21 }
0x1a64   :  { %v1564_v12 = vmul.f32 %v5608_v60, %v5353_v20  ;;  %v1563_v8 = vmul.f32 %v5608_v60, %v5351_v19  ;;  %v1567_v26 = vmul.f32 %v5608_v60, %v5368_v33  ;;  %v1566_v22 = vmul.f32 %v5608_v60, %v5366_v31 }
0x1a65   :  { %v1574_v34 = vsel %vm316_vm7, %v1562_v0, 0.0  ;;  %v1571_v53 = vsel %vm316_vm7, %v1561_v5, 0.0  ;;  %v1568_v54 = vsel %vm316_vm7, %v1560_v37, 0.0  ;;  %v1583_v17 = vsel %vm316_vm7, %v1565_v56, 0.0 }
0x1a66   :  { %1575 = vadd.xlane.f32.xlu0 %v1574_v34  ;;  %1572 = vadd.xlane.f32.xlu1 %v1571_v53  ;;  %v1580_v18 = vsel %vm316_vm7, %v1564_v12, 0.0  ;;  %v1577_v2 = vsel %vm316_vm7, %v1563_v8, 0.0  ;;  %v1589_v24 = vsel %vm316_vm7, %v1567_v26, 0.0  ;;  %v1586_v61 = vsel %vm316_vm7, %v1566_v22, 0.0 }
0x1a67   :  { %1569 = vadd.xlane.f32.xlu2 %v1568_v54 }
0x1a6e   :  { %1584 = vadd.xlane.f32.xlu0 %v1583_v17  ;;  %1581 = vadd.xlane.f32.xlu1 %v1580_v18 }
0x1a6f   :  { %1578 = vadd.xlane.f32.xlu2 %v1577_v2 }
0x1a76   :  { %1590 = vadd.xlane.f32.xlu1 %v1589_v24 }
0x1a77   :  { %1587 = vadd.xlane.f32.xlu2 %v1586_v61 }
0x1ad9   :  { %v1576_v43 = vpop.xlane.xlu0 %1575  ;;  %v1573_v28 = vpop.xlane.xlu1 %1572 }
0x1ada   :  { %v1570_v30 = vpop.xlane.xlu2 %1569  ;;  %v1593_v38 = vadd.f32 %v1573_v28, %v5394_v1  ;;  %v1594_v0 = vadd.f32 %v1576_v43, %v5401_v49 }
0x1adb   :  { %v1592_v57 = vadd.f32 %v1570_v30, %v5389_v59 }
0x1adc   :  { %v1602_v12 = vsel %vm1228_vm4, %v1594_v0, -inf }
0x1ae1   :  { %v1582_v58 = vpop.xlane.xlu1 %1581  ;;  %v1585_v13 = vpop.xlane.xlu0 %1584 }
0x1ae2   :  { %v1579_v48 = vpop.xlane.xlu2 %1578  ;;  %v1597_v9 = vadd.f32 %v1585_v13, %v5379_v45  ;;  %v1596_v36 = vadd.f32 %v1582_v58, %v5384_v40  ;;  %v1601_v45 = vsel %vm1228_vm4, %v1593_v38, -inf  ;;  %v1600_v40 = vsel %vm1228_vm4, %v1592_v57, -inf }
0x1ae3   :  { %v1595_v50 = vadd.f32 %v1579_v48, %v5406_v51 }
0x1ae4   :  { %v1606_v5 = vsel %vm1228_vm4, %v1597_v9, -inf  ;;  %v1604_v37 = vsel %vm1228_vm4, %v1596_v36, -inf }
0x1ae5   :  { %v1607_v56 = vmax.f32 %v1601_v45, %v1606_v5  ;;  %v1605_v59 = vmax.f32 %v1600_v40, %v1604_v37  ;;  %v1603_v51 = vsel %vm1228_vm4, %v1595_v50, -inf }
0x1ae9   :  { %v1591_v34 = vpop.xlane.xlu1 %1590 }
0x1aea   :  { %v1599_v53 = vadd.f32 %v1591_v34, %v5413_v62  ;;  %v1588_v54 = vpop.xlane.xlu2 %1587  ;;  %v1612_v62 = vmax.f32 %v1605_v59, %v1607_v56 }
0x1aeb   :  { %v1598_v1 = vadd.f32 %v1588_v54, %v5418_v63 }
0x1aec   :  { %v1610_v49 = vsel %vm1228_vm4, %v1599_v53, -inf }
0x1aed   :  { %v1611_v8 = vmax.f32 %v1603_v51, %v1610_v49  ;;  %v1608_v17 = vsel %vm1228_vm4, %v1598_v1, -inf }
0x1aee   :  { %v1609_v18 = vmax.f32 %v1602_v12, %v1608_v17 }
0x1af0   :  { %v1613_v2 = vmax.f32 %v1609_v18, %v1611_v8 }
0x1af2   :  { %v1614_v26 = vmax.f32 %v1612_v62, %v1613_v2 }
0x1af4   :  { %v1615_v22 = vsub.f32 %v1592_v57, %v1614_v26  ;;  %v1616_v24 = vsub.f32 %v1593_v38, %v1614_v26  ;;  %v1617_v61 = vsub.f32 %v1594_v0, %v1614_v26  ;;  %v1618_v43 = vsub.f32 %v1595_v50, %v1614_v26 }
0x1af5   :  { %v1619_v63 = vsub.f32 %v1596_v36, %v1614_v26  ;;  %v1620_v13 = vsub.f32 %v1597_v9, %v1614_v26  ;;  %v1621_v5 = vsub.f32 %v1598_v1, %v1614_v26  ;;  %v1622_v34 = vsub.f32 %v1599_v53, %v1614_v26 }
0x1af6   :  { %v1623_v28 = vmul.f32 1.442695, %v1615_v22  ;;  %v1625_v30 = vmul.f32 1.442695, %v1616_v24  ;;  %v1627_v58 = vmul.f32 1.442695, %v1617_v61 }
0x1af7   :  { %v1629_v48 = vmul.f32 1.442695, %v1618_v43  ;;  %v1631_v37 = vmul.f32 1.442695, %v1619_v63  ;;  %v1633_v54 = vmul.f32 1.442695, %v1620_v13 }
0x1af8   :  { %4561 = vpow2.f32 %v1623_v28  ;;  %v1635_v45 = vmul.f32 1.442695, %v1621_v5  ;;  %v1637_v50 = vmul.f32 1.442695, %v1622_v34 }
0x1af9   :  { %4563 = vpow2.f32 %v1625_v30 }
0x1afa   :  { %4565 = vpow2.f32 %v1627_v58 }
0x1afb   :  { %4567 = vpow2.f32 %v1629_v48 }
0x1afc   :  { %4569 = vpow2.f32 %v1631_v37  ;;  %v183_v37 = vld [vmem:[%s6956_s1 + $0x18] sm:$0xff] }
0x1afd   :  { %4571 = vpow2.f32 %v1633_v54 }
0x1afe   :  { %v4562_v57 = vpop.eup %4561  ;;  %4573 = vpow2.f32 %v1635_v45  ;;  %v186_v45 = vld [vmem:[%s6956_s1 + $0x30] sm:$0xff] }
0x1aff   :  { %v4564_v38 = vpop.eup %4563  ;;  %v1639_v36 = vsel %vm1228_vm4, %v4562_v57, 0.0  ;;  %4575 = vpow2.f32 %v1637_v50  ;;  %v187_v50 = vld [vmem:[%s6956_s1 + $0x38] sm:$0xff] }
0x1b00   :  { %v4566_v0 = vpop.eup %4565  ;;  %v1640_v9 = vsel %vm1228_vm4, %v4564_v38, 0.0 }
0x1b01   :  { %v4568_v40 = vpop.eup %4567  ;;  %v1641_v1 = vadd.f32 %v1640_v9, %v1639_v36  ;;  %v1642_v56 = vsel %vm1228_vm4, %v4566_v0, 0.0  ;;  %v185_v36 = vld [vmem:[%s6956_s1 + $0x28] sm:$0xff]  ;;  %v4330_v9 = vsel %vm1835_vm13, 1.0, %v6970_v7 }
0x1b02   :  { %v4570_v59 = vpop.eup %4569  ;;  %v1644_v51 = vsel %vm1228_vm4, %v4568_v40, 0.0 }
0x1b03   :  { %v1643_v53 = vadd.f32 %v1642_v56, %v1641_v1  ;;  %v4572_v49 = vpop.eup %4571  ;;  %v1646_v8 = vsel %vm1228_vm4, %v4570_v59, 0.0  ;;  %v4331_v1 = vsel %vm1840_vm15, 1.0, %v6970_v7 }
0x1b04   :  { %v4574_v17 = vpop.eup %4573  ;;  %v1648_v62 = vsel %vm1228_vm4, %v4572_v49, 0.0 }
0x1b05   :  { %v1645_v12 = vadd.f32 %v1644_v51, %v1643_v53  ;;  %v4576_v2 = vpop.eup %4575  ;;  %v1650_v22 = vsel %vm1228_vm4, %v4574_v17, 0.0 }
0x1b06   :  { %v1652_v61 = vsel %vm1228_vm4, %v4576_v2, 0.0 }
0x1b07   :  { %v1647_v18 = vadd.f32 %v1646_v8, %v1645_v12 }
0x1b09   :  { %v1649_v26 = vadd.f32 %v1648_v62, %v1647_v18 }
0x1b0b   :  { %v1651_v24 = vadd.f32 %v1650_v22, %v1649_v26  ;;  %v4333_v22 = vsel %vm1850_vm2, 1.0, %v6970_v7 }
0x1b0d   :  { %v1653_v43 = vadd.f32 %v1652_v61, %v1651_v24 }
0x1b0f   :  { %4577 = vrcp.f32 %v1653_v43 }
0x1b15   :  { %v4578_v63 = vpop.eup %4577 }
0x1b16   :  { %v1657_v28 = vmul.f32 %v4578_v63, %v4566_v0  ;;  %v1656_v30 = vmul.f32 %v4578_v63, %v4564_v38  ;;  %v1655_v58 = vmul.f32 %v4578_v63, %v4562_v57  ;;  %v1661_v13 = vmul.f32 %v4578_v63, %v4574_v17  ;;  %v184_v57 = vld [vmem:[%s6956_s1 + $0x20] sm:$0xff]  ;;  %v182_v38 = vld [vmem:[%s6956_s1 + $0x10] sm:$0xff] }
0x1b17   :  { %v1659_v48 = vmul.f32 %v4578_v63, %v4570_v59  ;;  %v1658_v5 = vmul.f32 %v4578_v63, %v4568_v40  ;;  %v1662_v34 = vmul.f32 %v4578_v63, %v4576_v2  ;;  %v1660_v54 = vmul.f32 %v4578_v63, %v4572_v49 }
0x1b18   :  { %1675 = vperm.xlu1 %4459, %v1657_v28   ;;  %1670 = vperm.xlu2 %4458, %v1656_v30   ;;  %v4329_v40 = vsel %vm1831_vm14, 1.0, %v6970_v7  ;;  %v4332_v2 = vsel %vm1845_vm1, 1.0, %v6970_v7 }
0x1b19   :  { %1665 = vperm.xlu0 %4457, %v1655_v58  }
0x1b20   :  { %1695 = vperm.xlu1 %4459, %v1661_v13   ;;  %1685 = vperm.xlu2 %4458, %v1659_v48  }
0x1b21   :  { %1680 = vperm.xlu0 %4457, %v1658_v5  }
0x1b28   :  { %198 = vperm.xlu1 %4459, %v183_v37   ;;  %1700 = vperm.xlu2 %4458, %v1662_v34   ;;  %v4334_v34 = vsel %vm1855_vm3, 1.0, %v6970_v7 }
0x1b29   :  { %1690 = vperm.xlu0 %4457, %v1660_v54   ;;  %v4335_v54 = vsel %vm1860_vm5, 1.0, %v6970_v7 }
0x1b30   :  { %207 = vperm.xlu1 %4459, %v186_v45   ;;  %201 = vperm.xlu2 %4458, %v184_v57  }
0x1b31   :  { %195 = vperm.xlu0 %4457, %v182_v38  }
0x1b38   :  { %210 = vperm.xlu2 %4458, %v187_v50  }
0x1b39   :  { %204 = vperm.xlu0 %4457, %v185_v36   ;;  %v4336_v36 = vsel %vm1865_vm6, 1.0, %v6970_v7  ;;  %vm1415_vm6 = vcmp.eq.s32.totalorder %v4980_v10, 0 }
0x1b41   :  { %1727 = vrot.lane.b32.xlu0 %v5608_v60, %s4852_s30 }
0x1b72   :  { %v1671_v0 = vpop.permute.xlu2 %1670 }
0x1b73   :  { %v1838_v53 = vmul.f32 %v4330_v9, %v1671_v0  ;;  %v1704_v60 = vmul.f32 %v1671_v0, %v5336_v14 }
0x1b75   :  { %v1712_v26 = vsel %vm316_vm7, %v1704_v60, 0.0 }
0x1b7a   :  { %v1686_v62 = vpop.permute.xlu2 %1685 }
0x1b7b   :  { %v1853_v63 = vmul.f32 %v4333_v22, %v1686_v62  ;;  %v1707_v48 = vmul.f32 %v1686_v62, %v5353_v20  ;;  %v5728_v62 = vld [vmem:[%s6960_s9 + $0x18] sm:$0xff]  ;;  %v5747_v22 = vld [vmem:[%s6960_s9] sm:$0xff] }
0x1b7d   :  { %v1718_v57 = vsel %vm316_vm7, %v1707_v48, 0.0 }
0x1b8a   :  { %v1676_v56 = vpop.permute.xlu1 %1675 }
0x1b8b   :  { %v1666_v59 = vpop.permute.xlu0 %1665  ;;  %v1843_v12 = vmul.f32 %v4331_v1, %v1676_v56 }
0x1b8c   :  { %v1703_v51 = vmul.f32 %v1666_v59, %v5334_v11  ;;  %v1834_v49 = vmul.f32 %v4329_v40, %v1666_v59  ;;  %v1705_v11 = vmul.f32 %v1676_v56, %v5338_v16 }
0x1b8e   :  { %v1839_v8 = vadd.f32 %v1838_v53, %v1834_v49  ;;  %v1711_v17 = vsel %vm316_vm7, %v1703_v51, 0.0  ;;  %v1714_v28 = vsel %vm316_vm7, %v1705_v11, 0.0 }
0x1b8f   :  { %v1713_v24 = vadd.f32 %v1712_v26, %v1711_v17  ;;  %v5734_v26 = vld [vmem:[%s6960_s9 + $0x10] sm:$0xff] }
0x1b90   :  { %v1844_v18 = vadd.f32 %v1843_v12, %v1839_v8 }
0x1b91   :  { %v1715_v13 = vadd.f32 %v1714_v28, %v1713_v24 }
0x1b92   :  { %v1696_v16 = vpop.permute.xlu1 %1695 }
0x1b93   :  { %v1681_v14 = vpop.permute.xlu0 %1680  ;;  %v1709_v38 = vmul.f32 %v1696_v16, %v5366_v31  ;;  %v1863_v40 = vmul.f32 %v4335_v54, %v1696_v16 }
0x1b94   :  { %v1706_v61 = vmul.f32 %v1681_v14, %v5351_v19  ;;  %v1848_v43 = vmul.f32 %v4332_v2, %v1681_v14  ;;  %v1701_v19 = vpop.permute.xlu2 %1700 }
0x1b95   :  { %v1710_v9 = vmul.f32 %v1701_v19, %v5368_v33  ;;  %v1868_v53 = vmul.f32 %v4336_v36, %v1701_v19  ;;  %v1722_v51 = vsel %vm316_vm7, %v1709_v38, 0.0  ;;  %v1777_v19 = vadd.s32 16, %v5578_v41  ;;  %v5788_v36 = vld [vmem:[%s6958_s7 + $0x18] sm:$0xff] }
0x1b96   :  { %v1716_v30 = vsel %vm316_vm7, %v1706_v61, 0.0  ;;  %v1849_v58 = vadd.f32 %v1848_v43, %v1844_v18 }
0x1b97   :  { %v1717_v37 = vadd.f32 %v1716_v30, %v1715_v13  ;;  %v1724_v31 = vsel %vm316_vm7, %v1710_v9, 0.0  ;;  %vm1779_vm15 = vcmp.eq.s32.totalorder %v4980_v10, %v1777_v19 }
0x1b98   :  { %v1854_v5 = vadd.f32 %v1853_v63, %v1849_v58 }
0x1b99   :  { %v1719_v0 = vadd.f32 %v1718_v57, %v1717_v37 }
0x1b9a   :  { %v199_v17 = vpop.permute.xlu1 %198 }
0x1b9b   :  { %v1691_v45 = vpop.permute.xlu0 %1690  ;;  %vm215_vm9 = vcmp.eq.s32.totalorder %v199_v17, %v4980_v10 }
0x1b9c   :  { %v1708_v50 = vmul.f32 %v1691_v45, %v5355_v21  ;;  %v1858_v20 = vmul.f32 %v4334_v34, %v1691_v45  ;;  %v4265_v18 = vsel %vm215_vm9, 1.0, %v6970_v7  ;;  %v202_v2 = vpop.permute.xlu2 %201  ;;  %v1778_v34 = vadd.s32 16, %v5581_v42 }
0x1b9d   :  { %vm216_vm10 = vcmp.eq.s32.totalorder %v202_v2, %v4980_v10  ;;  %vm1424_vm9 = vcmp.eq.s32.totalorder %v4980_v10, 2 }
0x1b9e   :  { %v1720_v1 = vsel %vm316_vm7, %v1708_v50, 0.0  ;;  %v1859_v56 = vadd.f32 %v1858_v20, %v1854_v5  ;;  %v4266_v11 = vsel %vm216_vm10, 1.0, %v6970_v7  ;;  %vm1780_vm14 = vcmp.eq.s32.totalorder %v4980_v10, %v1778_v34  ;;  %v5839_v34 = vld [vmem:[#allocation4] sm:$0xff] }
0x1b9f   :  { %v1721_v59 = vadd.f32 %v1720_v1, %v1719_v0  ;;  %4323 = vmatpush.msk.msra.mxu2 %vm1780_vm14, %v6968_v47  ;;  %v5794_v0 = vld [vmem:[%s6958_s7 + $0x10] sm:$0xff]  ;;  %vm1429_vm10 = vcmp.eq.s32.totalorder %v4980_v10, 3  ;;  %vm1434_vm14 = vcmp.eq.s32.totalorder %v4980_v10, 4 }
0x1ba0   :  { %v1864_v49 = vadd.f32 %v1863_v40, %v1859_v56  ;;  %v5806_v56 = vld [vmem:[%s6958_s7] sm:$0xff] }
0x1ba1   :  { %v1723_v60 = vadd.f32 %v1722_v51, %v1721_v59  ;;  %4324 = vmatpush.msk.msra.mxu2 %vm1779_vm15, %v6968_v47  ;;  %vm2239_vm15 = vcmp.eq.s32.totalorder %v4980_v10, 19 }
0x1ba2   :  { %v5710_v12 = vadd.f32 %v1868_v53, %v1864_v49  ;;  %v208_v61 = vpop.permute.xlu1 %207 }
0x1ba3   :  { %v196_v21 = vpop.permute.xlu0 %195  ;;  %v1725_v8 = vadd.f32 %v1724_v31, %v1723_v60  ;;  %vm218_vm12 = vcmp.eq.s32.totalorder %v208_v61, %v4980_v10  ;;  %1968 = vmatpush.msrb.mxu2 %v5728_v62 }
0x1ba4   :  { %vm214_vm8 = vcmp.eq.s32.totalorder %v196_v21, %v4980_v10  ;;  %v4268_v43 = vsel %vm218_vm12, 1.0, %v6970_v7  ;;  %v211_v63 = vpop.permute.xlu2 %210  ;;  %vm2225_vm12 = vcmp.eq.s32.totalorder %v4980_v10, 16 }
0x1ba5   :  { %v4264_v33 = vsel %vm214_vm8, 1.0, %v6970_v7  ;;  %4319 = vmatmul.msk.f32.vlgmr.msrb.gmra.mxu0 %vm316_vm7, %v1725_v8  ;;  %vm219_vm13 = vcmp.eq.s32.totalorder %v211_v63, %v4980_v10  ;;  %1969 = vmatpush.msrb.mxu2 %v5734_v26  ;;  %vm1419_vm8 = vcmp.eq.s32.totalorder %v4980_v10, 1 }
0x1ba6   :  { %4272 = vmatmul.msk.f32.gmra.mxu1 %vm106_vm0, %v4264_v33  ;;  %2185 = vmatpush.msrb.mxu0 %v5534_v52  ;;  %v4269_v28 = vsel %vm219_vm13, 1.0, %v6970_v7  ;;  %vm2234_vm13 = vcmp.eq.s32.totalorder %v4980_v10, 18 }
0x1ba8   :  { %2186 = vmatpush.msrb.mxu0 %v5539_v23 }
0x1baa   :  { %2187 = vmatpush.msrb.mxu0 %v5546_v27 }
0x1bab   :  { %v205_v24 = vpop.permute.xlu0 %204 }
0x1bac   :  { %2188 = vmatpush.msrb.mxu0 %v5553_v32  ;;  %vm217_vm11 = vcmp.eq.s32.totalorder %v205_v24, %v4980_v10 }
0x1bad   :  { %4337 = vmatmul.msk.f32.vlgmr.msra.gmra.mxu0 %vm316_vm7, %v5589_v44  ;;  %v5741_v44 = vld [vmem:[%s6960_s9 + $0x8] sm:$0xff]  ;;  %v4267_v14 = vsel %vm217_vm11, 1.0, %v6970_v7  ;;  %vm2229_vm11 = vcmp.eq.s32.totalorder %v4980_v10, 17 }
0x1bae   :  { %4273 = vmatmul.msk.f32.gmra.mxu1 %vm106_vm0, %v4265_v18  ;;  %2362 = vmatpush.msra.mxu0 %v5728_v62 }
0x1baf   :  { %1970 = vmatpush.msrb.mxu2 %v5741_v44 }
0x1bb0   :  { %2363 = vmatpush.msra.mxu0 %v5734_v26 }
0x1bb1   :  { %1971 = vmatpush.msrb.mxu2 %v5747_v22 }
0x1bb2   :  { %2364 = vmatpush.msra.mxu0 %v5741_v44 }
0x1bb3   :  { %v1728_v30 = vpop.permute.xlu0 %1727 }
0x1bb4   :  { %2365 = vmatpush.msra.mxu0 %v5747_v22 }
0x1bb6   :  { %4274 = vmatmul.msk.f32.gmra.mxu1 %vm106_vm0, %v4266_v11 }
0x1bbe   :  { %4275 = vmatmul.msk.f32.gmra.mxu1 %vm106_vm0, %v4267_v14 }
0x1bc6   :  { %4276 = vmatmul.msk.f32.gmra.mxu1 %vm106_vm0, %v4268_v43 }
0x1bce   :  { %4277 = vmatmul.msk.f32.gmra.mxu1 %vm106_vm0, %v4269_v28 }
0x1c22   :  { %v1750_v58 = vpop.f32.mrf.mxu0 }
0x1c23   :  { %v1751_v13 = vadd.f32 %v1750_v58, %v1728_v30  ;;  %v285_v5 = vpop.f32.mrf.mxu1 }
0x1c25   :  { %4579 = vtanh.f32 %v1751_v13 }
0x1c2a   :  { %v1889_v20 = vpop.f32.mrf.mxu0 }
0x1c2b   :  { %v4580_v48 = vpop.eup %4579  ;;  %v5763_v16 = vpop.f32.mrf.mxu1  ;;  %v1892_v9 = vadd.f32 %v1889_v20, %v285_v5 }
0x1c2c   :  { %4320 = vmatmul.msk.f32.vlgmr.msrb.gmra.mxu1 %vm316_vm7, %v4580_v48 }
0x1c33   :  { %v5765_v37 = vpop.f32.mrf.mxu1 }
0x1c34   :  { %4338 = vmatmul.msk.f32.vlgmr.msra.gmra.mxu1 %vm316_vm7, %v4580_v48  ;;  %6978 = vst [vmem:[#allocation5_spill] sm:$0xff] %v5765_v37 }
0x1c3b   :  { %v5771_v54 = vpop.f32.mrf.mxu1 }
0x1c3c   :  { %6979 = vst [vmem:[#allocation6_spill] sm:$0xff] %v5771_v54 }
0x1c43   :  { %v5779_v45 = vpop.f32.mrf.mxu1 }
0x1c44   :  { %6980 = vst [vmem:[#allocation7_spill] sm:$0xff] %v5779_v45 }
0x1c4b   :  { %v5781_v57 = vpop.f32.mrf.mxu1 }
0x1c4c   :  { %6981 = vst [vmem:[#allocation8_spill] sm:$0xff] %v5781_v57 }
0x1ca9   :  { %v1774_v38 = vpop.f32.mrf.mxu1 }
0x1caa   :  { %v1775_v50 = vadd.f32 %v5597_v46, %v1774_v38  ;;  %v5800_v46 = vld [vmem:[%s6958_s7 + $0x8] sm:$0xff] }
0x1cac   :  { %4325 = vmatmul.msk.f32.vlgmr.msra.gmra.mxu2 %vm106_vm0, %v1775_v50 }
0x1cad   :  { %2278 = vmatpush.msra.mxu2 %v5788_v36 }
0x1caf   :  { %2279 = vmatpush.msra.mxu2 %v5794_v0 }
0x1cb1   :  { %v1910_v40 = vpop.f32.mrf.mxu1  ;;  %2280 = vmatpush.msra.mxu2 %v5800_v46 }
0x1cb2   :  { %v1913_v1 = vadd.f32 %v1910_v40, %v1892_v9  ;;  %v5846_v9 = vld [vmem:[#allocation4 + $0x28] sm:$0xff] }
0x1cb3   :  { %2281 = vmatpush.msra.mxu2 %v5806_v56 }
0x1cb4   :  { %4581 = vtanh.f32 %v1913_v1  ;;  %v4339_v53 = vmul.f32 -1.442695, %v1913_v1  ;;  %v5850_v1 = vld [vmem:[#allocation4 + $0x20] sm:$0xff] }
0x1cb6   :  { %4583 = vpow2.f32 %v4339_v53  ;;  %v5854_v53 = vld [vmem:[#allocation4 + $0x18] sm:$0xff] }
0x1cba   :  { %v4582_v59 = vpop.eup %4581 }
0x1cbb   :  { %1936 = vrot.lane.b32.xlu1 %v4582_v59, %s4850_s26 }
0x1cbc   :  { %v4584_v51 = vpop.eup %4583 }
0x1cbd   :  { %v1917_v49 = vadd.f32 1.0, %v4584_v51 }
0x1cbf   :  { %4585 = vrcp.f32 %v1917_v49  ;;  %v1929_v17 = vand.u32 2147483648, %v1917_v49  ;;  %vm1923_vm2 = vweird.f32 %v1917_v49  ;;  %v1927_v18 = vand.u32 2147483647, %v1917_v49 }
0x1cc1   :  { %v1930_v11 = vor.u32 1.1754944e-38, %v1929_v17  ;;  %vm1928_vm5 = vcmp.eq.f32.partialorder %v1927_v18, 8.507059e+37 }
0x1cc5   :  { %v4586_v60 = vpop.eup %4585 }
0x1cc6   :  { %v1919_v31 = vmul.f32 %v4586_v60, %v1917_v49  ;;  %vm1924_vm1 = vweird.f32 %v4586_v60 }
0x1cc7   :  { %vm1925_vm3 = vmor %vm1923_vm2, %vm1924_vm1  ;;  %vm1439_vm1 = vcmp.eq.s32.totalorder %v4980_v10, 5  ;;  %vm1444_vm2 = vcmp.eq.s32.totalorder %v4980_v10, 6 }
0x1cc8   :  { %v1920_v21 = vsub.f32 1.0, %v1919_v31 }
0x1cca   :  { %v1921_v8 = vmul.f32 %v4586_v60, %v1920_v21  ;;  %v5861_v21 = vld [vmem:[#allocation4 + $0x38] sm:$0xff] }
0x1ccc   :  { %v1922_v33 = vadd.f32 %v4586_v60, %v1921_v8 }
0x1cce   :  { %v1926_v2 = vsel %vm1925_vm3, %v4586_v60, %v1922_v33  ;;  %v5865_v33 = vld [vmem:[#allocation4 + $0x30] sm:$0xff]  ;;  %vm2244_vm3 = vcmp.eq.s32.totalorder %v4980_v10, 20 }
0x1ccf   :  { %v1931_v14 = vsel %vm1928_vm5, %v1930_v11, %v1926_v2  ;;  %vm2249_vm5 = vcmp.eq.s32.totalorder %v4980_v10, 21 }
0x1cd0   :  { %v1934_v43 = vmul.f32 %v1931_v14, %v5572_v6 }
0x1d2d   :  { %v1937_v24 = vpop.permute.xlu1 %1936 }
0x1d2e   :  { %v1939_v61 = vmul.f32 %v1937_v24, %v1931_v14 }
0x1d2f   :  { %v5827_v6 = vpop.f32.mrf.mxu2 }
0x1d30   :  { %1941 = vrot.lane.b32.xlu2 %v1939_v61, %s4851_s28  ;;  %6982 = vst [vmem:[#allocation9_spill] sm:$0xff] %v5827_v6 }
0x1d8a   :  { %v1942_v63 = vpop.permute.xlu2 %1941 }
0x1d8b   :  { %v5812_v28 = vadd.f32 %v1942_v63, %v1934_v43 }
0x1d8d   :  { %4587 = vtanh.f32 %v5812_v28 }
0x1d93   :  { %v4588_v30 = vpop.eup %4587 }
0x1d94   :  { %1947 = vrot.lane.b32.xlu0 %v4588_v30, %s4850_s26  ;;  %v5874_v30 = vld [vmem:[%s6961_s3 + $0x28] sm:$0xff] }
0x1e06   :  { %v1948_v58 = vpop.permute.xlu0 %1947 }
0x1e07   :  { %v1950_v13 = vmul.f32 %v1948_v58, %v1931_v14 }
0x1e09   :  { %1952 = vrot.lane.b32.xlu1 %v1950_v13, %s4851_s28  ;;  %v5880_v13 = vld [vmem:[%s6961_s3 + $0x20] sm:$0xff] }
0x1e7b   :  { %v1953_v48 = vpop.permute.xlu1 %1952 }
0x1e7c   :  { %4340 = vmatmul.msk.f32.vlgmr.msrb.gmra.mxu2 %vm316_vm7, %v1953_v48 }
0x1e7d   :  { %2579 = vmatpush.msrb.mxu2 %v5534_v52  ;;  %v5831_v52 = vld [vmem:[#allocation4 + $0x10] sm:$0xff] }
0x1e7f   :  { %2580 = vmatpush.msrb.mxu2 %v5539_v23 }
0x1e81   :  { %2581 = vmatpush.msrb.mxu2 %v5546_v27  ;;  %v5835_v27 = vld [vmem:[#allocation4 + $0x8] sm:$0xff] }
0x1e83   :  { %2582 = vmatpush.msrb.mxu2 %v5553_v32 }
0x1e84   :  { %4356 = vmatmul.msk.f32.vlgmr.msra.gmra.mxu2 %vm316_vm7, %v1953_v48 }
0x1e85   :  { %2756 = vmatpush.msra.mxu2 %v5728_v62 }
0x1e87   :  { %2757 = vmatpush.msra.mxu2 %v5734_v26 }
0x1e89   :  { %2758 = vmatpush.msra.mxu2 %v5741_v44 }
0x1e8b   :  { %2759 = vmatpush.msra.mxu2 %v5747_v22 }
0x1eff   :  { %v5829_v5 = vpop.f32.mrf.mxu2 }
0x1f00   :  { %v1978_v23 = vmul.f32 %v5831_v52, %v5829_v5  ;;  %v1977_v32 = vmul.f32 %v5835_v27, %v5829_v5  ;;  %v1976_v19 = vmul.f32 %v5839_v34, %v5829_v5  ;;  %v1981_v40 = vmul.f32 %v5846_v9, %v5829_v5 }
0x1f01   :  { %v1980_v59 = vmul.f32 %v5850_v1, %v5829_v5  ;;  %v1979_v51 = vmul.f32 %v5854_v53, %v5829_v5  ;;  %v1983_v8 = vmul.f32 %v5861_v21, %v5829_v5  ;;  %v1982_v17 = vmul.f32 %v5865_v33, %v5829_v5 }
0x1f02   :  { %v1990_v38 = vsel %vm316_vm7, %v1978_v23, 0.0  ;;  %v1987_v50 = vsel %vm316_vm7, %v1977_v32, 0.0  ;;  %v1984_v20 = vsel %vm316_vm7, %v1976_v19, 0.0  ;;  %v1999_v49 = vsel %vm316_vm7, %v1981_v40, 0.0  ;;  %v5886_v23 = vld [vmem:[%s6961_s3 + $0x8] sm:$0xff]  ;;  %v5892_v19 = vld [vmem:[%s6961_s3] sm:$0xff] }
0x1f03   :  { %1991 = vadd.xlane.f32.xlu1 %v1990_v38  ;;  %1988 = vadd.xlane.f32.xlu0 %v1987_v50  ;;  %v1996_v60 = vsel %vm316_vm7, %v1980_v59, 0.0  ;;  %v1993_v31 = vsel %vm316_vm7, %v1979_v51, 0.0  ;;  %v2005_v18 = vsel %vm316_vm7, %v1983_v8, 0.0  ;;  %v2002_v2 = vsel %vm316_vm7, %v1982_v17, 0.0  ;;  %6983 = vst [vmem:[#allocation10_spill] sm:$0xff] %v5892_v19  ;;  %v5898_v50 = vld [vmem:[%s6961_s3 + $0x18] sm:$0xff] }
0x1f04   :  { %1985 = vadd.xlane.f32.xlu2 %v1984_v20  ;;  %6984 = vst [vmem:[#allocation11_spill] sm:$0xff] %v5898_v50  ;;  %v5904_v40 = vld [vmem:[%s6961_s3 + $0x10] sm:$0xff] }
0x1f05   :  { %6985 = vst [vmem:[#allocation12_spill] sm:$0xff] %v5904_v40 }
0x1f0b   :  { %2000 = vadd.xlane.f32.xlu1 %v1999_v49  ;;  %1997 = vadd.xlane.f32.xlu0 %v1996_v60 }
0x1f0c   :  { %1994 = vadd.xlane.f32.xlu2 %v1993_v31  ;;  %v5912_v31 = vld [vmem:[%s6961_s3 + $0x38] sm:$0xff] }
0x1f0d   :  { %6986 = vst [vmem:[#allocation13_spill] sm:$0xff] %v5912_v31 }
0x1f13   :  { %2006 = vadd.xlane.f32.xlu0 %v2005_v18 }
0x1f14   :  { %2003 = vadd.xlane.f32.xlu2 %v2002_v2 }
0x1f76   :  { %v1992_v11 = vpop.xlane.xlu1 %1991  ;;  %v1989_v24 = vpop.xlane.xlu0 %1988 }
0x1f77   :  { %v1986_v14 = vpop.xlane.xlu2 %1985  ;;  %v2009_v32 = vadd.f32 %v5886_v23, %v1989_v24  ;;  %v2010_v59 = vadd.f32 %v5904_v40, %v1992_v11  ;;  %v5920_v11 = vld [vmem:[%s6961_s3 + $0x30] sm:$0xff] }
0x1f78   :  { %v2008_v38 = vadd.f32 %v5892_v19, %v1986_v14  ;;  %6987 = vst [vmem:[#allocation14_spill] sm:$0xff] %v5920_v11 }
0x1f79   :  { %v2017_v18 = vsel %vm1228_vm4, %v2009_v32, -inf }
0x1f7a   :  { %v2016_v2 = vsel %vm1228_vm4, %v2008_v38, -inf }
0x1f7e   :  { %v1998_v61 = vpop.xlane.xlu0 %1997  ;;  %v2001_v43 = vpop.xlane.xlu1 %2000 }
0x1f7f   :  { %v1995_v63 = vpop.xlane.xlu2 %1994  ;;  %v2013_v58 = vadd.f32 %v5874_v30, %v2001_v43  ;;  %v2012_v48 = vadd.f32 %v5880_v13, %v1998_v61 }
0x1f80   :  { %v2011_v20 = vadd.f32 %v5898_v50, %v1995_v63 }
0x1f81   :  { %v2022_v51 = vsel %vm1228_vm4, %v2013_v58, -inf  ;;  %v2020_v49 = vsel %vm1228_vm4, %v2012_v48, -inf }
0x1f82   :  { %v2023_v14 = vmax.f32 %v2017_v18, %v2022_v51  ;;  %v2021_v61 = vmax.f32 %v2016_v2, %v2020_v49  ;;  %v2019_v43 = vsel %vm1228_vm4, %v2011_v20, -inf }
0x1f84   :  { %v2028_v57 = vmax.f32 %v2021_v61, %v2023_v14 }
0x1f86   :  { %v2007_v60 = vpop.xlane.xlu0 %2006 }
0x1f87   :  { %v2015_v8 = vadd.f32 %v5912_v31, %v2007_v60  ;;  %v2004_v17 = vpop.xlane.xlu2 %2003  ;;  %v2018_v60 = vsel %vm1228_vm4, %v2010_v59, -inf }
0x1f88   :  { %v2014_v24 = vadd.f32 %v5920_v11, %v2004_v17 }
0x1f89   :  { %v2026_v63 = vsel %vm1228_vm4, %v2015_v8, -inf }
0x1f8a   :  { %v2027_v47 = vmax.f32 %v2019_v43, %v2026_v63  ;;  %v2024_v7 = vsel %vm1228_vm4, %v2014_v24, -inf }
0x1f8b   :  { %v2025_v6 = vmax.f32 %v2018_v60, %v2024_v7 }
0x1f8d   :  { %v2029_v45 = vmax.f32 %v2025_v6, %v2027_v47 }
0x1f8f   :  { %v2030_v54 = vmax.f32 %v2028_v57, %v2029_v45 }
0x1f91   :  { %v2031_v37 = vsub.f32 %v2008_v38, %v2030_v54  ;;  %v2032_v31 = vsub.f32 %v2009_v32, %v2030_v54  ;;  %v2033_v40 = vsub.f32 %v2010_v59, %v2030_v54  ;;  %v2034_v50 = vsub.f32 %v2011_v20, %v2030_v54 }
0x1f92   :  { %v2035_v17 = vsub.f32 %v2012_v48, %v2030_v54  ;;  %v2036_v2 = vsub.f32 %v2013_v58, %v2030_v54  ;;  %v2037_v19 = vsub.f32 %v2014_v24, %v2030_v54  ;;  %v2038_v63 = vsub.f32 %v2015_v8, %v2030_v54 }
0x1f93   :  { %v2039_v51 = vmul.f32 1.442695, %v2031_v37  ;;  %v2041_v49 = vmul.f32 1.442695, %v2032_v31  ;;  %v2043_v18 = vmul.f32 1.442695, %v2033_v40 }
0x1f94   :  { %v2045_v11 = vmul.f32 1.442695, %v2034_v50  ;;  %v2047_v43 = vmul.f32 1.442695, %v2035_v17  ;;  %v2049_v7 = vmul.f32 1.442695, %v2036_v2 }
0x1f95   :  { %4589 = vpow2.f32 %v2039_v51  ;;  %v2051_v47 = vmul.f32 1.442695, %v2037_v19  ;;  %v2053_v6 = vmul.f32 1.442695, %v2038_v63 }
0x1f96   :  { %4591 = vpow2.f32 %v2041_v49 }
0x1f97   :  { %4593 = vpow2.f32 %v2043_v18 }
0x1f98   :  { %4595 = vpow2.f32 %v2045_v11 }
0x1f99   :  { %4597 = vpow2.f32 %v2047_v43 }
0x1f9a   :  { %4599 = vpow2.f32 %v2049_v7 }
0x1f9b   :  { %v4590_v45 = vpop.eup %4589  ;;  %4601 = vpow2.f32 %v2051_v47 }
0x1f9c   :  { %v4592_v57 = vpop.eup %4591  ;;  %v2055_v37 = vsel %vm1228_vm4, %v4590_v45, 0.0  ;;  %4603 = vpow2.f32 %v2053_v6 }
0x1f9d   :  { %v4594_v48 = vpop.eup %4593  ;;  %v2056_v58 = vsel %vm1228_vm4, %v4592_v57, 0.0 }
0x1f9e   :  { %v4596_v32 = vpop.eup %4595  ;;  %v2057_v38 = vadd.f32 %v2056_v58, %v2055_v37  ;;  %v2058_v50 = vsel %vm1228_vm4, %v4594_v48, 0.0 }
0x1f9f   :  { %v4598_v20 = vpop.eup %4597  ;;  %v2060_v19 = vsel %vm1228_vm4, %v4596_v32, 0.0 }
0x1fa0   :  { %v2059_v54 = vadd.f32 %v2058_v50, %v2057_v38  ;;  %v4600_v40 = vpop.eup %4599  ;;  %v2062_v31 = vsel %vm1228_vm4, %v4598_v20, 0.0 }
0x1fa1   :  { %v4602_v8 = vpop.eup %4601  ;;  %v2064_v24 = vsel %vm1228_vm4, %v4600_v40, 0.0 }
0x1fa2   :  { %v2061_v59 = vadd.f32 %v2060_v19, %v2059_v54  ;;  %v4604_v14 = vpop.eup %4603  ;;  %v2066_v60 = vsel %vm1228_vm4, %v4602_v8, 0.0 }
0x1fa3   :  { %v2068_v51 = vsel %vm1228_vm4, %v4604_v14, 0.0 }
0x1fa4   :  { %v2063_v11 = vadd.f32 %v2062_v31, %v2061_v59 }
0x1fa6   :  { %v2065_v61 = vadd.f32 %v2064_v24, %v2063_v11 }
0x1fa8   :  { %v2067_v17 = vadd.f32 %v2066_v60, %v2065_v61 }
0x1faa   :  { %v2069_v49 = vadd.f32 %v2068_v51, %v2067_v17 }
0x1fac   :  { %4605 = vrcp.f32 %v2069_v49 }
0x1fb2   :  { %v4606_v18 = vpop.eup %4605 }
0x1fb3   :  { %v2073_v2 = vmul.f32 %v4606_v18, %v4594_v48  ;;  %v2072_v43 = vmul.f32 %v4606_v18, %v4592_v57  ;;  %v2071_v63 = vmul.f32 %v4606_v18, %v4590_v45  ;;  %v2075_v7 = vmul.f32 %v4606_v18, %v4598_v20 }
0x1fb4   :  { %v2076_v47 = vmul.f32 %v4606_v18, %v4600_v40  ;;  %v2074_v6 = vmul.f32 %v4606_v18, %v4596_v32  ;;  %v2078_v37 = vmul.f32 %v4606_v18, %v4604_v14  ;;  %v2077_v58 = vmul.f32 %v4606_v18, %v4602_v8 }
0x1fb5   :  { %2091 = vperm.xlu0 %4457, %v2073_v2   ;;  %2086 = vperm.xlu2 %4458, %v2072_v43   ;;  %v6988_v45 = vmov 0.0  }
0x1fb6   :  { %2081 = vperm.xlu1 %4459, %v2071_v63   ;;  %v4307_v57 = vsel %vm1415_vm6, 1.0, %v6988_v45  ;;  %v4308_v48 = vsel %vm1419_vm8, 1.0, %v6988_v45  ;;  %v4309_v38 = vsel %vm1424_vm9, 1.0, %v6988_v45  ;;  %v4310_v50 = vsel %vm1429_vm10, 1.0, %v6988_v45 }
0x1fb7   :  { %v1418_v32 = vmul.f32 %v4307_v57, %v5481_v29  ;;  %v4349_v54 = vsel %vm2229_vm11, 1.0, %v6988_v45  ;;  %v4348_v29 = vsel %vm2225_vm12, 1.0, %v6988_v45  ;;  %v1427_v59 = vmul.f32 %v4309_v38, %v5479_v3 }
0x1fb8   :  { %v1432_v31 = vmul.f32 %v4310_v50, %v5497_v55  ;;  %v4311_v60 = vsel %vm1434_vm14, 1.0, %v6988_v45  ;;  %vm1449_vm6 = vcmp.eq.s32.totalorder %v4980_v10, 7  ;;  %vm2254_vm8 = vcmp.eq.s32.totalorder %v4980_v10, 22 }
0x1fb9   :  { %v1437_v63 = vmul.f32 %v4311_v60, %v5495_v35  ;;  %vm2259_vm9 = vcmp.eq.s32.totalorder %v4980_v10, 23 }
0x1fbd   :  { %2101 = vperm.xlu0 %4457, %v2075_v7   ;;  %2106 = vperm.xlu2 %4458, %v2076_v47   ;;  %v4351_v47 = vsel %vm2239_vm15, 1.0, %v6988_v45 }
0x1fbe   :  { %2096 = vperm.xlu1 %4459, %v2074_v6   ;;  %v4312_v6 = vsel %vm1439_vm1, 1.0, %v6988_v45  ;;  %vm2623_vm1 = vcmp.eq.s32.totalorder %v4980_v10, 25 }
0x1fc5   :  { %2116 = vperm.xlu0 %4457, %v2078_v37   ;;  %2143 = vrot.lane.b32.xlu2 %v5829_v5, %s4852_s30  ;;  %v1422_v5 = vmul.f32 %v4308_v48, %v5475_v25  ;;  %v4350_v25 = vsel %vm2234_vm13, 1.0, %v6988_v45  ;;  %v4313_v37 = vsel %vm1444_vm2, 1.0, %v6988_v45  ;;  %v4352_v48 = vsel %vm2244_vm3, 1.0, %v6988_v45 }
0x1fc6   :  { %2111 = vperm.xlu1 %4459, %v2077_v58   ;;  %vm2619_vm2 = vcmp.eq.s32.totalorder %v4980_v10, 24  ;;  %vm2628_vm3 = vcmp.eq.s32.totalorder %v4980_v10, 26 }
0x1fc7   :  { %v1423_v20 = vadd.f32 %v1422_v5, %v1418_v32 }
0x1fc9   :  { %v1428_v17 = vadd.f32 %v1427_v59, %v1423_v20  ;;  %v1442_v20 = vmul.f32 %v4312_v6, %v5504_v39 }
0x1fcb   :  { %v1433_v3 = vadd.f32 %v1432_v31, %v1428_v17  ;;  %v4354_v17 = vsel %vm2254_vm8, 1.0, %v6988_v45  ;;  %vm2643_vm8 = vcmp.eq.s32.totalorder %v4980_v10, 29 }
0x1fcd   :  { %v1438_v57 = vadd.f32 %v1437_v63, %v1433_v3 }
0x200f   :  { %v2087_v19 = vpop.permute.xlu2 %2086 }
0x2010   :  { %v2120_v11 = vmul.f32 %v5835_v27, %v2087_v19  ;;  %v2232_v24 = vmul.f32 %v4349_v54, %v2087_v19  ;;  %v1447_v54 = vmul.f32 %v4313_v37, %v5512_v15  ;;  %v4353_v19 = vsel %vm2249_vm5, 1.0, %v6988_v45 }
0x2011   :  { %vm2633_vm5 = vcmp.eq.s32.totalorder %v4980_v10, 27 }
0x2012   :  { %v2128_v55 = vsel %vm316_vm7, %v2120_v11, 0.0  ;;  %v1443_v11 = vadd.f32 %v1442_v20, %v1438_v57  ;;  %v5999_v20 = vpop.f32.mrf.mxu3 }
0x2027   :  { %v2092_v40 = vpop.permute.xlu0 %2091 }
0x2028   :  { %v2082_v8 = vpop.permute.xlu1 %2081  ;;  %v2237_v51 = vmul.f32 %v4350_v25, %v2092_v40  ;;  %v2121_v2 = vmul.f32 %v5831_v52, %v2092_v40 }
0x2029   :  { %v2119_v14 = vmul.f32 %v5839_v34, %v2082_v8  ;;  %v2228_v61 = vmul.f32 %v4348_v29, %v2082_v8  ;;  %v2107_v29 = vpop.permute.xlu2 %2106  ;;  %v4314_v8 = vsel %vm1449_vm6, 1.0, %v6988_v45  ;;  %vm2638_vm6 = vcmp.eq.s32.totalorder %v4980_v10, 28 }
0x202a   :  { %v2130_v5 = vsel %vm316_vm7, %v2121_v2, 0.0  ;;  %v2124_v39 = vmul.f32 %v5846_v9, %v2107_v29  ;;  %v2252_v15 = vmul.f32 %v4353_v19, %v2107_v29  ;;  %v1452_v3 = vmul.f32 %v4314_v8, %v5510_v4  ;;  %v6040_v8 = vld [vmem:[%s6963_s12] ss:$0 sm:$0xff] }
0x202b   :  { %v2127_v49 = vsel %vm316_vm7, %v2119_v14, 0.0  ;;  %v2233_v18 = vadd.f32 %v2232_v24, %v2228_v61 }
0x202c   :  { %v2129_v7 = vadd.f32 %v2128_v55, %v2127_v49  ;;  %v4355_v55 = vsel %vm2259_vm9, 1.0, %v6988_v45  ;;  %vm2648_vm9 = vcmp.eq.s32.totalorder %v4980_v10, 30 }
0x202d   :  { %v2238_v43 = vadd.f32 %v2237_v51, %v2233_v18  ;;  %v1448_v51 = vadd.f32 %v1447_v54, %v1443_v11 }
0x202e   :  { %v2131_v40 = vadd.f32 %v2130_v5, %v2129_v7 }
0x202f   :  { %v2102_v58 = vpop.permute.xlu0 %2101  ;;  %v1453_v37 = vadd.f32 %v1452_v3, %v1448_v51 }
0x2030   :  { %v2097_v32 = vpop.permute.xlu1 %2096  ;;  %v2123_v35 = vmul.f32 %v5850_v1, %v2102_v58  ;;  %v2247_v59 = vmul.f32 %v4352_v48, %v2102_v58 }
0x2031   :  { %v2122_v38 = vmul.f32 %v5854_v53, %v2097_v32  ;;  %v2242_v50 = vmul.f32 %v4351_v47, %v2097_v32  ;;  %v2144_v54 = vpop.permute.xlu2 %2143 }
0x2032   :  { %v2134_v14 = vsel %vm316_vm7, %v2123_v35, 0.0  ;;  %v1870_v35 = vadd.f32 %v5710_v12, %v1453_v37  ;;  %v2194_v12 = vadd.s32 32, %v5581_v42 }
0x2033   :  { %v2132_v31 = vsel %vm316_vm7, %v2122_v38, 0.0  ;;  %v2243_v25 = vadd.f32 %v2242_v50, %v2238_v43  ;;  %v2136_v43 = vsel %vm316_vm7, %v2124_v39, 0.0  ;;  %v6047_v39 = vld [vmem:[%s6959_s8 + $0x18] sm:$0xff] }
0x2034   :  { %v2133_v24 = vadd.f32 %v2132_v31, %v2131_v40  ;;  %vm2196_vm10 = vcmp.eq.s32.totalorder %v4980_v10, %v2194_v12  ;;  %v6989_v31 = vmov 1.0   ;;  %v6093_v12 = vld [vmem:[%s6964_s11 + $0x8] sm:$0xff] }
0x2035   :  { %v2248_v61 = vadd.f32 %v2247_v59, %v2243_v25  ;;  %v2193_v59 = vadd.s32 32, %v5578_v41  ;;  %4345 = vmatpush.msk.msrb.mxu1 %vm2196_vm10, %v6989_v31  ;;  %vm2653_vm10 = vcmp.eq.s32.totalorder %v4980_v10, 31 }
0x2036   :  { %v2135_v60 = vadd.f32 %v2134_v14, %v2133_v24  ;;  %v2283_v24 = vpop.f32.mrf.mxu2 }
0x2037   :  { %v2117_v49 = vpop.permute.xlu0 %2116  ;;  %v2253_v18 = vadd.f32 %v2252_v15, %v2248_v61  ;;  %vm2195_vm11 = vcmp.eq.s32.totalorder %v4980_v10, %v2193_v59  ;;  %v2286_v15 = vadd.f32 %v2283_v24, %v5763_v16  ;;  %v6054_v61 = vld [vmem:[%s6959_s8 + $0x10] sm:$0xff]  ;;  %v6066_v16 = vld [vmem:[%s6959_s8] sm:$0xff] }
0x2038   :  { %v2112_v2 = vpop.permute.xlu1 %2111  ;;  %v2126_v63 = vmul.f32 %v5861_v21, %v2117_v49  ;;  %v2137_v6 = vadd.f32 %v2136_v43, %v2135_v60  ;;  %v2262_v58 = vmul.f32 %v4355_v55, %v2117_v49  ;;  %4346 = vmatpush.msk.msrb.mxu1 %vm2195_vm11, %v6989_v31  ;;  %v6099_v59 = vld [vmem:[%s6964_s11] sm:$0xff] }
0x2039   :  { %v2125_v7 = vmul.f32 %v5865_v33, %v2112_v2  ;;  %v2257_v47 = vmul.f32 %v4354_v17, %v2112_v2  ;;  %v6060_v17 = vld [vmem:[%s6959_s8 + $0x8] sm:$0xff] }
0x203a   :  { %v2140_v5 = vsel %vm316_vm7, %v2126_v63, 0.0 }
0x203b   :  { %v2138_v57 = vsel %vm316_vm7, %v2125_v7, 0.0  ;;  %v2258_v48 = vadd.f32 %v2257_v47, %v2253_v18 }
0x203c   :  { %v2139_v32 = vadd.f32 %v2138_v57, %v2137_v6 }
0x203d   :  { %v2263_v4 = vadd.f32 %v2262_v58, %v2258_v48 }
0x203e   :  { %v2141_v38 = vadd.f32 %v2140_v5, %v2139_v32 }
0x203f   :  { %v5996_v50 = vadd.f32 %v2263_v4, %v1870_v35 }
0x2040   :  { %4341 = vmatmul.msk.f32.vlgmr.msrb.gmra.mxu3 %vm316_vm7, %v2141_v38 }
0x20c3   :  { %v2166_v19 = vpop.f32.mrf.mxu3 }
0x20c4   :  { %v2167_v29 = vadd.f32 %v2166_v19, %v2144_v54 }
0x20c6   :  { %4607 = vtanh.f32 %v2167_v29 }
0x20cc   :  { %v4608_v40 = vpop.eup %4607 }
0x20cd   :  { %4342 = vmatmul.msk.f32.vlgmr.msrb.gmra.mxu0 %vm316_vm7, %v4608_v40  ;;  %4357 = vmatmul.msk.f32.vlgmr.msra.gmra.mxu3 %vm316_vm7, %v4608_v40  ;;  %v6081_v40 = vld [vmem:[%s6964_s11 + $0x18] sm:$0xff] }
0x20ce   :  { %2672 = vmatpush.msrb.mxu0 %v5788_v36  ;;  %v6016_v36 = vld [vmem:[%s6962_s10 + $0x18] sm:$0xff] }
0x20cf   :  { %2555 = vmatpush.msra.mxu1 %v6016_v36 }
0x20d0   :  { %2673 = vmatpush.msrb.mxu0 %v5794_v0  ;;  %v6022_v0 = vld [vmem:[%s6962_s10 + $0x10] sm:$0xff] }
0x20d1   :  { %2556 = vmatpush.msra.mxu1 %v6022_v0 }
0x20d2   :  { %2674 = vmatpush.msrb.mxu0 %v5800_v46  ;;  %v6028_v46 = vld [vmem:[%s6962_s10 + $0x8] sm:$0xff] }
0x20d3   :  { %2557 = vmatpush.msra.mxu1 %v6028_v46 }
0x20d4   :  { %2675 = vmatpush.msrb.mxu0 %v5806_v56  ;;  %v6034_v56 = vld [vmem:[%s6962_s10] sm:$0xff] }
0x20d5   :  { %2558 = vmatpush.msra.mxu1 %v6034_v56 }
0x214a   :  { %v2190_v25 = vpop.f32.mrf.mxu0 }
0x214b   :  { %v2191_v11 = vadd.f32 %v6040_v8, %v2190_v25 }
0x214d   :  { %4347 = vmatmul.msk.f32.vlgmr.msrb.gmra.mxu1 %vm106_vm0, %v2191_v11 }
0x214e   :  { %2693 = vmatpush.msrb.mxu1 %v6047_v39 }
0x2150   :  { %v2304_v14 = vpop.f32.mrf.mxu3  ;;  %2694 = vmatpush.msrb.mxu1 %v6054_v61 }
0x2151   :  { %v2307_v60 = vadd.f32 %v2304_v14, %v2286_v15 }
0x2152   :  { %2695 = vmatpush.msrb.mxu1 %v6060_v17 }
0x2153   :  { %4609 = vtanh.f32 %v2307_v60  ;;  %v4358_v49 = vmul.f32 -1.442695, %v2307_v60 }
0x2154   :  { %2696 = vmatpush.msrb.mxu1 %v6066_v16 }
0x2155   :  { %4611 = vpow2.f32 %v4358_v49 }
0x2159   :  { %v4610_v51 = vpop.eup %4609 }
0x215a   :  { %2330 = vrot.lane.b32.xlu1 %v4610_v51, %s4850_s26 }
0x215b   :  { %v4612_v18 = vpop.eup %4611 }
0x215c   :  { %v2311_v3 = vadd.f32 1.0, %v4612_v18 }
0x215e   :  { %4613 = vrcp.f32 %v2311_v3  ;;  %v2323_v47 = vand.u32 2147483648, %v2311_v3  ;;  %vm2317_vm13 = vweird.f32 %v2311_v3  ;;  %v2321_v6 = vand.u32 2147483647, %v2311_v3 }
0x2160   :  { %v2324_v58 = vor.u32 1.1754944e-38, %v2323_v47  ;;  %vm2322_vm15 = vcmp.eq.f32.partialorder %v2321_v6, 8.507059e+37 }
0x2164   :  { %v4614_v55 = vpop.eup %4613 }
0x2165   :  { %v2313_v2 = vmul.f32 %v4614_v55, %v2311_v3  ;;  %vm2318_vm12 = vweird.f32 %v4614_v55 }
0x2166   :  { %vm2319_vm14 = vmor %vm2317_vm13, %vm2318_vm12 }
0x2167   :  { %v2314_v43 = vsub.f32 1.0, %v2313_v2 }
0x2169   :  { %v2315_v63 = vmul.f32 %v4614_v55, %v2314_v43 }
0x216b   :  { %v2316_v7 = vadd.f32 %v4614_v55, %v2315_v63 }
0x216d   :  { %v2320_v37 = vsel %vm2319_vm14, %v4614_v55, %v2316_v7 }
0x216e   :  { %v2325_v48 = vsel %vm2322_vm15, %v2324_v58, %v2320_v37 }
0x216f   :  { %v2328_v5 = vmul.f32 %v2325_v48, %v5812_v28  ;;  %v6087_v28 = vld [vmem:[%s6964_s11 + $0x10] sm:$0xff] }
0x21cc   :  { %v2331_v57 = vpop.permute.xlu1 %2330 }
0x21cd   :  { %v2333_v32 = vmul.f32 %v2331_v57, %v2325_v48 }
0x21cf   :  { %2335 = vrot.lane.b32.xlu0 %v2333_v32, %s4851_s28 }
0x2241   :  { %v2336_v4 = vpop.permute.xlu0 %2335 }
0x2242   :  { %v6072_v35 = vadd.f32 %v2336_v4, %v2328_v5  ;;  %v6990_v5 = vld [vmem:[#allocation10_spill] sm:$0xff] }
0x2244   :  { %4615 = vtanh.f32 %v6072_v35 }
0x224a   :  { %v4616_v38 = vpop.eup %4615 }
0x224b   :  { %2341 = vrot.lane.b32.xlu2 %v4616_v38, %s4850_s26  ;;  %v6991_v38 = vld [vmem:[#allocation11_spill] sm:$0xff] }
0x22a5   :  { %v2342_v54 = vpop.permute.xlu2 %2341 }
0x22a6   :  { %v2344_v19 = vmul.f32 %v2342_v54, %v2325_v48 }
0x22a8   :  { %2346 = vrot.lane.b32.xlu1 %v2344_v19, %s4851_s28  ;;  %v6992_v19 = vld [vmem:[#allocation12_spill] sm:$0xff] }
0x231a   :  { %v2347_v29 = vpop.permute.xlu1 %2346 }
0x231b   :  { %4359 = vmatmul.msk.f32.vlgmr.msra.gmra.mxu0 %vm316_vm7, %v2347_v29 }
0x231c   :  { %2973 = vmatpush.msra.mxu0 %v6081_v40 }
0x231e   :  { %2974 = vmatpush.msra.mxu0 %v6087_v28 }
0x2320   :  { %2975 = vmatpush.msra.mxu0 %v6093_v12 }
0x2322   :  { %2976 = vmatpush.msra.mxu0 %v6099_v59 }
0x2323   :  { %4375 = vmatmul.msk.f32.vlgmr.msrb.gmra.mxu0 %vm316_vm7, %v2347_v29 }
0x2324   :  { %3150 = vmatpush.msrb.mxu0 %v5728_v62 }
0x2326   :  { %3151 = vmatpush.msrb.mxu0 %v5734_v26 }
0x2328   :  { %3152 = vmatpush.msrb.mxu0 %v5741_v44 }
0x232a   :  { %3153 = vmatpush.msrb.mxu0 %v5747_v22 }
0x2398   :  { %v6107_v25 = vpop.f32.mrf.mxu0 }
0x2399   :  { %v2372_v11 = vmul.f32 %v5831_v52, %v6107_v25  ;;  %v2371_v24 = vmul.f32 %v5835_v27, %v6107_v25  ;;  %v2370_v15 = vmul.f32 %v5839_v34, %v6107_v25  ;;  %v2375_v44 = vmul.f32 %v5846_v9, %v6107_v25 }
0x239a   :  { %v2374_v22 = vmul.f32 %v5850_v1, %v6107_v25  ;;  %v2373_v60 = vmul.f32 %v5854_v53, %v6107_v25  ;;  %v2377_v3 = vmul.f32 %v5861_v21, %v6107_v25  ;;  %v2376_v55 = vmul.f32 %v5865_v33, %v6107_v25 }
0x239b   :  { %v2384_v14 = vsel %vm316_vm7, %v2372_v11, 0.0  ;;  %v2381_v62 = vsel %vm316_vm7, %v2371_v24, 0.0  ;;  %v2378_v26 = vsel %vm316_vm7, %v2370_v15, 0.0  ;;  %v2393_v51 = vsel %vm316_vm7, %v2375_v44, 0.0  ;;  %v6994_v44 = vld [vmem:[#allocation14_spill] sm:$0xff] }
0x239c   :  { %2385 = vadd.xlane.f32.xlu1 %v2384_v14  ;;  %2382 = vadd.xlane.f32.xlu2 %v2381_v62  ;;  %v2390_v49 = vsel %vm316_vm7, %v2374_v22, 0.0  ;;  %v2387_v18 = vsel %vm316_vm7, %v2373_v60, 0.0  ;;  %v2399_v2 = vsel %vm316_vm7, %v2377_v3, 0.0  ;;  %v2396_v43 = vsel %vm316_vm7, %v2376_v55, 0.0  ;;  %v6993_v14 = vld [vmem:[#allocation13_spill] sm:$0xff] }
0x239d   :  { %2379 = vadd.xlane.f32.xlu0 %v2378_v26 }
0x23a4   :  { %2394 = vadd.xlane.f32.xlu1 %v2393_v51  ;;  %2391 = vadd.xlane.f32.xlu2 %v2390_v49 }
0x23a5   :  { %2388 = vadd.xlane.f32.xlu0 %v2387_v18 }
0x23ac   :  { %2400 = vadd.xlane.f32.xlu2 %v2399_v2 }
0x23ad   :  { %2397 = vadd.xlane.f32.xlu0 %v2396_v43 }
0x240f   :  { %v2386_v63 = vpop.xlane.xlu1 %2385  ;;  %v2383_v7 = vpop.xlane.xlu2 %2382 }
0x2410   :  { %v2380_v47 = vpop.xlane.xlu0 %2379  ;;  %v2403_v32 = vadd.f32 %v5886_v23, %v2383_v7  ;;  %v2404_v29 = vadd.f32 %v6992_v19, %v2386_v63 }
0x2411   :  { %v2402_v4 = vadd.f32 %v6990_v5, %v2380_v47 }
0x2412   :  { %v2412_v18 = vsel %vm1228_vm4, %v2404_v29, -inf }
0x2417   :  { %v2392_v6 = vpop.xlane.xlu2 %2391  ;;  %v2395_v37 = vpop.xlane.xlu1 %2394 }
0x2418   :  { %v2389_v58 = vpop.xlane.xlu0 %2388  ;;  %v2407_v57 = vadd.f32 %v5874_v30, %v2395_v37  ;;  %v2406_v48 = vadd.f32 %v5880_v13, %v2392_v6  ;;  %v2411_v30 = vsel %vm1228_vm4, %v2403_v32, -inf  ;;  %v2410_v13 = vsel %vm1228_vm4, %v2402_v4, -inf }
0x2419   :  { %v2405_v54 = vadd.f32 %v6991_v38, %v2389_v58 }
0x241a   :  { %v2416_v11 = vsel %vm1228_vm4, %v2407_v57, -inf  ;;  %v2414_v24 = vsel %vm1228_vm4, %v2406_v48, -inf }
0x241b   :  { %v2417_v22 = vmax.f32 %v2411_v30, %v2416_v11  ;;  %v2415_v60 = vmax.f32 %v2410_v13, %v2414_v24  ;;  %v2413_v51 = vsel %vm1228_vm4, %v2405_v54, -inf }
0x241d   :  { %v2422_v43 = vmax.f32 %v2415_v60, %v2417_v22 }
0x241f   :  { %v2401_v15 = vpop.xlane.xlu2 %2400 }
0x2420   :  { %v2409_v62 = vadd.f32 %v6993_v14, %v2401_v15  ;;  %v2398_v26 = vpop.xlane.xlu0 %2397 }
0x2421   :  { %v2408_v23 = vadd.f32 %v6994_v44, %v2398_v26 }
0x2422   :  { %v2420_v49 = vsel %vm1228_vm4, %v2409_v62, -inf }
0x2423   :  { %v2421_v3 = vmax.f32 %v2413_v51, %v2420_v49  ;;  %v2418_v55 = vsel %vm1228_vm4, %v2408_v23, -inf }
0x2424   :  { %v2419_v2 = vmax.f32 %v2412_v18, %v2418_v55 }
0x2426   :  { %v2423_v63 = vmax.f32 %v2419_v2, %v2421_v3 }
0x2428   :  { %v2424_v7 = vmax.f32 %v2422_v43, %v2423_v63 }
0x242a   :  { %v2425_v47 = vsub.f32 %v2402_v4, %v2424_v7  ;;  %v2426_v6 = vsub.f32 %v2403_v32, %v2424_v7  ;;  %v2427_v37 = vsub.f32 %v2404_v29, %v2424_v7  ;;  %v2428_v58 = vsub.f32 %v2405_v54, %v2424_v7 }
0x242b   :  { %v2429_v5 = vsub.f32 %v2406_v48, %v2424_v7  ;;  %v2430_v24 = vsub.f32 %v2407_v57, %v2424_v7  ;;  %v2431_v14 = vsub.f32 %v2408_v23, %v2424_v7  ;;  %v2432_v30 = vsub.f32 %v2409_v62, %v2424_v7 }
0x242c   :  { %v2433_v38 = vmul.f32 1.442695, %v2425_v47  ;;  %v2435_v19 = vmul.f32 1.442695, %v2426_v6  ;;  %v2437_v11 = vmul.f32 1.442695, %v2427_v37 }
0x242d   :  { %v2439_v15 = vmul.f32 1.442695, %v2428_v58  ;;  %v2441_v26 = vmul.f32 1.442695, %v2429_v5  ;;  %v2443_v13 = vmul.f32 1.442695, %v2430_v24 }
0x242e   :  { %4617 = vpow2.f32 %v2433_v38  ;;  %v2445_v44 = vmul.f32 1.442695, %v2431_v14  ;;  %v2447_v54 = vmul.f32 1.442695, %v2432_v30 }
0x242f   :  { %4619 = vpow2.f32 %v2435_v19 }
0x2430   :  { %4621 = vpow2.f32 %v2437_v11 }
0x2431   :  { %4623 = vpow2.f32 %v2439_v15 }
0x2432   :  { %4625 = vpow2.f32 %v2441_v26 }
0x2433   :  { %4627 = vpow2.f32 %v2443_v13 }
0x2434   :  { %v4618_v4 = vpop.eup %4617  ;;  %4629 = vpow2.f32 %v2445_v44  ;;  %v4368_v44 = vsel %vm2623_vm1, 1.0, %v6988_v45 }
0x2435   :  { %v4620_v32 = vpop.eup %4619  ;;  %v2449_v48 = vsel %vm1228_vm4, %v4618_v4, 0.0  ;;  %4631 = vpow2.f32 %v2447_v54 }
0x2436   :  { %v4622_v29 = vpop.eup %4621  ;;  %v2450_v57 = vsel %vm1228_vm4, %v4620_v32, 0.0 }
0x2437   :  { %v4624_v22 = vpop.eup %4623  ;;  %v2451_v23 = vadd.f32 %v2450_v57, %v2449_v48  ;;  %v2452_v60 = vsel %vm1228_vm4, %v4622_v29, 0.0  ;;  %v4369_v48 = vsel %vm2628_vm3, 1.0, %v6988_v45  ;;  %vm3013_vm3 = vcmp.eq.s32.totalorder %v4980_v10, 32 }
0x2438   :  { %v4626_v51 = vpop.eup %4625  ;;  %v2454_v49 = vsel %vm1228_vm4, %v4624_v22, 0.0 }
0x2439   :  { %v2453_v62 = vadd.f32 %v2452_v60, %v2451_v23  ;;  %v4628_v18 = vpop.eup %4627  ;;  %v2456_v55 = vsel %vm1228_vm4, %v4626_v51, 0.0 }
0x243a   :  { %v4630_v2 = vpop.eup %4629  ;;  %v2458_v63 = vsel %vm1228_vm4, %v4628_v18, 0.0 }
0x243b   :  { %v2455_v3 = vadd.f32 %v2454_v49, %v2453_v62  ;;  %v4632_v7 = vpop.eup %4631  ;;  %v2460_v6 = vsel %vm1228_vm4, %v4630_v2, 0.0 }
0x243c   :  { %v2462_v58 = vsel %vm1228_vm4, %v4632_v7, 0.0 }
0x243d   :  { %v2457_v43 = vadd.f32 %v2456_v55, %v2455_v3 }
0x243f   :  { %v2459_v47 = vadd.f32 %v2458_v63, %v2457_v43 }
0x2441   :  { %v2461_v37 = vadd.f32 %v2460_v6, %v2459_v47 }
0x2443   :  { %v2463_v5 = vadd.f32 %v2462_v58, %v2461_v37 }
0x2445   :  { %4633 = vrcp.f32 %v2463_v5 }
0x244b   :  { %v4634_v38 = vpop.eup %4633 }
0x244c   :  { %v2467_v19 = vmul.f32 %v4634_v38, %v4622_v29  ;;  %v2466_v11 = vmul.f32 %v4634_v38, %v4620_v32  ;;  %v2465_v24 = vmul.f32 %v4634_v38, %v4618_v4  ;;  %v2470_v15 = vmul.f32 %v4634_v38, %v4628_v18 }
0x244d   :  { %v2468_v14 = vmul.f32 %v4634_v38, %v4624_v22  ;;  %v2469_v26 = vmul.f32 %v4634_v38, %v4626_v51  ;;  %v2471_v30 = vmul.f32 %v4634_v38, %v4630_v2  ;;  %v2472_v13 = vmul.f32 %v4634_v38, %v4632_v7 }
0x244e   :  { %2485 = vperm.xlu2 %4458, %v2467_v19   ;;  %2480 = vperm.xlu0 %4457, %v2466_v11   ;;  %v4367_v32 = vsel %vm2619_vm2, 1.0, %v6988_v45  ;;  %v4371_v2 = vsel %vm2638_vm6, 1.0, %v6988_v45  ;;  %vm3017_vm2 = vcmp.eq.s32.totalorder %v4980_v10, 33  ;;  %vm3027_vm6 = vcmp.eq.s32.totalorder %v4980_v10, 35 }
0x244f   :  { %2475 = vperm.xlu1 %4459, %v2465_v24  }
0x2456   :  { %2500 = vperm.xlu2 %4458, %v2470_v15   ;;  %2490 = vperm.xlu0 %4457, %v2468_v14  }
0x2457   :  { %2495 = vperm.xlu1 %4459, %v2469_v26  }
0x245e   :  { %2537 = vrot.lane.b32.xlu2 %v6107_v25, %s4852_s30  ;;  %2505 = vperm.xlu0 %4457, %v2471_v30   ;;  %v4373_v30 = vsel %vm2648_vm9, 1.0, %v6988_v45  ;;  %vm3037_vm9 = vcmp.eq.s32.totalorder %v4980_v10, 37 }
0x245f   :  { %2510 = vperm.xlu1 %4459, %v2472_v13  }
0x24a8   :  { %v2486_v4 = vpop.permute.xlu2 %2485 }
0x24a9   :  { %v2631_v51 = vmul.f32 %v4369_v48, %v2486_v4  ;;  %v2515_v18 = vmul.f32 %v5831_v52, %v2486_v4  ;;  %v4372_v52 = vsel %vm2643_vm8, 1.0, %v6988_v45  ;;  %vm3032_vm8 = vcmp.eq.s32.totalorder %v4980_v10, 36 }
0x24ab   :  { %v2524_v43 = vsel %vm316_vm7, %v2515_v18, 0.0 }
0x24b0   :  { %v2501_v63 = vpop.permute.xlu2 %2500 }
0x24b1   :  { %v2518_v11 = vmul.f32 %v5846_v9, %v2501_v63  ;;  %v2646_v15 = vmul.f32 %v4372_v52, %v2501_v63  ;;  %v2587_v63 = vadd.s32 48, %v5578_v41 }
0x24b3   :  { %v2530_v4 = vsel %vm316_vm7, %v2518_v11, 0.0  ;;  %vm2589_vm12 = vcmp.eq.s32.totalorder %v4980_v10, %v2587_v63 }
0x24b8   :  { %v2538_v18 = vpop.permute.xlu2 %2537 }
0x24c0   :  { %v2481_v54 = vpop.permute.xlu0 %2480 }
0x24c1   :  { %v2514_v29 = vmul.f32 %v5835_v27, %v2481_v54  ;;  %v2626_v57 = vmul.f32 %v4368_v44, %v2481_v54  ;;  %v2476_v25 = vpop.permute.xlu1 %2475  ;;  %v4370_v27 = vsel %vm2633_vm5, 1.0, %v6988_v45  ;;  %v4374_v44 = vsel %vm2653_vm10, 1.0, %v6988_v45 }
0x24c2   :  { %v2513_v22 = vmul.f32 %v5839_v34, %v2476_v25  ;;  %v2622_v23 = vmul.f32 %v4367_v32, %v2476_v25  ;;  %vm3022_vm5 = vcmp.eq.s32.totalorder %v4980_v10, 34  ;;  %vm3042_vm10 = vcmp.eq.s32.totalorder %v4980_v10, 38 }
0x24c3   :  { %v2522_v60 = vsel %vm316_vm7, %v2514_v29, 0.0 }
0x24c4   :  { %v2521_v62 = vsel %vm316_vm7, %v2513_v22, 0.0  ;;  %v2627_v49 = vadd.f32 %v2626_v57, %v2622_v23 }
0x24c5   :  { %v2523_v3 = vadd.f32 %v2522_v60, %v2521_v62 }
0x24c6   :  { %v2632_v55 = vadd.f32 %v2631_v51, %v2627_v49 }
0x24c7   :  { %v2525_v37 = vadd.f32 %v2524_v43, %v2523_v3  ;;  %v2588_v43 = vadd.s32 48, %v5581_v42 }
0x24c8   :  { %v2491_v34 = vpop.permute.xlu0 %2490 }
0x24c9   :  { %v2516_v7 = vmul.f32 %v5854_v53, %v2491_v34  ;;  %v2636_v47 = vmul.f32 %v4370_v27, %v2491_v34  ;;  %v2496_v6 = vpop.permute.xlu1 %2495  ;;  %v6214_v34 = vld [vmem:[%s6958_s7 + $0x8] sm:$0xff]  ;;  %vm2590_vm11 = vcmp.eq.s32.totalorder %v4980_v10, %v2588_v43 }
0x24ca   :  { %v2517_v58 = vmul.f32 %v5850_v1, %v2496_v6  ;;  %v2641_v19 = vmul.f32 %v4371_v2, %v2496_v6  ;;  %v6220_v2 = vld [vmem:[%s6958_s7] sm:$0xff]  ;;  %4364 = vmatpush.msk.msrb.mxu3 %vm2590_vm11, %v6989_v31  ;;  %vm3047_vm11 = vcmp.eq.s32.totalorder %v4980_v10, 39 }
0x24cb   :  { %v2526_v5 = vsel %vm316_vm7, %v2516_v7, 0.0  ;;  %v2637_v38 = vadd.f32 %v2636_v47, %v2632_v55  ;;  %v6202_v55 = vld [vmem:[%s6958_s7 + $0x18] sm:$0xff]  ;;  %v2677_v7 = vpop.f32.mrf.mxu0  ;;  %v6995_v47 = vld [vmem:[#allocation5_spill] sm:$0xff] }
0x24cc   :  { %v2527_v24 = vadd.f32 %v2526_v5, %v2525_v37  ;;  %v2528_v14 = vsel %vm316_vm7, %v2517_v58, 0.0  ;;  %4365 = vmatpush.msk.msrb.mxu3 %vm2589_vm12, %v6989_v31  ;;  %v2680_v6 = vadd.f32 %v2677_v7, %v6995_v47  ;;  %v6310_v47 = vld [vmem:[#allocation4 + $0x30] sm:$0xff] }
0x24cd   :  { %v2642_v53 = vadd.f32 %v2641_v19, %v2637_v38 }
0x24ce   :  { %v2529_v26 = vadd.f32 %v2528_v14, %v2527_v24  ;;  %2949 = vmatpush.msra.mxu3 %v6016_v36 }
0x24cf   :  { %v2647_v13 = vadd.f32 %v2646_v15, %v2642_v53 }
0x24d0   :  { %v2506_v1 = vpop.permute.xlu0 %2505  ;;  %v2531_v48 = vadd.f32 %v2530_v4, %v2529_v26  ;;  %2950 = vmatpush.msra.mxu3 %v6022_v0 }
0x24d1   :  { %v2519_v32 = vmul.f32 %v5865_v33, %v2506_v1  ;;  %v2651_v54 = vmul.f32 %v4373_v30, %v2506_v1  ;;  %v2511_v9 = vpop.permute.xlu1 %2510  ;;  %v6195_v33 = vpop.f32.mrf.mxu1 }
0x24d2   :  { %v2520_v29 = vmul.f32 %v5861_v21, %v2511_v9  ;;  %v2656_v22 = vmul.f32 %v4374_v44, %v2511_v9  ;;  %2951 = vmatpush.msra.mxu3 %v6028_v46 }
0x24d3   :  { %v2532_v57 = vsel %vm316_vm7, %v2519_v32, 0.0  ;;  %v2652_v25 = vadd.f32 %v2651_v54, %v2647_v13  ;;  %v6263_v54 = vld [vmem:[%s6960_s9 + $0x10] sm:$0xff] }
0x24d4   :  { %v2533_v23 = vadd.f32 %v2532_v57, %v2531_v48  ;;  %v2534_v60 = vsel %vm316_vm7, %v2520_v29, 0.0  ;;  %2952 = vmatpush.msra.mxu3 %v6034_v56  ;;  %v6284_v48 = vld [vmem:[#allocation4 + $0x8] sm:$0xff]  ;;  %v6288_v57 = vld [vmem:[#allocation4] sm:$0xff] }
0x24d5   :  { %v2657_v51 = vadd.f32 %v2656_v22, %v2652_v25 }
0x24d6   :  { %v2535_v62 = vadd.f32 %v2534_v60, %v2533_v23 }
0x24d7   :  { %v6192_v49 = vadd.f32 %v2657_v51, %v5996_v50  ;;  %v6208_v50 = vld [vmem:[%s6958_s7 + $0x10] sm:$0xff]  ;;  %v6295_v51 = vld [vmem:[#allocation4 + $0x28] sm:$0xff] }
0x24d8   :  { %4360 = vmatmul.msk.f32.vlgmr.msra.gmra.mxu1 %vm316_vm7, %v2535_v62 }
0x2555   :  { %v2560_v3 = vpop.f32.mrf.mxu1 }
0x2556   :  { %v2561_v27 = vadd.f32 %v2560_v3, %v2538_v18  ;;  %v6299_v18 = vld [vmem:[#allocation4 + $0x18] sm:$0xff] }
0x2558   :  { %4635 = vtanh.f32 %v2561_v27  ;;  %v6303_v27 = vld [vmem:[#allocation4 + $0x20] sm:$0xff] }
0x255e   :  { %v4636_v21 = vpop.eup %4635 }
0x255f   :  { %4361 = vmatmul.msk.f32.vlgmr.msrb.gmra.mxu2 %vm316_vm7, %v4636_v21  ;;  %4376 = vmatmul.msk.f32.vlgmr.msrb.gmra.mxu1 %vm316_vm7, %v4636_v21 }
0x2560   :  { %3066 = vmatpush.msrb.mxu2 %v6202_v55 }
0x2562   :  { %3067 = vmatpush.msrb.mxu2 %v6208_v50 }
0x2564   :  { %3068 = vmatpush.msrb.mxu2 %v6214_v34 }
0x2566   :  { %3069 = vmatpush.msrb.mxu2 %v6220_v2 }
0x25dc   :  { %v2698_v52 = vpop.f32.mrf.mxu1 }
0x25dd   :  { %v2701_v37 = vadd.f32 %v2698_v52, %v2680_v6  ;;  %v6314_v52 = vld [vmem:[#allocation4 + $0x38] sm:$0xff] }
0x25df   :  { %4637 = vtanh.f32 %v2701_v37  ;;  %v4377_v36 = vmul.f32 -1.442695, %v2701_v37 }
0x25e1   :  { %4639 = vpow2.f32 %v4377_v36 }
0x25e2   :  { %v2584_v58 = vpop.f32.mrf.mxu2 }
0x25e3   :  { %v2585_v5 = vadd.f32 %v6040_v8, %v2584_v58 }
0x25e5   :  { %v4638_v38 = vpop.eup %4637  ;;  %4366 = vmatmul.msk.f32.vlgmr.msrb.gmra.mxu3 %vm106_vm0, %v2585_v5 }
0x25e6   :  { %2724 = vrot.lane.b32.xlu0 %v4638_v38, %s4850_s26  ;;  %3087 = vmatpush.msrb.mxu3 %v6047_v39 }
0x25e7   :  { %v4640_v0 = vpop.eup %4639 }
0x25e8   :  { %3088 = vmatpush.msrb.mxu3 %v6054_v61  ;;  %v2705_v46 = vadd.f32 1.0, %v4640_v0 }
0x25ea   :  { %3089 = vmatpush.msrb.mxu3 %v6060_v17  ;;  %4641 = vrcp.f32 %v2705_v46  ;;  %v2717_v15 = vand.u32 2147483648, %v2705_v46  ;;  %vm2711_vm14 = vweird.f32 %v2705_v46  ;;  %v2715_v39 = vand.u32 2147483647, %v2705_v46 }
0x25ec   :  { %3090 = vmatpush.msrb.mxu3 %v6066_v16  ;;  %v2718_v14 = vor.u32 1.1754944e-38, %v2717_v15  ;;  %vm2716_vm1 = vcmp.eq.f32.partialorder %v2715_v39, 8.507059e+37  ;;  %v6335_v39 = vld [vmem:[%s6961_s3 + $0x8] sm:$0xff] }
0x25f0   :  { %v4642_v56 = vpop.eup %4641 }
0x25f1   :  { %v2707_v8 = vmul.f32 %v4642_v56, %v2705_v46  ;;  %vm2712_vm13 = vweird.f32 %v4642_v56 }
0x25f2   :  { %vm2713_vm15 = vmor %vm2711_vm14, %vm2712_vm13 }
0x25f3   :  { %v2708_v19 = vsub.f32 1.0, %v2707_v8 }
0x25f5   :  { %v2709_v11 = vmul.f32 %v4642_v56, %v2708_v19  ;;  %v6323_v19 = vld [vmem:[%s6961_s3 + $0x28] sm:$0xff] }
0x25f7   :  { %v2710_v24 = vadd.f32 %v4642_v56, %v2709_v11 }
0x25f9   :  { %v2714_v61 = vsel %vm2713_vm15, %v4642_v56, %v2710_v24  ;;  %v6329_v24 = vld [vmem:[%s6961_s3 + $0x20] sm:$0xff] }
0x25fa   :  { %v2719_v16 = vsel %vm2716_vm1, %v2718_v14, %v2714_v61  ;;  %v6341_v14 = vld [vmem:[%s6961_s3] sm:$0xff] }
0x25fb   :  { %v2722_v26 = vmul.f32 %v2719_v16, %v6072_v35  ;;  %v6257_v35 = vld [vmem:[%s6960_s9 + $0x18] sm:$0xff] }
0x2658   :  { %v2725_v17 = vpop.permute.xlu0 %2724 }
0x2659   :  { %v2727_v53 = vmul.f32 %v2725_v17, %v2719_v16 }
0x265b   :  { %2729 = vrot.lane.b32.xlu1 %v2727_v53, %s4851_s28 }
0x26cd   :  { %v2730_v30 = vpop.permute.xlu1 %2729 }
0x26ce   :  { %v6243_v13 = vadd.f32 %v2730_v30, %v2722_v26  ;;  %v6354_v30 = vld [vmem:[%s6961_s3 + $0x18] sm:$0xff] }
0x26d0   :  { %4643 = vtanh.f32 %v6243_v13 }
0x26d6   :  { %v4644_v1 = vpop.eup %4643 }
0x26d7   :  { %2735 = vrot.lane.b32.xlu2 %v4644_v1, %s4850_s26 }
0x2731   :  { %v2736_v44 = vpop.permute.xlu2 %2735 }
0x2732   :  { %v2738_v4 = vmul.f32 %v2736_v44, %v2719_v16  ;;  %v6347_v16 = vld [vmem:[%s6961_s3 + $0x10] sm:$0xff] }
0x2734   :  { %2740 = vrot.lane.b32.xlu0 %v2738_v4, %s4851_s28 }
0x27a6   :  { %v2741_v32 = vpop.permute.xlu0 %2740 }
0x27a7   :  { %4378 = vmatmul.msk.f32.vlgmr.msra.gmra.mxu2 %vm316_vm7, %v2741_v32 }
0x27a8   :  { %3367 = vmatpush.msra.mxu2 %v6081_v40  ;;  %v6269_v40 = vld [vmem:[%s6960_s9 + $0x8] sm:$0xff] }
0x27aa   :  { %3368 = vmatpush.msra.mxu2 %v6087_v28  ;;  %v6275_v28 = vld [vmem:[%s6960_s9] sm:$0xff] }
0x27ac   :  { %3369 = vmatpush.msra.mxu2 %v6093_v12 }
0x27ae   :  { %3370 = vmatpush.msra.mxu2 %v6099_v59  ;;  %v6280_v59 = vld [vmem:[#allocation4 + $0x10] sm:$0xff] }
0x27af   :  { %4394 = vmatmul.msk.f32.vlgmr.msrb.gmra.mxu2 %vm316_vm7, %v2741_v32  ;;  %v6361_v32 = vld [vmem:[%s6961_s3 + $0x30] sm:$0xff] }
0x27b0   :  { %3544 = vmatpush.msrb.mxu2 %v6257_v35 }
0x27b2   :  { %3545 = vmatpush.msrb.mxu2 %v6263_v54 }
0x27b4   :  { %3546 = vmatpush.msrb.mxu2 %v6269_v40 }
0x27b6   :  { %3547 = vmatpush.msrb.mxu2 %v6275_v28 }
0x282a   :  { %v6278_v12 = vpop.f32.mrf.mxu2 }
0x282b   :  { %v2766_v9 = vmul.f32 %v6280_v59, %v6278_v12  ;;  %v2765_v29 = vmul.f32 %v6284_v48, %v6278_v12  ;;  %v2764_v25 = vmul.f32 %v6288_v57, %v6278_v12  ;;  %v2769_v62 = vmul.f32 %v6295_v51, %v6278_v12 }
0x282c   :  { %v2767_v3 = vmul.f32 %v6299_v18, %v6278_v12  ;;  %v2768_v21 = vmul.f32 %v6303_v27, %v6278_v12  ;;  %v2770_v6 = vmul.f32 %v6310_v47, %v6278_v12  ;;  %v2771_v37 = vmul.f32 %v6314_v52, %v6278_v12 }
0x282d   :  { %v2778_v22 = vsel %vm316_vm7, %v2766_v9, 0.0  ;;  %v2775_v23 = vsel %vm316_vm7, %v2765_v29, 0.0  ;;  %v2772_v60 = vsel %vm316_vm7, %v2764_v25, 0.0  ;;  %v2787_v43 = vsel %vm316_vm7, %v2769_v62, 0.0 }
0x282e   :  { %2779 = vadd.xlane.f32.xlu0 %v2778_v22  ;;  %2776 = vadd.xlane.f32.xlu2 %v2775_v23  ;;  %v2781_v63 = vsel %vm316_vm7, %v2767_v3, 0.0  ;;  %v2784_v7 = vsel %vm316_vm7, %v2768_v21, 0.0  ;;  %v2790_v58 = vsel %vm316_vm7, %v2770_v6, 0.0  ;;  %v2793_v5 = vsel %vm316_vm7, %v2771_v37, 0.0  ;;  %v6369_v23 = vld [vmem:[%s6961_s3 + $0x38] sm:$0xff] }
0x282f   :  { %2773 = vadd.xlane.f32.xlu1 %v2772_v60 }
0x2836   :  { %2788 = vadd.xlane.f32.xlu0 %v2787_v43  ;;  %2782 = vadd.xlane.f32.xlu2 %v2781_v63 }
0x2837   :  { %2785 = vadd.xlane.f32.xlu1 %v2784_v7 }
0x283e   :  { %2791 = vadd.xlane.f32.xlu2 %v2790_v58 }
0x283f   :  { %2794 = vadd.xlane.f32.xlu1 %v2793_v5 }
0x28a1   :  { %v2780_v38 = vpop.xlane.xlu0 %2779  ;;  %v2777_v36 = vpop.xlane.xlu2 %2776 }
0x28a2   :  { %v2774_v0 = vpop.xlane.xlu1 %2773  ;;  %v2797_v61 = vadd.f32 %v6335_v39, %v2777_v36  ;;  %v2798_v53 = vadd.f32 %v6347_v16, %v2780_v38 }
0x28a3   :  { %v2796_v17 = vadd.f32 %v6341_v14, %v2774_v0 }
0x28a4   :  { %v2805_v25 = vsel %vm1228_vm4, %v2797_v61, -inf  ;;  %v2806_v62 = vsel %vm1228_vm4, %v2798_v53, -inf }
0x28a5   :  { %v2804_v22 = vsel %vm1228_vm4, %v2796_v17, -inf }
0x28a9   :  { %v2783_v46 = vpop.xlane.xlu2 %2782  ;;  %v2789_v56 = vpop.xlane.xlu0 %2788 }
0x28aa   :  { %v2786_v8 = vpop.xlane.xlu1 %2785  ;;  %v2801_v11 = vadd.f32 %v6323_v19, %v2789_v56  ;;  %v2799_v1 = vadd.f32 %v6354_v30, %v2783_v46 }
0x28ab   :  { %v2800_v15 = vadd.f32 %v6329_v24, %v2786_v8 }
0x28ac   :  { %v2810_v26 = vsel %vm1228_vm4, %v2801_v11, -inf  ;;  %v2807_v63 = vsel %vm1228_vm4, %v2799_v1, -inf }
0x28ad   :  { %v2808_v44 = vsel %vm1228_vm4, %v2800_v15, -inf  ;;  %v2811_v3 = vmax.f32 %v2805_v25, %v2810_v26 }
0x28ae   :  { %v2809_v21 = vmax.f32 %v2804_v22, %v2808_v44 }
0x28b0   :  { %v2816_v58 = vmax.f32 %v2809_v21, %v2811_v3 }
0x28b1   :  { %v2792_v4 = vpop.xlane.xlu2 %2791 }
0x28b2   :  { %v2802_v9 = vadd.f32 %v6361_v32, %v2792_v4  ;;  %v2795_v29 = vpop.xlane.xlu1 %2794 }
0x28b3   :  { %v2803_v60 = vadd.f32 %v6369_v23, %v2795_v29 }
0x28b4   :  { %v2812_v43 = vsel %vm1228_vm4, %v2802_v9, -inf }
0x28b5   :  { %v2813_v7 = vmax.f32 %v2806_v62, %v2812_v43  ;;  %v2814_v6 = vsel %vm1228_vm4, %v2803_v60, -inf }
0x28b6   :  { %v2815_v37 = vmax.f32 %v2807_v63, %v2814_v6 }
0x28b8   :  { %v2817_v5 = vmax.f32 %v2813_v7, %v2815_v37 }
0x28ba   :  { %v2818_v38 = vmax.f32 %v2816_v58, %v2817_v5 }
0x28bc   :  { %v2819_v36 = vsub.f32 %v2796_v17, %v2818_v38  ;;  %v2820_v0 = vsub.f32 %v2797_v61, %v2818_v38  ;;  %v2821_v46 = vsub.f32 %v2798_v53, %v2818_v38  ;;  %v2822_v56 = vsub.f32 %v2799_v1, %v2818_v38 }
0x28bd   :  { %v2823_v8 = vsub.f32 %v2800_v15, %v2818_v38  ;;  %v2824_v44 = vsub.f32 %v2801_v11, %v2818_v38  ;;  %v2825_v22 = vsub.f32 %v2802_v9, %v2818_v38  ;;  %v2826_v43 = vsub.f32 %v2803_v60, %v2818_v38 }
0x28be   :  { %v2827_v4 = vmul.f32 1.442695, %v2819_v36  ;;  %v2829_v29 = vmul.f32 1.442695, %v2820_v0  ;;  %v2831_v26 = vmul.f32 1.442695, %v2821_v46 }
0x28bf   :  { %v2833_v25 = vmul.f32 1.442695, %v2822_v56  ;;  %v2835_v62 = vmul.f32 1.442695, %v2823_v8  ;;  %v2837_v3 = vmul.f32 1.442695, %v2824_v44 }
0x28c0   :  { %4645 = vpow2.f32 %v2827_v4  ;;  %v2839_v21 = vmul.f32 1.442695, %v2825_v22  ;;  %v2841_v53 = vmul.f32 1.442695, %v2826_v43 }
0x28c1   :  { %4647 = vpow2.f32 %v2829_v29 }
0x28c2   :  { %4649 = vpow2.f32 %v2831_v26 }
0x28c3   :  { %4651 = vpow2.f32 %v2833_v25 }
0x28c4   :  { %4653 = vpow2.f32 %v2835_v62 }
0x28c5   :  { %4655 = vpow2.f32 %v2837_v3 }
0x28c6   :  { %v4646_v17 = vpop.eup %4645  ;;  %4657 = vpow2.f32 %v2839_v21 }
0x28c7   :  { %v4648_v61 = vpop.eup %4647  ;;  %v2843_v15 = vsel %vm1228_vm4, %v4646_v17, 0.0  ;;  %4659 = vpow2.f32 %v2841_v53 }
0x28c8   :  { %v4650_v1 = vpop.eup %4649  ;;  %v2844_v11 = vsel %vm1228_vm4, %v4648_v61, 0.0 }
0x28c9   :  { %v4652_v63 = vpop.eup %4651  ;;  %v2845_v9 = vadd.f32 %v2844_v11, %v2843_v15  ;;  %v2846_v7 = vsel %vm1228_vm4, %v4650_v1, 0.0 }
0x28ca   :  { %v4654_v6 = vpop.eup %4653  ;;  %v2848_v37 = vsel %vm1228_vm4, %v4652_v63, 0.0 }
0x28cb   :  { %v2847_v60 = vadd.f32 %v2846_v7, %v2845_v9  ;;  %v4656_v58 = vpop.eup %4655  ;;  %v2850_v38 = vsel %vm1228_vm4, %v4654_v6, 0.0 }
0x28cc   :  { %v4658_v36 = vpop.eup %4657  ;;  %v2852_v46 = vsel %vm1228_vm4, %v4656_v58, 0.0 }
0x28cd   :  { %v2849_v5 = vadd.f32 %v2848_v37, %v2847_v60  ;;  %v4660_v56 = vpop.eup %4659  ;;  %v2854_v4 = vsel %vm1228_vm4, %v4658_v36, 0.0 }
0x28ce   :  { %v2856_v26 = vsel %vm1228_vm4, %v4660_v56, 0.0 }
0x28cf   :  { %v2851_v0 = vadd.f32 %v2850_v38, %v2849_v5 }
0x28d1   :  { %v2853_v8 = vadd.f32 %v2852_v46, %v2851_v0  ;;  %v4389_v46 = vsel %vm3027_vm6, 1.0, %v6988_v45  ;;  %vm3416_vm6 = vcmp.eq.s32.totalorder %v4980_v10, 42 }
0x28d3   :  { %v2855_v29 = vadd.f32 %v2854_v4, %v2853_v8  ;;  %v4390_v4 = vsel %vm3032_vm8, 1.0, %v6988_v45  ;;  %vm3421_vm8 = vcmp.eq.s32.totalorder %v4980_v10, 43 }
0x28d5   :  { %v2857_v44 = vadd.f32 %v2856_v26, %v2855_v29 }
0x28d7   :  { %4661 = vrcp.f32 %v2857_v44 }
0x28dd   :  { %v4662_v25 = vpop.eup %4661 }
0x28de   :  { %v2861_v22 = vmul.f32 %v4662_v25, %v4650_v1  ;;  %v2860_v62 = vmul.f32 %v4662_v25, %v4648_v61  ;;  %v2859_v43 = vmul.f32 %v4662_v25, %v4646_v17  ;;  %v2865_v3 = vmul.f32 %v4662_v25, %v4658_v36 }
0x28df   :  { %v2863_v21 = vmul.f32 %v4662_v25, %v4654_v6  ;;  %v2862_v53 = vmul.f32 %v4662_v25, %v4652_v63  ;;  %v2866_v15 = vmul.f32 %v4662_v25, %v4660_v56  ;;  %v2864_v11 = vmul.f32 %v4662_v25, %v4656_v58 }
0x28e0   :  { %2879 = vperm.xlu1 %4459, %v2861_v22   ;;  %2874 = vperm.xlu2 %4458, %v2860_v62   ;;  %v4387_v61 = vsel %vm3017_vm2, 1.0, %v6988_v45  ;;  %v4386_v1 = vsel %vm3013_vm3, 1.0, %v6988_v45  ;;  %v4388_v63 = vsel %vm3022_vm5, 1.0, %v6988_v45  ;;  %vm3411_vm3 = vcmp.eq.s32.totalorder %v4980_v10, 41 }
0x28e1   :  { %2869 = vperm.xlu0 %4457, %v2859_v43   ;;  %vm3407_vm5 = vcmp.eq.s32.totalorder %v4980_v10, 40 }
0x28e8   :  { %2899 = vperm.xlu1 %4459, %v2865_v3   ;;  %2889 = vperm.xlu2 %4458, %v2863_v21  }
0x28e9   :  { %2884 = vperm.xlu0 %4457, %v2862_v53  }
0x28f0   :  { %2904 = vperm.xlu2 %4458, %v2866_v15  }
0x28f1   :  { %2894 = vperm.xlu0 %4457, %v2864_v11  }
0x28f9   :  { %2931 = vrot.lane.b32.xlu0 %v6278_v12, %s4852_s30 }
0x293a   :  { %v2875_v17 = vpop.permute.xlu2 %2874 }
0x293b   :  { %v3020_v6 = vmul.f32 %v4387_v61, %v2875_v17  ;;  %v2908_v12 = vmul.f32 %v6284_v48, %v2875_v17  ;;  %v4391_v61 = vsel %vm3037_vm9, 1.0, %v6988_v45  ;;  %vm3426_vm9 = vcmp.eq.s32.totalorder %v4980_v10, 44 }
0x293d   :  { %v2916_v56 = vsel %vm316_vm7, %v2908_v12, 0.0  ;;  %v4393_v12 = vsel %vm3047_vm11, 1.0, %v6988_v45  ;;  %vm3436_vm11 = vcmp.eq.s32.totalorder %v4980_v10, 46 }
0x2942   :  { %v2890_v0 = vpop.permute.xlu2 %2889 }
0x2943   :  { %v3035_v22 = vmul.f32 %v4390_v4, %v2890_v0  ;;  %v2911_v53 = vmul.f32 %v6303_v27, %v2890_v0 }
0x2952   :  { %v2880_v9 = vpop.permute.xlu1 %2879 }
0x2953   :  { %v2870_v7 = vpop.permute.xlu0 %2869  ;;  %v3025_v58 = vmul.f32 %v4388_v63, %v2880_v9  ;;  %v2909_v8 = vmul.f32 %v6280_v59, %v2880_v9  ;;  %v4392_v63 = vsel %vm3042_vm10, 1.0, %v6988_v45  ;;  %vm3431_vm10 = vcmp.eq.s32.totalorder %v4980_v10, 45 }
0x2954   :  { %v2907_v60 = vmul.f32 %v6288_v57, %v2870_v7  ;;  %v3016_v37 = vmul.f32 %v4386_v1, %v2870_v7  ;;  %v2905_v1 = vpop.permute.xlu2 %2904  ;;  %v2922_v7 = vsel %vm316_vm7, %v2911_v53, 0.0 }
0x2955   :  { %v2918_v62 = vsel %vm316_vm7, %v2909_v8, 0.0 }
0x2956   :  { %v3021_v5 = vadd.f32 %v3020_v6, %v3016_v37  ;;  %v2915_v38 = vsel %vm316_vm7, %v2907_v60, 0.0 }
0x2957   :  { %v2917_v29 = vadd.f32 %v2916_v56, %v2915_v38  ;;  %v3050_v56 = vmul.f32 %v4393_v12, %v2905_v1  ;;  %v6483_v12 = vld [vmem:[%s6959_s8 + $0x8] sm:$0xff] }
0x2958   :  { %v3026_v36 = vadd.f32 %v3025_v58, %v3021_v5  ;;  %v2914_v5 = vmul.f32 %v6314_v52, %v2905_v1  ;;  %v3071_v1 = vpop.f32.mrf.mxu2 }
0x2959   :  { %v2919_v21 = vadd.f32 %v2918_v62, %v2917_v29  ;;  %v6422_v62 = vpop.f32.mrf.mxu3 }
0x295a   :  { %v2900_v11 = vpop.permute.xlu1 %2899 }
0x295b   :  { %v2885_v26 = vpop.permute.xlu0 %2884  ;;  %v2913_v6 = vmul.f32 %v6310_v47, %v2900_v11  ;;  %v3045_v38 = vmul.f32 %v4392_v63, %v2900_v11  ;;  %v6470_v63 = vld [vmem:[%s6959_s8 + $0x18] sm:$0xff] }
0x295c   :  { %v2910_v44 = vmul.f32 %v6299_v18, %v2885_v26  ;;  %v3030_v25 = vmul.f32 %v4389_v46, %v2885_v26  ;;  %v2928_v26 = vsel %vm316_vm7, %v2914_v5, 0.0 }
0x295d   :  { %v2926_v8 = vsel %vm316_vm7, %v2913_v6, 0.0 }
0x295e   :  { %v2920_v43 = vsel %vm316_vm7, %v2910_v44, 0.0  ;;  %v3031_v3 = vadd.f32 %v3030_v25, %v3026_v36 }
0x295f   :  { %v2921_v17 = vadd.f32 %v2920_v43, %v2919_v21 }
0x2960   :  { %v3036_v15 = vadd.f32 %v3035_v22, %v3031_v3 }
0x2961   :  { %v2923_v58 = vadd.f32 %v2922_v7, %v2921_v17  ;;  %v6463_v17 = vld [vmem:[%s6963_s12] ss:$0 sm:$0xff] }
0x2963   :  { %v2895_v9 = vpop.permute.xlu0 %2894 }
0x2964   :  { %v2912_v60 = vmul.f32 %v6295_v51, %v2895_v9  ;;  %v3040_v37 = vmul.f32 %v4391_v61, %v2895_v9  ;;  %v6996_v9 = vld [vmem:[#allocation6_spill] sm:$0xff] }
0x2965   :  { %v3074_v7 = vadd.f32 %v3071_v1, %v6996_v9 }
0x2966   :  { %v2924_v36 = vsel %vm316_vm7, %v2912_v60, 0.0  ;;  %v3041_v0 = vadd.f32 %v3040_v37, %v3036_v15  ;;  %v2981_v15 = vadd.s32 64, %v5578_v41  ;;  %v6477_v60 = vld [vmem:[%s6959_s8 + $0x10] sm:$0xff] }
0x2967   :  { %v2925_v46 = vadd.f32 %v2924_v36, %v2923_v58  ;;  %v6489_v58 = vld [vmem:[%s6959_s8] sm:$0xff] }
0x2968   :  { %v3046_v4 = vadd.f32 %v3045_v38, %v3041_v0  ;;  %vm2983_vm13 = vcmp.eq.s32.totalorder %v4980_v10, %v2981_v15 }
0x2969   :  { %v2927_v29 = vadd.f32 %v2926_v8, %v2925_v46 }
0x296a   :  { %v3051_v44 = vadd.f32 %v3050_v56, %v3046_v4 }
0x296b   :  { %v2929_v25 = vadd.f32 %v2928_v26, %v2927_v29  ;;  %v2932_v43 = vpop.permute.xlu0 %2931 }
0x296c   :  { %v6419_v22 = vadd.f32 %v3051_v44, %v6192_v49  ;;  %v2982_v49 = vadd.s32 64, %v5581_v42 }
0x296d   :  { %4379 = vmatmul.msk.f32.vlgmr.msra.gmra.mxu3 %vm316_vm7, %v2929_v25 }
0x296e   :  { %vm2984_vm12 = vcmp.eq.s32.totalorder %v4980_v10, %v2982_v49 }
0x296f   :  { %4383 = vmatpush.msk.msra.mxu1 %vm2984_vm12, %v6989_v31  ;;  %vm3441_vm12 = vcmp.eq.s32.totalorder %v4980_v10, 47 }
0x2971   :  { %4384 = vmatpush.msk.msra.mxu1 %vm2983_vm13, %v6989_v31 }
0x29f0   :  { %v2954_v3 = vpop.f32.mrf.mxu3 }
0x29f1   :  { %v2955_v21 = vadd.f32 %v2954_v3, %v2932_v43 }
0x29f3   :  { %4663 = vtanh.f32 %v2955_v21 }
0x29f9   :  { %v4664_v53 = vpop.eup %4663 }
0x29fa   :  { %4380 = vmatmul.msk.f32.vlgmr.msra.gmra.mxu0 %vm316_vm7, %v4664_v53  ;;  %4395 = vmatmul.msk.f32.vlgmr.msrb.gmra.mxu3 %vm316_vm7, %v4664_v53 }
0x29fb   :  { %3460 = vmatpush.msra.mxu0 %v6202_v55  ;;  %v6439_v55 = vld [vmem:[%s6962_s10 + $0x18] sm:$0xff] }
0x29fc   :  { %3343 = vmatpush.msrb.mxu1 %v6439_v55 }
0x29fd   :  { %3461 = vmatpush.msra.mxu0 %v6208_v50  ;;  %v6445_v50 = vld [vmem:[%s6962_s10 + $0x10] sm:$0xff] }
0x29fe   :  { %3344 = vmatpush.msrb.mxu1 %v6445_v50 }
0x29ff   :  { %3462 = vmatpush.msra.mxu0 %v6214_v34  ;;  %v6451_v34 = vld [vmem:[%s6962_s10 + $0x8] sm:$0xff] }
0x2a00   :  { %3345 = vmatpush.msrb.mxu1 %v6451_v34 }
0x2a01   :  { %3463 = vmatpush.msra.mxu0 %v6220_v2  ;;  %v6457_v2 = vld [vmem:[%s6962_s10] sm:$0xff] }
0x2a02   :  { %3346 = vmatpush.msrb.mxu1 %v6457_v2 }
0x2a77   :  { %v2978_v11 = vpop.f32.mrf.mxu0 }
0x2a78   :  { %v2979_v61 = vadd.f32 %v6463_v17, %v2978_v11 }
0x2a7a   :  { %4385 = vmatmul.msk.f32.vlgmr.msra.gmra.mxu1 %vm106_vm0, %v2979_v61 }
0x2a7b   :  { %3481 = vmatpush.msra.mxu1 %v6470_v63 }
0x2a7d   :  { %v3092_v6 = vpop.f32.mrf.mxu3  ;;  %3482 = vmatpush.msra.mxu1 %v6477_v60 }
0x2a7e   :  { %v3095_v37 = vadd.f32 %v3092_v6, %v3074_v7  ;;  %v6504_v6 = vld [vmem:[%s6964_s11 + $0x18] sm:$0xff] }
0x2a7f   :  { %3483 = vmatpush.msra.mxu1 %v6483_v12 }
0x2a80   :  { %4665 = vtanh.f32 %v3095_v37  ;;  %v4396_v38 = vmul.f32 -1.442695, %v3095_v37  ;;  %v6516_v37 = vld [vmem:[%s6964_s11 + $0x8] sm:$0xff] }
0x2a81   :  { %3484 = vmatpush.msra.mxu1 %v6489_v58 }
0x2a82   :  { %4667 = vpow2.f32 %v4396_v38 }
0x2a86   :  { %v4666_v5 = vpop.eup %4665 }
0x2a87   :  { %3118 = vrot.lane.b32.xlu1 %v4666_v5, %s4850_s26  ;;  %v6522_v5 = vld [vmem:[%s6964_s11] sm:$0xff] }
0x2a88   :  { %v4668_v36 = vpop.eup %4667 }
0x2a89   :  { %v3099_v0 = vadd.f32 1.0, %v4668_v36 }
0x2a8b   :  { %4669 = vrcp.f32 %v3099_v0  ;;  %v3111_v26 = vand.u32 2147483648, %v3099_v0  ;;  %vm3105_vm15 = vweird.f32 %v3099_v0  ;;  %v3109_v44 = vand.u32 2147483647, %v3099_v0 }
0x2a8d   :  { %v3112_v43 = vor.u32 1.1754944e-38, %v3111_v26  ;;  %vm3110_vm2 = vcmp.eq.f32.partialorder %v3109_v44, 8.507059e+37 }
0x2a91   :  { %v4670_v46 = vpop.eup %4669 }
0x2a92   :  { %v3101_v56 = vmul.f32 %v4670_v46, %v3099_v0  ;;  %vm3106_vm14 = vweird.f32 %v4670_v46 }
0x2a93   :  { %vm3107_vm1 = vmor %vm3105_vm15, %vm3106_vm14 }
0x2a94   :  { %v3102_v8 = vsub.f32 1.0, %v3101_v56 }
0x2a96   :  { %v3103_v4 = vmul.f32 %v4670_v46, %v3102_v8 }
0x2a98   :  { %v3104_v29 = vadd.f32 %v4670_v46, %v3103_v4 }
0x2a9a   :  { %v3108_v25 = vsel %vm3107_vm1, %v4670_v46, %v3104_v29 }
0x2a9b   :  { %v3113_v21 = vsel %vm3110_vm2, %v3112_v43, %v3108_v25 }
0x2a9c   :  { %v3116_v49 = vmul.f32 %v3113_v21, %v6243_v13  ;;  %v6510_v13 = vld [vmem:[%s6964_s11 + $0x10] sm:$0xff] }
0x2af9   :  { %v3119_v3 = vpop.permute.xlu1 %3118 }
0x2afa   :  { %v3121_v53 = vmul.f32 %v3119_v3, %v3113_v21 }
0x2afc   :  { %3123 = vrot.lane.b32.xlu2 %v3121_v53, %s4851_s28 }
0x2b56   :  { %v3124_v15 = vpop.permute.xlu2 %3123 }
0x2b57   :  { %v6495_v11 = vadd.f32 %v3124_v15, %v3116_v49 }
0x2b59   :  { %4671 = vtanh.f32 %v6495_v11 }
0x2b5f   :  { %v4672_v61 = vpop.eup %4671 }
0x2b60   :  { %3129 = vrot.lane.b32.xlu0 %v4672_v61, %s4850_s26 }
0x2bd2   :  { %v3130_v1 = vpop.permute.xlu0 %3129 }
0x2bd3   :  { %v3132_v9 = vmul.f32 %v3130_v1, %v3113_v21 }
0x2bd5   :  { %3134 = vrot.lane.b32.xlu1 %v3132_v9, %s4851_s28 }
0x2c47   :  { %v3135_v7 = vpop.permute.xlu1 %3134 }
0x2c48   :  { %4397 = vmatmul.msk.f32.vlgmr.msrb.gmra.mxu0 %vm316_vm7, %v3135_v7 }
0x2c49   :  { %3761 = vmatpush.msrb.mxu0 %v6504_v6 }
0x2c4b   :  { %3762 = vmatpush.msrb.mxu0 %v6510_v13 }
0x2c4d   :  { %3763 = vmatpush.msrb.mxu0 %v6516_v37 }
0x2c4f   :  { %3764 = vmatpush.msrb.mxu0 %v6522_v5 }
0x2c50   :  { %4413 = vmatmul.msk.f32.vlgmr.msra.gmra.mxu0 %vm316_vm7, %v3135_v7 }
0x2c51   :  { %3938 = vmatpush.msra.mxu0 %v6257_v35 }
0x2c53   :  { %3939 = vmatpush.msra.mxu0 %v6263_v54 }
0x2c55   :  { %3940 = vmatpush.msra.mxu0 %v6269_v40 }
0x2c57   :  { %3941 = vmatpush.msra.mxu0 %v6275_v28 }
0x2cc5   :  { %v6530_v38 = vpop.f32.mrf.mxu0 }
0x2cc6   :  { %v3160_v36 = vmul.f32 %v6280_v59, %v6530_v38  ;;  %v3159_v0 = vmul.f32 %v6284_v48, %v6530_v38  ;;  %v3158_v46 = vmul.f32 %v6288_v57, %v6530_v38  ;;  %v3163_v40 = vmul.f32 %v6295_v51, %v6530_v38 }
0x2cc7   :  { %v3162_v28 = vmul.f32 %v6303_v27, %v6530_v38  ;;  %v3161_v8 = vmul.f32 %v6299_v18, %v6530_v38  ;;  %v3165_v44 = vmul.f32 %v6314_v52, %v6530_v38  ;;  %v3164_v25 = vmul.f32 %v6310_v47, %v6530_v38 }
0x2cc8   :  { %v3172_v56 = vsel %vm316_vm7, %v3160_v36, 0.0  ;;  %v3169_v35 = vsel %vm316_vm7, %v3159_v0, 0.0  ;;  %v3166_v54 = vsel %vm316_vm7, %v3158_v46, 0.0  ;;  %v3181_v4 = vsel %vm316_vm7, %v3163_v40, 0.0 }
0x2cc9   :  { %3173 = vadd.xlane.f32.xlu1 %v3172_v56  ;;  %3170 = vadd.xlane.f32.xlu0 %v3169_v35  ;;  %v3178_v29 = vsel %vm316_vm7, %v3162_v28, 0.0  ;;  %v3175_v26 = vsel %vm316_vm7, %v3161_v8, 0.0  ;;  %v3187_v43 = vsel %vm316_vm7, %v3165_v44, 0.0  ;;  %v3184_v3 = vsel %vm316_vm7, %v3164_v25, 0.0 }
0x2cca   :  { %3167 = vadd.xlane.f32.xlu2 %v3166_v54 }
0x2cd1   :  { %3182 = vadd.xlane.f32.xlu1 %v3181_v4  ;;  %3179 = vadd.xlane.f32.xlu0 %v3178_v29 }
0x2cd2   :  { %3176 = vadd.xlane.f32.xlu2 %v3175_v26 }
0x2cd9   :  { %3188 = vadd.xlane.f32.xlu0 %v3187_v43 }
0x2cda   :  { %3185 = vadd.xlane.f32.xlu2 %v3184_v3 }
0x2d3c   :  { %v3174_v21 = vpop.xlane.xlu1 %3173  ;;  %v3171_v53 = vpop.xlane.xlu0 %3170 }
0x2d3d   :  { %v3168_v49 = vpop.xlane.xlu2 %3167  ;;  %v3191_v36 = vadd.f32 %v6335_v39, %v3171_v53  ;;  %v3192_v56 = vadd.f32 %v6347_v16, %v3174_v21 }
0x2d3e   :  { %v3190_v0 = vadd.f32 %v6341_v14, %v3168_v49 }
0x2d3f   :  { %v3200_v29 = vsel %vm1228_vm4, %v3192_v56, -inf }
0x2d44   :  { %v3180_v15 = vpop.xlane.xlu0 %3179  ;;  %v3183_v61 = vpop.xlane.xlu1 %3182 }
0x2d45   :  { %v3177_v1 = vpop.xlane.xlu2 %3176  ;;  %v3195_v9 = vadd.f32 %v6323_v19, %v3183_v61  ;;  %v3194_v7 = vadd.f32 %v6329_v24, %v3180_v15  ;;  %v3199_v19 = vsel %vm1228_vm4, %v3191_v36, -inf  ;;  %v3198_v24 = vsel %vm1228_vm4, %v3190_v0, -inf }
0x2d46   :  { %v3193_v46 = vadd.f32 %v6354_v30, %v3177_v1 }
0x2d47   :  { %v3204_v35 = vsel %vm1228_vm4, %v3195_v9, -inf  ;;  %v3202_v54 = vsel %vm1228_vm4, %v3194_v7, -inf }
0x2d48   :  { %v3205_v4 = vmax.f32 %v3199_v19, %v3204_v35  ;;  %v3203_v14 = vmax.f32 %v3198_v24, %v3202_v54  ;;  %v3201_v30 = vsel %vm1228_vm4, %v3193_v46, -inf }
0x2d4c   :  { %v3189_v40 = vpop.xlane.xlu0 %3188 }
0x2d4d   :  { %v3197_v28 = vadd.f32 %v6369_v23, %v3189_v40  ;;  %v3186_v8 = vpop.xlane.xlu2 %3185  ;;  %v3210_v23 = vmax.f32 %v3203_v14, %v3205_v4 }
0x2d4e   :  { %v3196_v39 = vadd.f32 %v6361_v32, %v3186_v8 }
0x2d4f   :  { %v3208_v16 = vsel %vm1228_vm4, %v3197_v28, -inf }
0x2d50   :  { %v3209_v26 = vmax.f32 %v3201_v30, %v3208_v16  ;;  %v3206_v44 = vsel %vm1228_vm4, %v3196_v39, -inf }
0x2d51   :  { %v3207_v25 = vmax.f32 %v3200_v29, %v3206_v44 }
0x2d53   :  { %v3211_v43 = vmax.f32 %v3207_v25, %v3209_v26 }
0x2d55   :  { %v3212_v3 = vmax.f32 %v3210_v23, %v3211_v43 }
0x2d57   :  { %v3213_v21 = vsub.f32 %v3190_v0, %v3212_v3  ;;  %v3214_v53 = vsub.f32 %v3191_v36, %v3212_v3  ;;  %v3215_v49 = vsub.f32 %v3192_v56, %v3212_v3  ;;  %v3216_v15 = vsub.f32 %v3193_v46, %v3212_v3 }
0x2d58   :  { %v3217_v32 = vsub.f32 %v3194_v7, %v3212_v3  ;;  %v3218_v54 = vsub.f32 %v3195_v9, %v3212_v3  ;;  %v3219_v8 = vsub.f32 %v3196_v39, %v3212_v3  ;;  %v3220_v24 = vsub.f32 %v3197_v28, %v3212_v3 }
0x2d59   :  { %v3221_v61 = vmul.f32 1.442695, %v3213_v21  ;;  %v3223_v1 = vmul.f32 1.442695, %v3214_v53  ;;  %v3225_v35 = vmul.f32 1.442695, %v3215_v49 }
0x2d5a   :  { %v3227_v40 = vmul.f32 1.442695, %v3216_v15  ;;  %v3229_v19 = vmul.f32 1.442695, %v3217_v32  ;;  %v3231_v4 = vmul.f32 1.442695, %v3218_v54 }
0x2d5b   :  { %4673 = vpow2.f32 %v3221_v61  ;;  %v3233_v14 = vmul.f32 1.442695, %v3219_v8  ;;  %v3235_v46 = vmul.f32 1.442695, %v3220_v24 }
0x2d5c   :  { %4675 = vpow2.f32 %v3223_v1 }
0x2d5d   :  { %4677 = vpow2.f32 %v3225_v35 }
0x2d5e   :  { %4679 = vpow2.f32 %v3227_v40 }
0x2d5f   :  { %4681 = vpow2.f32 %v3229_v19 }
0x2d60   :  { %4683 = vpow2.f32 %v3231_v4 }
0x2d61   :  { %v4674_v0 = vpop.eup %4673  ;;  %4685 = vpow2.f32 %v3233_v14 }
0x2d62   :  { %v4676_v36 = vpop.eup %4675  ;;  %v3237_v7 = vsel %vm1228_vm4, %v4674_v0, 0.0  ;;  %4687 = vpow2.f32 %v3235_v46 }
0x2d63   :  { %v4678_v56 = vpop.eup %4677  ;;  %v3238_v9 = vsel %vm1228_vm4, %v4676_v36, 0.0 }
0x2d64   :  { %v4680_v30 = vpop.eup %4679  ;;  %v3239_v39 = vadd.f32 %v3238_v9, %v3237_v7  ;;  %v3240_v16 = vsel %vm1228_vm4, %v4678_v56, 0.0  ;;  %v4405_v7 = vsel %vm3407_vm5, 1.0, %v6988_v45  ;;  %v4407_v9 = vsel %vm3416_vm6, 1.0, %v6988_v45 }
0x2d65   :  { %v4682_v29 = vpop.eup %4681  ;;  %v3242_v26 = vsel %vm1228_vm4, %v4680_v30, 0.0  ;;  %vm3805_vm5 = vcmp.eq.s32.totalorder %v4980_v10, 49  ;;  %vm3801_vm6 = vcmp.eq.s32.totalorder %v4980_v10, 48 }
0x2d66   :  { %v3241_v28 = vadd.f32 %v3240_v16, %v3239_v39  ;;  %v4684_v44 = vpop.eup %4683  ;;  %v3244_v23 = vsel %vm1228_vm4, %v4682_v29, 0.0 }
0x2d67   :  { %v4686_v43 = vpop.eup %4685  ;;  %v3246_v21 = vsel %vm1228_vm4, %v4684_v44, 0.0 }
0x2d68   :  { %v3243_v25 = vadd.f32 %v3242_v26, %v3241_v28  ;;  %v4688_v53 = vpop.eup %4687  ;;  %v3248_v15 = vsel %vm1228_vm4, %v4686_v43, 0.0 }
0x2d69   :  { %v3250_v61 = vsel %vm1228_vm4, %v4688_v53, 0.0 }
0x2d6a   :  { %v3245_v3 = vadd.f32 %v3244_v23, %v3243_v25 }
0x2d6c   :  { %v3247_v49 = vadd.f32 %v3246_v21, %v3245_v3  ;;  %v4409_v21 = vsel %vm3426_vm9, 1.0, %v6988_v45  ;;  %vm3815_vm9 = vcmp.eq.s32.totalorder %v4980_v10, 51 }
0x2d6e   :  { %v3249_v32 = vadd.f32 %v3248_v15, %v3247_v49 }
0x2d70   :  { %v3251_v1 = vadd.f32 %v3250_v61, %v3249_v32 }
0x2d72   :  { %4689 = vrcp.f32 %v3251_v1 }
0x2d78   :  { %v4690_v35 = vpop.eup %4689 }
0x2d79   :  { %v3255_v54 = vmul.f32 %v4690_v35, %v4678_v56  ;;  %v3254_v40 = vmul.f32 %v4690_v35, %v4676_v36  ;;  %v3253_v8 = vmul.f32 %v4690_v35, %v4674_v0  ;;  %v3257_v19 = vmul.f32 %v4690_v35, %v4682_v29 }
0x2d7a   :  { %v3258_v24 = vmul.f32 %v4690_v35, %v4684_v44  ;;  %v3256_v4 = vmul.f32 %v4690_v35, %v4680_v30  ;;  %v3260_v14 = vmul.f32 %v4690_v35, %v4688_v53  ;;  %v3259_v46 = vmul.f32 %v4690_v35, %v4686_v43 }
0x2d7b   :  { %3273 = vperm.xlu0 %4457, %v3255_v54   ;;  %3268 = vperm.xlu2 %4458, %v3254_v40   ;;  %v4406_v0 = vsel %vm3411_vm3, 1.0, %v6988_v45 }
0x2d7c   :  { %3263 = vperm.xlu1 %4459, %v3253_v8  }
0x2d83   :  { %3283 = vperm.xlu0 %4457, %v3257_v19   ;;  %3288 = vperm.xlu2 %4458, %v3258_v24  }
0x2d84   :  { %3278 = vperm.xlu1 %4459, %v3256_v4  }
0x2d8b   :  { %3298 = vperm.xlu0 %4457, %v3260_v14   ;;  %3325 = vrot.lane.b32.xlu2 %v6530_v38, %s4852_s30 }
0x2d8c   :  { %3293 = vperm.xlu1 %4459, %v3259_v46   ;;  %v4411_v46 = vsel %vm3436_vm11, 1.0, %v6988_v45  ;;  %vm3825_vm11 = vcmp.eq.s32.totalorder %v4980_v10, 53 }
0x2dd5   :  { %v3269_v36 = vpop.permute.xlu2 %3268 }
0x2dd6   :  { %v3302_v39 = vmul.f32 %v6284_v48, %v3269_v36  ;;  %v3414_v16 = vmul.f32 %v4406_v0, %v3269_v36  ;;  %v4408_v48 = vsel %vm3421_vm8, 1.0, %v6988_v45  ;;  %vm3810_vm8 = vcmp.eq.s32.totalorder %v4980_v10, 50 }
0x2dd8   :  { %v3310_v25 = vsel %vm316_vm7, %v3302_v39, 0.0 }
0x2ddd   :  { %v3289_v1 = vpop.permute.xlu2 %3288 }
0x2dde   :  { %v3306_v24 = vmul.f32 %v6295_v51, %v3289_v1 }
0x2ded   :  { %v3274_v56 = vpop.permute.xlu0 %3273 }
0x2dee   :  { %v3264_v30 = vpop.permute.xlu1 %3263  ;;  %v3419_v28 = vmul.f32 %v4407_v9, %v3274_v56  ;;  %v3303_v23 = vmul.f32 %v6280_v59, %v3274_v56  ;;  %v4410_v59 = vsel %vm3431_vm10, 1.0, %v6988_v45  ;;  %v3318_v9 = vsel %vm316_vm7, %v3306_v24, 0.0 }
0x2def   :  { %v3301_v38 = vmul.f32 %v6288_v57, %v3264_v30  ;;  %v3410_v29 = vmul.f32 %v4405_v7, %v3264_v30  ;;  %v3434_v4 = vmul.f32 %v4410_v59, %v3289_v1  ;;  %v4412_v7 = vsel %vm3441_vm12, 1.0, %v6988_v45  ;;  %v6997_v59 = vld [vmem:[#allocation7_spill] sm:$0xff] }
0x2df0   :  { %v3312_v49 = vsel %vm316_vm7, %v3303_v23, 0.0  ;;  %vm3820_vm10 = vcmp.eq.s32.totalorder %v4980_v10, 52  ;;  %vm3830_vm12 = vcmp.eq.s32.totalorder %v4980_v10, 54 }
0x2df1   :  { %v3309_v26 = vsel %vm316_vm7, %v3301_v38, 0.0  ;;  %v3415_v44 = vadd.f32 %v3414_v16, %v3410_v29 }
0x2df2   :  { %v3311_v3 = vadd.f32 %v3310_v25, %v3309_v26 }
0x2df3   :  { %v3420_v43 = vadd.f32 %v3419_v28, %v3415_v44 }
0x2df4   :  { %v3313_v35 = vadd.f32 %v3312_v49, %v3311_v3  ;;  %v6618_v3 = vpop.f32.mrf.mxu1  ;;  %v4826_v49 = vld [vmem:[%s6958_s7] sm:$0xff] }
0x2df5   :  { %v3284_v57 = vpop.permute.xlu0 %3283 }
0x2df6   :  { %v3279_v53 = vpop.permute.xlu1 %3278  ;;  %v3305_v15 = vmul.f32 %v6303_v27, %v3284_v57  ;;  %v3429_v54 = vmul.f32 %v4409_v21, %v3284_v57  ;;  %v4823_v21 = vld [vmem:[%s6958_s7 + $0x18] sm:$0xff] }
0x2df7   :  { %v3304_v32 = vmul.f32 %v6299_v18, %v3279_v53  ;;  %v3424_v61 = vmul.f32 %v4408_v48, %v3279_v53  ;;  %v4825_v53 = vld [vmem:[%s6958_s7 + $0x8] sm:$0xff] }
0x2df8   :  { %v3316_v27 = vsel %vm316_vm7, %v3305_v15, 0.0  ;;  %v3376_v15 = vadd.s32 80, %v5581_v42 }
0x2df9   :  { %v3314_v40 = vsel %vm316_vm7, %v3304_v32, 0.0  ;;  %v3425_v8 = vadd.f32 %v3424_v61, %v3420_v43  ;;  %v3375_v32 = vadd.s32 80, %v5578_v41  ;;  %v3465_v61 = vpop.f32.mrf.mxu0 }
0x2dfa   :  { %v3315_v19 = vadd.f32 %v3314_v40, %v3313_v35  ;;  %vm3378_vm13 = vcmp.eq.s32.totalorder %v4980_v10, %v3376_v15  ;;  %v3468_v1 = vadd.f32 %v3465_v61, %v6997_v59 }
0x2dfb   :  { %v3430_v18 = vadd.f32 %v3429_v54, %v3425_v8  ;;  %4402 = vmatpush.msk.msra.mxu3 %vm3378_vm13, %v6989_v31  ;;  %vm3377_vm14 = vcmp.eq.s32.totalorder %v4980_v10, %v3375_v32  ;;  %vm3835_vm13 = vcmp.eq.s32.totalorder %v4980_v10, 55 }
0x2dfc   :  { %v3317_v14 = vadd.f32 %v3316_v27, %v3315_v19 }
0x2dfd   :  { %v3299_v0 = vpop.permute.xlu0 %3298  ;;  %v3435_v36 = vadd.f32 %v3434_v4, %v3430_v18  ;;  %4403 = vmatpush.msk.msra.mxu3 %vm3377_vm14, %v6989_v31 }
0x2dfe   :  { %v3294_v56 = vpop.permute.xlu1 %3293  ;;  %v3308_v30 = vmul.f32 %v6314_v52, %v3299_v0  ;;  %v3319_v51 = vadd.f32 %v3318_v9, %v3317_v14  ;;  %v3444_v38 = vmul.f32 %v4412_v7, %v3299_v0  ;;  %v3326_v52 = vpop.permute.xlu2 %3325 }
0x2dff   :  { %v3307_v39 = vmul.f32 %v6310_v47, %v3294_v56  ;;  %v3439_v16 = vmul.f32 %v4411_v46, %v3294_v56  ;;  %3737 = vmatpush.msrb.mxu3 %v6439_v55 }
0x2e00   :  { %v3322_v44 = vsel %vm316_vm7, %v3308_v30, 0.0 }
0x2e01   :  { %v3320_v29 = vsel %vm316_vm7, %v3307_v39, 0.0  ;;  %v3440_v28 = vadd.f32 %v3439_v16, %v3435_v36  ;;  %3738 = vmatpush.msrb.mxu3 %v6445_v50  ;;  %v6667_v16 = vld [vmem:[#allocation4 + $0x10] sm:$0xff] }
0x2e02   :  { %v3321_v26 = vadd.f32 %v3320_v29, %v3319_v51  ;;  %v6675_v29 = vld [vmem:[#allocation4] sm:$0xff] }
0x2e03   :  { %v3445_v25 = vadd.f32 %v3444_v38, %v3440_v28  ;;  %3739 = vmatpush.msrb.mxu3 %v6451_v34  ;;  %v6671_v38 = vld [vmem:[#allocation4 + $0x8] sm:$0xff] }
0x2e04   :  { %v3323_v23 = vadd.f32 %v3322_v44, %v3321_v26  ;;  %v6682_v26 = vld [vmem:[#allocation4 + $0x28] sm:$0xff] }
0x2e05   :  { %v6615_v43 = vadd.f32 %v3445_v25, %v6419_v22  ;;  %v4824_v22 = vld [vmem:[%s6958_s7 + $0x10] sm:$0xff]  ;;  %3740 = vmatpush.msrb.mxu3 %v6457_v2  ;;  %v6686_v25 = vld [vmem:[#allocation4 + $0x20] sm:$0xff] }
0x2e06   :  { %4398 = vmatmul.msk.f32.vlgmr.msrb.gmra.mxu1 %vm316_vm7, %v3323_v23 }
0x2e83   :  { %v3348_v47 = vpop.f32.mrf.mxu1 }
0x2e84   :  { %v3349_v48 = vadd.f32 %v3348_v47, %v3326_v52  ;;  %v6690_v52 = vld [vmem:[#allocation4 + $0x18] sm:$0xff] }
0x2e86   :  { %4691 = vtanh.f32 %v3349_v48 }
0x2e8c   :  { %v4692_v57 = vpop.eup %4691 }
0x2e8d   :  { %4399 = vmatmul.msk.f32.vlgmr.msra.gmra.mxu2 %vm316_vm7, %v4692_v57  ;;  %4414 = vmatmul.msk.f32.vlgmr.msra.gmra.mxu1 %vm316_vm7, %v4692_v57 }
0x2e8e   :  { %3854 = vmatpush.msra.mxu2 %v4823_v21 }
0x2e90   :  { %3855 = vmatpush.msra.mxu2 %v4824_v22  ;;  %v6697_v22 = vld [vmem:[#allocation4 + $0x38] sm:$0xff] }
0x2e92   :  { %3856 = vmatpush.msra.mxu2 %v4825_v53 }
0x2e94   :  { %3857 = vmatpush.msra.mxu2 %v4826_v49  ;;  %v6701_v49 = vld [vmem:[#allocation4 + $0x30] sm:$0xff] }
0x2f0a   :  { %v3486_v35 = vpop.f32.mrf.mxu1 }
0x2f0b   :  { %v3489_v54 = vadd.f32 %v3486_v35, %v3468_v1 }
0x2f0d   :  { %4693 = vtanh.f32 %v3489_v54  ;;  %v4415_v55 = vmul.f32 -1.442695, %v3489_v54 }
0x2f0f   :  { %4695 = vpow2.f32 %v4415_v55 }
0x2f10   :  { %v3372_v40 = vpop.f32.mrf.mxu2 }
0x2f11   :  { %v3373_v8 = vadd.f32 %v6463_v17, %v3372_v40 }
0x2f13   :  { %v4694_v19 = vpop.eup %4693  ;;  %4404 = vmatmul.msk.f32.vlgmr.msra.gmra.mxu3 %vm106_vm0, %v3373_v8 }
0x2f14   :  { %3512 = vrot.lane.b32.xlu1 %v4694_v19, %s4850_s26  ;;  %3875 = vmatpush.msra.mxu3 %v6470_v63  ;;  %v6710_v19 = vld [vmem:[%s6961_s3 + $0x28] sm:$0xff] }
0x2f15   :  { %v4696_v50 = vpop.eup %4695 }
0x2f16   :  { %3876 = vmatpush.msra.mxu3 %v6477_v60  ;;  %v3493_v34 = vadd.f32 1.0, %v4696_v50  ;;  %v6716_v50 = vld [vmem:[%s6961_s3 + $0x20] sm:$0xff] }
0x2f18   :  { %3877 = vmatpush.msra.mxu3 %v6483_v12  ;;  %4697 = vrcp.f32 %v3493_v34  ;;  %v3505_v18 = vand.u32 2147483648, %v3493_v34  ;;  %vm3499_vm1 = vweird.f32 %v3493_v34  ;;  %v3503_v63 = vand.u32 2147483647, %v3493_v34 }
0x2f1a   :  { %3878 = vmatpush.msra.mxu3 %v6489_v58  ;;  %v3506_v14 = vor.u32 1.1754944e-38, %v3505_v18  ;;  %vm3504_vm3 = vcmp.eq.f32.partialorder %v3503_v63, 8.507059e+37  ;;  %v6740_v63 = vld [vmem:[%s6961_s3 + $0x10] sm:$0xff] }
0x2f1e   :  { %v4698_v2 = vpop.eup %4697 }
0x2f1f   :  { %v3495_v17 = vmul.f32 %v4698_v2, %v3493_v34  ;;  %vm3500_vm15 = vweird.f32 %v4698_v2 }
0x2f20   :  { %vm3501_vm2 = vmor %vm3499_vm1, %vm3500_vm15 }
0x2f21   :  { %v3496_v24 = vsub.f32 1.0, %v3495_v17 }
0x2f23   :  { %v3497_v4 = vmul.f32 %v4698_v2, %v3496_v24  ;;  %v6728_v24 = vld [vmem:[%s6961_s3] sm:$0xff] }
0x2f25   :  { %v3498_v27 = vadd.f32 %v4698_v2, %v3497_v4 }
0x2f27   :  { %v3502_v60 = vsel %vm3501_vm2, %v4698_v2, %v3498_v27  ;;  %v6722_v2 = vld [vmem:[%s6961_s3 + $0x8] sm:$0xff]  ;;  %v6734_v27 = vld [vmem:[%s6961_s3 + $0x18] sm:$0xff] }
0x2f28   :  { %v3507_v58 = vsel %vm3504_vm3, %v3506_v14, %v3502_v60 }
0x2f29   :  { %v3510_v0 = vmul.f32 %v3507_v58, %v6495_v11 }
0x2f86   :  { %v3513_v12 = vpop.permute.xlu1 %3512 }
0x2f87   :  { %v3515_v46 = vmul.f32 %v3513_v12, %v3507_v58 }
0x2f89   :  { %3517 = vrot.lane.b32.xlu0 %v3515_v46, %s4851_s28  ;;  %v6748_v46 = vld [vmem:[%s6961_s3 + $0x38] sm:$0xff] }
0x2ffb   :  { %v3518_v36 = vpop.permute.xlu0 %3517 }
0x2ffc   :  { %v6654_v7 = vadd.f32 %v3518_v36, %v3510_v0 }
0x2ffe   :  { %4699 = vtanh.f32 %v6654_v7 }
0x3004   :  { %v4700_v56 = vpop.eup %4699 }
0x3005   :  { %3523 = vrot.lane.b32.xlu2 %v4700_v56, %s4850_s26 }
0x305f   :  { %v3524_v9 = vpop.permute.xlu2 %3523 }
0x3060   :  { %v3526_v30 = vmul.f32 %v3524_v9, %v3507_v58 }
0x3062   :  { %3528 = vrot.lane.b32.xlu1 %v3526_v30, %s4851_s28  ;;  %v6756_v30 = vld [vmem:[%s6961_s3 + $0x30] sm:$0xff] }
0x30d4   :  { %v3529_v39 = vpop.permute.xlu1 %3528 }
0x30d5   :  { %4416 = vmatmul.msk.f32.vlgmr.msrb.gmra.mxu2 %vm316_vm7, %v3529_v39 }
0x30d6   :  { %4155 = vmatpush.msrb.mxu2 %v6504_v6 }
0x30d8   :  { %4156 = vmatpush.msrb.mxu2 %v6510_v13 }
0x30da   :  { %4157 = vmatpush.msrb.mxu2 %v6516_v37 }
0x30dc   :  { %4158 = vmatpush.msrb.mxu2 %v6522_v5 }
0x30dd   :  { %4432 = vmatmul.msk.f32.vlgmr.msra.gmra.mxu2 %vm316_vm7, %v3529_v39 }
0x3158   :  { %v6665_v11 = vpop.f32.mrf.mxu2 }
0x3159   :  { %v3554_v51 = vmul.f32 %v6667_v16, %v6665_v11  ;;  %v3553_v6 = vmul.f32 %v6671_v38, %v6665_v11  ;;  %v3552_v13 = vmul.f32 %v6675_v29, %v6665_v11  ;;  %v3557_v44 = vmul.f32 %v6682_v26, %v6665_v11 }
0x315a   :  { %v3556_v23 = vmul.f32 %v6686_v25, %v6665_v11  ;;  %v3555_v47 = vmul.f32 %v6690_v52, %v6665_v11  ;;  %v3559_v53 = vmul.f32 %v6697_v22, %v6665_v11  ;;  %v3558_v15 = vmul.f32 %v6701_v49, %v6665_v11 }
0x315b   :  { %v3566_v37 = vsel %vm316_vm7, %v3554_v51, 0.0  ;;  %v3563_v5 = vsel %vm316_vm7, %v3553_v6, 0.0  ;;  %v3560_v28 = vsel %vm316_vm7, %v3552_v13, 0.0  ;;  %v3575_v48 = vsel %vm316_vm7, %v3557_v44, 0.0 }
0x315c   :  { %3567 = vadd.xlane.f32.xlu1 %v3566_v37  ;;  %3564 = vadd.xlane.f32.xlu2 %v3563_v5  ;;  %v3572_v57 = vsel %vm316_vm7, %v3556_v23, 0.0  ;;  %v3569_v21 = vsel %vm316_vm7, %v3555_v47, 0.0  ;;  %v3581_v32 = vsel %vm316_vm7, %v3559_v53, 0.0  ;;  %v3578_v61 = vsel %vm316_vm7, %v3558_v15, 0.0 }
0x315d   :  { %3561 = vadd.xlane.f32.xlu0 %v3560_v28 }
0x3164   :  { %3576 = vadd.xlane.f32.xlu1 %v3575_v48  ;;  %3573 = vadd.xlane.f32.xlu2 %v3572_v57 }
0x3165   :  { %3570 = vadd.xlane.f32.xlu0 %v3569_v21 }
0x316c   :  { %3582 = vadd.xlane.f32.xlu2 %v3581_v32 }
0x316d   :  { %3579 = vadd.xlane.f32.xlu0 %v3578_v61 }
0x31cf   :  { %v3568_v59 = vpop.xlane.xlu1 %3567  ;;  %v3565_v1 = vpop.xlane.xlu2 %3564 }
0x31d0   :  { %v3562_v35 = vpop.xlane.xlu0 %3561  ;;  %v3585_v17 = vadd.f32 %v6722_v2, %v3565_v1  ;;  %v3586_v60 = vadd.f32 %v6740_v63, %v3568_v59 }
0x31d1   :  { %v3584_v4 = vadd.f32 %v6728_v24, %v3562_v35 }
0x31d2   :  { %v3593_v56 = vsel %vm1228_vm4, %v3585_v17, -inf  ;;  %v3594_v5 = vsel %vm1228_vm4, %v3586_v60, -inf }
0x31d3   :  { %v3592_v9 = vsel %vm1228_vm4, %v3584_v4, -inf }
0x31d7   :  { %v3574_v54 = vpop.xlane.xlu2 %3573  ;;  %v3577_v40 = vpop.xlane.xlu1 %3576 }
0x31d8   :  { %v3571_v8 = vpop.xlane.xlu0 %3570  ;;  %v3589_v55 = vadd.f32 %v6710_v19, %v3577_v40  ;;  %v3588_v34 = vadd.f32 %v6716_v50, %v3574_v54 }
0x31d9   :  { %v3587_v18 = vadd.f32 %v6734_v27, %v3571_v8 }
0x31da   :  { %v3598_v14 = vsel %vm1228_vm4, %v3589_v55, -inf  ;;  %v3596_v12 = vsel %vm1228_vm4, %v3588_v34, -inf }
0x31db   :  { %v3599_v51 = vmax.f32 %v3593_v56, %v3598_v14  ;;  %v3597_v6 = vmax.f32 %v3592_v9, %v3596_v12  ;;  %v3595_v13 = vsel %vm1228_vm4, %v3587_v18, -inf }
0x31dd   :  { %v3604_v47 = vmax.f32 %v3597_v6, %v3599_v51 }
0x31df   :  { %v3583_v58 = vpop.xlane.xlu2 %3582 }
0x31e0   :  { %v3591_v0 = vadd.f32 %v6748_v46, %v3583_v58  ;;  %v3580_v36 = vpop.xlane.xlu0 %3579 }
0x31e1   :  { %v3590_v39 = vadd.f32 %v6756_v30, %v3580_v36 }
0x31e2   :  { %v3602_v37 = vsel %vm1228_vm4, %v3591_v0, -inf }
0x31e3   :  { %v3603_v28 = vmax.f32 %v3595_v13, %v3602_v37  ;;  %v3600_v44 = vsel %vm1228_vm4, %v3590_v39, -inf }
0x31e4   :  { %v3601_v23 = vmax.f32 %v3594_v5, %v3600_v44 }
0x31e6   :  { %v3605_v48 = vmax.f32 %v3601_v23, %v3603_v28 }
0x31e8   :  { %v3606_v57 = vmax.f32 %v3604_v47, %v3605_v48 }
0x31ea   :  { %v3607_v21 = vsub.f32 %v3584_v4, %v3606_v57  ;;  %v3608_v53 = vsub.f32 %v3585_v17, %v3606_v57  ;;  %v3609_v15 = vsub.f32 %v3586_v60, %v3606_v57  ;;  %v3610_v32 = vsub.f32 %v3587_v18, %v3606_v57 }
0x31eb   :  { %v3611_v61 = vsub.f32 %v3588_v34, %v3606_v57  ;;  %v3612_v54 = vsub.f32 %v3589_v55, %v3606_v57  ;;  %v3613_v8 = vsub.f32 %v3590_v39, %v3606_v57  ;;  %v3614_v12 = vsub.f32 %v3591_v0, %v3606_v57 }
0x31ec   :  { %v3615_v59 = vmul.f32 1.442695, %v3607_v21  ;;  %v3617_v1 = vmul.f32 1.442695, %v3608_v53  ;;  %v3619_v35 = vmul.f32 1.442695, %v3609_v15 }
0x31ed   :  { %v3621_v40 = vmul.f32 1.442695, %v3610_v32  ;;  %v3623_v14 = vmul.f32 1.442695, %v3611_v61  ;;  %v3625_v58 = vmul.f32 1.442695, %v3612_v54 }
0x31ee   :  { %4701 = vpow2.f32 %v3615_v59  ;;  %v3627_v36 = vmul.f32 1.442695, %v3613_v8  ;;  %v3629_v18 = vmul.f32 1.442695, %v3614_v12  ;;  %v4425_v12 = vsel %vm3805_vm5, 1.0, %v6988_v45 }
0x31ef   :  { %4703 = vpow2.f32 %v3617_v1 }
0x31f0   :  { %4705 = vpow2.f32 %v3619_v35 }
0x31f1   :  { %4707 = vpow2.f32 %v3621_v40 }
0x31f2   :  { %4709 = vpow2.f32 %v3623_v14 }
0x31f3   :  { %4711 = vpow2.f32 %v3625_v58 }
0x31f4   :  { %v4702_v4 = vpop.eup %4701  ;;  %4713 = vpow2.f32 %v3627_v36  ;;  %v4424_v36 = vsel %vm3801_vm6, 1.0, %v6988_v45  ;;  %vm4195_vm6 = vcmp.eq.s32.totalorder %v4980_v10, 56 }
0x31f5   :  { %v4704_v17 = vpop.eup %4703  ;;  %v3631_v34 = vsel %vm1228_vm4, %v4702_v4, 0.0  ;;  %4715 = vpow2.f32 %v3629_v18 }
0x31f6   :  { %v4706_v60 = vpop.eup %4705  ;;  %v3632_v55 = vsel %vm1228_vm4, %v4704_v17, 0.0 }
0x31f7   :  { %v4708_v56 = vpop.eup %4707  ;;  %v3633_v9 = vadd.f32 %v3632_v55, %v3631_v34  ;;  %v3634_v39 = vsel %vm1228_vm4, %v4706_v60, 0.0 }
0x31f8   :  { %v4710_v51 = vpop.eup %4709  ;;  %v3636_v6 = vsel %vm1228_vm4, %v4708_v56, 0.0 }
0x31f9   :  { %v3635_v0 = vadd.f32 %v3634_v39, %v3633_v9  ;;  %v4712_v13 = vpop.eup %4711  ;;  %v3638_v5 = vsel %vm1228_vm4, %v4710_v51, 0.0 }
0x31fa   :  { %v4714_v28 = vpop.eup %4713  ;;  %v3640_v23 = vsel %vm1228_vm4, %v4712_v13, 0.0 }
0x31fb   :  { %v3637_v37 = vadd.f32 %v3636_v6, %v3635_v0  ;;  %v4716_v47 = vpop.eup %4715  ;;  %v3642_v57 = vsel %vm1228_vm4, %v4714_v28, 0.0 }
0x31fc   :  { %v3644_v53 = vsel %vm1228_vm4, %v4716_v47, 0.0 }
0x31fd   :  { %v3639_v44 = vadd.f32 %v3638_v5, %v3637_v37 }
0x31ff   :  { %v3641_v48 = vadd.f32 %v3640_v23, %v3639_v44 }
0x3201   :  { %v3643_v21 = vadd.f32 %v3642_v57, %v3641_v48 }
0x3203   :  { %v3645_v15 = vadd.f32 %v3644_v53, %v3643_v21  ;;  %v4429_v21 = vsel %vm3825_vm11, 1.0, %v6988_v45  ;;  %vm4219_vm11 = vcmp.eq.s32.totalorder %v4980_v10, 61 }
0x3205   :  { %4717 = vrcp.f32 %v3645_v15 }
0x320b   :  { %v4718_v32 = vpop.eup %4717 }
0x320c   :  { %v3649_v61 = vmul.f32 %v4718_v32, %v4706_v60  ;;  %v3648_v59 = vmul.f32 %v4718_v32, %v4704_v17  ;;  %v3647_v1 = vmul.f32 %v4718_v32, %v4702_v4  ;;  %v3652_v35 = vmul.f32 %v4718_v32, %v4712_v13 }
0x320d   :  { %v3650_v54 = vmul.f32 %v4718_v32, %v4708_v56  ;;  %v3651_v40 = vmul.f32 %v4718_v32, %v4710_v51  ;;  %v3653_v8 = vmul.f32 %v4718_v32, %v4714_v28  ;;  %v3654_v14 = vmul.f32 %v4718_v32, %v4716_v47 }
0x320e   :  { %3667 = vperm.xlu2 %4458, %v3649_v61   ;;  %3662 = vperm.xlu0 %4457, %v3648_v59   ;;  %v4426_v17 = vsel %vm3810_vm8, 1.0, %v6988_v45  ;;  %v4427_v13 = vsel %vm3815_vm9, 1.0, %v6988_v45  ;;  %v4428_v28 = vsel %vm3820_vm10, 1.0, %v6988_v45  ;;  %vm4204_vm8 = vcmp.eq.s32.totalorder %v4980_v10, 58 }
0x320f   :  { %3657 = vperm.xlu1 %4459, %v3647_v1   ;;  %vm4209_vm9 = vcmp.eq.s32.totalorder %v4980_v10, 59  ;;  %vm4214_vm10 = vcmp.eq.s32.totalorder %v4980_v10, 60 }
0x3216   :  { %3682 = vperm.xlu2 %4458, %v3652_v35   ;;  %3672 = vperm.xlu0 %4457, %v3650_v54  }
0x3217   :  { %3677 = vperm.xlu1 %4459, %v3651_v40  }
0x321e   :  { %3719 = vrot.lane.b32.xlu2 %v6665_v11, %s4852_s30  ;;  %3687 = vperm.xlu0 %4457, %v3653_v8  }
0x321f   :  { %3692 = vperm.xlu1 %4459, %v3654_v14  }
0x3268   :  { %v3668_v58 = vpop.permute.xlu2 %3667 }
0x3269   :  { %v3813_v9 = vmul.f32 %v4426_v17, %v3668_v58  ;;  %v3697_v0 = vmul.f32 %v6667_v16, %v3668_v58 }
0x326b   :  { %v3706_v44 = vsel %vm316_vm7, %v3697_v0, 0.0 }
0x3270   :  { %v3683_v23 = vpop.permute.xlu2 %3682 }
0x3271   :  { %v3700_v1 = vmul.f32 %v6682_v26, %v3683_v23  ;;  %v3828_v54 = vmul.f32 %v4429_v21, %v3683_v23  ;;  %v4844_v21 = vld [vmem:[%s6962_s10 + $0x10] sm:$0xff] }
0x3273   :  { %v3712_v17 = vsel %vm316_vm7, %v3700_v1, 0.0  ;;  %v3859_v1 = vpop.f32.mrf.mxu2 }
0x3280   :  { %v3663_v4 = vpop.permute.xlu0 %3662 }
0x3281   :  { %v3696_v18 = vmul.f32 %v6671_v38, %v3663_v4  ;;  %v3808_v34 = vmul.f32 %v4425_v12, %v3663_v4  ;;  %v3658_v11 = vpop.permute.xlu1 %3657  ;;  %v4430_v12 = vsel %vm3830_vm12, 1.0, %v6988_v45  ;;  %v4431_v4 = vsel %vm3835_vm13, 1.0, %v6988_v45 }
0x3282   :  { %v3695_v60 = vmul.f32 %v6675_v29, %v3658_v11  ;;  %v3804_v55 = vmul.f32 %v4424_v36, %v3658_v11  ;;  %vm4224_vm12 = vcmp.eq.s32.totalorder %v4980_v10, 62  ;;  %vm4229_vm13 = vcmp.eq.s32.totalorder %v4980_v10, 63 }
0x3283   :  { %v3704_v56 = vsel %vm316_vm7, %v3696_v18, 0.0 }
0x3284   :  { %v3703_v39 = vsel %vm316_vm7, %v3695_v60, 0.0  ;;  %v3809_v51 = vadd.f32 %v3808_v34, %v3804_v55 }
0x3285   :  { %v3705_v6 = vadd.f32 %v3704_v56, %v3703_v39 }
0x3286   :  { %v3814_v37 = vadd.f32 %v3813_v9, %v3809_v51 }
0x3287   :  { %v3707_v53 = vadd.f32 %v3706_v44, %v3705_v6 }
0x3288   :  { %v3673_v5 = vpop.permute.xlu0 %3672 }
0x3289   :  { %v3698_v47 = vmul.f32 %v6690_v52, %v3673_v5  ;;  %v3818_v48 = vmul.f32 %v4427_v13, %v3673_v5  ;;  %v3678_v57 = vpop.permute.xlu1 %3677  ;;  %v6809_v5 = vpop.f32.mrf.mxu3 }
0x328a   :  { %v3699_v15 = vmul.f32 %v6686_v25, %v3678_v57  ;;  %v3823_v59 = vmul.f32 %v4428_v28, %v3678_v57  ;;  %v3720_v28 = vpop.permute.xlu2 %3719  ;;  %v3769_v57 = vadd.s32 96, %v5578_v41 }
0x328b   :  { %v3708_v32 = vsel %vm316_vm7, %v3698_v47, 0.0  ;;  %v3819_v61 = vadd.f32 %v3818_v48, %v3814_v37  ;;  %v3770_v48 = vadd.s32 96, %v5581_v42 }
0x328c   :  { %v3709_v35 = vadd.f32 %v3708_v32, %v3707_v53  ;;  %v3710_v40 = vsel %vm316_vm7, %v3699_v15, 0.0  ;;  %vm3771_vm15 = vcmp.eq.s32.totalorder %v4980_v10, %v3769_v57  ;;  %v4845_v53 = vld [vmem:[%s6962_s10 + $0x8] sm:$0xff]  ;;  %v4846_v15 = vld [vmem:[%s6962_s10] sm:$0xff] }
0x328d   :  { %v3824_v8 = vadd.f32 %v3823_v59, %v3819_v61  ;;  %vm3772_vm14 = vcmp.eq.s32.totalorder %v4980_v10, %v3770_v48  ;;  %v6834_v61 = vld [vmem:[%s6963_s12] ss:$0 sm:$0xff] }
0x328e   :  { %v3711_v14 = vadd.f32 %v3710_v40, %v3709_v35  ;;  %4421 = vmatpush.msk.msrb.mxu1 %vm3772_vm14, %v6989_v31  ;;  %v6998_v35 = vld [vmem:[#allocation8_spill] sm:$0xff]  ;;  %vm4236_vm14 = vcmask 523264  }
0x328f   :  { %v3829_v58 = vadd.f32 %v3828_v54, %v3824_v8  ;;  %v3862_v54 = vadd.f32 %v3859_v1, %v6998_v35 }
0x3290   :  { %v3688_v36 = vpop.permute.xlu0 %3687  ;;  %v3713_v60 = vadd.f32 %v3712_v17, %v3711_v14  ;;  %4422 = vmatpush.msk.msrb.mxu1 %vm3771_vm15, %v6989_v31 }
0x3291   :  { %v3701_v18 = vmul.f32 %v6701_v49, %v3688_v36  ;;  %v3833_v34 = vmul.f32 %v4430_v12, %v3688_v36  ;;  %v3693_v11 = vpop.permute.xlu1 %3692 }
0x3292   :  { %v3702_v55 = vmul.f32 %v6697_v22, %v3693_v11  ;;  %v3838_v39 = vmul.f32 %v4431_v4, %v3693_v11 }
0x3293   :  { %v3714_v56 = vsel %vm316_vm7, %v3701_v18, 0.0  ;;  %v3834_v9 = vadd.f32 %v3833_v34, %v3829_v58 }
0x3294   :  { %v3715_v51 = vadd.f32 %v3714_v56, %v3713_v60  ;;  %v3716_v0 = vsel %vm316_vm7, %v3702_v55, 0.0 }
0x3295   :  { %v3839_v6 = vadd.f32 %v3838_v39, %v3834_v9 }
0x3296   :  { %v3717_v13 = vadd.f32 %v3716_v0, %v3715_v51 }
0x3297   :  { %v6806_v37 = vadd.f32 %v3839_v6, %v6615_v43  ;;  %v4843_v43 = vld [vmem:[%s6962_s10 + $0x18] sm:$0xff] }
0x3298   :  { %4417 = vmatmul.msk.f32.vlgmr.msrb.gmra.mxu3 %vm316_vm7, %v3717_v13  ;;  %4131 = vmatpush.msra.mxu1 %v4843_v43 }
0x329a   :  { %4132 = vmatpush.msra.mxu1 %v4844_v21 }
0x329c   :  { %4133 = vmatpush.msra.mxu1 %v4845_v53 }
0x329e   :  { %4134 = vmatpush.msra.mxu1 %v4846_v15 }
0x331b   :  { %v3742_v44 = vpop.f32.mrf.mxu3 }
0x331c   :  { %v3743_v23 = vadd.f32 %v3742_v44, %v3720_v28 }
0x331e   :  { %4719 = vtanh.f32 %v3743_v23 }
0x3324   :  { %v4720_v47 = vpop.eup %4719 }
0x3325   :  { %4418 = vmatmul.msk.f32.vlgmr.msrb.gmra.mxu0 %vm316_vm7, %v4720_v47  ;;  %4433 = vmatmul.msk.f32.vlgmr.msra.gmra.mxu3 %vm316_vm7, %v4720_v47 }
0x33a2   :  { %v3766_v32 = vpop.f32.mrf.mxu0 }
0x33a3   :  { %v3767_v59 = vadd.f32 %v6834_v61, %v3766_v32 }
0x33a5   :  { %4423 = vmatmul.msk.f32.vlgmr.msrb.gmra.mxu1 %vm106_vm0, %v3767_v59 }
0x33a8   :  { %v3880_v40 = vpop.f32.mrf.mxu3 }
0x33a9   :  { %v3883_v8 = vadd.f32 %v3880_v40, %v3862_v54 }
0x33ab   :  { %4721 = vtanh.f32 %v3883_v8  ;;  %v4434_v12 = vmul.f32 -1.442695, %v3883_v8 }
0x33ad   :  { %4723 = vpow2.f32 %v4434_v12 }
0x33b1   :  { %v4722_v14 = vpop.eup %4721 }
0x33b2   :  { %3906 = vrot.lane.b32.xlu0 %v4722_v14, %s4850_s26 }
0x33b3   :  { %v4724_v58 = vpop.eup %4723 }
0x33b4   :  { %v3887_v36 = vadd.f32 1.0, %v4724_v58 }
0x33b6   :  { %4725 = vrcp.f32 %v3887_v36  ;;  %v3899_v60 = vand.u32 2147483648, %v3887_v36  ;;  %vm3893_vm2 = vweird.f32 %v3887_v36  ;;  %v3897_v55 = vand.u32 2147483647, %v3887_v36 }
0x33b8   :  { %v3900_v9 = vor.u32 1.1754944e-38, %v3899_v60  ;;  %vm3898_vm5 = vcmp.eq.f32.partialorder %v3897_v55, 8.507059e+37 }
0x33bc   :  { %v4726_v4 = vpop.eup %4725 }
0x33bd   :  { %v3889_v17 = vmul.f32 %v4726_v4, %v3887_v36  ;;  %vm3894_vm1 = vweird.f32 %v4726_v4 }
0x33be   :  { %vm3895_vm3 = vmor %vm3893_vm2, %vm3894_vm1 }
0x33bf   :  { %v3890_v18 = vsub.f32 1.0, %v3889_v17 }
0x33c1   :  { %v3891_v34 = vmul.f32 %v4726_v4, %v3890_v18 }
0x33c3   :  { %v3892_v11 = vadd.f32 %v4726_v4, %v3891_v34 }
0x33c5   :  { %v3896_v56 = vsel %vm3895_vm3, %v4726_v4, %v3892_v11 }
0x33c6   :  { %v3901_v51 = vsel %vm3898_vm5, %v3900_v9, %v3896_v56 }
0x33c7   :  { %v3904_v6 = vmul.f32 %v3901_v51, %v6654_v7 }
0x3424   :  { %v3907_v39 = vpop.permute.xlu0 %3906 }
0x3425   :  { %v3909_v0 = vmul.f32 %v3907_v39, %v3901_v51 }
0x3427   :  { %3911 = vrot.lane.b32.xlu1 %v3909_v0, %s4851_s28 }
0x3499   :  { %v3912_v13 = vpop.permute.xlu1 %3911 }
0x349a   :  { %v3914_v28 = vadd.f32 %v3912_v13, %v3904_v6 }
0x349c   :  { %4727 = vtanh.f32 %v3914_v28 }
0x34a2   :  { %v4728_v44 = vpop.eup %4727 }
0x34a3   :  { %3917 = vrot.lane.b32.xlu2 %v4728_v44, %s4850_s26 }
0x34fd   :  { %v3918_v23 = vpop.permute.xlu2 %3917 }
0x34fe   :  { %v3920_v47 = vmul.f32 %v3918_v23, %v3901_v51 }
0x3500   :  { %3922 = vrot.lane.b32.xlu0 %v3920_v47, %s4851_s28 }
0x3572   :  { %v3923_v48 = vpop.permute.xlu0 %3922 }
0x3573   :  { %4435 = vmatmul.msk.f32.vlgmr.msra.gmra.mxu0 %vm316_vm7, %v3923_v48 }
0x35f0   :  { %v6845_v57 = vpop.f32.mrf.mxu0 }
0x35f1   :  { %v3948_v43 = vmul.f32 %v6667_v16, %v6845_v57  ;;  %v3947_v7 = vmul.f32 %v6671_v38, %v6845_v57  ;;  %v3946_v21 = vmul.f32 %v6675_v29, %v6845_v57  ;;  %v3951_v59 = vmul.f32 %v6682_v26, %v6845_v57 }
0x35f2   :  { %v3950_v1 = vmul.f32 %v6686_v25, %v6845_v57  ;;  %v3949_v35 = vmul.f32 %v6690_v52, %v6845_v57  ;;  %v3953_v14 = vmul.f32 %v6697_v22, %v6845_v57  ;;  %v3952_v12 = vmul.f32 %v6701_v49, %v6845_v57 }
0x35f3   :  { %v3960_v53 = vsel %vm316_vm7, %v3948_v43, 0.0  ;;  %v3957_v15 = vsel %vm316_vm7, %v3947_v7, 0.0  ;;  %v3954_v32 = vsel %vm316_vm7, %v3946_v21, 0.0  ;;  %v3969_v54 = vsel %vm316_vm7, %v3951_v59, 0.0 }
0x35f4   :  { %3961 = vadd.xlane.f32.xlu0 %v3960_v53  ;;  %3958 = vadd.xlane.f32.xlu2 %v3957_v15  ;;  %v3966_v40 = vsel %vm316_vm7, %v3950_v1, 0.0  ;;  %v3963_v8 = vsel %vm316_vm7, %v3949_v35, 0.0  ;;  %v3975_v58 = vsel %vm316_vm7, %v3953_v14, 0.0  ;;  %v3972_v36 = vsel %vm316_vm7, %v3952_v12, 0.0 }
0x35f5   :  { %3955 = vadd.xlane.f32.xlu1 %v3954_v32 }
0x35fc   :  { %3970 = vadd.xlane.f32.xlu0 %v3969_v54  ;;  %3967 = vadd.xlane.f32.xlu2 %v3966_v40 }
0x35fd   :  { %3964 = vadd.xlane.f32.xlu1 %v3963_v8 }
0x3604   :  { %3976 = vadd.xlane.f32.xlu2 %v3975_v58 }
0x3605   :  { %3973 = vadd.xlane.f32.xlu1 %v3972_v36 }
0x3667   :  { %v3962_v4 = vpop.xlane.xlu0 %3961  ;;  %v3959_v17 = vpop.xlane.xlu2 %3958 }
0x3668   :  { %v3956_v18 = vpop.xlane.xlu1 %3955  ;;  %v3979_v9 = vadd.f32 %v6722_v2, %v3959_v17  ;;  %v3980_v0 = vadd.f32 %v6740_v63, %v3962_v4 }
0x3669   :  { %v3978_v39 = vadd.f32 %v6728_v24, %v3956_v18 }
0x366a   :  { %v3988_v48 = vsel %vm1228_vm4, %v3980_v0, -inf }
0x366f   :  { %v3968_v34 = vpop.xlane.xlu2 %3967  ;;  %v3971_v11 = vpop.xlane.xlu0 %3970 }
0x3670   :  { %v3965_v60 = vpop.xlane.xlu1 %3964  ;;  %v3983_v55 = vadd.f32 %v6710_v19, %v3971_v11  ;;  %v3982_v56 = vadd.f32 %v6716_v50, %v3968_v34  ;;  %v3987_v19 = vsel %vm1228_vm4, %v3979_v9, -inf  ;;  %v3986_v50 = vsel %vm1228_vm4, %v3978_v39, -inf }
0x3671   :  { %v3981_v51 = vadd.f32 %v6734_v27, %v3965_v60 }
0x3672   :  { %v3992_v6 = vsel %vm1228_vm4, %v3983_v55, -inf  ;;  %v3990_v13 = vsel %vm1228_vm4, %v3982_v56, -inf }
0x3673   :  { %v3993_v47 = vmax.f32 %v3987_v19, %v3992_v6  ;;  %v3991_v24 = vmax.f32 %v3986_v50, %v3990_v13  ;;  %v3989_v27 = vsel %vm1228_vm4, %v3981_v51, -inf }
0x3677   :  { %v3977_v28 = vpop.xlane.xlu2 %3976 }
0x3678   :  { %v3985_v44 = vadd.f32 %v6748_v46, %v3977_v28  ;;  %v3974_v23 = vpop.xlane.xlu1 %3973  ;;  %v3998_v46 = vmax.f32 %v3991_v24, %v3993_v47 }
0x3679   :  { %v3984_v2 = vadd.f32 %v6756_v30, %v3974_v23 }
0x367a   :  { %v3996_v63 = vsel %vm1228_vm4, %v3985_v44, -inf }
0x367b   :  { %v3997_v43 = vmax.f32 %v3989_v27, %v3996_v63  ;;  %v3994_v7 = vsel %vm1228_vm4, %v3984_v2, -inf }
0x367c   :  { %v3995_v21 = vmax.f32 %v3988_v48, %v3994_v7 }
0x367e   :  { %v3999_v53 = vmax.f32 %v3995_v21, %v3997_v43 }
0x3680   :  { %v4000_v15 = vmax.f32 %v3998_v46, %v3999_v53 }
0x3682   :  { %v4001_v32 = vsub.f32 %v3978_v39, %v4000_v15  ;;  %v4002_v59 = vsub.f32 %v3979_v9, %v4000_v15  ;;  %v4003_v1 = vsub.f32 %v3980_v0, %v4000_v15  ;;  %v4004_v35 = vsub.f32 %v3981_v51, %v4000_v15 }
0x3683   :  { %v4005_v30 = vsub.f32 %v3982_v56, %v4000_v15  ;;  %v4006_v14 = vsub.f32 %v3983_v55, %v4000_v15  ;;  %v4007_v58 = vsub.f32 %v3984_v2, %v4000_v15  ;;  %v4008_v4 = vsub.f32 %v3985_v44, %v4000_v15 }
0x3684   :  { %v4009_v54 = vmul.f32 1.442695, %v4001_v32  ;;  %v4011_v40 = vmul.f32 1.442695, %v4002_v59  ;;  %v4013_v8 = vmul.f32 1.442695, %v4003_v1 }
0x3685   :  { %v4015_v12 = vmul.f32 1.442695, %v4004_v35  ;;  %v4017_v36 = vmul.f32 1.442695, %v4005_v30  ;;  %v4019_v17 = vmul.f32 1.442695, %v4006_v14 }
0x3686   :  { %4729 = vpow2.f32 %v4009_v54  ;;  %v4021_v18 = vmul.f32 1.442695, %v4007_v58  ;;  %v4023_v60 = vmul.f32 1.442695, %v4008_v4  ;;  %v4443_v14 = vsel %vm4195_vm6, 1.0, %v6988_v45 }
0x3687   :  { %4731 = vpow2.f32 %v4011_v40 }
0x3688   :  { %4733 = vpow2.f32 %v4013_v8 }
0x3689   :  { %4735 = vpow2.f32 %v4015_v12 }
0x368a   :  { %4737 = vpow2.f32 %v4017_v36 }
0x368b   :  { %4739 = vpow2.f32 %v4019_v17 }
0x368c   :  { %v4730_v34 = vpop.eup %4729  ;;  %4741 = vpow2.f32 %v4021_v18 }
0x368d   :  { %v4732_v11 = vpop.eup %4731  ;;  %v4025_v56 = vsel %vm1228_vm4, %v4730_v34, 0.0  ;;  %4743 = vpow2.f32 %v4023_v60  ;;  %v4446_v60 = vsel %vm4209_vm9, 1.0, %v6988_v45 }
0x368e   :  { %v4734_v9 = vpop.eup %4733  ;;  %v4026_v55 = vsel %vm1228_vm4, %v4732_v11, 0.0 }
0x368f   :  { %v4736_v39 = vpop.eup %4735  ;;  %v4027_v51 = vadd.f32 %v4026_v55, %v4025_v56  ;;  %v4028_v0 = vsel %vm1228_vm4, %v4734_v9, 0.0 }
0x3690   :  { %v4738_v6 = vpop.eup %4737  ;;  %v4030_v28 = vsel %vm1228_vm4, %v4736_v39, 0.0 }
0x3691   :  { %v4029_v13 = vadd.f32 %v4028_v0, %v4027_v51  ;;  %v4740_v44 = vpop.eup %4739  ;;  %v4032_v19 = vsel %vm1228_vm4, %v4738_v6, 0.0  ;;  %v4447_v0 = vsel %vm4214_vm10, 1.0, %v6988_v45 }
0x3692   :  { %v4742_v50 = vpop.eup %4741  ;;  %v4034_v47 = vsel %vm1228_vm4, %v4740_v44, 0.0 }
0x3693   :  { %v4031_v23 = vadd.f32 %v4030_v28, %v4029_v13  ;;  %v4744_v24 = vpop.eup %4743  ;;  %v4036_v63 = vsel %vm1228_vm4, %v4742_v50, 0.0 }
0x3694   :  { %v4038_v43 = vsel %vm1228_vm4, %v4744_v24, 0.0  ;;  %vm4199_vm4 = vcmp.eq.s32.totalorder %v4980_v10, 57 }
0x3695   :  { %v4033_v2 = vadd.f32 %v4032_v19, %v4031_v23  ;;  %v4444_v8 = vsel %vm4199_vm4, 1.0, %v6988_v45 }
0x3697   :  { %v4035_v27 = vadd.f32 %v4034_v47, %v4033_v2 }
0x3699   :  { %v4037_v48 = vadd.f32 %v4036_v63, %v4035_v27 }
0x369b   :  { %v4039_v7 = vadd.f32 %v4038_v43, %v4037_v48  ;;  %v4449_v43 = vsel %vm4224_vm12, 1.0, %v6988_v45 }
0x369d   :  { %4745 = vrcp.f32 %v4039_v7 }
0x36a3   :  { %v4746_v21 = vpop.eup %4745 }
0x36a4   :  { %v4043_v46 = vmul.f32 %v4746_v21, %v4734_v9  ;;  %v4042_v53 = vmul.f32 %v4746_v21, %v4732_v11  ;;  %v4041_v15 = vmul.f32 %v4746_v21, %v4730_v34  ;;  %v4047_v32 = vmul.f32 %v4746_v21, %v4742_v50 }
0x36a5   :  { %v4046_v59 = vmul.f32 %v4746_v21, %v4740_v44  ;;  %v4044_v1 = vmul.f32 %v4746_v21, %v4736_v39  ;;  %v4045_v35 = vmul.f32 %v4746_v21, %v4738_v6  ;;  %v4048_v30 = vmul.f32 %v4746_v21, %v4744_v24 }
0x36a6   :  { %4061 = vperm.xlu2 %4458, %v4043_v46   ;;  %4056 = vperm.xlu1 %4459, %v4042_v53   ;;  %v4445_v11 = vsel %vm4204_vm8, 1.0, %v6988_v45 }
0x36a7   :  { %4051 = vperm.xlu0 %4457, %v4041_v15  }
0x36ae   :  { %4081 = vperm.xlu2 %4458, %v4047_v32   ;;  %4076 = vperm.xlu1 %4459, %v4046_v59  }
0x36af   :  { %4066 = vperm.xlu0 %4457, %v4044_v1  }
0x36b6   :  { %4113 = vrot.lane.b32.xlu1 %v6845_v57, %s4852_s30 }
0x36b7   :  { %4071 = vperm.xlu0 %4457, %v4045_v35  }
0x36bf   :  { %4086 = vperm.xlu0 %4457, %v4048_v30  }
0x3700   :  { %v4062_v4 = vpop.permute.xlu2 %4061 }
0x3701   :  { %v4207_v55 = vmul.f32 %v4445_v11, %v4062_v4 }
0x3708   :  { %v4082_v47 = vpop.permute.xlu2 %4081 }
0x3709   :  { %v4095_v21 = vmul.f32 %v6701_v49, %v4082_v47  ;;  %v4227_v15 = vmul.f32 %v4449_v43, %v4082_v47 }
0x370b   :  { %v4108_v59 = vsel %vm316_vm7, %v4095_v21, 0.0 }
0x3718   :  { %v4057_v40 = vpop.permute.xlu1 %4056 }
0x3719   :  { %v4052_v54 = vpop.permute.xlu0 %4051  ;;  %v4090_v12 = vmul.f32 %v6671_v38, %v4057_v40  ;;  %v4202_v57 = vmul.f32 %v4444_v8, %v4057_v40  ;;  %v4091_v38 = vmul.f32 %v6667_v16, %v4062_v4  ;;  %v4448_v16 = vsel %vm4219_vm11, 1.0, %v6988_v45 }
0x371a   :  { %v4089_v58 = vmul.f32 %v6675_v29, %v4052_v54  ;;  %v4198_v36 = vmul.f32 %v4443_v14, %v4052_v54 }
0x371b   :  { %v4098_v18 = vsel %vm316_vm7, %v4090_v12, 0.0  ;;  %v4100_v6 = vsel %vm316_vm7, %v4091_v38, 0.0  ;;  %v4163_v12 = vadd.s32 112, %v5578_v41  ;;  %v6999_v41 = vld [vmem:[#allocation9_spill] sm:$0xff] }
0x371c   :  { %v4097_v34 = vsel %vm316_vm7, %v4089_v58, 0.0  ;;  %v4203_v56 = vadd.f32 %v4202_v57, %v4198_v36 }
0x371d   :  { %v4099_v9 = vadd.f32 %v4098_v18, %v4097_v34  ;;  %vm4165_vm1 = vcmp.eq.s32.totalorder %v4980_v10, %v4163_v12 }
0x371e   :  { %v4208_v13 = vadd.f32 %v4207_v55, %v4203_v56 }
0x3720   :  { %v4077_v51 = vpop.permute.xlu1 %4076 }
0x3721   :  { %v4067_v17 = vpop.permute.xlu0 %4066  ;;  %v4094_v23 = vmul.f32 %v6682_v26, %v4077_v51  ;;  %v4222_v27 = vmul.f32 %v4448_v16, %v4077_v51 }
0x3722   :  { %v4092_v29 = vmul.f32 %v6690_v52, %v4067_v17  ;;  %v4212_v39 = vmul.f32 %v4446_v60, %v4067_v17  ;;  %v4101_v52 = vadd.f32 %v4100_v6, %v4099_v9 }
0x3723   :  { %v4106_v46 = vsel %vm316_vm7, %v4094_v23, 0.0 }
0x3724   :  { %v4102_v28 = vsel %vm316_vm7, %v4092_v29, 0.0  ;;  %v4213_v19 = vadd.f32 %v4212_v39, %v4208_v13 }
0x3725   :  { %v4103_v24 = vadd.f32 %v4102_v28, %v4101_v52 }
0x3729   :  { %v4072_v44 = vpop.permute.xlu0 %4071 }
0x372a   :  { %v4093_v50 = vmul.f32 %v6686_v25, %v4072_v44  ;;  %v4217_v2 = vmul.f32 %v4447_v0, %v4072_v44  ;;  %v4450_v25 = vsel %vm4229_vm13, 1.0, %v6988_v45  ;;  %v4164_v45 = vadd.s32 112, %v5581_v42 }
0x372c   :  { %v4104_v63 = vsel %vm316_vm7, %v4093_v50, 0.0  ;;  %v4218_v48 = vadd.f32 %v4217_v2, %v4213_v19  ;;  %vm4166_vm15 = vcmp.eq.s32.totalorder %v4980_v10, %v4164_v45  ;;  %v1829_v10 = vadd.f32 %v5999_v20, %v6999_v41 }
0x372d   :  { %v4105_v7 = vadd.f32 %v4104_v63, %v4103_v24  ;;  %4440 = vmatpush.msk.msrb.mxu3 %vm4166_vm15, %v6989_v31 }
0x372e   :  { %v4223_v26 = vadd.f32 %v4222_v27, %v4218_v48  ;;  %v2224_v17 = vadd.f32 %v6195_v33, %v1829_v10 }
0x372f   :  { %v4107_v53 = vadd.f32 %v4106_v46, %v4105_v7  ;;  %4441 = vmatpush.msk.msrb.mxu3 %vm4165_vm1, %v6989_v31 }
0x3730   :  { %v4228_v1 = vadd.f32 %v4227_v15, %v4223_v26  ;;  %v2618_v31 = vadd.f32 %v6422_v62, %v2224_v17 }
0x3731   :  { %v4087_v32 = vpop.permute.xlu0 %4086  ;;  %v4109_v54 = vadd.f32 %v4108_v59, %v4107_v53 }
0x3732   :  { %v4096_v35 = vmul.f32 %v6697_v22, %v4087_v32  ;;  %v4232_v30 = vmul.f32 %v4450_v25, %v4087_v32  ;;  %v3797_v22 = vpop.f32.mrf.mxu1  ;;  %v3012_v18 = vadd.f32 %v6618_v3, %v2618_v31 }
0x3734   :  { %v4110_v40 = vsel %vm316_vm7, %v4096_v35, 0.0  ;;  %v4233_v8 = vadd.f32 %v4232_v30, %v4228_v1  ;;  %v3406_v34 = vadd.f32 %v6809_v5, %v3012_v18 }
0x3735   :  { %v4111_v49 = vadd.f32 %v4110_v40, %v4109_v54 }
0x3736   :  { %v4234_v14 = vadd.f32 %v4233_v8, %v6806_v37  ;;  %v4114_v37 = vpop.permute.xlu1 %4113  ;;  %v3800_v11 = vadd.f32 %v3797_v22, %v3406_v34 }
0x3737   :  { %4436 = vmatmul.msk.f32.vlgmr.msra.gmra.mxu1 %vm316_vm7, %v4111_v49 }
0x3738   :  { %4237 = vst.msk [vmem:[%s6965_s14] sm:$0xff] %vm4236_vm14, %v4234_v14 }
0x37b4   :  { %v4136_v58 = vpop.f32.mrf.mxu1 }
0x37b5   :  { %v4137_v57 = vadd.f32 %v4136_v58, %v4114_v37 }
0x37b7   :  { %4747 = vtanh.f32 %v4137_v57 }
0x37bd   :  { %v4748_v36 = vpop.eup %4747 }
0x37be   :  { %4437 = vmatmul.msk.f32.vlgmr.msrb.gmra.mxu2 %vm316_vm7, %v4748_v36 }
0x3841   :  { %v4160_v4 = vpop.f32.mrf.mxu2 }
0x3842   :  { %v4161_v42 = vadd.f32 %v6834_v61, %v4160_v4 }
0x3844   :  { %4442 = vmatmul.msk.f32.vlgmr.msrb.gmra.mxu3 %vm106_vm0, %v4161_v42 }
0x38c7   :  { %v4191_v60 = vpop.f32.mrf.mxu3 }
0x38c8   :  { %v4194_v38 = vadd.f32 %v4191_v60, %v3800_v11 }
0x38ca   :  { %4235 = vst [vmem:[%s6966_s13] sm:$0xff] %v4194_v38 }

</bundles_post_ra>
